<compile_context>
chip_gen: v7x
topology: tpu7x:2x2x1
jax: 0.10.0
libtpu: 0.0.40
codegen_flags: <defaults>
</compile_context>

<pallas_src>
import functools

import jax
import jax.numpy as jnp
import numpy as np
from jax import lax
from jax.experimental import pallas as pl
from jax.experimental.pallas import tpu as pltpu


# ----------------------------------------------------------------------------
# Static geometry of the flat zero-padded activation layout
# ----------------------------------------------------------------------------
def _layer_dims(H, W, chans, Bt):
    """Per-layer geometry.  Activations are stored row-major-flattened as
    (Bt * (Hi+2) * (Wi+2) + tail, C): one zero-padded (Hi+2)x(Wi+2) block per batch
    element, plus a small tail so the largest tap shift of the stacked matmul stays
    in bounds (it only ever feeds junk rows that are never read)."""
    dims = []
    for i in range(5):
        Hi, Wi = H >> i, W >> i
        Wpi = Wi + 2
        blk = (Hi + 2) * Wpi          # flat rows per batch-element block
        Mq = Bt * blk                 # rows of the conv-output buffer
        tail = 2 * Wpi + 2            # extra rows read by the largest tap shift
        dims.append(dict(H=Hi, W=Wi, Wp=Wpi, blk=blk, Mq=Mq, Mp=Mq + tail,
                         Cin=chans[i], Cout=chans[i + 1]))
    return dims


# ----------------------------------------------------------------------------
# Fused kernel
# ----------------------------------------------------------------------------
def _make_kernel(dims, Bt):
    def kernel(x_ref,
               w0, s0, w1, s1, w2, s2, w3, s3, w4, s4,
               fw1, fb1, fw2, fb2, fw3, fb3,
               o_ref, feat_ref,
               xp1, xp2, xp3, xp4,
               p0, p1, p2, p3, p4,
               q0, q1, q2, q3, q4):
        xps = (None, xp1, xp2, xp3, xp4)   # padded layer inputs (layer 0 = input block)
        ps = (p0, p1, p2, p3, p4)          # stacked-N matmul outputs
        qs = (q0, q1, q2, q3, q4)          # conv+BN+ReLU outputs (flat padded layout)
        ws = (w0, w1, w2, w3, w4)
        ss = (s0, s1, s2, s3, s4)

        def stride2(ref, start, n):
            if n > 1:
                return ref[pl.ds(start, n, stride=2), :]
            return ref[start:start + 1, :]

        for i in range(5):
            d = dims[i]
            Hp2, Wp, Co, Mq = d["H"] + 2, d["Wp"], d["Cout"], d["Mq"]

            # ---- (1) whole-layer 3x3 conv as ONE stacked-N MXU matmul (bf16 -> f32) ----
            lhs = (x_ref[0] if i == 0 else xps[i][...]).astype(jnp.bfloat16)
            ps[i][...] = jnp.dot(lhs, ws[i][...], preferred_element_type=jnp.float32)

            # ---- (2) combine the 9 shifted tap column-blocks (accumulate in VMEM) ----
            q = qs[i]
            for t in range(9):
                off = (t // 3) * Wp + (t % 3)
                sl = ps[i][off:off + Mq, t * Co:(t + 1) * Co]
                if t == 0:
                    q[...] = sl
                else:
                    q[...] += sl
            # folded-BN shift + ReLU, hoisted to once per layer (f32)
            q[...] = jnp.maximum(q[...] + ss[i][...], 0.0)

            # ---- (3) 2x2 max-pool (stride 2) into the next layer's padded input ----
            if i < 4:
                dn = dims[i + 1]
                Hn, Wn, Wpn, Hn2 = dn["H"], dn["W"], dn["Wp"], dn["H"] + 2
                dst = xps[i + 1]
                dst[...] = jnp.zeros_like(dst)   # padding border + junk tail
                for b in range(Bt):
                    for ph in range(Hn):
                        r0 = (b * Hp2 + 2 * ph) * Wp
                        r1 = r0 + Wp
                        top = jnp.maximum(stride2(q, r0, Wn), stride2(q, r0 + 1, Wn))
                        bot = jnp.maximum(stride2(q, r1, Wn), stride2(q, r1 + 1, Wn))
                        a0 = (b * Hn2 + ph + 1) * Wpn + 1
                        dst[a0:a0 + Wn, :] = jnp.maximum(top, bot)

        # ---- (4) global average pool -> (Bt, base_channels*16) ----
        d4 = dims[4]
        rows = []
        for b in range(Bt):
            acc = None
            for h in range(d4["H"]):
                base = (b * (d4["H"] + 2) + h) * d4["Wp"]
                rsum = jnp.sum(qs[4][base:base + d4["W"], :], axis=0, keepdims=True)
                acc = rsum if acc is None else acc + rsum
            rows.append(acc)
        feat = rows[0] if Bt == 1 else jnp.concatenate(rows, axis=0)
        feat = feat * (1.0 / float(d4["H"] * d4["W"]))
        feat_ref[0] = feat

        # ---- (5) classifier: Linear -> ReLU -> Linear -> ReLU -> Linear ----
        # TODO(synk): Dropout is an inference-time no-op (identity) here.
        h1 = jnp.maximum(jnp.dot(feat.astype(jnp.bfloat16), fw1[...],
                                 preferred_element_type=jnp.float32) + fb1[...], 0.0)
        h2 = jnp.maximum(jnp.dot(h1.astype(jnp.bfloat16), fw2[...],
                                 preferred_element_type=jnp.float32) + fb2[...], 0.0)
        out = jnp.dot(h2.astype(jnp.bfloat16), fw3[...],
                      preferred_element_type=jnp.float32) + fb3[...]
        o_ref[0] = out

    return kernel


# ----------------------------------------------------------------------------
# Wrapper: single pallas_call for the whole network
# ----------------------------------------------------------------------------
@functools.partial(jax.jit, static_argnames=("num_grid_steps",))
def _forward_impl(x_nchw, params, num_grid_steps=None):
    B, Cin, H, W = x_nchw.shape
    if H % 16 != 0 or W % 16 != 0:
        raise ValueError("spatial dims must be multiples of 16 (four 2x2 max-pools)")
    conv_w = [params[f"conv{i}_w"] for i in range(5)]
    if Cin != conv_w[0].shape[1]:
        raise ValueError("input channel mismatch")
    G = num_grid_steps if num_grid_steps is not None else (2 if B % 2 == 0 else 1)
    if B % G != 0:
        raise ValueError("batch must be divisible by num_grid_steps")
    Bt = B // G

    cin_pad = -(-Cin // 8) * 8               # pad the first conv's K to a multiple of 8
    chans = [cin_pad] + [w.shape[2] for w in conv_w]
    dims = _layer_dims(H, W, chans, Bt)
    num_classes = params["fc3_w"].shape[1]
    feat_dim = chans[5]

    # Fold eval-mode BN scale into the conv weights, stack the 9 taps along N, cast bf16.
    wstk, shifts = [], []
    for i in range(5):
        w = conv_w[i] * params[f"bn{i}_scale"][:, None, :]           # (9, Ci, Co)
        if i == 0 and cin_pad != Cin:
            w = jnp.pad(w, ((0, 0), (0, cin_pad - Cin), (0, 0)))
        ci, co = w.shape[1], w.shape[2]
        wstk.append(jnp.transpose(w, (1, 0, 2)).reshape(ci, 9 * co).astype(jnp.bfloat16))
        shifts.append(params[f"bn{i}_shift"].astype(jnp.float32))
    fw = [params[f"fc{j}_w"].astype(jnp.bfloat16) for j in (1, 2, 3)]
    fb = [params[f"fc{j}_b"].astype(jnp.float32) for j in (1, 2, 3)]

    # Input: NCHW -> flat zero-padded row-major layout.  XLA fuses the pad/reshape into
    # the NCHW->NHWC transpose copy, so the kernel does zero staging work.
    x = jnp.transpose(x_nchw, (0, 2, 3, 1)).astype(jnp.float32)       # (B, H, W, Cin)
    if cin_pad != Cin:
        x = jnp.pad(x, ((0, 0), (0, 0), (0, 0), (0, cin_pad - Cin)))
    x = jnp.pad(x, ((0, 0), (1, 1), (1, 1), (0, 0)))                   # (B, H+2, W+2, Cp)
    x = x.reshape(G, Bt * dims[0]["blk"], cin_pad)
    x = jnp.pad(x, ((0, 0), (0, dims[0]["Mp"] - Bt * dims[0]["blk"]), (0, 0)))

    in_specs = [pl.BlockSpec((1, dims[0]["Mp"], cin_pad), lambda g: (g, 0, 0))]
    operands = [x]
    for i in range(5):
        in_specs.append(pl.BlockSpec(wstk[i].shape, lambda g: (0, 0)))
        operands.append(wstk[i])
        in_specs.append(pl.BlockSpec(shifts[i].shape, lambda g: (0, 0)))
        operands.append(shifts[i])
    for j in range(3):
        in_specs.append(pl.BlockSpec(fw[j].shape, lambda g: (0, 0)))
        operands.append(fw[j])
        in_specs.append(pl.BlockSpec(fb[j].shape, lambda g: (0, 0)))
        operands.append(fb[j])

    scratch = []
    for i in range(1, 5):      # padded layer inputs (layer 0's lives in the input block)
        scratch.append(pltpu.VMEM((dims[i]["Mp"], dims[i]["Cin"]), jnp.float32))
    for i in range(5):         # stacked-N matmul outputs
        scratch.append(pltpu.VMEM((dims[i]["Mp"], 9 * dims[i]["Cout"]), jnp.float32))
    for i in range(5):         # conv(+BN+ReLU) outputs, read by pooling / GAP
        scratch.append(pltpu.VMEM((dims[i]["Mq"], dims[i]["Cout"]), jnp.float32))

    out_shape = (jax.ShapeDtypeStruct((G, Bt, num_classes), jnp.float32),
                 jax.ShapeDtypeStruct((G, Bt, feat_dim), jnp.float32))
    out_specs = (pl.BlockSpec((1, Bt, num_classes), lambda g: (g, 0, 0)),
                 pl.BlockSpec((1, Bt, feat_dim), lambda g: (g, 0, 0)))

    logits, feat = pl.pallas_call(
        _make_kernel(dims, Bt),
        out_shape=out_shape,
        grid=(G,),
        in_specs=in_specs,
        out_specs=out_specs,
        scratch_shapes=scratch,
        compiler_params=pltpu.CompilerParams(
            dimension_semantics=("parallel",),
            vmem_limit_bytes=32 * 1024 * 1024),
    )(*operands)
    return logits.reshape(B, num_classes), feat.reshape(B, feat_dim)


def melspec_cnn_forward(x_nchw, params, num_grid_steps=None):
    """Forward pass matching MelSpecCNNWatermelon.forward (inference mode).
    x_nchw: (B, C, H, W) like the PyTorch module; returns (B, num_classes)."""
    logits, _ = _forward_impl(x_nchw, params, num_grid_steps=num_grid_steps)
    return logits


# ----------------------------------------------------------------------------
# Deterministic parameter init (mirrors _initialize_weights shapes/semantics)
# ----------------------------------------------------------------------------
def init_params(key, input_channels=3, base_channels=8, num_classes=1):
    bn_eps = 1e-5
    chans = [input_channels, base_channels, base_channels * 2, base_channels * 4,
             base_channels * 8, base_channels * 16]
    params = {}
    for i in range(5):
        cin, cout = chans[i], chans[i + 1]
        key, k = jax.random.split(key)
        # kaiming_normal_(mode='fan_out', relu): std = sqrt(2 / (Cout * 3 * 3))
        std = (2.0 / (cout * 9)) ** 0.5
        # stored as (9, Cin, Cout): tap-major (torch layout is (Cout, Cin, 3, 3))
        params[f"conv{i}_w"] = (std * jax.random.normal(k, (9, cin, cout))).astype(jnp.float32)
        # BN eval with fresh stats: scale = gamma/sqrt(var+eps) = 1/sqrt(1+eps), shift = 0
        params[f"bn{i}_scale"] = jnp.full((1, cout), 1.0 / (1.0 + bn_eps) ** 0.5, jnp.float32)
        params[f"bn{i}_shift"] = jnp.zeros((1, cout), jnp.float32)

    fc_dims = [(base_channels * 16, base_channels * 4),
               (base_channels * 4, base_channels),
               (base_channels, num_classes)]
    for j, (fin, fout) in enumerate(fc_dims, start=1):
        key, k = jax.random.split(key)
        # normal(0, 0.01) weights, zero bias; stored transposed as (in, out)
        params[f"fc{j}_w"] = (0.01 * jax.random.normal(k, (fin, fout))).astype(jnp.float32)
        params[f"fc{j}_b"] = jnp.zeros((1, fout), jnp.float32)
    return params


# ----------------------------------------------------------------------------
# Pure-JAX f32 reference (correctness check only)
# ----------------------------------------------------------------------------
def reference_forward(x_nchw, params):
    x = jnp.transpose(x_nchw, (0, 2, 3, 1)).astype(jnp.float32)
    feat = None
    for i in range(5):
        w = params[f"conv{i}_w"]
        cin, cout = w.shape[1], w.shape[2]
        w4 = w.reshape(3, 3, cin, cout)  # HWIO
        y = lax.conv_general_dilated(x, w4, (1, 1), "SAME",
                                     dimension_numbers=("NHWC", "HWIO", "NHWC"))
        y = y * params[f"bn{i}_scale"][0] + params[f"bn{i}_shift"][0]
        y = jnp.maximum(y, 0.0)
        if i < 4:
            x = lax.reduce_window(y, -jnp.inf, lax.max, (1, 2, 2, 1), (1, 2, 2, 1), "VALID")
        else:
            feat = jnp.mean(y, axis=(1, 2))
    h = jnp.maximum(feat @ params["fc1_w"] + params["fc1_b"][0], 0.0)
    h = jnp.maximum(h @ params["fc2_w"] + params["fc2_b"][0], 0.0)
    return h @ params["fc3_w"] + params["fc3_b"][0], feat


# ----------------------------------------------------------------------------
# Main
# ----------------------------------------------------------------------------
if __name__ == "__main__":
    key = jax.random.PRNGKey(0)
    key, kx = jax.random.split(key)

    # Small shapes consistent with the module: batch=2, input_channels=3,
    # 16x16 "mel-spectrogram", base_channels=8, num_classes=1.
    B, C, H, W = 2, 3, 16, 16
    x = jax.random.normal(kx, (B, C, H, W), jnp.float32)
    params = init_params(key, input_channels=C, base_channels=8, num_classes=1)

    ref_out, ref_feat = reference_forward(x, params)
    ref_out = np.asarray(jax.block_until_ready(ref_out))
    ref_feat = np.asarray(ref_feat)

    # grid=(2,): one batch element per grid step (keeps both v7x TensorCores busy).
    out2, feat2 = _forward_impl(x, params, num_grid_steps=2)
    out2 = np.asarray(jax.block_until_ready(out2))
    assert out2.shape == (B, 1), out2.shape
    np.testing.assert_allclose(np.asarray(feat2), ref_feat, rtol=8e-2, atol=3e-2)
    np.testing.assert_allclose(out2, ref_out, rtol=1.5e-1, atol=1e-4)

    # grid=(1,): whole batch folded into the matmul M dimension (v5e/v6e single core).
    out1, feat1 = _forward_impl(x, params, num_grid_steps=1)
    out1 = np.asarray(jax.block_until_ready(out1))
    np.testing.assert_allclose(np.asarray(feat1), ref_feat, rtol=8e-2, atol=3e-2)
    np.testing.assert_allclose(out1, ref_out, rtol=1.5e-1, atol=1e-4)

    # Public API (logits only).
    out = jax.block_until_ready(melspec_cnn_forward(x, params))
    assert out.shape == (B, 1), out.shape

    print("KERNEL_OK")
</pallas_src>

<mosaic_0001>
module attributes {stable_mosaic.version = 11 : i64} {
  func.func @kernel(%arg0: i32, %arg1: memref<1x362x8xf32, #tpu.memory_space<vmem>>, %arg2: memref<8x72xbf16, #tpu.memory_space<vmem>>, %arg3: memref<1x8xf32, #tpu.memory_space<vmem>>, %arg4: memref<8x144xbf16, #tpu.memory_space<vmem>>, %arg5: memref<1x16xf32, #tpu.memory_space<vmem>>, %arg6: memref<16x288xbf16, #tpu.memory_space<vmem>>, %arg7: memref<1x32xf32, #tpu.memory_space<vmem>>, %arg8: memref<32x576xbf16, #tpu.memory_space<vmem>>, %arg9: memref<1x64xf32, #tpu.memory_space<vmem>>, %arg10: memref<64x1152xbf16, #tpu.memory_space<vmem>>, %arg11: memref<1x128xf32, #tpu.memory_space<vmem>>, %arg12: memref<128x32xbf16, #tpu.memory_space<vmem>>, %arg13: memref<1x32xf32, #tpu.memory_space<vmem>>, %arg14: memref<32x8xbf16, #tpu.memory_space<vmem>>, %arg15: memref<1x8xf32, #tpu.memory_space<vmem>>, %arg16: memref<8x1xbf16, #tpu.memory_space<vmem>>, %arg17: memref<1x1xf32, #tpu.memory_space<vmem>>, %arg18: memref<1x1x1xf32, #tpu.memory_space<vmem>>, %arg19: memref<1x1x128xf32, #tpu.memory_space<vmem>>, %arg20: memref<122x8xf32, #tpu.memory_space<vmem>>, %arg21: memref<50x16xf32, #tpu.memory_space<vmem>>, %arg22: memref<26x32xf32, #tpu.memory_space<vmem>>, %arg23: memref<17x64xf32, #tpu.memory_space<vmem>>, %arg24: memref<362x72xf32, #tpu.memory_space<vmem>>, %arg25: memref<122x144xf32, #tpu.memory_space<vmem>>, %arg26: memref<50x288xf32, #tpu.memory_space<vmem>>, %arg27: memref<26x576xf32, #tpu.memory_space<vmem>>, %arg28: memref<17x1152xf32, #tpu.memory_space<vmem>>, %arg29: memref<324x8xf32, #tpu.memory_space<vmem>>, %arg30: memref<100x16xf32, #tpu.memory_space<vmem>>, %arg31: memref<36x32xf32, #tpu.memory_space<vmem>>, %arg32: memref<16x64xf32, #tpu.memory_space<vmem>>, %arg33: memref<9x128xf32, #tpu.memory_space<vmem>>) attributes {dimension_semantics = [#tpu.dimension_semantics<parallel>], iteration_bounds = array<i64: 2>, scalar_prefetch = 0 : i64, scratch_operands = 14 : i64, tpu.core_type = #tpu.core_type<tc>, window_params = [{transform_indices = @transform_0, window_bounds = array<i64: 1, 362, 8>}, {pipeline_mode = #tpu.pipeline_mode<synchronous>, transform_indices = @transform_1, window_bounds = array<i64: 8, 72>}, {pipeline_mode = #tpu.pipeline_mode<synchronous>, transform_indices = @transform_2, window_bounds = array<i64: 1, 8>}, {pipeline_mode = #tpu.pipeline_mode<synchronous>, transform_indices = @transform_3, window_bounds = array<i64: 8, 144>}, {pipeline_mode = #tpu.pipeline_mode<synchronous>, transform_indices = @transform_4, window_bounds = array<i64: 1, 16>}, {pipeline_mode = #tpu.pipeline_mode<synchronous>, transform_indices = @transform_5, window_bounds = array<i64: 16, 288>}, {pipeline_mode = #tpu.pipeline_mode<synchronous>, transform_indices = @transform_6, window_bounds = array<i64: 1, 32>}, {pipeline_mode = #tpu.pipeline_mode<synchronous>, transform_indices = @transform_7, window_bounds = array<i64: 32, 576>}, {pipeline_mode = #tpu.pipeline_mode<synchronous>, transform_indices = @transform_8, window_bounds = array<i64: 1, 64>}, {pipeline_mode = #tpu.pipeline_mode<synchronous>, transform_indices = @transform_9, window_bounds = array<i64: 64, 1152>}, {pipeline_mode = #tpu.pipeline_mode<synchronous>, transform_indices = @transform_10, window_bounds = array<i64: 1, 128>}, {pipeline_mode = #tpu.pipeline_mode<synchronous>, transform_indices = @transform_11, window_bounds = array<i64: 128, 32>}, {pipeline_mode = #tpu.pipeline_mode<synchronous>, transform_indices = @transform_12, window_bounds = array<i64: 1, 32>}, {pipeline_mode = #tpu.pipeline_mode<synchronous>, transform_indices = @transform_13, window_bounds = array<i64: 32, 8>}, {pipeline_mode = #tpu.pipeline_mode<synchronous>, transform_indices = @transform_14, window_bounds = array<i64: 1, 8>}, {pipeline_mode = #tpu.pipeline_mode<synchronous>, transform_indices = @transform_15, window_bounds = array<i64: 8, 1>}, {pipeline_mode = #tpu.pipeline_mode<synchronous>, transform_indices = @transform_16, window_bounds = array<i64: 1, 1>}, {transform_indices = @transform_17, window_bounds = array<i64: 1, 1, 1>}, {transform_indices = @transform_18, window_bounds = array<i64: 1, 1, 128>}]} {
    %c0 = arith.constant 0 : index
    %c0_0 = arith.constant 0 : index
    %c0_1 = arith.constant 0 : index
    %0 = vector.load %arg1[%c0, %c0_0, %c0_1] : memref<1x362x8xf32, #tpu.memory_space<vmem>>, vector<1x362x8xf32>
    %1 = vector.shape_cast %0 : vector<1x362x8xf32> to vector<362x8xf32>
    %2 = arith.truncf %1 : vector<362x8xf32> to vector<362x8xbf16>
    %c0_2 = arith.constant 0 : index
    %c0_3 = arith.constant 0 : index
    %3 = vector.load %arg2[%c0_2, %c0_3] : memref<8x72xbf16, #tpu.memory_space<vmem>>, vector<8x72xbf16>
    %cst = arith.constant dense<0.000000e+00> : vector<362x72xf32>
    %4 = tpu.matmul %2, %3, %cst {dimension_numbers = #tpu.dot_dimension_numbers<[1], [0], [0], [1], [0, 0, 1, 1], [], []>} : vector<362x8xbf16>, vector<8x72xbf16>, vector<362x72xf32> -> vector<362x72xf32>
    %c0_4 = arith.constant 0 : index
    %c0_5 = arith.constant 0 : index
    %5 = vector.load %arg24[%c0_4, %c0_5] : memref<362x72xf32, #tpu.memory_space<vmem>>, vector<362x72xf32>
    tpu.vector_store %arg24[%c0_4, %c0_5], %4 {strides = array<i32>} : memref<362x72xf32, #tpu.memory_space<vmem>>, vector<362x72xf32>,
    %c0_6 = arith.constant 0 : index
    %c0_7 = arith.constant 0 : index
    %6 = vector.load %arg24[%c0_6, %c0_7] : memref<362x72xf32, #tpu.memory_space<vmem>>, vector<324x8xf32>
    %c0_8 = arith.constant 0 : index
    %c0_9 = arith.constant 0 : index
    %7 = vector.load %arg29[%c0_8, %c0_9] : memref<324x8xf32, #tpu.memory_space<vmem>>, vector<324x8xf32>
    tpu.vector_store %arg29[%c0_8, %c0_9], %6 {strides = array<i32>} : memref<324x8xf32, #tpu.memory_space<vmem>>, vector<324x8xf32>,
    %c1 = arith.constant 1 : index
    %c8 = arith.constant 8 : index
    %8 = vector.load %arg24[%c1, %c8] : memref<362x72xf32, #tpu.memory_space<vmem>>, vector<324x8xf32>
    %c0_10 = arith.constant 0 : index
    %c0_11 = arith.constant 0 : index
    %9 = vector.load %arg29[%c0_10, %c0_11] : memref<324x8xf32, #tpu.memory_space<vmem>>, vector<324x8xf32>
    %10 = arith.addf %9, %8 : vector<324x8xf32>
    %c0_12 = arith.constant 0 : index
    %c0_13 = arith.constant 0 : index
    %11 = vector.load %arg29[%c0_12, %c0_13] : memref<324x8xf32, #tpu.memory_space<vmem>>, vector<324x8xf32>
    tpu.vector_store %arg29[%c0_12, %c0_13], %10 {strides = array<i32>} : memref<324x8xf32, #tpu.memory_space<vmem>>, vector<324x8xf32>,
    %c2 = arith.constant 2 : index
    %c16 = arith.constant 16 : index
    %12 = vector.load %arg24[%c2, %c16] : memref<362x72xf32, #tpu.memory_space<vmem>>, vector<324x8xf32>
    %c0_14 = arith.constant 0 : index
    %c0_15 = arith.constant 0 : index
    %13 = vector.load %arg29[%c0_14, %c0_15] : memref<324x8xf32, #tpu.memory_space<vmem>>, vector<324x8xf32>
    %14 = arith.addf %13, %12 : vector<324x8xf32>
    %c0_16 = arith.constant 0 : index
    %c0_17 = arith.constant 0 : index
    %15 = vector.load %arg29[%c0_16, %c0_17] : memref<324x8xf32, #tpu.memory_space<vmem>>, vector<324x8xf32>
    tpu.vector_store %arg29[%c0_16, %c0_17], %14 {strides = array<i32>} : memref<324x8xf32, #tpu.memory_space<vmem>>, vector<324x8xf32>,
    %c18 = arith.constant 18 : index
    %c24 = arith.constant 24 : index
    %16 = vector.load %arg24[%c18, %c24] : memref<362x72xf32, #tpu.memory_space<vmem>>, vector<324x8xf32>
    %c0_18 = arith.constant 0 : index
    %c0_19 = arith.constant 0 : index
    %17 = vector.load %arg29[%c0_18, %c0_19] : memref<324x8xf32, #tpu.memory_space<vmem>>, vector<324x8xf32>
    %18 = arith.addf %17, %16 : vector<324x8xf32>
    %c0_20 = arith.constant 0 : index
    %c0_21 = arith.constant 0 : index
    %19 = vector.load %arg29[%c0_20, %c0_21] : memref<324x8xf32, #tpu.memory_space<vmem>>, vector<324x8xf32>
    tpu.vector_store %arg29[%c0_20, %c0_21], %18 {strides = array<i32>} : memref<324x8xf32, #tpu.memory_space<vmem>>, vector<324x8xf32>,
    %c19 = arith.constant 19 : index
    %c32 = arith.constant 32 : index
    %20 = vector.load %arg24[%c19, %c32] : memref<362x72xf32, #tpu.memory_space<vmem>>, vector<324x8xf32>
    %c0_22 = arith.constant 0 : index
    %c0_23 = arith.constant 0 : index
    %21 = vector.load %arg29[%c0_22, %c0_23] : memref<324x8xf32, #tpu.memory_space<vmem>>, vector<324x8xf32>
    %22 = arith.addf %21, %20 : vector<324x8xf32>
    %c0_24 = arith.constant 0 : index
    %c0_25 = arith.constant 0 : index
    %23 = vector.load %arg29[%c0_24, %c0_25] : memref<324x8xf32, #tpu.memory_space<vmem>>, vector<324x8xf32>
    tpu.vector_store %arg29[%c0_24, %c0_25], %22 {strides = array<i32>} : memref<324x8xf32, #tpu.memory_space<vmem>>, vector<324x8xf32>,
    %c20 = arith.constant 20 : index
    %c40 = arith.constant 40 : index
    %24 = vector.load %arg24[%c20, %c40] : memref<362x72xf32, #tpu.memory_space<vmem>>, vector<324x8xf32>
    %c0_26 = arith.constant 0 : index
    %c0_27 = arith.constant 0 : index
    %25 = vector.load %arg29[%c0_26, %c0_27] : memref<324x8xf32, #tpu.memory_space<vmem>>, vector<324x8xf32>
    %26 = arith.addf %25, %24 : vector<324x8xf32>
    %c0_28 = arith.constant 0 : index
    %c0_29 = arith.constant 0 : index
    %27 = vector.load %arg29[%c0_28, %c0_29] : memref<324x8xf32, #tpu.memory_space<vmem>>, vector<324x8xf32>
    tpu.vector_store %arg29[%c0_28, %c0_29], %26 {strides = array<i32>} : memref<324x8xf32, #tpu.memory_space<vmem>>, vector<324x8xf32>,
    %c36 = arith.constant 36 : index
    %c48 = arith.constant 48 : index
    %28 = vector.load %arg24[%c36, %c48] : memref<362x72xf32, #tpu.memory_space<vmem>>, vector<324x8xf32>
    %c0_30 = arith.constant 0 : index
    %c0_31 = arith.constant 0 : index
    %29 = vector.load %arg29[%c0_30, %c0_31] : memref<324x8xf32, #tpu.memory_space<vmem>>, vector<324x8xf32>
    %30 = arith.addf %29, %28 : vector<324x8xf32>
    %c0_32 = arith.constant 0 : index
    %c0_33 = arith.constant 0 : index
    %31 = vector.load %arg29[%c0_32, %c0_33] : memref<324x8xf32, #tpu.memory_space<vmem>>, vector<324x8xf32>
    tpu.vector_store %arg29[%c0_32, %c0_33], %30 {strides = array<i32>} : memref<324x8xf32, #tpu.memory_space<vmem>>, vector<324x8xf32>,
    %c37 = arith.constant 37 : index
    %c56 = arith.constant 56 : index
    %32 = vector.load %arg24[%c37, %c56] : memref<362x72xf32, #tpu.memory_space<vmem>>, vector<324x8xf32>
    %c0_34 = arith.constant 0 : index
    %c0_35 = arith.constant 0 : index
    %33 = vector.load %arg29[%c0_34, %c0_35] : memref<324x8xf32, #tpu.memory_space<vmem>>, vector<324x8xf32>
    %34 = arith.addf %33, %32 : vector<324x8xf32>
    %c0_36 = arith.constant 0 : index
    %c0_37 = arith.constant 0 : index
    %35 = vector.load %arg29[%c0_36, %c0_37] : memref<324x8xf32, #tpu.memory_space<vmem>>, vector<324x8xf32>
    tpu.vector_store %arg29[%c0_36, %c0_37], %34 {strides = array<i32>} : memref<324x8xf32, #tpu.memory_space<vmem>>, vector<324x8xf32>,
    %c38 = arith.constant 38 : index
    %c64 = arith.constant 64 : index
    %36 = vector.load %arg24[%c38, %c64] : memref<362x72xf32, #tpu.memory_space<vmem>>, vector<324x8xf32>
    %c0_38 = arith.constant 0 : index
    %c0_39 = arith.constant 0 : index
    %37 = vector.load %arg29[%c0_38, %c0_39] : memref<324x8xf32, #tpu.memory_space<vmem>>, vector<324x8xf32>
    %38 = arith.addf %37, %36 : vector<324x8xf32>
    %c0_40 = arith.constant 0 : index
    %c0_41 = arith.constant 0 : index
    %39 = vector.load %arg29[%c0_40, %c0_41] : memref<324x8xf32, #tpu.memory_space<vmem>>, vector<324x8xf32>
    tpu.vector_store %arg29[%c0_40, %c0_41], %38 {strides = array<i32>} : memref<324x8xf32, #tpu.memory_space<vmem>>, vector<324x8xf32>,
    %c0_42 = arith.constant 0 : index
    %c0_43 = arith.constant 0 : index
    %40 = vector.load %arg29[%c0_42, %c0_43] : memref<324x8xf32, #tpu.memory_space<vmem>>, vector<324x8xf32>
    %c0_44 = arith.constant 0 : index
    %c0_45 = arith.constant 0 : index
    %41 = vector.load %arg3[%c0_44, %c0_45] : memref<1x8xf32, #tpu.memory_space<vmem>>, vector<1x8xf32>
    %42 = vector.broadcast %41 : vector<1x8xf32> to vector<324x8xf32>
    %43 = arith.addf %40, %42 : vector<324x8xf32>
    %cst_46 = arith.constant 0.000000e+00 : f32
    %44 = vector.broadcast %cst_46 : f32 to vector<324x8xf32>
    %45 = arith.maximumf %43, %44 : vector<324x8xf32>
    %c0_47 = arith.constant 0 : index
    %c0_48 = arith.constant 0 : index
    %46 = vector.load %arg29[%c0_47, %c0_48] : memref<324x8xf32, #tpu.memory_space<vmem>>, vector<324x8xf32>
    tpu.vector_store %arg29[%c0_47, %c0_48], %45 {strides = array<i32>} : memref<324x8xf32, #tpu.memory_space<vmem>>, vector<324x8xf32>,
    %cst_49 = arith.constant 0.000000e+00 : f32
    %47 = vector.broadcast %cst_49 : f32 to vector<122x8xf32>
    %c0_50 = arith.constant 0 : index
    %c0_51 = arith.constant 0 : index
    %48 = vector.load %arg20[%c0_50, %c0_51] : memref<122x8xf32, #tpu.memory_space<vmem>>, vector<122x8xf32>
    tpu.vector_store %arg20[%c0_50, %c0_51], %47 {strides = array<i32>} : memref<122x8xf32, #tpu.memory_space<vmem>>, vector<122x8xf32>,
    %c0_52 = arith.constant 0 : index
    %c0_53 = arith.constant 0 : index
    %49 = tpu.strided_load %arg29[%c0_52, %c0_53] {strides = array<i32: 2, 1>} : memref<324x8xf32, #tpu.memory_space<vmem>>, vector<8x8xf32>
    %c1_54 = arith.constant 1 : index
    %c0_55 = arith.constant 0 : index
    %50 = tpu.strided_load %arg29[%c1_54, %c0_55] {strides = array<i32: 2, 1>} : memref<324x8xf32, #tpu.memory_space<vmem>>, vector<8x8xf32>
    %51 = arith.maximumf %49, %50 : vector<8x8xf32>
    %c18_56 = arith.constant 18 : index
    %c0_57 = arith.constant 0 : index
    %52 = tpu.strided_load %arg29[%c18_56, %c0_57] {strides = array<i32: 2, 1>} : memref<324x8xf32, #tpu.memory_space<vmem>>, vector<8x8xf32>
    %c19_58 = arith.constant 19 : index
    %c0_59 = arith.constant 0 : index
    %53 = tpu.strided_load %arg29[%c19_58, %c0_59] {strides = array<i32: 2, 1>} : memref<324x8xf32, #tpu.memory_space<vmem>>, vector<8x8xf32>
    %54 = arith.maximumf %52, %53 : vector<8x8xf32>
    %55 = arith.maximumf %51, %54 : vector<8x8xf32>
    %c11 = arith.constant 11 : index
    %c0_60 = arith.constant 0 : index
    %56 = vector.load %arg20[%c11, %c0_60] : memref<122x8xf32, #tpu.memory_space<vmem>>, vector<8x8xf32>
    tpu.vector_store %arg20[%c11, %c0_60], %55 {strides = array<i32>} : memref<122x8xf32, #tpu.memory_space<vmem>>, vector<8x8xf32>,
    %c36_61 = arith.constant 36 : index
    %c0_62 = arith.constant 0 : index
    %57 = tpu.strided_load %arg29[%c36_61, %c0_62] {strides = array<i32: 2, 1>} : memref<324x8xf32, #tpu.memory_space<vmem>>, vector<8x8xf32>
    %c37_63 = arith.constant 37 : index
    %c0_64 = arith.constant 0 : index
    %58 = tpu.strided_load %arg29[%c37_63, %c0_64] {strides = array<i32: 2, 1>} : memref<324x8xf32, #tpu.memory_space<vmem>>, vector<8x8xf32>
    %59 = arith.maximumf %57, %58 : vector<8x8xf32>
    %c54 = arith.constant 54 : index
    %c0_65 = arith.constant 0 : index
    %60 = tpu.strided_load %arg29[%c54, %c0_65] {strides = array<i32: 2, 1>} : memref<324x8xf32, #tpu.memory_space<vmem>>, vector<8x8xf32>
    %c55 = arith.constant 55 : index
    %c0_66 = arith.constant 0 : index
    %61 = tpu.strided_load %arg29[%c55, %c0_66] {strides = array<i32: 2, 1>} : memref<324x8xf32, #tpu.memory_space<vmem>>, vector<8x8xf32>
    %62 = arith.maximumf %60, %61 : vector<8x8xf32>
    %63 = arith.maximumf %59, %62 : vector<8x8xf32>
    %c21 = arith.constant 21 : index
    %c0_67 = arith.constant 0 : index
    %64 = vector.load %arg20[%c21, %c0_67] : memref<122x8xf32, #tpu.memory_space<vmem>>, vector<8x8xf32>
    tpu.vector_store %arg20[%c21, %c0_67], %63 {strides = array<i32>} : memref<122x8xf32, #tpu.memory_space<vmem>>, vector<8x8xf32>,
    %c72 = arith.constant 72 : index
    %c0_68 = arith.constant 0 : index
    %65 = tpu.strided_load %arg29[%c72, %c0_68] {strides = array<i32: 2, 1>} : memref<324x8xf32, #tpu.memory_space<vmem>>, vector<8x8xf32>
    %c73 = arith.constant 73 : index
    %c0_69 = arith.constant 0 : index
    %66 = tpu.strided_load %arg29[%c73, %c0_69] {strides = array<i32: 2, 1>} : memref<324x8xf32, #tpu.memory_space<vmem>>, vector<8x8xf32>
    %67 = arith.maximumf %65, %66 : vector<8x8xf32>
    %c90 = arith.constant 90 : index
    %c0_70 = arith.constant 0 : index
    %68 = tpu.strided_load %arg29[%c90, %c0_70] {strides = array<i32: 2, 1>} : memref<324x8xf32, #tpu.memory_space<vmem>>, vector<8x8xf32>
    %c91 = arith.constant 91 : index
    %c0_71 = arith.constant 0 : index
    %69 = tpu.strided_load %arg29[%c91, %c0_71] {strides = array<i32: 2, 1>} : memref<324x8xf32, #tpu.memory_space<vmem>>, vector<8x8xf32>
    %70 = arith.maximumf %68, %69 : vector<8x8xf32>
    %71 = arith.maximumf %67, %70 : vector<8x8xf32>
    %c31 = arith.constant 31 : index
    %c0_72 = arith.constant 0 : index
    %72 = vector.load %arg20[%c31, %c0_72] : memref<122x8xf32, #tpu.memory_space<vmem>>, vector<8x8xf32>
    tpu.vector_store %arg20[%c31, %c0_72], %71 {strides = array<i32>} : memref<122x8xf32, #tpu.memory_space<vmem>>, vector<8x8xf32>,
    %c108 = arith.constant 108 : index
    %c0_73 = arith.constant 0 : index
    %73 = tpu.strided_load %arg29[%c108, %c0_73] {strides = array<i32: 2, 1>} : memref<324x8xf32, #tpu.memory_space<vmem>>, vector<8x8xf32>
    %c109 = arith.constant 109 : index
    %c0_74 = arith.constant 0 : index
    %74 = tpu.strided_load %arg29[%c109, %c0_74] {strides = array<i32: 2, 1>} : memref<324x8xf32, #tpu.memory_space<vmem>>, vector<8x8xf32>
    %75 = arith.maximumf %73, %74 : vector<8x8xf32>
    %c126 = arith.constant 126 : index
    %c0_75 = arith.constant 0 : index
    %76 = tpu.strided_load %arg29[%c126, %c0_75] {strides = array<i32: 2, 1>} : memref<324x8xf32, #tpu.memory_space<vmem>>, vector<8x8xf32>
    %c127 = arith.constant 127 : index
    %c0_76 = arith.constant 0 : index
    %77 = tpu.strided_load %arg29[%c127, %c0_76] {strides = array<i32: 2, 1>} : memref<324x8xf32, #tpu.memory_space<vmem>>, vector<8x8xf32>
    %78 = arith.maximumf %76, %77 : vector<8x8xf32>
    %79 = arith.maximumf %75, %78 : vector<8x8xf32>
    %c41 = arith.constant 41 : index
    %c0_77 = arith.constant 0 : index
    %80 = vector.load %arg20[%c41, %c0_77] : memref<122x8xf32, #tpu.memory_space<vmem>>, vector<8x8xf32>
    tpu.vector_store %arg20[%c41, %c0_77], %79 {strides = array<i32>} : memref<122x8xf32, #tpu.memory_space<vmem>>, vector<8x8xf32>,
    %c144 = arith.constant 144 : index
    %c0_78 = arith.constant 0 : index
    %81 = tpu.strided_load %arg29[%c144, %c0_78] {strides = array<i32: 2, 1>} : memref<324x8xf32, #tpu.memory_space<vmem>>, vector<8x8xf32>
    %c145 = arith.constant 145 : index
    %c0_79 = arith.constant 0 : index
    %82 = tpu.strided_load %arg29[%c145, %c0_79] {strides = array<i32: 2, 1>} : memref<324x8xf32, #tpu.memory_space<vmem>>, vector<8x8xf32>
    %83 = arith.maximumf %81, %82 : vector<8x8xf32>
    %c162 = arith.constant 162 : index
    %c0_80 = arith.constant 0 : index
    %84 = tpu.strided_load %arg29[%c162, %c0_80] {strides = array<i32: 2, 1>} : memref<324x8xf32, #tpu.memory_space<vmem>>, vector<8x8xf32>
    %c163 = arith.constant 163 : index
    %c0_81 = arith.constant 0 : index
    %85 = tpu.strided_load %arg29[%c163, %c0_81] {strides = array<i32: 2, 1>} : memref<324x8xf32, #tpu.memory_space<vmem>>, vector<8x8xf32>
    %86 = arith.maximumf %84, %85 : vector<8x8xf32>
    %87 = arith.maximumf %83, %86 : vector<8x8xf32>
    %c51 = arith.constant 51 : index
    %c0_82 = arith.constant 0 : index
    %88 = vector.load %arg20[%c51, %c0_82] : memref<122x8xf32, #tpu.memory_space<vmem>>, vector<8x8xf32>
    tpu.vector_store %arg20[%c51, %c0_82], %87 {strides = array<i32>} : memref<122x8xf32, #tpu.memory_space<vmem>>, vector<8x8xf32>,
    %c180 = arith.constant 180 : index
    %c0_83 = arith.constant 0 : index
    %89 = tpu.strided_load %arg29[%c180, %c0_83] {strides = array<i32: 2, 1>} : memref<324x8xf32, #tpu.memory_space<vmem>>, vector<8x8xf32>
    %c181 = arith.constant 181 : index
    %c0_84 = arith.constant 0 : index
    %90 = tpu.strided_load %arg29[%c181, %c0_84] {strides = array<i32: 2, 1>} : memref<324x8xf32, #tpu.memory_space<vmem>>, vector<8x8xf32>
    %91 = arith.maximumf %89, %90 : vector<8x8xf32>
    %c198 = arith.constant 198 : index
    %c0_85 = arith.constant 0 : index
    %92 = tpu.strided_load %arg29[%c198, %c0_85] {strides = array<i32: 2, 1>} : memref<324x8xf32, #tpu.memory_space<vmem>>, vector<8x8xf32>
    %c199 = arith.constant 199 : index
    %c0_86 = arith.constant 0 : index
    %93 = tpu.strided_load %arg29[%c199, %c0_86] {strides = array<i32: 2, 1>} : memref<324x8xf32, #tpu.memory_space<vmem>>, vector<8x8xf32>
    %94 = arith.maximumf %92, %93 : vector<8x8xf32>
    %95 = arith.maximumf %91, %94 : vector<8x8xf32>
    %c61 = arith.constant 61 : index
    %c0_87 = arith.constant 0 : index
    %96 = vector.load %arg20[%c61, %c0_87] : memref<122x8xf32, #tpu.memory_space<vmem>>, vector<8x8xf32>
    tpu.vector_store %arg20[%c61, %c0_87], %95 {strides = array<i32>} : memref<122x8xf32, #tpu.memory_space<vmem>>, vector<8x8xf32>,
    %c216 = arith.constant 216 : index
    %c0_88 = arith.constant 0 : index
    %97 = tpu.strided_load %arg29[%c216, %c0_88] {strides = array<i32: 2, 1>} : memref<324x8xf32, #tpu.memory_space<vmem>>, vector<8x8xf32>
    %c217 = arith.constant 217 : index
    %c0_89 = arith.constant 0 : index
    %98 = tpu.strided_load %arg29[%c217, %c0_89] {strides = array<i32: 2, 1>} : memref<324x8xf32, #tpu.memory_space<vmem>>, vector<8x8xf32>
    %99 = arith.maximumf %97, %98 : vector<8x8xf32>
    %c234 = arith.constant 234 : index
    %c0_90 = arith.constant 0 : index
    %100 = tpu.strided_load %arg29[%c234, %c0_90] {strides = array<i32: 2, 1>} : memref<324x8xf32, #tpu.memory_space<vmem>>, vector<8x8xf32>
    %c235 = arith.constant 235 : index
    %c0_91 = arith.constant 0 : index
    %101 = tpu.strided_load %arg29[%c235, %c0_91] {strides = array<i32: 2, 1>} : memref<324x8xf32, #tpu.memory_space<vmem>>, vector<8x8xf32>
    %102 = arith.maximumf %100, %101 : vector<8x8xf32>
    %103 = arith.maximumf %99, %102 : vector<8x8xf32>
    %c71 = arith.constant 71 : index
    %c0_92 = arith.constant 0 : index
    %104 = vector.load %arg20[%c71, %c0_92] : memref<122x8xf32, #tpu.memory_space<vmem>>, vector<8x8xf32>
    tpu.vector_store %arg20[%c71, %c0_92], %103 {strides = array<i32>} : memref<122x8xf32, #tpu.memory_space<vmem>>, vector<8x8xf32>,
    %c252 = arith.constant 252 : index
    %c0_93 = arith.constant 0 : index
    %105 = tpu.strided_load %arg29[%c252, %c0_93] {strides = array<i32: 2, 1>} : memref<324x8xf32, #tpu.memory_space<vmem>>, vector<8x8xf32>
    %c253 = arith.constant 253 : index
    %c0_94 = arith.constant 0 : index
    %106 = tpu.strided_load %arg29[%c253, %c0_94] {strides = array<i32: 2, 1>} : memref<324x8xf32, #tpu.memory_space<vmem>>, vector<8x8xf32>
    %107 = arith.maximumf %105, %106 : vector<8x8xf32>
    %c270 = arith.constant 270 : index
    %c0_95 = arith.constant 0 : index
    %108 = tpu.strided_load %arg29[%c270, %c0_95] {strides = array<i32: 2, 1>} : memref<324x8xf32, #tpu.memory_space<vmem>>, vector<8x8xf32>
    %c271 = arith.constant 271 : index
    %c0_96 = arith.constant 0 : index
    %109 = tpu.strided_load %arg29[%c271, %c0_96] {strides = array<i32: 2, 1>} : memref<324x8xf32, #tpu.memory_space<vmem>>, vector<8x8xf32>
    %110 = arith.maximumf %108, %109 : vector<8x8xf32>
    %111 = arith.maximumf %107, %110 : vector<8x8xf32>
    %c81 = arith.constant 81 : index
    %c0_97 = arith.constant 0 : index
    %112 = vector.load %arg20[%c81, %c0_97] : memref<122x8xf32, #tpu.memory_space<vmem>>, vector<8x8xf32>
    tpu.vector_store %arg20[%c81, %c0_97], %111 {strides = array<i32>} : memref<122x8xf32, #tpu.memory_space<vmem>>, vector<8x8xf32>,
    %c0_98 = arith.constant 0 : index
    %c0_99 = arith.constant 0 : index
    %113 = vector.load %arg20[%c0_98, %c0_99] : memref<122x8xf32, #tpu.memory_space<vmem>>, vector<122x8xf32>
    %114 = arith.truncf %113 : vector<122x8xf32> to vector<122x8xbf16>
    %c0_100 = arith.constant 0 : index
    %c0_101 = arith.constant 0 : index
    %115 = vector.load %arg4[%c0_100, %c0_101] : memref<8x144xbf16, #tpu.memory_space<vmem>>, vector<8x144xbf16>
    %cst_102 = arith.constant dense<0.000000e+00> : vector<122x144xf32>
    %116 = tpu.matmul %114, %115, %cst_102 {dimension_numbers = #tpu.dot_dimension_numbers<[1], [0], [0], [1], [0, 0, 1, 1], [], []>} : vector<122x8xbf16>, vector<8x144xbf16>, vector<122x144xf32> -> vector<122x144xf32>
    %c0_103 = arith.constant 0 : index
    %c0_104 = arith.constant 0 : index
    %117 = vector.load %arg25[%c0_103, %c0_104] : memref<122x144xf32, #tpu.memory_space<vmem>>, vector<122x144xf32>
    tpu.vector_store %arg25[%c0_103, %c0_104], %116 {strides = array<i32>} : memref<122x144xf32, #tpu.memory_space<vmem>>, vector<122x144xf32>,
    %c0_105 = arith.constant 0 : index
    %c0_106 = arith.constant 0 : index
    %118 = vector.load %arg25[%c0_105, %c0_106] : memref<122x144xf32, #tpu.memory_space<vmem>>, vector<100x16xf32>
    %c0_107 = arith.constant 0 : index
    %c0_108 = arith.constant 0 : index
    %119 = vector.load %arg30[%c0_107, %c0_108] : memref<100x16xf32, #tpu.memory_space<vmem>>, vector<100x16xf32>
    tpu.vector_store %arg30[%c0_107, %c0_108], %118 {strides = array<i32>} : memref<100x16xf32, #tpu.memory_space<vmem>>, vector<100x16xf32>,
    %c1_109 = arith.constant 1 : index
    %c16_110 = arith.constant 16 : index
    %120 = vector.load %arg25[%c1_109, %c16_110] : memref<122x144xf32, #tpu.memory_space<vmem>>, vector<100x16xf32>
    %c0_111 = arith.constant 0 : index
    %c0_112 = arith.constant 0 : index
    %121 = vector.load %arg30[%c0_111, %c0_112] : memref<100x16xf32, #tpu.memory_space<vmem>>, vector<100x16xf32>
    %122 = arith.addf %121, %120 : vector<100x16xf32>
    %c0_113 = arith.constant 0 : index
    %c0_114 = arith.constant 0 : index
    %123 = vector.load %arg30[%c0_113, %c0_114] : memref<100x16xf32, #tpu.memory_space<vmem>>, vector<100x16xf32>
    tpu.vector_store %arg30[%c0_113, %c0_114], %122 {strides = array<i32>} : memref<100x16xf32, #tpu.memory_space<vmem>>, vector<100x16xf32>,
    %c2_115 = arith.constant 2 : index
    %c32_116 = arith.constant 32 : index
    %124 = vector.load %arg25[%c2_115, %c32_116] : memref<122x144xf32, #tpu.memory_space<vmem>>, vector<100x16xf32>
    %c0_117 = arith.constant 0 : index
    %c0_118 = arith.constant 0 : index
    %125 = vector.load %arg30[%c0_117, %c0_118] : memref<100x16xf32, #tpu.memory_space<vmem>>, vector<100x16xf32>
    %126 = arith.addf %125, %124 : vector<100x16xf32>
    %c0_119 = arith.constant 0 : index
    %c0_120 = arith.constant 0 : index
    %127 = vector.load %arg30[%c0_119, %c0_120] : memref<100x16xf32, #tpu.memory_space<vmem>>, vector<100x16xf32>
    tpu.vector_store %arg30[%c0_119, %c0_120], %126 {strides = array<i32>} : memref<100x16xf32, #tpu.memory_space<vmem>>, vector<100x16xf32>,
    %c10 = arith.constant 10 : index
    %c48_121 = arith.constant 48 : index
    %128 = vector.load %arg25[%c10, %c48_121] : memref<122x144xf32, #tpu.memory_space<vmem>>, vector<100x16xf32>
    %c0_122 = arith.constant 0 : index
    %c0_123 = arith.constant 0 : index
    %129 = vector.load %arg30[%c0_122, %c0_123] : memref<100x16xf32, #tpu.memory_space<vmem>>, vector<100x16xf32>
    %130 = arith.addf %129, %128 : vector<100x16xf32>
    %c0_124 = arith.constant 0 : index
    %c0_125 = arith.constant 0 : index
    %131 = vector.load %arg30[%c0_124, %c0_125] : memref<100x16xf32, #tpu.memory_space<vmem>>, vector<100x16xf32>
    tpu.vector_store %arg30[%c0_124, %c0_125], %130 {strides = array<i32>} : memref<100x16xf32, #tpu.memory_space<vmem>>, vector<100x16xf32>,
    %c11_126 = arith.constant 11 : index
    %c64_127 = arith.constant 64 : index
    %132 = vector.load %arg25[%c11_126, %c64_127] : memref<122x144xf32, #tpu.memory_space<vmem>>, vector<100x16xf32>
    %c0_128 = arith.constant 0 : index
    %c0_129 = arith.constant 0 : index
    %133 = vector.load %arg30[%c0_128, %c0_129] : memref<100x16xf32, #tpu.memory_space<vmem>>, vector<100x16xf32>
    %134 = arith.addf %133, %132 : vector<100x16xf32>
    %c0_130 = arith.constant 0 : index
    %c0_131 = arith.constant 0 : index
    %135 = vector.load %arg30[%c0_130, %c0_131] : memref<100x16xf32, #tpu.memory_space<vmem>>, vector<100x16xf32>
    tpu.vector_store %arg30[%c0_130, %c0_131], %134 {strides = array<i32>} : memref<100x16xf32, #tpu.memory_space<vmem>>, vector<100x16xf32>,
    %c12 = arith.constant 12 : index
    %c80 = arith.constant 80 : index
    %136 = vector.load %arg25[%c12, %c80] : memref<122x144xf32, #tpu.memory_space<vmem>>, vector<100x16xf32>
    %c0_132 = arith.constant 0 : index
    %c0_133 = arith.constant 0 : index
    %137 = vector.load %arg30[%c0_132, %c0_133] : memref<100x16xf32, #tpu.memory_space<vmem>>, vector<100x16xf32>
    %138 = arith.addf %137, %136 : vector<100x16xf32>
    %c0_134 = arith.constant 0 : index
    %c0_135 = arith.constant 0 : index
    %139 = vector.load %arg30[%c0_134, %c0_135] : memref<100x16xf32, #tpu.memory_space<vmem>>, vector<100x16xf32>
    tpu.vector_store %arg30[%c0_134, %c0_135], %138 {strides = array<i32>} : memref<100x16xf32, #tpu.memory_space<vmem>>, vector<100x16xf32>,
    %c20_136 = arith.constant 20 : index
    %c96 = arith.constant 96 : index
    %140 = vector.load %arg25[%c20_136, %c96] : memref<122x144xf32, #tpu.memory_space<vmem>>, vector<100x16xf32>
    %c0_137 = arith.constant 0 : index
    %c0_138 = arith.constant 0 : index
    %141 = vector.load %arg30[%c0_137, %c0_138] : memref<100x16xf32, #tpu.memory_space<vmem>>, vector<100x16xf32>
    %142 = arith.addf %141, %140 : vector<100x16xf32>
    %c0_139 = arith.constant 0 : index
    %c0_140 = arith.constant 0 : index
    %143 = vector.load %arg30[%c0_139, %c0_140] : memref<100x16xf32, #tpu.memory_space<vmem>>, vector<100x16xf32>
    tpu.vector_store %arg30[%c0_139, %c0_140], %142 {strides = array<i32>} : memref<100x16xf32, #tpu.memory_space<vmem>>, vector<100x16xf32>,
    %c21_141 = arith.constant 21 : index
    %c112 = arith.constant 112 : index
    %144 = vector.load %arg25[%c21_141, %c112] : memref<122x144xf32, #tpu.memory_space<vmem>>, vector<100x16xf32>
    %c0_142 = arith.constant 0 : index
    %c0_143 = arith.constant 0 : index
    %145 = vector.load %arg30[%c0_142, %c0_143] : memref<100x16xf32, #tpu.memory_space<vmem>>, vector<100x16xf32>
    %146 = arith.addf %145, %144 : vector<100x16xf32>
    %c0_144 = arith.constant 0 : index
    %c0_145 = arith.constant 0 : index
    %147 = vector.load %arg30[%c0_144, %c0_145] : memref<100x16xf32, #tpu.memory_space<vmem>>, vector<100x16xf32>
    tpu.vector_store %arg30[%c0_144, %c0_145], %146 {strides = array<i32>} : memref<100x16xf32, #tpu.memory_space<vmem>>, vector<100x16xf32>,
    %c22 = arith.constant 22 : index
    %c128 = arith.constant 128 : index
    %148 = vector.load %arg25[%c22, %c128] : memref<122x144xf32, #tpu.memory_space<vmem>>, vector<100x16xf32>
    %c0_146 = arith.constant 0 : index
    %c0_147 = arith.constant 0 : index
    %149 = vector.load %arg30[%c0_146, %c0_147] : memref<100x16xf32, #tpu.memory_space<vmem>>, vector<100x16xf32>
    %150 = arith.addf %149, %148 : vector<100x16xf32>
    %c0_148 = arith.constant 0 : index
    %c0_149 = arith.constant 0 : index
    %151 = vector.load %arg30[%c0_148, %c0_149] : memref<100x16xf32, #tpu.memory_space<vmem>>, vector<100x16xf32>
    tpu.vector_store %arg30[%c0_148, %c0_149], %150 {strides = array<i32>} : memref<100x16xf32, #tpu.memory_space<vmem>>, vector<100x16xf32>,
    %c0_150 = arith.constant 0 : index
    %c0_151 = arith.constant 0 : index
    %152 = vector.load %arg30[%c0_150, %c0_151] : memref<100x16xf32, #tpu.memory_space<vmem>>, vector<100x16xf32>
    %c0_152 = arith.constant 0 : index
    %c0_153 = arith.constant 0 : index
    %153 = vector.load %arg5[%c0_152, %c0_153] : memref<1x16xf32, #tpu.memory_space<vmem>>, vector<1x16xf32>
    %154 = vector.broadcast %153 : vector<1x16xf32> to vector<100x16xf32>
    %155 = arith.addf %152, %154 : vector<100x16xf32>
    %cst_154 = arith.constant 0.000000e+00 : f32
    %156 = vector.broadcast %cst_154 : f32 to vector<100x16xf32>
    %157 = arith.maximumf %155, %156 : vector<100x16xf32>
    %c0_155 = arith.constant 0 : index
    %c0_156 = arith.constant 0 : index
    %158 = vector.load %arg30[%c0_155, %c0_156] : memref<100x16xf32, #tpu.memory_space<vmem>>, vector<100x16xf32>
    tpu.vector_store %arg30[%c0_155, %c0_156], %157 {strides = array<i32>} : memref<100x16xf32, #tpu.memory_space<vmem>>, vector<100x16xf32>,
    %cst_157 = arith.constant 0.000000e+00 : f32
    %159 = vector.broadcast %cst_157 : f32 to vector<50x16xf32>
    %c0_158 = arith.constant 0 : index
    %c0_159 = arith.constant 0 : index
    %160 = vector.load %arg21[%c0_158, %c0_159] : memref<50x16xf32, #tpu.memory_space<vmem>>, vector<50x16xf32>
    tpu.vector_store %arg21[%c0_158, %c0_159], %159 {strides = array<i32>} : memref<50x16xf32, #tpu.memory_space<vmem>>, vector<50x16xf32>,
    %c0_160 = arith.constant 0 : index
    %c0_161 = arith.constant 0 : index
    %161 = tpu.strided_load %arg30[%c0_160, %c0_161] {strides = array<i32: 2, 1>} : memref<100x16xf32, #tpu.memory_space<vmem>>, vector<4x16xf32>
    %c1_162 = arith.constant 1 : index
    %c0_163 = arith.constant 0 : index
    %162 = tpu.strided_load %arg30[%c1_162, %c0_163] {strides = array<i32: 2, 1>} : memref<100x16xf32, #tpu.memory_space<vmem>>, vector<4x16xf32>
    %163 = arith.maximumf %161, %162 : vector<4x16xf32>
    %c10_164 = arith.constant 10 : index
    %c0_165 = arith.constant 0 : index
    %164 = tpu.strided_load %arg30[%c10_164, %c0_165] {strides = array<i32: 2, 1>} : memref<100x16xf32, #tpu.memory_space<vmem>>, vector<4x16xf32>
    %c11_166 = arith.constant 11 : index
    %c0_167 = arith.constant 0 : index
    %165 = tpu.strided_load %arg30[%c11_166, %c0_167] {strides = array<i32: 2, 1>} : memref<100x16xf32, #tpu.memory_space<vmem>>, vector<4x16xf32>
    %166 = arith.maximumf %164, %165 : vector<4x16xf32>
    %167 = arith.maximumf %163, %166 : vector<4x16xf32>
    %c7 = arith.constant 7 : index
    %c0_168 = arith.constant 0 : index
    %168 = vector.load %arg21[%c7, %c0_168] : memref<50x16xf32, #tpu.memory_space<vmem>>, vector<4x16xf32>
    tpu.vector_store %arg21[%c7, %c0_168], %167 {strides = array<i32>} : memref<50x16xf32, #tpu.memory_space<vmem>>, vector<4x16xf32>,
    %c20_169 = arith.constant 20 : index
    %c0_170 = arith.constant 0 : index
    %169 = tpu.strided_load %arg30[%c20_169, %c0_170] {strides = array<i32: 2, 1>} : memref<100x16xf32, #tpu.memory_space<vmem>>, vector<4x16xf32>
    %c21_171 = arith.constant 21 : index
    %c0_172 = arith.constant 0 : index
    %170 = tpu.strided_load %arg30[%c21_171, %c0_172] {strides = array<i32: 2, 1>} : memref<100x16xf32, #tpu.memory_space<vmem>>, vector<4x16xf32>
    %171 = arith.maximumf %169, %170 : vector<4x16xf32>
    %c30 = arith.constant 30 : index
    %c0_173 = arith.constant 0 : index
    %172 = tpu.strided_load %arg30[%c30, %c0_173] {strides = array<i32: 2, 1>} : memref<100x16xf32, #tpu.memory_space<vmem>>, vector<4x16xf32>
    %c31_174 = arith.constant 31 : index
    %c0_175 = arith.constant 0 : index
    %173 = tpu.strided_load %arg30[%c31_174, %c0_175] {strides = array<i32: 2, 1>} : memref<100x16xf32, #tpu.memory_space<vmem>>, vector<4x16xf32>
    %174 = arith.maximumf %172, %173 : vector<4x16xf32>
    %175 = arith.maximumf %171, %174 : vector<4x16xf32>
    %c13 = arith.constant 13 : index
    %c0_176 = arith.constant 0 : index
    %176 = vector.load %arg21[%c13, %c0_176] : memref<50x16xf32, #tpu.memory_space<vmem>>, vector<4x16xf32>
    tpu.vector_store %arg21[%c13, %c0_176], %175 {strides = array<i32>} : memref<50x16xf32, #tpu.memory_space<vmem>>, vector<4x16xf32>,
    %c40_177 = arith.constant 40 : index
    %c0_178 = arith.constant 0 : index
    %177 = tpu.strided_load %arg30[%c40_177, %c0_178] {strides = array<i32: 2, 1>} : memref<100x16xf32, #tpu.memory_space<vmem>>, vector<4x16xf32>
    %c41_179 = arith.constant 41 : index
    %c0_180 = arith.constant 0 : index
    %178 = tpu.strided_load %arg30[%c41_179, %c0_180] {strides = array<i32: 2, 1>} : memref<100x16xf32, #tpu.memory_space<vmem>>, vector<4x16xf32>
    %179 = arith.maximumf %177, %178 : vector<4x16xf32>
    %c50 = arith.constant 50 : index
    %c0_181 = arith.constant 0 : index
    %180 = tpu.strided_load %arg30[%c50, %c0_181] {strides = array<i32: 2, 1>} : memref<100x16xf32, #tpu.memory_space<vmem>>, vector<4x16xf32>
    %c51_182 = arith.constant 51 : index
    %c0_183 = arith.constant 0 : index
    %181 = tpu.strided_load %arg30[%c51_182, %c0_183] {strides = array<i32: 2, 1>} : memref<100x16xf32, #tpu.memory_space<vmem>>, vector<4x16xf32>
    %182 = arith.maximumf %180, %181 : vector<4x16xf32>
    %183 = arith.maximumf %179, %182 : vector<4x16xf32>
    %c19_184 = arith.constant 19 : index
    %c0_185 = arith.constant 0 : index
    %184 = vector.load %arg21[%c19_184, %c0_185] : memref<50x16xf32, #tpu.memory_space<vmem>>, vector<4x16xf32>
    tpu.vector_store %arg21[%c19_184, %c0_185], %183 {strides = array<i32>} : memref<50x16xf32, #tpu.memory_space<vmem>>, vector<4x16xf32>,
    %c60 = arith.constant 60 : index
    %c0_186 = arith.constant 0 : index
    %185 = tpu.strided_load %arg30[%c60, %c0_186] {strides = array<i32: 2, 1>} : memref<100x16xf32, #tpu.memory_space<vmem>>, vector<4x16xf32>
    %c61_187 = arith.constant 61 : index
    %c0_188 = arith.constant 0 : index
    %186 = tpu.strided_load %arg30[%c61_187, %c0_188] {strides = array<i32: 2, 1>} : memref<100x16xf32, #tpu.memory_space<vmem>>, vector<4x16xf32>
    %187 = arith.maximumf %185, %186 : vector<4x16xf32>
    %c70 = arith.constant 70 : index
    %c0_189 = arith.constant 0 : index
    %188 = tpu.strided_load %arg30[%c70, %c0_189] {strides = array<i32: 2, 1>} : memref<100x16xf32, #tpu.memory_space<vmem>>, vector<4x16xf32>
    %c71_190 = arith.constant 71 : index
    %c0_191 = arith.constant 0 : index
    %189 = tpu.strided_load %arg30[%c71_190, %c0_191] {strides = array<i32: 2, 1>} : memref<100x16xf32, #tpu.memory_space<vmem>>, vector<4x16xf32>
    %190 = arith.maximumf %188, %189 : vector<4x16xf32>
    %191 = arith.maximumf %187, %190 : vector<4x16xf32>
    %c25 = arith.constant 25 : index
    %c0_192 = arith.constant 0 : index
    %192 = vector.load %arg21[%c25, %c0_192] : memref<50x16xf32, #tpu.memory_space<vmem>>, vector<4x16xf32>
    tpu.vector_store %arg21[%c25, %c0_192], %191 {strides = array<i32>} : memref<50x16xf32, #tpu.memory_space<vmem>>, vector<4x16xf32>,
    %c0_193 = arith.constant 0 : index
    %c0_194 = arith.constant 0 : index
    %193 = vector.load %arg21[%c0_193, %c0_194] : memref<50x16xf32, #tpu.memory_space<vmem>>, vector<50x16xf32>
    %194 = arith.truncf %193 : vector<50x16xf32> to vector<50x16xbf16>
    %c0_195 = arith.constant 0 : index
    %c0_196 = arith.constant 0 : index
    %195 = vector.load %arg6[%c0_195, %c0_196] : memref<16x288xbf16, #tpu.memory_space<vmem>>, vector<16x288xbf16>
    %cst_197 = arith.constant dense<0.000000e+00> : vector<50x288xf32>
    %196 = tpu.matmul %194, %195, %cst_197 {dimension_numbers = #tpu.dot_dimension_numbers<[1], [0], [0], [1], [0, 0, 1, 1], [], []>} : vector<50x16xbf16>, vector<16x288xbf16>, vector<50x288xf32> -> vector<50x288xf32>
    %c0_198 = arith.constant 0 : index
    %c0_199 = arith.constant 0 : index
    %197 = vector.load %arg26[%c0_198, %c0_199] : memref<50x288xf32, #tpu.memory_space<vmem>>, vector<50x288xf32>
    tpu.vector_store %arg26[%c0_198, %c0_199], %196 {strides = array<i32>} : memref<50x288xf32, #tpu.memory_space<vmem>>, vector<50x288xf32>,
    %c0_200 = arith.constant 0 : index
    %c0_201 = arith.constant 0 : index
    %198 = vector.load %arg26[%c0_200, %c0_201] : memref<50x288xf32, #tpu.memory_space<vmem>>, vector<36x32xf32>
    %c0_202 = arith.constant 0 : index
    %c0_203 = arith.constant 0 : index
    %199 = vector.load %arg31[%c0_202, %c0_203] : memref<36x32xf32, #tpu.memory_space<vmem>>, vector<36x32xf32>
    tpu.vector_store %arg31[%c0_202, %c0_203], %198 {strides = array<i32>} : memref<36x32xf32, #tpu.memory_space<vmem>>, vector<36x32xf32>,
    %c1_204 = arith.constant 1 : index
    %c32_205 = arith.constant 32 : index
    %200 = vector.load %arg26[%c1_204, %c32_205] : memref<50x288xf32, #tpu.memory_space<vmem>>, vector<36x32xf32>
    %c0_206 = arith.constant 0 : index
    %c0_207 = arith.constant 0 : index
    %201 = vector.load %arg31[%c0_206, %c0_207] : memref<36x32xf32, #tpu.memory_space<vmem>>, vector<36x32xf32>
    %202 = arith.addf %201, %200 : vector<36x32xf32>
    %c0_208 = arith.constant 0 : index
    %c0_209 = arith.constant 0 : index
    %203 = vector.load %arg31[%c0_208, %c0_209] : memref<36x32xf32, #tpu.memory_space<vmem>>, vector<36x32xf32>
    tpu.vector_store %arg31[%c0_208, %c0_209], %202 {strides = array<i32>} : memref<36x32xf32, #tpu.memory_space<vmem>>, vector<36x32xf32>,
    %c2_210 = arith.constant 2 : index
    %c64_211 = arith.constant 64 : index
    %204 = vector.load %arg26[%c2_210, %c64_211] : memref<50x288xf32, #tpu.memory_space<vmem>>, vector<36x32xf32>
    %c0_212 = arith.constant 0 : index
    %c0_213 = arith.constant 0 : index
    %205 = vector.load %arg31[%c0_212, %c0_213] : memref<36x32xf32, #tpu.memory_space<vmem>>, vector<36x32xf32>
    %206 = arith.addf %205, %204 : vector<36x32xf32>
    %c0_214 = arith.constant 0 : index
    %c0_215 = arith.constant 0 : index
    %207 = vector.load %arg31[%c0_214, %c0_215] : memref<36x32xf32, #tpu.memory_space<vmem>>, vector<36x32xf32>
    tpu.vector_store %arg31[%c0_214, %c0_215], %206 {strides = array<i32>} : memref<36x32xf32, #tpu.memory_space<vmem>>, vector<36x32xf32>,
    %c6 = arith.constant 6 : index
    %c96_216 = arith.constant 96 : index
    %208 = vector.load %arg26[%c6, %c96_216] : memref<50x288xf32, #tpu.memory_space<vmem>>, vector<36x32xf32>
    %c0_217 = arith.constant 0 : index
    %c0_218 = arith.constant 0 : index
    %209 = vector.load %arg31[%c0_217, %c0_218] : memref<36x32xf32, #tpu.memory_space<vmem>>, vector<36x32xf32>
    %210 = arith.addf %209, %208 : vector<36x32xf32>
    %c0_219 = arith.constant 0 : index
    %c0_220 = arith.constant 0 : index
    %211 = vector.load %arg31[%c0_219, %c0_220] : memref<36x32xf32, #tpu.memory_space<vmem>>, vector<36x32xf32>
    tpu.vector_store %arg31[%c0_219, %c0_220], %210 {strides = array<i32>} : memref<36x32xf32, #tpu.memory_space<vmem>>, vector<36x32xf32>,
    %c7_221 = arith.constant 7 : index
    %c128_222 = arith.constant 128 : index
    %212 = vector.load %arg26[%c7_221, %c128_222] : memref<50x288xf32, #tpu.memory_space<vmem>>, vector<36x32xf32>
    %c0_223 = arith.constant 0 : index
    %c0_224 = arith.constant 0 : index
    %213 = vector.load %arg31[%c0_223, %c0_224] : memref<36x32xf32, #tpu.memory_space<vmem>>, vector<36x32xf32>
    %214 = arith.addf %213, %212 : vector<36x32xf32>
    %c0_225 = arith.constant 0 : index
    %c0_226 = arith.constant 0 : index
    %215 = vector.load %arg31[%c0_225, %c0_226] : memref<36x32xf32, #tpu.memory_space<vmem>>, vector<36x32xf32>
    tpu.vector_store %arg31[%c0_225, %c0_226], %214 {strides = array<i32>} : memref<36x32xf32, #tpu.memory_space<vmem>>, vector<36x32xf32>,
    %c8_227 = arith.constant 8 : index
    %c160 = arith.constant 160 : index
    %216 = vector.load %arg26[%c8_227, %c160] : memref<50x288xf32, #tpu.memory_space<vmem>>, vector<36x32xf32>
    %c0_228 = arith.constant 0 : index
    %c0_229 = arith.constant 0 : index
    %217 = vector.load %arg31[%c0_228, %c0_229] : memref<36x32xf32, #tpu.memory_space<vmem>>, vector<36x32xf32>
    %218 = arith.addf %217, %216 : vector<36x32xf32>
    %c0_230 = arith.constant 0 : index
    %c0_231 = arith.constant 0 : index
    %219 = vector.load %arg31[%c0_230, %c0_231] : memref<36x32xf32, #tpu.memory_space<vmem>>, vector<36x32xf32>
    tpu.vector_store %arg31[%c0_230, %c0_231], %218 {strides = array<i32>} : memref<36x32xf32, #tpu.memory_space<vmem>>, vector<36x32xf32>,
    %c12_232 = arith.constant 12 : index
    %c192 = arith.constant 192 : index
    %220 = vector.load %arg26[%c12_232, %c192] : memref<50x288xf32, #tpu.memory_space<vmem>>, vector<36x32xf32>
    %c0_233 = arith.constant 0 : index
    %c0_234 = arith.constant 0 : index
    %221 = vector.load %arg31[%c0_233, %c0_234] : memref<36x32xf32, #tpu.memory_space<vmem>>, vector<36x32xf32>
    %222 = arith.addf %221, %220 : vector<36x32xf32>
    %c0_235 = arith.constant 0 : index
    %c0_236 = arith.constant 0 : index
    %223 = vector.load %arg31[%c0_235, %c0_236] : memref<36x32xf32, #tpu.memory_space<vmem>>, vector<36x32xf32>
    tpu.vector_store %arg31[%c0_235, %c0_236], %222 {strides = array<i32>} : memref<36x32xf32, #tpu.memory_space<vmem>>, vector<36x32xf32>,
    %c13_237 = arith.constant 13 : index
    %c224 = arith.constant 224 : index
    %224 = vector.load %arg26[%c13_237, %c224] : memref<50x288xf32, #tpu.memory_space<vmem>>, vector<36x32xf32>
    %c0_238 = arith.constant 0 : index
    %c0_239 = arith.constant 0 : index
    %225 = vector.load %arg31[%c0_238, %c0_239] : memref<36x32xf32, #tpu.memory_space<vmem>>, vector<36x32xf32>
    %226 = arith.addf %225, %224 : vector<36x32xf32>
    %c0_240 = arith.constant 0 : index
    %c0_241 = arith.constant 0 : index
    %227 = vector.load %arg31[%c0_240, %c0_241] : memref<36x32xf32, #tpu.memory_space<vmem>>, vector<36x32xf32>
    tpu.vector_store %arg31[%c0_240, %c0_241], %226 {strides = array<i32>} : memref<36x32xf32, #tpu.memory_space<vmem>>, vector<36x32xf32>,
    %c14 = arith.constant 14 : index
    %c256 = arith.constant 256 : index
    %228 = vector.load %arg26[%c14, %c256] : memref<50x288xf32, #tpu.memory_space<vmem>>, vector<36x32xf32>
    %c0_242 = arith.constant 0 : index
    %c0_243 = arith.constant 0 : index
    %229 = vector.load %arg31[%c0_242, %c0_243] : memref<36x32xf32, #tpu.memory_space<vmem>>, vector<36x32xf32>
    %230 = arith.addf %229, %228 : vector<36x32xf32>
    %c0_244 = arith.constant 0 : index
    %c0_245 = arith.constant 0 : index
    %231 = vector.load %arg31[%c0_244, %c0_245] : memref<36x32xf32, #tpu.memory_space<vmem>>, vector<36x32xf32>
    tpu.vector_store %arg31[%c0_244, %c0_245], %230 {strides = array<i32>} : memref<36x32xf32, #tpu.memory_space<vmem>>, vector<36x32xf32>,
    %c0_246 = arith.constant 0 : index
    %c0_247 = arith.constant 0 : index
    %232 = vector.load %arg31[%c0_246, %c0_247] : memref<36x32xf32, #tpu.memory_space<vmem>>, vector<36x32xf32>
    %c0_248 = arith.constant 0 : index
    %c0_249 = arith.constant 0 : index
    %233 = vector.load %arg7[%c0_248, %c0_249] : memref<1x32xf32, #tpu.memory_space<vmem>>, vector<1x32xf32>
    %234 = vector.broadcast %233 : vector<1x32xf32> to vector<36x32xf32>
    %235 = arith.addf %232, %234 : vector<36x32xf32>
    %cst_250 = arith.constant 0.000000e+00 : f32
    %236 = vector.broadcast %cst_250 : f32 to vector<36x32xf32>
    %237 = arith.maximumf %235, %236 : vector<36x32xf32>
    %c0_251 = arith.constant 0 : index
    %c0_252 = arith.constant 0 : index
    %238 = vector.load %arg31[%c0_251, %c0_252] : memref<36x32xf32, #tpu.memory_space<vmem>>, vector<36x32xf32>
    tpu.vector_store %arg31[%c0_251, %c0_252], %237 {strides = array<i32>} : memref<36x32xf32, #tpu.memory_space<vmem>>, vector<36x32xf32>,
    %cst_253 = arith.constant 0.000000e+00 : f32
    %239 = vector.broadcast %cst_253 : f32 to vector<26x32xf32>
    %c0_254 = arith.constant 0 : index
    %c0_255 = arith.constant 0 : index
    %240 = vector.load %arg22[%c0_254, %c0_255] : memref<26x32xf32, #tpu.memory_space<vmem>>, vector<26x32xf32>
    tpu.vector_store %arg22[%c0_254, %c0_255], %239 {strides = array<i32>} : memref<26x32xf32, #tpu.memory_space<vmem>>, vector<26x32xf32>,
    %c0_256 = arith.constant 0 : index
    %c0_257 = arith.constant 0 : index
    %241 = tpu.strided_load %arg31[%c0_256, %c0_257] {strides = array<i32: 2, 1>} : memref<36x32xf32, #tpu.memory_space<vmem>>, vector<2x32xf32>
    %c1_258 = arith.constant 1 : index
    %c0_259 = arith.constant 0 : index
    %242 = tpu.strided_load %arg31[%c1_258, %c0_259] {strides = array<i32: 2, 1>} : memref<36x32xf32, #tpu.memory_space<vmem>>, vector<2x32xf32>
    %243 = arith.maximumf %241, %242 : vector<2x32xf32>
    %c6_260 = arith.constant 6 : index
    %c0_261 = arith.constant 0 : index
    %244 = tpu.strided_load %arg31[%c6_260, %c0_261] {strides = array<i32: 2, 1>} : memref<36x32xf32, #tpu.memory_space<vmem>>, vector<2x32xf32>
    %c7_262 = arith.constant 7 : index
    %c0_263 = arith.constant 0 : index
    %245 = tpu.strided_load %arg31[%c7_262, %c0_263] {strides = array<i32: 2, 1>} : memref<36x32xf32, #tpu.memory_space<vmem>>, vector<2x32xf32>
    %246 = arith.maximumf %244, %245 : vector<2x32xf32>
    %247 = arith.maximumf %243, %246 : vector<2x32xf32>
    %c5 = arith.constant 5 : index
    %c0_264 = arith.constant 0 : index
    %248 = vector.load %arg22[%c5, %c0_264] : memref<26x32xf32, #tpu.memory_space<vmem>>, vector<2x32xf32>
    tpu.vector_store %arg22[%c5, %c0_264], %247 {strides = array<i32>} : memref<26x32xf32, #tpu.memory_space<vmem>>, vector<2x32xf32>,
    %c12_265 = arith.constant 12 : index
    %c0_266 = arith.constant 0 : index
    %249 = tpu.strided_load %arg31[%c12_265, %c0_266] {strides = array<i32: 2, 1>} : memref<36x32xf32, #tpu.memory_space<vmem>>, vector<2x32xf32>
    %c13_267 = arith.constant 13 : index
    %c0_268 = arith.constant 0 : index
    %250 = tpu.strided_load %arg31[%c13_267, %c0_268] {strides = array<i32: 2, 1>} : memref<36x32xf32, #tpu.memory_space<vmem>>, vector<2x32xf32>
    %251 = arith.maximumf %249, %250 : vector<2x32xf32>
    %c18_269 = arith.constant 18 : index
    %c0_270 = arith.constant 0 : index
    %252 = tpu.strided_load %arg31[%c18_269, %c0_270] {strides = array<i32: 2, 1>} : memref<36x32xf32, #tpu.memory_space<vmem>>, vector<2x32xf32>
    %c19_271 = arith.constant 19 : index
    %c0_272 = arith.constant 0 : index
    %253 = tpu.strided_load %arg31[%c19_271, %c0_272] {strides = array<i32: 2, 1>} : memref<36x32xf32, #tpu.memory_space<vmem>>, vector<2x32xf32>
    %254 = arith.maximumf %252, %253 : vector<2x32xf32>
    %255 = arith.maximumf %251, %254 : vector<2x32xf32>
    %c9 = arith.constant 9 : index
    %c0_273 = arith.constant 0 : index
    %256 = vector.load %arg22[%c9, %c0_273] : memref<26x32xf32, #tpu.memory_space<vmem>>, vector<2x32xf32>
    tpu.vector_store %arg22[%c9, %c0_273], %255 {strides = array<i32>} : memref<26x32xf32, #tpu.memory_space<vmem>>, vector<2x32xf32>,
    %c0_274 = arith.constant 0 : index
    %c0_275 = arith.constant 0 : index
    %257 = vector.load %arg22[%c0_274, %c0_275] : memref<26x32xf32, #tpu.memory_space<vmem>>, vector<26x32xf32>
    %258 = arith.truncf %257 : vector<26x32xf32> to vector<26x32xbf16>
    %c0_276 = arith.constant 0 : index
    %c0_277 = arith.constant 0 : index
    %259 = vector.load %arg8[%c0_276, %c0_277] : memref<32x576xbf16, #tpu.memory_space<vmem>>, vector<32x576xbf16>
    %cst_278 = arith.constant dense<0.000000e+00> : vector<26x576xf32>
    %260 = tpu.matmul %258, %259, %cst_278 {dimension_numbers = #tpu.dot_dimension_numbers<[1], [0], [0], [1], [0, 0, 1, 1], [], []>} : vector<26x32xbf16>, vector<32x576xbf16>, vector<26x576xf32> -> vector<26x576xf32>
    %c0_279 = arith.constant 0 : index
    %c0_280 = arith.constant 0 : index
    %261 = vector.load %arg27[%c0_279, %c0_280] : memref<26x576xf32, #tpu.memory_space<vmem>>, vector<26x576xf32>
    tpu.vector_store %arg27[%c0_279, %c0_280], %260 {strides = array<i32>} : memref<26x576xf32, #tpu.memory_space<vmem>>, vector<26x576xf32>,
    %c0_281 = arith.constant 0 : index
    %c0_282 = arith.constant 0 : index
    %262 = vector.load %arg27[%c0_281, %c0_282] : memref<26x576xf32, #tpu.memory_space<vmem>>, vector<16x64xf32>
    %c0_283 = arith.constant 0 : index
    %c0_284 = arith.constant 0 : index
    %263 = vector.load %arg32[%c0_283, %c0_284] : memref<16x64xf32, #tpu.memory_space<vmem>>, vector<16x64xf32>
    tpu.vector_store %arg32[%c0_283, %c0_284], %262 {strides = array<i32>} : memref<16x64xf32, #tpu.memory_space<vmem>>, vector<16x64xf32>,
    %c1_285 = arith.constant 1 : index
    %c64_286 = arith.constant 64 : index
    %264 = vector.load %arg27[%c1_285, %c64_286] : memref<26x576xf32, #tpu.memory_space<vmem>>, vector<16x64xf32>
    %c0_287 = arith.constant 0 : index
    %c0_288 = arith.constant 0 : index
    %265 = vector.load %arg32[%c0_287, %c0_288] : memref<16x64xf32, #tpu.memory_space<vmem>>, vector<16x64xf32>
    %266 = arith.addf %265, %264 : vector<16x64xf32>
    %c0_289 = arith.constant 0 : index
    %c0_290 = arith.constant 0 : index
    %267 = vector.load %arg32[%c0_289, %c0_290] : memref<16x64xf32, #tpu.memory_space<vmem>>, vector<16x64xf32>
    tpu.vector_store %arg32[%c0_289, %c0_290], %266 {strides = array<i32>} : memref<16x64xf32, #tpu.memory_space<vmem>>, vector<16x64xf32>,
    %c2_291 = arith.constant 2 : index
    %c128_292 = arith.constant 128 : index
    %268 = vector.load %arg27[%c2_291, %c128_292] : memref<26x576xf32, #tpu.memory_space<vmem>>, vector<16x64xf32>
    %c0_293 = arith.constant 0 : index
    %c0_294 = arith.constant 0 : index
    %269 = vector.load %arg32[%c0_293, %c0_294] : memref<16x64xf32, #tpu.memory_space<vmem>>, vector<16x64xf32>
    %270 = arith.addf %269, %268 : vector<16x64xf32>
    %c0_295 = arith.constant 0 : index
    %c0_296 = arith.constant 0 : index
    %271 = vector.load %arg32[%c0_295, %c0_296] : memref<16x64xf32, #tpu.memory_space<vmem>>, vector<16x64xf32>
    tpu.vector_store %arg32[%c0_295, %c0_296], %270 {strides = array<i32>} : memref<16x64xf32, #tpu.memory_space<vmem>>, vector<16x64xf32>,
    %c4 = arith.constant 4 : index
    %c192_297 = arith.constant 192 : index
    %272 = vector.load %arg27[%c4, %c192_297] : memref<26x576xf32, #tpu.memory_space<vmem>>, vector<16x64xf32>
    %c0_298 = arith.constant 0 : index
    %c0_299 = arith.constant 0 : index
    %273 = vector.load %arg32[%c0_298, %c0_299] : memref<16x64xf32, #tpu.memory_space<vmem>>, vector<16x64xf32>
    %274 = arith.addf %273, %272 : vector<16x64xf32>
    %c0_300 = arith.constant 0 : index
    %c0_301 = arith.constant 0 : index
    %275 = vector.load %arg32[%c0_300, %c0_301] : memref<16x64xf32, #tpu.memory_space<vmem>>, vector<16x64xf32>
    tpu.vector_store %arg32[%c0_300, %c0_301], %274 {strides = array<i32>} : memref<16x64xf32, #tpu.memory_space<vmem>>, vector<16x64xf32>,
    %c5_302 = arith.constant 5 : index
    %c256_303 = arith.constant 256 : index
    %276 = vector.load %arg27[%c5_302, %c256_303] : memref<26x576xf32, #tpu.memory_space<vmem>>, vector<16x64xf32>
    %c0_304 = arith.constant 0 : index
    %c0_305 = arith.constant 0 : index
    %277 = vector.load %arg32[%c0_304, %c0_305] : memref<16x64xf32, #tpu.memory_space<vmem>>, vector<16x64xf32>
    %278 = arith.addf %277, %276 : vector<16x64xf32>
    %c0_306 = arith.constant 0 : index
    %c0_307 = arith.constant 0 : index
    %279 = vector.load %arg32[%c0_306, %c0_307] : memref<16x64xf32, #tpu.memory_space<vmem>>, vector<16x64xf32>
    tpu.vector_store %arg32[%c0_306, %c0_307], %278 {strides = array<i32>} : memref<16x64xf32, #tpu.memory_space<vmem>>, vector<16x64xf32>,
    %c6_308 = arith.constant 6 : index
    %c320 = arith.constant 320 : index
    %280 = vector.load %arg27[%c6_308, %c320] : memref<26x576xf32, #tpu.memory_space<vmem>>, vector<16x64xf32>
    %c0_309 = arith.constant 0 : index
    %c0_310 = arith.constant 0 : index
    %281 = vector.load %arg32[%c0_309, %c0_310] : memref<16x64xf32, #tpu.memory_space<vmem>>, vector<16x64xf32>
    %282 = arith.addf %281, %280 : vector<16x64xf32>
    %c0_311 = arith.constant 0 : index
    %c0_312 = arith.constant 0 : index
    %283 = vector.load %arg32[%c0_311, %c0_312] : memref<16x64xf32, #tpu.memory_space<vmem>>, vector<16x64xf32>
    tpu.vector_store %arg32[%c0_311, %c0_312], %282 {strides = array<i32>} : memref<16x64xf32, #tpu.memory_space<vmem>>, vector<16x64xf32>,
    %c8_313 = arith.constant 8 : index
    %c384 = arith.constant 384 : index
    %284 = vector.load %arg27[%c8_313, %c384] : memref<26x576xf32, #tpu.memory_space<vmem>>, vector<16x64xf32>
    %c0_314 = arith.constant 0 : index
    %c0_315 = arith.constant 0 : index
    %285 = vector.load %arg32[%c0_314, %c0_315] : memref<16x64xf32, #tpu.memory_space<vmem>>, vector<16x64xf32>
    %286 = arith.addf %285, %284 : vector<16x64xf32>
    %c0_316 = arith.constant 0 : index
    %c0_317 = arith.constant 0 : index
    %287 = vector.load %arg32[%c0_316, %c0_317] : memref<16x64xf32, #tpu.memory_space<vmem>>, vector<16x64xf32>
    tpu.vector_store %arg32[%c0_316, %c0_317], %286 {strides = array<i32>} : memref<16x64xf32, #tpu.memory_space<vmem>>, vector<16x64xf32>,
    %c9_318 = arith.constant 9 : index
    %c448 = arith.constant 448 : index
    %288 = vector.load %arg27[%c9_318, %c448] : memref<26x576xf32, #tpu.memory_space<vmem>>, vector<16x64xf32>
    %c0_319 = arith.constant 0 : index
    %c0_320 = arith.constant 0 : index
    %289 = vector.load %arg32[%c0_319, %c0_320] : memref<16x64xf32, #tpu.memory_space<vmem>>, vector<16x64xf32>
    %290 = arith.addf %289, %288 : vector<16x64xf32>
    %c0_321 = arith.constant 0 : index
    %c0_322 = arith.constant 0 : index
    %291 = vector.load %arg32[%c0_321, %c0_322] : memref<16x64xf32, #tpu.memory_space<vmem>>, vector<16x64xf32>
    tpu.vector_store %arg32[%c0_321, %c0_322], %290 {strides = array<i32>} : memref<16x64xf32, #tpu.memory_space<vmem>>, vector<16x64xf32>,
    %c10_323 = arith.constant 10 : index
    %c512 = arith.constant 512 : index
    %292 = vector.load %arg27[%c10_323, %c512] : memref<26x576xf32, #tpu.memory_space<vmem>>, vector<16x64xf32>
    %c0_324 = arith.constant 0 : index
    %c0_325 = arith.constant 0 : index
    %293 = vector.load %arg32[%c0_324, %c0_325] : memref<16x64xf32, #tpu.memory_space<vmem>>, vector<16x64xf32>
    %294 = arith.addf %293, %292 : vector<16x64xf32>
    %c0_326 = arith.constant 0 : index
    %c0_327 = arith.constant 0 : index
    %295 = vector.load %arg32[%c0_326, %c0_327] : memref<16x64xf32, #tpu.memory_space<vmem>>, vector<16x64xf32>
    tpu.vector_store %arg32[%c0_326, %c0_327], %294 {strides = array<i32>} : memref<16x64xf32, #tpu.memory_space<vmem>>, vector<16x64xf32>,
    %c0_328 = arith.constant 0 : index
    %c0_329 = arith.constant 0 : index
    %296 = vector.load %arg32[%c0_328, %c0_329] : memref<16x64xf32, #tpu.memory_space<vmem>>, vector<16x64xf32>
    %c0_330 = arith.constant 0 : index
    %c0_331 = arith.constant 0 : index
    %297 = vector.load %arg9[%c0_330, %c0_331] : memref<1x64xf32, #tpu.memory_space<vmem>>, vector<1x64xf32>
    %298 = vector.broadcast %297 : vector<1x64xf32> to vector<16x64xf32>
    %299 = arith.addf %296, %298 : vector<16x64xf32>
    %cst_332 = arith.constant 0.000000e+00 : f32
    %300 = vector.broadcast %cst_332 : f32 to vector<16x64xf32>
    %301 = arith.maximumf %299, %300 : vector<16x64xf32>
    %c0_333 = arith.constant 0 : index
    %c0_334 = arith.constant 0 : index
    %302 = vector.load %arg32[%c0_333, %c0_334] : memref<16x64xf32, #tpu.memory_space<vmem>>, vector<16x64xf32>
    tpu.vector_store %arg32[%c0_333, %c0_334], %301 {strides = array<i32>} : memref<16x64xf32, #tpu.memory_space<vmem>>, vector<16x64xf32>,
    %cst_335 = arith.constant 0.000000e+00 : f32
    %303 = vector.broadcast %cst_335 : f32 to vector<17x64xf32>
    %c0_336 = arith.constant 0 : index
    %c0_337 = arith.constant 0 : index
    %304 = vector.load %arg23[%c0_336, %c0_337] : memref<17x64xf32, #tpu.memory_space<vmem>>, vector<17x64xf32>
    tpu.vector_store %arg23[%c0_336, %c0_337], %303 {strides = array<i32>} : memref<17x64xf32, #tpu.memory_space<vmem>>, vector<17x64xf32>,
    %c0_338 = arith.constant 0 : index
    %c0_339 = arith.constant 0 : index
    %305 = vector.load %arg32[%c0_338, %c0_339] : memref<16x64xf32, #tpu.memory_space<vmem>>, vector<1x64xf32>
    %c1_340 = arith.constant 1 : index
    %c0_341 = arith.constant 0 : index
    %306 = vector.load %arg32[%c1_340, %c0_341] : memref<16x64xf32, #tpu.memory_space<vmem>>, vector<1x64xf32>
    %307 = arith.maximumf %305, %306 : vector<1x64xf32>
    %c4_342 = arith.constant 4 : index
    %c0_343 = arith.constant 0 : index
    %308 = vector.load %arg32[%c4_342, %c0_343] : memref<16x64xf32, #tpu.memory_space<vmem>>, vector<1x64xf32>
    %c5_344 = arith.constant 5 : index
    %c0_345 = arith.constant 0 : index
    %309 = vector.load %arg32[%c5_344, %c0_345] : memref<16x64xf32, #tpu.memory_space<vmem>>, vector<1x64xf32>
    %310 = arith.maximumf %308, %309 : vector<1x64xf32>
    %311 = arith.maximumf %307, %310 : vector<1x64xf32>
    %c4_346 = arith.constant 4 : index
    %c0_347 = arith.constant 0 : index
    %312 = vector.load %arg23[%c4_346, %c0_347] : memref<17x64xf32, #tpu.memory_space<vmem>>, vector<1x64xf32>
    tpu.vector_store %arg23[%c4_346, %c0_347], %311 {strides = array<i32>} : memref<17x64xf32, #tpu.memory_space<vmem>>, vector<1x64xf32>,
    %c0_348 = arith.constant 0 : index
    %c0_349 = arith.constant 0 : index
    %313 = vector.load %arg23[%c0_348, %c0_349] : memref<17x64xf32, #tpu.memory_space<vmem>>, vector<17x64xf32>
    %314 = arith.truncf %313 : vector<17x64xf32> to vector<17x64xbf16>
    %c0_350 = arith.constant 0 : index
    %c0_351 = arith.constant 0 : index
    %315 = vector.load %arg10[%c0_350, %c0_351] : memref<64x1152xbf16, #tpu.memory_space<vmem>>, vector<64x1152xbf16>
    %cst_352 = arith.constant dense<0.000000e+00> : vector<17x1152xf32>
    %316 = tpu.matmul %314, %315, %cst_352 {dimension_numbers = #tpu.dot_dimension_numbers<[1], [0], [0], [1], [0, 0, 1, 1], [], []>} : vector<17x64xbf16>, vector<64x1152xbf16>, vector<17x1152xf32> -> vector<17x1152xf32>
    %c0_353 = arith.constant 0 : index
    %c0_354 = arith.constant 0 : index
    %317 = vector.load %arg28[%c0_353, %c0_354] : memref<17x1152xf32, #tpu.memory_space<vmem>>, vector<17x1152xf32>
    tpu.vector_store %arg28[%c0_353, %c0_354], %316 {strides = array<i32>} : memref<17x1152xf32, #tpu.memory_space<vmem>>, vector<17x1152xf32>,
    %c0_355 = arith.constant 0 : index
    %c0_356 = arith.constant 0 : index
    %318 = vector.load %arg28[%c0_355, %c0_356] : memref<17x1152xf32, #tpu.memory_space<vmem>>, vector<9x128xf32>
    %c0_357 = arith.constant 0 : index
    %c0_358 = arith.constant 0 : index
    %319 = vector.load %arg33[%c0_357, %c0_358] : memref<9x128xf32, #tpu.memory_space<vmem>>, vector<9x128xf32>
    tpu.vector_store %arg33[%c0_357, %c0_358], %318 {strides = array<i32>} : memref<9x128xf32, #tpu.memory_space<vmem>>, vector<9x128xf32>,
    %c1_359 = arith.constant 1 : index
    %c128_360 = arith.constant 128 : index
    %320 = vector.load %arg28[%c1_359, %c128_360] : memref<17x1152xf32, #tpu.memory_space<vmem>>, vector<9x128xf32>
    %c0_361 = arith.constant 0 : index
    %c0_362 = arith.constant 0 : index
    %321 = vector.load %arg33[%c0_361, %c0_362] : memref<9x128xf32, #tpu.memory_space<vmem>>, vector<9x128xf32>
    %322 = arith.addf %321, %320 : vector<9x128xf32>
    %c0_363 = arith.constant 0 : index
    %c0_364 = arith.constant 0 : index
    %323 = vector.load %arg33[%c0_363, %c0_364] : memref<9x128xf32, #tpu.memory_space<vmem>>, vector<9x128xf32>
    tpu.vector_store %arg33[%c0_363, %c0_364], %322 {strides = array<i32>} : memref<9x128xf32, #tpu.memory_space<vmem>>, vector<9x128xf32>,
    %c2_365 = arith.constant 2 : index
    %c256_366 = arith.constant 256 : index
    %324 = vector.load %arg28[%c2_365, %c256_366] : memref<17x1152xf32, #tpu.memory_space<vmem>>, vector<9x128xf32>
    %c0_367 = arith.constant 0 : index
    %c0_368 = arith.constant 0 : index
    %325 = vector.load %arg33[%c0_367, %c0_368] : memref<9x128xf32, #tpu.memory_space<vmem>>, vector<9x128xf32>
    %326 = arith.addf %325, %324 : vector<9x128xf32>
    %c0_369 = arith.constant 0 : index
    %c0_370 = arith.constant 0 : index
    %327 = vector.load %arg33[%c0_369, %c0_370] : memref<9x128xf32, #tpu.memory_space<vmem>>, vector<9x128xf32>
    tpu.vector_store %arg33[%c0_369, %c0_370], %326 {strides = array<i32>} : memref<9x128xf32, #tpu.memory_space<vmem>>, vector<9x128xf32>,
    %c3 = arith.constant 3 : index
    %c384_371 = arith.constant 384 : index
    %328 = vector.load %arg28[%c3, %c384_371] : memref<17x1152xf32, #tpu.memory_space<vmem>>, vector<9x128xf32>
    %c0_372 = arith.constant 0 : index
    %c0_373 = arith.constant 0 : index
    %329 = vector.load %arg33[%c0_372, %c0_373] : memref<9x128xf32, #tpu.memory_space<vmem>>, vector<9x128xf32>
    %330 = arith.addf %329, %328 : vector<9x128xf32>
    %c0_374 = arith.constant 0 : index
    %c0_375 = arith.constant 0 : index
    %331 = vector.load %arg33[%c0_374, %c0_375] : memref<9x128xf32, #tpu.memory_space<vmem>>, vector<9x128xf32>
    tpu.vector_store %arg33[%c0_374, %c0_375], %330 {strides = array<i32>} : memref<9x128xf32, #tpu.memory_space<vmem>>, vector<9x128xf32>,
    %c4_376 = arith.constant 4 : index
    %c512_377 = arith.constant 512 : index
    %332 = vector.load %arg28[%c4_376, %c512_377] : memref<17x1152xf32, #tpu.memory_space<vmem>>, vector<9x128xf32>
    %c0_378 = arith.constant 0 : index
    %c0_379 = arith.constant 0 : index
    %333 = vector.load %arg33[%c0_378, %c0_379] : memref<9x128xf32, #tpu.memory_space<vmem>>, vector<9x128xf32>
    %334 = arith.addf %333, %332 : vector<9x128xf32>
    %c0_380 = arith.constant 0 : index
    %c0_381 = arith.constant 0 : index
    %335 = vector.load %arg33[%c0_380, %c0_381] : memref<9x128xf32, #tpu.memory_space<vmem>>, vector<9x128xf32>
    tpu.vector_store %arg33[%c0_380, %c0_381], %334 {strides = array<i32>} : memref<9x128xf32, #tpu.memory_space<vmem>>, vector<9x128xf32>,
    %c5_382 = arith.constant 5 : index
    %c640 = arith.constant 640 : index
    %336 = vector.load %arg28[%c5_382, %c640] : memref<17x1152xf32, #tpu.memory_space<vmem>>, vector<9x128xf32>
    %c0_383 = arith.constant 0 : index
    %c0_384 = arith.constant 0 : index
    %337 = vector.load %arg33[%c0_383, %c0_384] : memref<9x128xf32, #tpu.memory_space<vmem>>, vector<9x128xf32>
    %338 = arith.addf %337, %336 : vector<9x128xf32>
    %c0_385 = arith.constant 0 : index
    %c0_386 = arith.constant 0 : index
    %339 = vector.load %arg33[%c0_385, %c0_386] : memref<9x128xf32, #tpu.memory_space<vmem>>, vector<9x128xf32>
    tpu.vector_store %arg33[%c0_385, %c0_386], %338 {strides = array<i32>} : memref<9x128xf32, #tpu.memory_space<vmem>>, vector<9x128xf32>,
    %c6_387 = arith.constant 6 : index
    %c768 = arith.constant 768 : index
    %340 = vector.load %arg28[%c6_387, %c768] : memref<17x1152xf32, #tpu.memory_space<vmem>>, vector<9x128xf32>
    %c0_388 = arith.constant 0 : index
    %c0_389 = arith.constant 0 : index
    %341 = vector.load %arg33[%c0_388, %c0_389] : memref<9x128xf32, #tpu.memory_space<vmem>>, vector<9x128xf32>
    %342 = arith.addf %341, %340 : vector<9x128xf32>
    %c0_390 = arith.constant 0 : index
    %c0_391 = arith.constant 0 : index
    %343 = vector.load %arg33[%c0_390, %c0_391] : memref<9x128xf32, #tpu.memory_space<vmem>>, vector<9x128xf32>
    tpu.vector_store %arg33[%c0_390, %c0_391], %342 {strides = array<i32>} : memref<9x128xf32, #tpu.memory_space<vmem>>, vector<9x128xf32>,
    %c7_392 = arith.constant 7 : index
    %c896 = arith.constant 896 : index
    %344 = vector.load %arg28[%c7_392, %c896] : memref<17x1152xf32, #tpu.memory_space<vmem>>, vector<9x128xf32>
    %c0_393 = arith.constant 0 : index
    %c0_394 = arith.constant 0 : index
    %345 = vector.load %arg33[%c0_393, %c0_394] : memref<9x128xf32, #tpu.memory_space<vmem>>, vector<9x128xf32>
    %346 = arith.addf %345, %344 : vector<9x128xf32>
    %c0_395 = arith.constant 0 : index
    %c0_396 = arith.constant 0 : index
    %347 = vector.load %arg33[%c0_395, %c0_396] : memref<9x128xf32, #tpu.memory_space<vmem>>, vector<9x128xf32>
    tpu.vector_store %arg33[%c0_395, %c0_396], %346 {strides = array<i32>} : memref<9x128xf32, #tpu.memory_space<vmem>>, vector<9x128xf32>,
    %c8_397 = arith.constant 8 : index
    %c1024 = arith.constant 1024 : index
    %348 = vector.load %arg28[%c8_397, %c1024] : memref<17x1152xf32, #tpu.memory_space<vmem>>, vector<9x128xf32>
    %c0_398 = arith.constant 0 : index
    %c0_399 = arith.constant 0 : index
    %349 = vector.load %arg33[%c0_398, %c0_399] : memref<9x128xf32, #tpu.memory_space<vmem>>, vector<9x128xf32>
    %350 = arith.addf %349, %348 : vector<9x128xf32>
    %c0_400 = arith.constant 0 : index
    %c0_401 = arith.constant 0 : index
    %351 = vector.load %arg33[%c0_400, %c0_401] : memref<9x128xf32, #tpu.memory_space<vmem>>, vector<9x128xf32>
    tpu.vector_store %arg33[%c0_400, %c0_401], %350 {strides = array<i32>} : memref<9x128xf32, #tpu.memory_space<vmem>>, vector<9x128xf32>,
    %c0_402 = arith.constant 0 : index
    %c0_403 = arith.constant 0 : index
    %352 = vector.load %arg33[%c0_402, %c0_403] : memref<9x128xf32, #tpu.memory_space<vmem>>, vector<9x128xf32>
    %c0_404 = arith.constant 0 : index
    %c0_405 = arith.constant 0 : index
    %353 = vector.load %arg11[%c0_404, %c0_405] : memref<1x128xf32, #tpu.memory_space<vmem>>, vector<1x128xf32>
    %354 = vector.broadcast %353 : vector<1x128xf32> to vector<9x128xf32>
    %355 = arith.addf %352, %354 : vector<9x128xf32>
    %cst_406 = arith.constant 0.000000e+00 : f32
    %356 = vector.broadcast %cst_406 : f32 to vector<9x128xf32>
    %357 = arith.maximumf %355, %356 : vector<9x128xf32>
    %c0_407 = arith.constant 0 : index
    %c0_408 = arith.constant 0 : index
    %358 = vector.load %arg33[%c0_407, %c0_408] : memref<9x128xf32, #tpu.memory_space<vmem>>, vector<9x128xf32>
    tpu.vector_store %arg33[%c0_407, %c0_408], %357 {strides = array<i32>} : memref<9x128xf32, #tpu.memory_space<vmem>>, vector<9x128xf32>,
    %c0_409 = arith.constant 0 : index
    %c0_410 = arith.constant 0 : index
    %359 = vector.load %arg33[%c0_409, %c0_410] : memref<9x128xf32, #tpu.memory_space<vmem>>, vector<1x128xf32>
    %cst_411 = arith.constant dense<0.000000e+00> : vector<128xf32>
    %360 = vector.multi_reduction <add>, %359, %cst_411 [0] : vector<1x128xf32> to vector<128xf32>
    %361 = vector.shape_cast %360 : vector<128xf32> to vector<1x128xf32>
    %cst_412 = arith.constant 1.000000e+00 : f32
    %362 = vector.broadcast %cst_412 : f32 to vector<1x128xf32>
    %363 = arith.mulf %361, %362 : vector<1x128xf32>
    %c0_413 = arith.constant 0 : index
    %c0_414 = arith.constant 0 : index
    %c0_415 = arith.constant 0 : index
    %364 = vector.load %arg19[%c0_413, %c0_414, %c0_415] : memref<1x1x128xf32, #tpu.memory_space<vmem>>, vector<1x1x128xf32>
    %365 = vector.shape_cast %364 : vector<1x1x128xf32> to vector<1x128xf32>
    %366 = vector.shape_cast %363 : vector<1x128xf32> to vector<1x1x128xf32>
    tpu.vector_store %arg19[%c0_413, %c0_414, %c0_415], %366 {strides = array<i32>} : memref<1x1x128xf32, #tpu.memory_space<vmem>>, vector<1x1x128xf32>,
    %367 = arith.truncf %363 : vector<1x128xf32> to vector<1x128xbf16>
    %c0_416 = arith.constant 0 : index
    %c0_417 = arith.constant 0 : index
    %368 = vector.load %arg12[%c0_416, %c0_417] : memref<128x32xbf16, #tpu.memory_space<vmem>>, vector<128x32xbf16>
    %cst_418 = arith.constant dense<0.000000e+00> : vector<1x32xf32>
    %369 = tpu.matmul %367, %368, %cst_418 {dimension_numbers = #tpu.dot_dimension_numbers<[1], [0], [0], [1], [0, 0, 1, 1], [], []>} : vector<1x128xbf16>, vector<128x32xbf16>, vector<1x32xf32> -> vector<1x32xf32>
    %c0_419 = arith.constant 0 : index
    %c0_420 = arith.constant 0 : index
    %370 = vector.load %arg13[%c0_419, %c0_420] : memref<1x32xf32, #tpu.memory_space<vmem>>, vector<1x32xf32>
    %371 = arith.addf %369, %370 : vector<1x32xf32>
    %cst_421 = arith.constant 0.000000e+00 : f32
    %372 = vector.broadcast %cst_421 : f32 to vector<1x32xf32>
    %373 = arith.maximumf %371, %372 : vector<1x32xf32>
    %374 = arith.truncf %373 : vector<1x32xf32> to vector<1x32xbf16>
    %c0_422 = arith.constant 0 : index
    %c0_423 = arith.constant 0 : index
    %375 = vector.load %arg14[%c0_422, %c0_423] : memref<32x8xbf16, #tpu.memory_space<vmem>>, vector<32x8xbf16>
    %cst_424 = arith.constant dense<0.000000e+00> : vector<1x8xf32>
    %376 = tpu.matmul %374, %375, %cst_424 {dimension_numbers = #tpu.dot_dimension_numbers<[1], [0], [0], [1], [0, 0, 1, 1], [], []>} : vector<1x32xbf16>, vector<32x8xbf16>, vector<1x8xf32> -> vector<1x8xf32>
    %c0_425 = arith.constant 0 : index
    %c0_426 = arith.constant 0 : index
    %377 = vector.load %arg15[%c0_425, %c0_426] : memref<1x8xf32, #tpu.memory_space<vmem>>, vector<1x8xf32>
    %378 = arith.addf %376, %377 : vector<1x8xf32>
    %cst_427 = arith.constant 0.000000e+00 : f32
    %379 = vector.broadcast %cst_427 : f32 to vector<1x8xf32>
    %380 = arith.maximumf %378, %379 : vector<1x8xf32>
    %381 = arith.truncf %380 : vector<1x8xf32> to vector<1x8xbf16>
    %c0_428 = arith.constant 0 : index
    %c0_429 = arith.constant 0 : index
    %382 = vector.load %arg16[%c0_428, %c0_429] : memref<8x1xbf16, #tpu.memory_space<vmem>>, vector<8x1xbf16>
    %cst_430 = arith.constant dense<0.000000e+00> : vector<1x1xf32>
    %383 = tpu.matmul %381, %382, %cst_430 {dimension_numbers = #tpu.dot_dimension_numbers<[1], [0], [0], [1], [0, 0, 1, 1], [], []>} : vector<1x8xbf16>, vector<8x1xbf16>, vector<1x1xf32> -> vector<1x1xf32>
    %c0_431 = arith.constant 0 : index
    %c0_432 = arith.constant 0 : index
    %384 = vector.load %arg17[%c0_431, %c0_432] : memref<1x1xf32, #tpu.memory_space<vmem>>, vector<1x1xf32>
    %385 = arith.addf %383, %384 : vector<1x1xf32>
    %c0_433 = arith.constant 0 : index
    %c0_434 = arith.constant 0 : index
    %c0_435 = arith.constant 0 : index
    %386 = vector.load %arg18[%c0_433, %c0_434, %c0_435] : memref<1x1x1xf32, #tpu.memory_space<vmem>>, vector<1x1x1xf32>
    %387 = vector.shape_cast %386 : vector<1x1x1xf32> to vector<1x1xf32>
    %388 = vector.shape_cast %385 : vector<1x1xf32> to vector<1x1x1xf32>
    tpu.vector_store %arg18[%c0_433, %c0_434, %c0_435], %388 {strides = array<i32>} : memref<1x1x1xf32, #tpu.memory_space<vmem>>, vector<1x1x1xf32>,
    return
  }
  func.func @transform_0(%arg0: i32) -> (i32, i32, i32) {
    %c0_i32 = arith.constant 0 : i32
    %c0_i32_0 = arith.constant 0 : i32
    %c0_i32_1 = arith.constant 0 : i32
    return %arg0, %c0_i32, %c0_i32_0 : i32, i32, i32
  }
  func.func @transform_1(%arg0: i32) -> (i32, i32) {
    %c0_i32 = arith.constant 0 : i32
    %c0_i32_0 = arith.constant 0 : i32
    %c0_i32_1 = arith.constant 0 : i32
    return %c0_i32, %c0_i32_0 : i32, i32
  }
  func.func @transform_2(%arg0: i32) -> (i32, i32) {
    %c0_i32 = arith.constant 0 : i32
    %c0_i32_0 = arith.constant 0 : i32
    %c0_i32_1 = arith.constant 0 : i32
    return %c0_i32, %c0_i32_0 : i32, i32
  }
  func.func @transform_3(%arg0: i32) -> (i32, i32) {
    %c0_i32 = arith.constant 0 : i32
    %c0_i32_0 = arith.constant 0 : i32
    %c0_i32_1 = arith.constant 0 : i32
    return %c0_i32, %c0_i32_0 : i32, i32
  }
  func.func @transform_4(%arg0: i32) -> (i32, i32) {
    %c0_i32 = arith.constant 0 : i32
    %c0_i32_0 = arith.constant 0 : i32
    %c0_i32_1 = arith.constant 0 : i32
    return %c0_i32, %c0_i32_0 : i32, i32
  }
  func.func @transform_5(%arg0: i32) -> (i32, i32) {
    %c0_i32 = arith.constant 0 : i32
    %c0_i32_0 = arith.constant 0 : i32
    %c0_i32_1 = arith.constant 0 : i32
    return %c0_i32, %c0_i32_0 : i32, i32
  }
  func.func @transform_6(%arg0: i32) -> (i32, i32) {
    %c0_i32 = arith.constant 0 : i32
    %c0_i32_0 = arith.constant 0 : i32
    %c0_i32_1 = arith.constant 0 : i32
    return %c0_i32, %c0_i32_0 : i32, i32
  }
  func.func @transform_7(%arg0: i32) -> (i32, i32) {
    %c0_i32 = arith.constant 0 : i32
    %c0_i32_0 = arith.constant 0 : i32
    %c0_i32_1 = arith.constant 0 : i32
    return %c0_i32, %c0_i32_0 : i32, i32
  }
  func.func @transform_8(%arg0: i32) -> (i32, i32) {
    %c0_i32 = arith.constant 0 : i32
    %c0_i32_0 = arith.constant 0 : i32
    %c0_i32_1 = arith.constant 0 : i32
    return %c0_i32, %c0_i32_0 : i32, i32
  }
  func.func @transform_9(%arg0: i32) -> (i32, i32) {
    %c0_i32 = arith.constant 0 : i32
    %c0_i32_0 = arith.constant 0 : i32
    %c0_i32_1 = arith.constant 0 : i32
    return %c0_i32, %c0_i32_0 : i32, i32
  }
  func.func @transform_10(%arg0: i32) -> (i32, i32) {
    %c0_i32 = arith.constant 0 : i32
    %c0_i32_0 = arith.constant 0 : i32
    %c0_i32_1 = arith.constant 0 : i32
    return %c0_i32, %c0_i32_0 : i32, i32
  }
  func.func @transform_11(%arg0: i32) -> (i32, i32) {
    %c0_i32 = arith.constant 0 : i32
    %c0_i32_0 = arith.constant 0 : i32
    %c0_i32_1 = arith.constant 0 : i32
    return %c0_i32, %c0_i32_0 : i32, i32
  }
  func.func @transform_12(%arg0: i32) -> (i32, i32) {
    %c0_i32 = arith.constant 0 : i32
    %c0_i32_0 = arith.constant 0 : i32
    %c0_i32_1 = arith.constant 0 : i32
    return %c0_i32, %c0_i32_0 : i32, i32
  }
  func.func @transform_13(%arg0: i32) -> (i32, i32) {
    %c0_i32 = arith.constant 0 : i32
    %c0_i32_0 = arith.constant 0 : i32
    %c0_i32_1 = arith.constant 0 : i32
    return %c0_i32, %c0_i32_0 : i32, i32
  }
  func.func @transform_14(%arg0: i32) -> (i32, i32) {
    %c0_i32 = arith.constant 0 : i32
    %c0_i32_0 = arith.constant 0 : i32
    %c0_i32_1 = arith.constant 0 : i32
    return %c0_i32, %c0_i32_0 : i32, i32
  }
  func.func @transform_15(%arg0: i32) -> (i32, i32) {
    %c0_i32 = arith.constant 0 : i32
    %c0_i32_0 = arith.constant 0 : i32
    %c0_i32_1 = arith.constant 0 : i32
    return %c0_i32, %c0_i32_0 : i32, i32
  }
  func.func @transform_16(%arg0: i32) -> (i32, i32) {
    %c0_i32 = arith.constant 0 : i32
    %c0_i32_0 = arith.constant 0 : i32
    %c0_i32_1 = arith.constant 0 : i32
    return %c0_i32, %c0_i32_0 : i32, i32
  }
  func.func @transform_17(%arg0: i32) -> (i32, i32, i32) {
    %c0_i32 = arith.constant 0 : i32
    %c0_i32_0 = arith.constant 0 : i32
    %c0_i32_1 = arith.constant 0 : i32
    return %arg0, %c0_i32, %c0_i32_0 : i32, i32, i32
  }
  func.func @transform_18(%arg0: i32) -> (i32, i32, i32) {
    %c0_i32 = arith.constant 0 : i32
    %c0_i32_0 = arith.constant 0 : i32
    %c0_i32_1 = arith.constant 0 : i32
    return %arg0, %c0_i32, %c0_i32_0 : i32, i32, i32
  }
}

</mosaic_0001>

<bundles_post_ra>
// kernel: _forward_impl.1
= control target key start
LH: loop header
LB: loop body
LE: loop exit
PB: predicated region body
PF: predicated region fallthrough
CT: control target
= control target key end

     0   :  { %s10408_s0 = inlined_call_operand.vmem [shape: f32[2,362,8], index: 0, kind: input, shape index: {}]   ;;  %s10409_s1 = inlined_call_operand.vmem [shape: bf16[8,72], index: 1, kind: input, shape index: {}]   ;;  %s10410_s2 = inlined_call_operand.vmem [shape: f32[1,8], index: 2, kind: input, shape index: {}]   ;;  %s10411_s3 = inlined_call_operand.vmem [shape: bf16[8,144], index: 3, kind: input, shape index: {}]   ;;  %s10412_s4 = inlined_call_operand.vmem [shape: f32[1,16], index: 4, kind: input, shape index: {}]   ;;  %s10413_s5 = inlined_call_operand.vmem [shape: bf16[16,288], index: 5, kind: input, shape index: {}]   ;;  %s10414_s6 = inlined_call_operand.vmem [shape: f32[1,32], index: 6, kind: input, shape index: {}]   ;;  %s10415_s7 = inlined_call_operand.vmem [shape: bf16[32,576], index: 7, kind: input, shape index: {}]   ;;  %s10416_s8 = inlined_call_operand.vmem [shape: f32[1,64], index: 8, kind: input, shape index: {}]   ;;  %s10417_s9 = inlined_call_operand.vmem [shape: bf16[64,1152], index: 9, kind: input, shape index: {}]   ;;  %s10418_s10 = inlined_call_operand.vmem [shape: f32[1,128], index: 10, kind: input, shape index: {}]   ;;  %s10419_s11 = inlined_call_operand.vmem [shape: bf16[128,32], index: 11, kind: input, shape index: {}]   ;;  %s10420_s12 = inlined_call_operand.vmem [shape: f32[1,32], index: 12, kind: input, shape index: {}]   ;;  %s10421_s13 = inlined_call_operand.vmem [shape: bf16[32,8], index: 13, kind: input, shape index: {}]   ;;  %s10422_s14 = inlined_call_operand.vmem [shape: f32[1,8], index: 14, kind: input, shape index: {}]   ;;  %s10423_s15 = inlined_call_operand.vmem [shape: bf16[8,1], index: 15, kind: input, shape index: {}]   ;;  %s10424_s16 = inlined_call_operand.<no memory space> [shape: f32[1,1], index: 16, kind: input, shape index: {}]   ;;  %s10425_s17 = inlined_call_operand.vmem [shape: f32[2,1,1], index: 17, kind: output, shape index: {0}]   ;;  %s10426_s18 = inlined_call_operand.hbm [shape: f32[2,1,128], index: 18, kind: output, shape index: {1}]  }
   0x1   :  { %10461 = sst [smem:[#allocation29_spill]] %s10408_s0  ;;  %v24_v0 = vstv %s10424_s16 }
   0x2   :  { %10462 = sst [smem:[#allocation30_spill]] %s10409_s1  ;;  %25 = vst [vmem:[#allocation16] sm:$0x1] %v24_v0 }
   0x3   :  { %10463 = sst [smem:[#allocation31_spill]] %s10410_s2 }
   0x4   :  { %10464 = sst [smem:[#allocation32_spill]] %s10411_s3 }
   0x5   :  { %10465 = sst [smem:[#allocation33_spill]] %s10413_s5 }
   0x6   :  { %10466 = sst [smem:[#allocation34_spill]] %s10422_s14 }
   0x7   :  { %10467 = sst [smem:[#allocation35_spill]] %s10423_s15 }
   0x8   :  { %10468 = sst [smem:[#allocation36_spill]] %s10425_s17 }
   0x9   :  { %10469 = sst [smem:[#allocation37_spill]] %s10426_s18 }
   0xa   :  { %26 = vsyncpa [#allocation18], 0 }
   0xb   :  { %28 = vsyncpa [#allocation18 + $0x1], 0  ;;  %s8059_s29 = smov 0   ;;  %s8061_s30 = smov 0  }
   0xc   :  { %s8063_s0 = smov 0   ;;  %s8065_s19 = smov 0  }
   0xd LB: > { %10470 = sst [smem:[#allocation20_spill]] %s7932_s29  ;;  %s8080_s16 = sadd.s32 4294967295, %s7944_s19   ;;  %s7944_s19 = sphi %s8065_s19, %s10507_s19   ;;  %s7940_s0 = sphi %s8063_s0, %s10509_s0   ;;  %s7936_s30 = sphi %s8061_s30, %s10511_s30   ;;  %s7932_s29 = sphi %s8059_s29, %s10510_s29  }
   0xe   : > { %10471 = sst [smem:[#allocation21_spill]] %s7940_s0  ;;  %s7399_s1 = sadd.s32 4294967294, %s7944_s19  }
   0xf   : > { %10472 = sst [smem:[#allocation22_spill]] %s7944_s19  ;;  %s8084_s20 = sadd.s32 1, %s7944_s19  }
  0x10   : > { %10473 = sst [smem:[#allocation23_spill]] %s8080_s16  ;;  %s429_s21 = sadd.s32 1, %s7940_s0 }
  0x11   : > { %10474 = sst [smem:[#allocation24_spill]] %s8084_s20  ;;  %s426_s22 = ssub.s32 %s7944_s19, %s8084_s20 }
  0x12   : > { %p439_p0 = scmp.ne.s32.totalorder %s7940_s0, %s7936_s30  ;;  %p427_p1 = scmp.eq.s32.totalorder %s426_s22, 0 }
  0x13   : > { %p440_p2 = scmp.eq.s32.totalorder %s8080_s16, 1  ;;  %p445_p3 = scmp.ne.s32.totalorder %s7936_s30, %s7932_s29 }
  0x14   : > { %p446_p4 = scmp.eq.s32.totalorder %s7399_s1, 1  ;;  %p7402_p7 = scmp.ge.s32.totalorder %s7944_s19, 1 }
  0x15   : > { %s8095_s2 = scalar_select %p427_p1, %s7940_s0, %s429_s21  }
  0x16   : > { %p8097_p5 = por %p440_p2, %p439_p0  ;;  %p8101_p6 = por %p446_p4, %p445_p3 }
  0x17   : > { %10475 = sst [smem:[#allocation25_spill]] %s8095_s2  ;;  %p520_p8 = scmp.lt.s32.totalorder %s7944_s19, 3 }
  0x18   : > { %s10476_s23 = scalar_select %p8097_p5, 1, 0 }
  0x19   : > { %s10478_s24 = scalar_select %p8101_p6, 1, 0 }
  0x1a   : > { %10477 = sst [smem:[#allocation26_spill]] %s10476_s23  ;;  %p521_p9 = pnand %p7402_p7, %p520_p8 }
  0x1b   : > { %10479 = sst [smem:[#allocation27_spill]] %s10478_s24 }
  0x1c   : > { %524 = sbr.rel (%p521_p9) target bundleno = 3253 (0xcb5), region = 88 }
  0x23   : > { %s10480_s27 = sld [smem:[#allocation30_spill]]  ;;  %vm725_vm0 = vcmask 1043456   ;;  %p576_p10 = scmp.lt.s32.totalorder %s8080_s16, 1  ;;  %v7946_v2 = vmov 0.0   ;;  %vm7947_vm1 = vmmov 0   ;;  %vm655_vm2 = vcmask 64512  }
  0x24   : > { %7584 = vmatprep.subr.bf16.mxu0 %v7946_v2  ;;  %7586 = vmatprep.mubr.msk.bf16.mxu0 %vm7947_vm1, %v7946_v2  ;;  %3872 = vst.msk [vmem:[#allocation2] sm:$0xff] %vm655_vm2, %v7946_v2  ;;  %3873 = vst.msk [vmem:[#allocation2 + $0x8] sm:$0xff] %vm655_vm2, %v7946_v2  ;;  %s10482_s25 = sld [smem:[#allocation29_spill]]  ;;  %vm946_vm3 = vcmask 588800   ;;  %s10443_s21 = smov 96   ;;  %vm1075_vm4 = vcmask 60416  }
  0x25   : > { %s8116_s28 = scalar_select %p576_p10, %s8080_s16, 1  ;;  %3874 = vst.msk [vmem:[#allocation2 + $0x10] sm:$0xff] %vm655_vm2, %v7946_v2  ;;  %3875 = vst.msk [vmem:[#allocation2 + $0x18] sm:$0xff] %vm655_vm2, %v7946_v2  ;;  %vm3887_vm5 = vcmask 58368   ;;  %vm4158_vm6 = vcmask 130048   ;;  %vm4257_vm7 = vcmask 1046528  }
  0x26   : > { %3876 = vst.msk [vmem:[#allocation2 + $0x20] sm:$0xff] %vm655_vm2, %v7946_v2  ;;  %3877 = vst.msk [vmem:[#allocation2 + $0x28] sm:$0xff] %vm655_vm2, %v7946_v2  ;;  %s10428_s22 = smov 104   ;;  %s10486_s2 = smov 72   ;;  %vm4387_vm8 = vcmask 1045504   ;;  %vm4646_vm9 = vcmask 1044480  }
  0x27   : > { %10481 = sst [smem:[#allocation28_spill]] %s8116_s28  ;;  %3878 = vst.msk [vmem:[#allocation2 + $0x30] sm:$0xff] %vm655_vm2, %v7946_v2  ;;  %3879 = vst.msk [vmem:[#allocation2 + $0x38] sm:$0xff] %vm655_vm2, %v7946_v2  ;;  %s7742_s1 = smul.u32 368, %s8116_s28  ;;  %vm5036_vm10 = vcmask 1042432   ;;  %vm4216_vm11 = vcmask 125952  }
  0x28   : > { %3880 = vst.msk [vmem:[#allocation2 + $0x40] sm:$0xff] %vm655_vm2, %v7946_v2  ;;  %3881 = vst.msk [vmem:[#allocation2 + $0x48] sm:$0xff] %vm655_vm2, %v7946_v2  ;;  %s10488_s0 = smov 80   ;;  %s10445_s20 = smov 64   ;;  %vm4189_vm12 = vcmask 123904   ;;  %vm5170_vm13 = vcmask 1041408  }
  0x29   : > { %v654_v1 = vld [vmem:[%s10480_s27] sm:$0xf]  ;;  %3882 = vst.msk [vmem:[#allocation2 + $0x50] sm:$0xff] %vm655_vm2, %v7946_v2  ;;  %3883 = vst.msk [vmem:[#allocation2 + $0x58] sm:$0xff] %vm655_vm2, %v7946_v2  ;;  %s10436_s27 = smov 120   ;;  %s10489_s3 = sld [smem:[#allocation32_spill]] }
  0x2a   : > { %v727_v3 = vsel %vm725_vm0, %v654_v1, 0  ;;  %3884 = vst.msk [vmem:[#allocation2 + $0x60] sm:$0xff] %vm655_vm2, %v7946_v2  ;;  %3885 = vst.msk [vmem:[#allocation2 + $0x68] sm:$0xff] %vm655_vm2, %v7946_v2  ;;  %s8152_s26 = scalar_lea.vmem %s10482_s25, %s7742_s1  ;;  %s10430_s1 = smov 112   ;;  %vm5530_vm14 = vcmask 261120   ;;  %vm5549_vm15 = vcmask 254976  }
  0x2b   : > { %7585 = vmatpush3.bf16.msra.mxu0 %v727_v3  ;;  %3886 = vst.msk [vmem:[#allocation2 + $0x70] sm:$0xff] %vm655_vm2, %v7946_v2  ;;  %v585_v4 = vld [vmem:[%s8152_s26] sm:$0xff]  ;;  %v586_v5 = vld [vmem:[%s8152_s26 + $0x8] sm:$0xff]  ;;  %v587_v7 = vld [vmem:[%s8152_s26 + $0x10] sm:$0xff]  ;;  %s10432_s25 = smov 88   ;;  %s10491_s24 = sld [smem:[#allocation31_spill]] }
  0x2c   : > { %v631_v6 = vpack.c.bf16 %v586_v5, %v585_v4  ;;  %v588_v8 = vld [vmem:[%s8152_s26 + $0x18] sm:$0xff]  ;;  %v589_v10 = vld [vmem:[%s8152_s26 + $0x20] sm:$0xff]  ;;  %v590_v11 = vld [vmem:[%s8152_s26 + $0x28] sm:$0xff]  ;;  %3888 = vst.msk [vmem:[#allocation2 + $0x78] sm:$0x3] %vm3887_vm5, %v7946_v2  ;;  %s10493_s29 = smov 48  }
  0x2d   : > { %v632_v9 = vpack.c.bf16 %v588_v8, %v587_v7  ;;  %v633_v12 = vpack.c.bf16 %v590_v11, %v589_v10  ;;  %v591_v13 = vld [vmem:[%s8152_s26 + $0x30] sm:$0xff]  ;;  %v592_v14 = vld [vmem:[%s8152_s26 + $0x38] sm:$0xff]  ;;  %v593_v16 = vld [vmem:[%s8152_s26 + $0x40] sm:$0xff]  ;;  %5296 = vst.msk [vmem:[#allocation3] sm:$0xff] %vm4158_vm6, %v7946_v2  ;;  %s10456_s19 = smov 16   ;;  %s10494_s5 = sld [smem:[#allocation33_spill]] }
  0x2e   : > { %7587 = vmatmul.mubr.msk.bf16.vlgmr.msra.gmra.mrb[0].mxu0 %vm655_vm2, %v631_v6  ;;  %v634_v15 = vpack.c.bf16 %v592_v14, %v591_v13  ;;  %v594_v17 = vld [vmem:[%s8152_s26 + $0x48] sm:$0xff]  ;;  %v595_v19 = vld [vmem:[%s8152_s26 + $0x50] sm:$0xff]  ;;  %v596_v20 = vld [vmem:[%s8152_s26 + $0x58] sm:$0xff]  ;;  %5297 = vst.msk [vmem:[#allocation3 + $0x8] sm:$0xff] %vm4158_vm6, %v7946_v2  ;;  %vm5730_vm5 = vcmask 1040384   ;;  %s10497_s16 = sld [smem:[#allocation35_spill]] }
  0x2f   : > { %7590 = vmatprep.mubr.msk.bf16.mxu0 %vm7947_vm1, %v7946_v2  ;;  %v635_v18 = vpack.c.bf16 %v594_v17, %v593_v16  ;;  %v636_v21 = vpack.c.bf16 %v596_v20, %v595_v19  ;;  %v597_v22 = vld [vmem:[%s8152_s26 + $0x60] sm:$0xff]  ;;  %v598_v23 = vld [vmem:[%s8152_s26 + $0x68] sm:$0xff]  ;;  %v599_v25 = vld [vmem:[%s8152_s26 + $0x70] sm:$0xff]  ;;  %5298 = vst.msk [vmem:[#allocation3 + $0x10] sm:$0xff] %vm4158_vm6, %v7946_v2  ;;  %s10499_s18 = sld [smem:[#allocation34_spill]] }
  0x30   : > { %v637_v24 = vpack.c.bf16 %v598_v23, %v597_v22  ;;  %v600_v26 = vld [vmem:[%s8152_s26 + $0x78] sm:$0xff]  ;;  %v601_v28 = vld [vmem:[%s8152_s26 + $0x80] sm:$0xff]  ;;  %v602_v29 = vld [vmem:[%s8152_s26 + $0x88] sm:$0xff]  ;;  %5299 = vst.msk [vmem:[#allocation3 + $0x18] sm:$0xff] %vm4158_vm6, %v7946_v2 }
  0x31   : > { %v638_v27 = vpack.c.bf16 %v600_v26, %v599_v25  ;;  %v639_v30 = vpack.c.bf16 %v602_v29, %v601_v28  ;;  %v603_v31 = vld [vmem:[%s8152_s26 + $0x90] sm:$0xff]  ;;  %v604_v32 = vld [vmem:[%s8152_s26 + $0x98] sm:$0xff]  ;;  %v605_v34 = vld [vmem:[%s8152_s26 + $0xa0] sm:$0xff]  ;;  %5300 = vst.msk [vmem:[#allocation3 + $0x20] sm:$0xff] %vm4158_vm6, %v7946_v2 }
  0x32   : > { %v640_v33 = vpack.c.bf16 %v604_v32, %v603_v31  ;;  %v606_v35 = vld [vmem:[%s8152_s26 + $0xa8] sm:$0xff]  ;;  %v607_v37 = vld [vmem:[%s8152_s26 + $0xb0] sm:$0xff]  ;;  %v608_v38 = vld [vmem:[%s8152_s26 + $0xb8] sm:$0xff]  ;;  %5301 = vst.msk [vmem:[#allocation3 + $0x28] sm:$0xff] %vm4158_vm6, %v7946_v2 }
  0x33   : > { %v641_v36 = vpack.c.bf16 %v606_v35, %v605_v34  ;;  %v642_v39 = vpack.c.bf16 %v608_v38, %v607_v37  ;;  %v609_v40 = vld [vmem:[%s8152_s26 + $0xc0] sm:$0xff]  ;;  %v610_v41 = vld [vmem:[%s8152_s26 + $0xc8] sm:$0xff]  ;;  %v611_v43 = vld [vmem:[%s8152_s26 + $0xd0] sm:$0xff]  ;;  %5302 = vst.msk [vmem:[#allocation3 + $0x30] sm:$0x3] %vm4189_vm12, %v7946_v2 }
  0x34   : > { %v643_v42 = vpack.c.bf16 %v610_v41, %v609_v40  ;;  %v612_v44 = vld [vmem:[%s8152_s26 + $0xd8] sm:$0xff]  ;;  %v613_v46 = vld [vmem:[%s8152_s26 + $0xe0] sm:$0xff]  ;;  %v614_v47 = vld [vmem:[%s8152_s26 + $0xe8] sm:$0xff]  ;;  %5969 = vst.msk [vmem:[#allocation4] sm:$0xff] %vm5530_vm14, %v7946_v2 }
  0x35   : > { %v644_v45 = vpack.c.bf16 %v612_v44, %v611_v43  ;;  %v645_v48 = vpack.c.bf16 %v614_v47, %v613_v46  ;;  %v615_v49 = vld [vmem:[%s8152_s26 + $0xf0] sm:$0xff]  ;;  %v616_v50 = vld [vmem:[%s8152_s26 + $0xf8] sm:$0xff]  ;;  %v617_v52 = vld [vmem:[%s8152_s26 + $0x100] sm:$0xff]  ;;  %5970 = vst.msk [vmem:[#allocation4 + $0x8] sm:$0xff] %vm5530_vm14, %v7946_v2 }
  0x36   : > { %7591 = vmatmul.mubr.msk.bf16.gmra.mrb[4].mxu0 %vm655_vm2, %v632_v9  ;;  %v646_v51 = vpack.c.bf16 %v616_v50, %v615_v49  ;;  %v618_v53 = vld [vmem:[%s8152_s26 + $0x108] sm:$0xff]  ;;  %v619_v55 = vld [vmem:[%s8152_s26 + $0x110] sm:$0xff]  ;;  %v620_v56 = vld [vmem:[%s8152_s26 + $0x118] sm:$0xff]  ;;  %5971 = vst.msk [vmem:[#allocation4 + $0x10] sm:$0xff] %vm5530_vm14, %v7946_v2 }
  0x37   : > { %7594 = vmatprep.mubr.msk.bf16.mxu0 %vm7947_vm1, %v7946_v2  ;;  %v647_v54 = vpack.c.bf16 %v618_v53, %v617_v52  ;;  %v648_v57 = vpack.c.bf16 %v620_v56, %v619_v55  ;;  %v621_v6 = vld [vmem:[%s8152_s26 + $0x120] sm:$0xff]  ;;  %v622_v7 = vld [vmem:[%s8152_s26 + $0x128] sm:$0xff]  ;;  %v624_v28 = vld [vmem:[%s8152_s26 + $0x138] sm:$0xff]  ;;  %5972 = vst.msk [vmem:[#allocation4 + $0x18] sm:$0x3] %vm5549_vm15, %v7946_v2 }
  0x38   : > { %v649_v8 = vpack.c.bf16 %v622_v7, %v621_v6  ;;  %v626_v50 = vld [vmem:[%s8152_s26 + $0x148] sm:$0xff] }
  0x3e   : > { %7595 = vmatmul.mubr.msk.bf16.gmra.mrb[8].mxu0 %vm655_vm2, %v633_v12 }
  0x3f   : > { %7598 = vmatprep.mubr.msk.bf16.mxu0 %vm7947_vm1, %v7946_v2 }
  0x46   : > { %7599 = vmatmul.mubr.msk.bf16.gmra.mrb[12].mxu0 %vm655_vm2, %v634_v15 }
  0x47   : > { %7602 = vmatprep.mubr.msk.bf16.mxu0 %vm7947_vm1, %v7946_v2 }
  0x4e   : > { %7603 = vmatmul.mubr.msk.bf16.gmra.mrb[16].mxu0 %vm655_vm2, %v635_v18 }
  0x4f   : > { %7606 = vmatprep.mubr.msk.bf16.mxu0 %vm7947_vm1, %v7946_v2 }
  0x56   : > { %7607 = vmatmul.mubr.msk.bf16.gmra.mrb[20].mxu0 %vm655_vm2, %v636_v21 }
  0x57   : > { %7610 = vmatprep.mubr.msk.bf16.mxu0 %vm7947_vm1, %v7946_v2 }
  0x5e   : > { %7611 = vmatmul.mubr.msk.bf16.gmra.mrb[24].mxu0 %vm655_vm2, %v637_v24 }
  0x5f   : > { %7614 = vmatprep.mubr.msk.bf16.mxu0 %vm7947_vm1, %v7946_v2 }
  0x66   : > { %7615 = vmatmul.mubr.msk.bf16.gmra.mrb[28].mxu0 %vm655_vm2, %v638_v27  ;;  %v623_v27 = vld [vmem:[%s8152_s26 + $0x130] sm:$0xff] }
  0x67   : > { %7618 = vmatprep.mubr.msk.bf16.mxu0 %vm7947_vm1, %v7946_v2 }
  0x6e   : > { %7619 = vmatmul.mubr.msk.bf16.gmra.mrb[32].mxu0 %vm655_vm2, %v639_v30  ;;  %v650_v30 = vpack.c.bf16 %v624_v28, %v623_v27 }
  0x6f   : > { %7622 = vmatprep.mubr.msk.bf16.mxu0 %vm7947_vm1, %v7946_v2 }
  0x76   : > { %7623 = vmatmul.mubr.msk.bf16.gmra.mrb[36].mxu0 %vm655_vm2, %v640_v33 }
  0x77   : > { %7626 = vmatprep.mubr.msk.bf16.mxu0 %vm7947_vm1, %v7946_v2 }
  0x7e   : > { %7627 = vmatmul.mubr.msk.bf16.gmra.mrb[40].mxu0 %vm655_vm2, %v641_v36 }
  0x7f   : > { %7630 = vmatprep.mubr.msk.bf16.mxu0 %vm7947_vm1, %v7946_v2 }
  0x86   : > { %7631 = vmatmul.mubr.msk.bf16.gmra.mrb[44].mxu0 %vm655_vm2, %v642_v39 }
  0x87   : > { %7634 = vmatprep.mubr.msk.bf16.mxu0 %vm7947_vm1, %v7946_v2 }
  0x8e   : > { %7635 = vmatmul.mubr.msk.bf16.gmra.mrb[48].mxu0 %vm655_vm2, %v643_v42 }
  0x8f   : > { %7638 = vmatprep.mubr.msk.bf16.mxu0 %vm7947_vm1, %v7946_v2 }
  0x96   : > { %7639 = vmatmul.mubr.msk.bf16.gmra.mrb[52].mxu0 %vm655_vm2, %v644_v45 }
  0x97   : > { %7642 = vmatprep.mubr.msk.bf16.mxu0 %vm7947_vm1, %v7946_v2 }
  0x9e   : > { %7643 = vmatmul.mubr.msk.bf16.gmra.mrb[56].mxu0 %vm655_vm2, %v645_v48  ;;  %v625_v48 = vld [vmem:[%s8152_s26 + $0x140] sm:$0xff] }
  0x9f   : > { %7646 = vmatprep.mubr.msk.bf16.mxu0 %vm7947_vm1, %v7946_v2 }
  0xa6   : > { %7647 = vmatmul.mubr.msk.bf16.gmra.mrb[60].mxu0 %vm655_vm2, %v646_v51  ;;  %v651_v51 = vpack.c.bf16 %v626_v50, %v625_v48 }
  0xa7   : > { %7650 = vmatprep.mubr.msk.bf16.mxu0 %vm7947_vm1, %v7946_v2 }
  0xae   : > { %7651 = vmatmul.mubr.msk.bf16.gmra.mrb[64].mxu0 %vm655_vm2, %v647_v54 }
  0xaf   : > { %7654 = vmatprep.mubr.msk.bf16.mxu0 %vm7947_vm1, %v7946_v2 }
  0xb6   : > { %7655 = vmatmul.mubr.msk.bf16.gmra.mrb[68].mxu0 %vm655_vm2, %v648_v57 }
  0xb7   : > { %7658 = vmatprep.mubr.msk.bf16.mxu0 %vm7947_vm1, %v7946_v2 }
  0xbe   : > { %7659 = vmatmul.mubr.msk.bf16.gmra.mrb[72].mxu0 %vm655_vm2, %v649_v8 }
  0xbf   : > { %7662 = vmatprep.mubr.msk.bf16.mxu0 %vm7947_vm1, %v7946_v2 }
  0xc6   : > { %7663 = vmatmul.mubr.msk.bf16.gmra.mrb[76].mxu0 %vm655_vm2, %v650_v30 }
  0xc7   : > { %7666 = vmatprep.mubr.msk.bf16.mxu0 %vm7947_vm1, %v7946_v2 }
  0xce   : > { %7667 = vmatmul.mubr.msk.bf16.gmra.mrb[80].mxu0 %vm655_vm2, %v651_v51 }
  0xcf   : > { %7670 = vmatprep.mubr.msk.bf16.mxu0 %vm7947_vm1, %v7946_v2 }
 0x101   : > { %v763_v58 = vpop.f32.mrb[0].mxu0 }
 0x102   : > { %947 = vst.msk [vmem:[#allocation6] sm:$0xff] %vm946_vm3, %v763_v58  ;;  %v7588_v59 = vpop.f32.mrb[1].mxu0 }
 0x103   : > { %v766_v60 = vpop.f32.mrb[2].mxu0 }
 0x104   : > { %948 = vst.msk [vmem:[#allocation6 + $0x8] sm:$0xff] %vm946_vm3, %v766_v60  ;;  %v7589_v61 = vpop.f32.mrb[3].mxu0 }
 0x109   : > { %v771_v62 = vpop.f32.mrb[4].mxu0  ;;  %v994_v63 = vld [vmem:[#allocation6] sm:$0xff] }
 0x10a   : > { %949 = vst.msk [vmem:[#allocation6 + $0x10] sm:$0xff] %vm946_vm3, %v771_v62  ;;  %v7592_v0 = vpop.f32.mrb[5].mxu0 }
 0x10b   : > { %1035 = vst.msk [vmem:[#allocation11] sm:$0xff] %vm655_vm2, %v994_v63  ;;  %v774_v1 = vpop.f32.mrb[6].mxu0  ;;  %v1077_v3 = vld [vmem:[#allocation6 + $0x1] sm:$0xff] }
 0x10c   : > { %v995_v4 = vld [vmem:[#allocation6 + $0x8] sm:$0xff]  ;;  %950 = vst.msk [vmem:[#allocation6 + $0x18] sm:$0xff] %vm946_vm3, %v774_v1  ;;  %1200 = vrot.lane.b32.xlu0 %v1077_v3, %s10436_s27  ;;  %v7593_v5 = vpop.f32.mrb[7].mxu0 }
 0x10d   : > { %1036 = vst.msk [vmem:[#allocation11 + $0x8] sm:$0xff] %vm655_vm2, %v995_v4  ;;  %v1405_v9 = vld [vmem:[#allocation6 + $0x2] sm:$0xff] }
 0x110   : > { %1528 = vrot.lane.b32.xlu0 %v1405_v9, %s10430_s1 }
 0x111   : > { %v779_v10 = vpop.f32.mrb[8].mxu0  ;;  %v1406_v11 = vld [vmem:[#allocation6 + $0xa] sm:$0xff] }
 0x112   : > { %951 = vst.msk [vmem:[#allocation6 + $0x20] sm:$0xff] %vm946_vm3, %v779_v10  ;;  %1530 = vrot.lane.b32.xlu1 %v1406_v11, %s10430_s1  ;;  %v7596_v12 = vpop.f32.mrb[9].mxu0  ;;  %v996_v13 = vld [vmem:[#allocation6 + $0x10] sm:$0xff] }
 0x113   : > { %v1078_v14 = vld [vmem:[#allocation6 + $0x9] sm:$0xff]  ;;  %v782_v15 = vpop.f32.mrb[10].mxu0  ;;  %1037 = vst.msk [vmem:[#allocation11 + $0x10] sm:$0xff] %vm655_vm2, %v996_v13  ;;  %v997_v17 = vld [vmem:[#allocation6 + $0x18] sm:$0xff] }
 0x114   : > { %1202 = vrot.lane.b32.xlu0 %v1078_v14, %s10436_s27  ;;  %952 = vst.msk [vmem:[#allocation6 + $0x28] sm:$0xff] %vm946_vm3, %v782_v15  ;;  %v7597_v16 = vpop.f32.mrb[11].mxu0  ;;  %v1079_v18 = vld [vmem:[#allocation6 + $0x11] sm:$0xff] }
 0x115   : > { %1038 = vst.msk [vmem:[#allocation11 + $0x18] sm:$0xff] %vm655_vm2, %v997_v17  ;;  %v1407_v19 = vld [vmem:[#allocation6 + $0x12] sm:$0xff] }
 0x116   : > { %1204 = vrot.lane.b32.xlu1 %v1079_v18, %s10436_s27  ;;  %v2061_v21 = vld [vmem:[#allocation6 + $0x13] sm:$0xff] }
 0x117   : > { %v2389_v25 = vld [vmem:[#allocation6 + $0x14] sm:$0xff] }
 0x118   : > { %1532 = vrot.lane.b32.xlu0 %v1407_v19, %s10430_s1 }
 0x119   : > { %v787_v20 = vpop.f32.mrb[12].mxu0  ;;  %v998_v23 = vld [vmem:[#allocation6 + $0x20] sm:$0xff] }
 0x11a   : > { %953 = vst.msk [vmem:[#allocation6 + $0x30] sm:$0xff] %vm946_vm3, %v787_v20  ;;  %2184 = vrot.lane.b32.xlu1 %v2061_v21, %s10443_s21  ;;  %v7600_v22 = vpop.f32.mrb[13].mxu0  ;;  %v2062_v31 = vld [vmem:[#allocation6 + $0x1b] sm:$0xff] }
 0x11b   : > { %v790_v24 = vpop.f32.mrb[14].mxu0  ;;  %1039 = vst.msk [vmem:[#allocation11 + $0x20] sm:$0xff] %vm655_vm2, %v998_v23  ;;  %v999_v29 = vld [vmem:[#allocation6 + $0x28] sm:$0xff]  ;;  %v1080_v32 = vld [vmem:[#allocation6 + $0x19] sm:$0xff] }
 0x11c   : > { %1856 = vrot.lane.b32.xlu0 %v1407_v19, %s10428_s22  ;;  %954 = vst.msk [vmem:[#allocation6 + $0x38] sm:$0xff] %vm946_vm3, %v790_v24  ;;  %v7601_v26 = vpop.f32.mrb[15].mxu0  ;;  %v2390_v35 = vld [vmem:[#allocation6 + $0x1c] sm:$0xff]  ;;  %v2391_v53 = vld [vmem:[#allocation6 + $0x24] sm:$0xff] }
 0x11d   : > { %1040 = vst.msk [vmem:[#allocation11 + $0x28] sm:$0xff] %vm655_vm2, %v999_v29  ;;  %v1408_v39 = vld [vmem:[#allocation6 + $0x1a] sm:$0xff]  ;;  %v1409_v45 = vld [vmem:[#allocation6 + $0x22] sm:$0xff] }
 0x11e   : > { %2512 = vrot.lane.b32.xlu1 %v2389_v25, %s10432_s25  ;;  %v1081_v41 = vld [vmem:[#allocation6 + $0x21] sm:$0xff] }
 0x11f   : > { %v2063_v49 = vld [vmem:[#allocation6 + $0x23] sm:$0xff] }
 0x120   : > { %2186 = vrot.lane.b32.xlu0 %v2062_v31, %s10443_s21  ;;  %v3045_v62 = vld [vmem:[#allocation6 + $0x25] sm:$0xff] }
 0x121   : > { %v795_v33 = vpop.f32.mrb[16].mxu0  ;;  %v1000_v38 = vld [vmem:[#allocation6 + $0x30] sm:$0xff] }
 0x122   : > { %1206 = vrot.lane.b32.xlu1 %v1080_v32, %s10436_s27  ;;  %955 = vst.msk [vmem:[#allocation6 + $0x40] sm:$0xff] %vm946_vm3, %v795_v33  ;;  %v7604_v34 = vpop.f32.mrb[17].mxu0  ;;  %v2064_v57 = vld [vmem:[#allocation6 + $0x2b] sm:$0xff] }
 0x123   : > { %v798_v36 = vpop.f32.mrb[18].mxu0  ;;  %1041 = vst.msk [vmem:[#allocation11 + $0x30] sm:$0xff] %vm655_vm2, %v1000_v38  ;;  %v1001_v40 = vld [vmem:[#allocation6 + $0x38] sm:$0xff]  ;;  %v2392_v61 = vld [vmem:[#allocation6 + $0x2c] sm:$0xff] }
 0x124   : > { %2514 = vrot.lane.b32.xlu0 %v2390_v35, %s10432_s25  ;;  %956 = vst.msk [vmem:[#allocation6 + $0x48] sm:$0xff] %vm946_vm3, %v798_v36  ;;  %v7605_v37 = vpop.f32.mrb[19].mxu0  ;;  %v1082_v6 = vld [vmem:[#allocation6 + $0x29] sm:$0xff]  ;;  %v1083_v12 = vld [vmem:[#allocation6 + $0x31] sm:$0xff] }
 0x125   : > { %1042 = vst.msk [vmem:[#allocation11 + $0x38] sm:$0xff] %vm655_vm2, %v1001_v40  ;;  %v3046_v7 = vld [vmem:[#allocation6 + $0x2d] sm:$0xff]  ;;  %v3047_v31 = vld [vmem:[#allocation6 + $0x35] sm:$0xff] }
 0x126   : > { %1534 = vrot.lane.b32.xlu1 %v1408_v39, %s10430_s1  ;;  %v1410_v8 = vld [vmem:[#allocation6 + $0x2a] sm:$0xff]  ;;  %v1411_v16 = vld [vmem:[#allocation6 + $0x32] sm:$0xff] }
 0x127   : > { %v2065_v17 = vld [vmem:[#allocation6 + $0x33] sm:$0xff] }
 0x128   : > { %1208 = vrot.lane.b32.xlu0 %v1081_v41, %s10436_s27  ;;  %v2393_v24 = vld [vmem:[#allocation6 + $0x34] sm:$0xff] }
 0x129   : > { %v803_v42 = vpop.f32.mrb[20].mxu0  ;;  %v1002_v44 = vld [vmem:[#allocation6 + $0x40] sm:$0xff] }
 0x12a   : > { %1858 = vrot.lane.b32.xlu1 %v1408_v39, %s10428_s22  ;;  %957 = vst.msk [vmem:[#allocation6 + $0x50] sm:$0xff] %vm946_vm3, %v803_v42  ;;  %v7608_v43 = vpop.f32.mrb[21].mxu0  ;;  %v1738_v25 = vld [vmem:[#allocation6 + $0x3a] sm:$0xff] }
 0x12b   : > { %v806_v46 = vpop.f32.mrb[22].mxu0  ;;  %1043 = vst.msk [vmem:[#allocation11 + $0x40] sm:$0xff] %vm655_vm2, %v1002_v44  ;;  %v1003_v52 = vld [vmem:[#allocation6 + $0x48] sm:$0xff]  ;;  %v2066_v29 = vld [vmem:[#allocation6 + $0x3b] sm:$0xff] }
 0x12c   : > { %1536 = vrot.lane.b32.xlu0 %v1409_v45, %s10430_s1  ;;  %958 = vst.msk [vmem:[#allocation6 + $0x58] sm:$0xff] %vm946_vm3, %v806_v46  ;;  %v7609_v47 = vpop.f32.mrb[23].mxu0  ;;  %s10434_s1 = smov 72   ;;  %v2394_v32 = vld [vmem:[#allocation6 + $0x3c] sm:$0xff]  ;;  %v2395_v43 = vld [vmem:[#allocation6 + $0x44] sm:$0xff] }
 0x12d   : > { %1044 = vst.msk [vmem:[#allocation11 + $0x48] sm:$0xff] %vm655_vm2, %v1003_v52  ;;  %v1084_v33 = vld [vmem:[#allocation6 + $0x39] sm:$0xff]  ;;  %v1739_v39 = vld [vmem:[#allocation6 + $0x42] sm:$0xff] }
 0x12e   : > { %2188 = vrot.lane.b32.xlu1 %v2063_v49, %s10443_s21  ;;  %v3048_v37 = vld [vmem:[#allocation6 + $0x3d] sm:$0xff]  ;;  %v3049_v48 = vld [vmem:[#allocation6 + $0x45] sm:$0xff] }
 0x12f   : > { %v1085_v40 = vld [vmem:[#allocation6 + $0x41] sm:$0xff] }
 0x130   : > { %1860 = vrot.lane.b32.xlu0 %v1409_v45, %s10428_s22  ;;  %s10438_s22 = smov 80   ;;  %v2067_v41 = vld [vmem:[#allocation6 + $0x43] sm:$0xff] }
 0x131   : > { %v811_v54 = vpop.f32.mrb[24].mxu0  ;;  %v1004_v56 = vld [vmem:[#allocation6 + $0x50] sm:$0xff] }
 0x132   : > { %2516 = vrot.lane.b32.xlu1 %v2391_v53, %s10432_s25  ;;  %959 = vst.msk [vmem:[#allocation6 + $0x60] sm:$0xff] %vm946_vm3, %v811_v54  ;;  %v7612_v55 = vpop.f32.mrb[25].mxu0  ;;  %v1740_v45 = vld [vmem:[#allocation6 + $0x4a] sm:$0xff] }
 0x133   : > { %v814_v58 = vpop.f32.mrb[26].mxu0  ;;  %1045 = vst.msk [vmem:[#allocation11 + $0x50] sm:$0xff] %vm655_vm2, %v1004_v56  ;;  %v1005_v60 = vld [vmem:[#allocation6 + $0x58] sm:$0xff]  ;;  %v2068_v46 = vld [vmem:[#allocation6 + $0x4b] sm:$0xff] }
 0x134   : > { %2190 = vrot.lane.b32.xlu0 %v2064_v57, %s10443_s21  ;;  %960 = vst.msk [vmem:[#allocation6 + $0x68] sm:$0xff] %vm946_vm3, %v814_v58  ;;  %v7613_v59 = vpop.f32.mrb[27].mxu0  ;;  %v2396_v51 = vld [vmem:[#allocation6 + $0x4c] sm:$0xff] }
 0x135   : > { %1046 = vst.msk [vmem:[#allocation11 + $0x58] sm:$0xff] %vm655_vm2, %v1005_v60  ;;  %v1087_v54 = vld [vmem:[#allocation6 + $0x51] sm:$0xff] }
 0x136   : > { %2840 = vrot.lane.b32.xlu1 %v2391_v53, %s10438_s22  ;;  %v1086_v53 = vld [vmem:[#allocation6 + $0x49] sm:$0xff]  ;;  %v1741_v56 = vld [vmem:[#allocation6 + $0x52] sm:$0xff] }
 0x137   : > { %v1118_v58 = vld [vmem:[#allocation11] sm:$0xff] }
 0x138   : > { %2518 = vrot.lane.b32.xlu0 %v2392_v61, %s10432_s25  ;;  %s10483_s25 = smov 112  }
 0x139   : > { %v819_v63 = vpop.f32.mrb[28].mxu0  ;;  %v1006_v1 = vld [vmem:[#allocation6 + $0x60] sm:$0xff] }
 0x13a   : > { %3168 = vrot.lane.b32.xlu1 %v3045_v62, %s10434_s1  ;;  %961 = vst.msk [vmem:[#allocation6 + $0x70] sm:$0xff] %vm946_vm3, %v819_v63  ;;  %v7616_v0 = vpop.f32.mrb[29].mxu0  ;;  %v1742_v63 = vld [vmem:[#allocation6 + $0x5a] sm:$0xff] }
 0x13b   : > { %v822_v3 = vpop.f32.mrb[30].mxu0  ;;  %1047 = vst.msk [vmem:[#allocation11 + $0x60] sm:$0xff] %vm655_vm2, %v1006_v1  ;;  %v1007_v5 = vld [vmem:[#allocation6 + $0x68] sm:$0xff] }
 0x13c   : > { %2842 = vrot.lane.b32.xlu0 %v2392_v61, %s10438_s22  ;;  %962 = vst.msk [vmem:[#allocation6 + $0x78] sm:$0xff] %vm946_vm3, %v822_v3  ;;  %v7617_v4 = vpop.f32.mrb[31].mxu0  ;;  %v2069_v61 = vld [vmem:[#allocation6 + $0x53] sm:$0xff] }
 0x13d   : > { %1048 = vst.msk [vmem:[#allocation11 + $0x68] sm:$0xff] %vm655_vm2, %v1007_v5  ;;  %v2397_v3 = vld [vmem:[#allocation6 + $0x54] sm:$0xff] }
 0x13e   : > { %1210 = vrot.lane.b32.xlu1 %v1082_v6, %s10436_s27  ;;  %v1119_v5 = vld [vmem:[#allocation11 + $0x8] sm:$0xff] }
 0x140   : > { %3170 = vrot.lane.b32.xlu0 %v3046_v7, %s10434_s1  ;;  %s10484_s1 = smov 104  }
 0x141   : > { %v827_v9 = vpop.f32.mrb[32].mxu0  ;;  %v1008_v11 = vld [vmem:[#allocation6 + $0x70] sm:$0xff] }
 0x142   : > { %1538 = vrot.lane.b32.xlu1 %v1410_v8, %s10483_s25  ;;  %963 = vst.msk [vmem:[#allocation6 + $0x80] sm:$0xff] %vm946_vm3, %v827_v9  ;;  %v7620_v10 = vpop.f32.mrb[33].mxu0  ;;  %v2070_v9 = vld [vmem:[#allocation6 + $0x5b] sm:$0xff] }
 0x143   : > { %v830_v13 = vpop.f32.mrb[34].mxu0  ;;  %1049 = vst.msk [vmem:[#allocation11 + $0x70] sm:$0xff] %vm655_vm2, %v1008_v11  ;;  %v1009_v15 = vld [vmem:[#allocation6 + $0x78] sm:$0xff] }
 0x144   : > { %1212 = vrot.lane.b32.xlu0 %v1083_v12, %s10436_s27  ;;  %964 = vst.msk [vmem:[#allocation6 + $0x88] sm:$0xff] %vm946_vm3, %v830_v13  ;;  %v7621_v14 = vpop.f32.mrb[35].mxu0  ;;  %s10485_s27 = smov 88   ;;  %v1120_v12 = vld [vmem:[#allocation11 + $0x10] sm:$0xff] }
 0x145   : > { %1050 = vst.msk [vmem:[#allocation11 + $0x78] sm:$0xff] %vm655_vm2, %v1009_v15 }
 0x146   : > { %1862 = vrot.lane.b32.xlu1 %v1410_v8, %s10484_s1 }
 0x148   : > { %1540 = vrot.lane.b32.xlu0 %v1411_v16, %s10483_s25 }
 0x149   : > { %v835_v18 = vpop.f32.mrb[36].mxu0  ;;  %v1010_v20 = vld [vmem:[#allocation6 + $0x80] sm:$0xff] }
 0x14a   : > { %2192 = vrot.lane.b32.xlu1 %v2065_v17, %s10443_s21  ;;  %965 = vst.msk [vmem:[#allocation6 + $0x90] sm:$0xff] %vm946_vm3, %v835_v18  ;;  %v7624_v19 = vpop.f32.mrb[37].mxu0  ;;  %v2398_v17 = vld [vmem:[#allocation6 + $0x5c] sm:$0xff] }
 0x14b   : > { %v838_v21 = vpop.f32.mrb[38].mxu0  ;;  %1051 = vst.msk [vmem:[#allocation11 + $0x80] sm:$0xff] %vm655_vm2, %v1010_v20  ;;  %v1011_v23 = vld [vmem:[#allocation6 + $0x88] sm:$0xff]  ;;  %v1088_v19 = vld [vmem:[#allocation6 + $0x59] sm:$0xff] }
 0x14c   : > { %1864 = vrot.lane.b32.xlu0 %v1411_v16, %s10484_s1  ;;  %966 = vst.msk [vmem:[#allocation6 + $0x98] sm:$0xff] %vm946_vm3, %v838_v21  ;;  %v7625_v22 = vpop.f32.mrb[39].mxu0 }
 0x14d   : > { %1052 = vst.msk [vmem:[#allocation11 + $0x88] sm:$0xff] %vm655_vm2, %v1011_v23 }
 0x14e   : > { %2520 = vrot.lane.b32.xlu1 %v2393_v24, %s10485_s27 }
 0x150   : > { %1866 = vrot.lane.b32.xlu0 %v1738_v25, %s10484_s1 }
 0x151   : > { %v843_v26 = vpop.f32.mrb[40].mxu0  ;;  %v1012_v28 = vld [vmem:[#allocation6 + $0x90] sm:$0xff] }
 0x152   : > { %2844 = vrot.lane.b32.xlu1 %v2393_v24, %s10438_s22  ;;  %967 = vst.msk [vmem:[#allocation6 + $0xa0] sm:$0xff] %vm946_vm3, %v843_v26  ;;  %v7628_v27 = vpop.f32.mrb[41].mxu0  ;;  %s10487_s22 = smov 120  }
 0x153   : > { %1053 = vst.msk [vmem:[#allocation11 + $0x90] sm:$0xff] %vm655_vm2, %v1012_v28  ;;  %v1013_v30 = vld [vmem:[#allocation6 + $0x98] sm:$0xff]  ;;  %v846_v34 = vpop.f32.mrb[42].mxu0 }
 0x154   : > { %2194 = vrot.lane.b32.xlu0 %v2066_v29, %s10443_s21  ;;  %1054 = vst.msk [vmem:[#allocation11 + $0x98] sm:$0xff] %vm655_vm2, %v1013_v30  ;;  %v7629_v35 = vpop.f32.mrb[43].mxu0 }
 0x155   : > { %968 = vst.msk [vmem:[#allocation6 + $0xa8] sm:$0xff] %vm946_vm3, %v846_v34  ;;  %v1743_v35 = vld [vmem:[#allocation6 + $0x62] sm:$0xff] }
 0x156   : > { %3172 = vrot.lane.b32.xlu1 %v3047_v31, %s10486_s2  ;;  %v1089_v31 = vld [vmem:[#allocation6 + $0x61] sm:$0xff] }
 0x158   : > { %2522 = vrot.lane.b32.xlu0 %v2394_v32, %s10485_s27 }
 0x159   : > { %v851_v36 = vpop.f32.mrb[44].mxu0  ;;  %v1014_v42 = vld [vmem:[#allocation6 + $0xa0] sm:$0xff] }
 0x15a   : > { %1214 = vrot.lane.b32.xlu1 %v1084_v33, %s10487_s22  ;;  %969 = vst.msk [vmem:[#allocation6 + $0xb0] sm:$0xff] %vm946_vm3, %v851_v36  ;;  %v7632_v38 = vpop.f32.mrb[45].mxu0 }
 0x15b   : > { %1055 = vst.msk [vmem:[#allocation11 + $0xa0] sm:$0xff] %vm655_vm2, %v1014_v42  ;;  %v854_v47 = vpop.f32.mrb[46].mxu0 }
 0x15c   : > { %2846 = vrot.lane.b32.xlu0 %v2394_v32, %s10488_s0  ;;  %v1015_v44 = vld [vmem:[#allocation6 + $0xa8] sm:$0xff]  ;;  %970 = vst.msk [vmem:[#allocation6 + $0xb8] sm:$0xff] %vm946_vm3, %v854_v47  ;;  %v7633_v49 = vpop.f32.mrb[47].mxu0 }
 0x15d   : > { %1056 = vst.msk [vmem:[#allocation11 + $0xa8] sm:$0xff] %vm655_vm2, %v1015_v44  ;;  %v1121_v32 = vld [vmem:[#allocation11 + $0x18] sm:$0xff] }
 0x15e   : > { %1542 = vrot.lane.b32.xlu1 %v1738_v25, %s10483_s25 }
 0x160   : > { %3174 = vrot.lane.b32.xlu0 %v3048_v37, %s10486_s2 }
 0x161   : > { %v859_v50 = vpop.f32.mrb[48].mxu0  ;;  %v1016_v55 = vld [vmem:[#allocation6 + $0xb0] sm:$0xff] }
 0x162   : > { %1868 = vrot.lane.b32.xlu1 %v1739_v39, %s10484_s1  ;;  %971 = vst.msk [vmem:[#allocation6 + $0xc0] sm:$0xff] %vm946_vm3, %v859_v50  ;;  %v7636_v52 = vpop.f32.mrb[49].mxu0 }
 0x163   : > { %1057 = vst.msk [vmem:[#allocation11 + $0xb0] sm:$0xff] %vm655_vm2, %v1016_v55  ;;  %v1017_v57 = vld [vmem:[#allocation6 + $0xb8] sm:$0xff]  ;;  %v862_v1 = vpop.f32.mrb[50].mxu0  ;;  %v2399_v52 = vld [vmem:[#allocation6 + $0x64] sm:$0xff] }
 0x164   : > { %1216 = vrot.lane.b32.xlu0 %v1085_v40, %s10487_s22  ;;  %1058 = vst.msk [vmem:[#allocation11 + $0xb8] sm:$0xff] %vm655_vm2, %v1017_v57  ;;  %v7637_v4 = vpop.f32.mrb[51].mxu0 }
 0x165   : > { %972 = vst.msk [vmem:[#allocation6 + $0xc8] sm:$0xff] %vm946_vm3, %v862_v1  ;;  %v1090_v1 = vld [vmem:[#allocation6 + $0x69] sm:$0xff] }
 0x166   : > { %2196 = vrot.lane.b32.xlu1 %v2067_v41, %s10443_s21  ;;  %v1122_v41 = vld [vmem:[#allocation11 + $0x20] sm:$0xff] }
 0x168   : > { %1544 = vrot.lane.b32.xlu0 %v1739_v39, %s10483_s25  ;;  %v2071_v39 = vld [vmem:[#allocation6 + $0x63] sm:$0xff] }
 0x169   : > { %v867_v7 = vpop.f32.mrb[52].mxu0  ;;  %v1018_v24 = vld [vmem:[#allocation6 + $0xc0] sm:$0xff] }
 0x16a   : > { %2524 = vrot.lane.b32.xlu1 %v2395_v43, %s10485_s27  ;;  %973 = vst.msk [vmem:[#allocation6 + $0xd0] sm:$0xff] %vm946_vm3, %v867_v7  ;;  %v7640_v10 = vpop.f32.mrb[53].mxu0 }
 0x16b   : > { %1059 = vst.msk [vmem:[#allocation11 + $0xc0] sm:$0xff] %vm655_vm2, %v1018_v24  ;;  %v870_v38 = vpop.f32.mrb[54].mxu0 }
 0x16c   : > { %1870 = vrot.lane.b32.xlu0 %v1740_v45, %s10484_s1  ;;  %v1019_v25 = vld [vmem:[#allocation6 + $0xc8] sm:$0xff]  ;;  %974 = vst.msk [vmem:[#allocation6 + $0xd8] sm:$0xff] %vm946_vm3, %v870_v38  ;;  %v7641_v40 = vpop.f32.mrb[55].mxu0 }
 0x16d   : > { %1060 = vst.msk [vmem:[#allocation11 + $0xc8] sm:$0xff] %vm655_vm2, %v1019_v25  ;;  %v1123_v25 = vld [vmem:[#allocation11 + $0x28] sm:$0xff] }
 0x16e   : > { %2848 = vrot.lane.b32.xlu1 %v2395_v43, %s10488_s0 }
 0x170   : > { %2198 = vrot.lane.b32.xlu0 %v2068_v46, %s10443_s21 }
 0x171   : > { %v875_v43 = vpop.f32.mrb[56].mxu0 }
 0x172   : > { %3176 = vrot.lane.b32.xlu1 %v3049_v48, %s10486_s2  ;;  %975 = vst.msk [vmem:[#allocation6 + $0xe0] sm:$0xff] %vm946_vm3, %v875_v43  ;;  %v7644_v46 = vpop.f32.mrb[57].mxu0  ;;  %v628_v43 = vld [vmem:[%s8152_s26 + $0x158] sm:$0xff] }
 0x173   : > { %v1021_v4 = vld [vmem:[#allocation6 + $0xd8] sm:$0xff] }
 0x174   : > { %2526 = vrot.lane.b32.xlu0 %v2396_v51, %s10485_s27  ;;  %1062 = vst.msk [vmem:[#allocation11 + $0xd8] sm:$0xff] %vm655_vm2, %v1021_v4 }
 0x176   : > { %1218 = vrot.lane.b32.xlu1 %v1086_v53, %s10487_s22 }
 0x178   : > { %2850 = vrot.lane.b32.xlu0 %v2396_v51, %s10488_s0 }
 0x17a   : > { %1546 = vrot.lane.b32.xlu1 %v1740_v45, %s10483_s25  ;;  %v1744_v45 = vld [vmem:[#allocation6 + $0x6a] sm:$0xff] }
 0x17c   : > { %1220 = vrot.lane.b32.xlu0 %v1087_v54, %s10487_s22 }
 0x17e   : > { %v1201_v59 = vpop.permute.xlu0 %1200  ;;  %1872 = vrot.lane.b32.xlu1 %v1741_v56, %s10484_s1 }
 0x17f   : > { %v1323_v60 = vadd.f32 %v1201_v59, %v1118_v58 }
 0x180   : > { %1548 = vrot.lane.b32.xlu0 %v1741_v56, %s10483_s25  ;;  %v2072_v56 = vld [vmem:[#allocation6 + $0x6b] sm:$0xff] }
 0x181   : > { %1364 = vst.msk [vmem:[#allocation11] sm:$0xff] %vm655_vm2, %v1323_v60 }
 0x182   : > { %v1529_v62 = vpop.permute.xlu0 %1528  ;;  %2200 = vrot.lane.b32.xlu1 %v2069_v61, %s10443_s21  ;;  %v2400_v61 = vld [vmem:[#allocation6 + $0x6c] sm:$0xff] }
 0x184   : > { %v1531_v0 = vpop.permute.xlu1 %1530  ;;  %1874 = vrot.lane.b32.xlu0 %v1742_v63, %s10484_s1 }
 0x186   : > { %v1203_v6 = vpop.permute.xlu0 %1202  ;;  %2528 = vrot.lane.b32.xlu1 %v2397_v3, %s10485_s27 }
 0x187   : > { %v1324_v8 = vadd.f32 %v1203_v6, %v1119_v5 }
 0x188   : > { %v1446_v11 = vld [vmem:[#allocation11] sm:$0xff]  ;;  %v1205_v13 = vpop.permute.xlu1 %1204  ;;  %2202 = vrot.lane.b32.xlu0 %v2070_v9, %s10443_s21 }
 0x189   : > { %v1651_v14 = vadd.f32 %v1529_v62, %v1446_v11  ;;  %1365 = vst.msk [vmem:[#allocation11 + $0x8] sm:$0xff] %vm655_vm2, %v1324_v8  ;;  %v1325_v15 = vadd.f32 %v1205_v13, %v1120_v12  ;;  %v1419_v12 = vld [vmem:[#allocation6 + $0x72] sm:$0xff] }
 0x18a   : > { %v1533_v16 = vpop.permute.xlu0 %1532  ;;  %2852 = vrot.lane.b32.xlu1 %v2397_v3, %s10488_s0  ;;  %v1020_v3 = vld [vmem:[#allocation6 + $0xd0] sm:$0xff] }
 0x18b   : > { %1692 = vst.msk [vmem:[#allocation11] sm:$0xff] %vm655_vm2, %v1651_v14  ;;  %1366 = vst.msk [vmem:[#allocation11 + $0x10] sm:$0xff] %vm655_vm2, %v1325_v15  ;;  %v878_v15 = vpop.f32.mrb[58].mxu0 }
 0x18c   : > { %v2185_v18 = vpop.permute.xlu1 %2184  ;;  %2530 = vrot.lane.b32.xlu0 %v2398_v17, %s10485_s27  ;;  %1061 = vst.msk [vmem:[#allocation11 + $0xd0] sm:$0xff] %vm655_vm2, %v1020_v3 }
 0x18d   : > { %976 = vst.msk [vmem:[#allocation6 + $0xe8] sm:$0xff] %vm946_vm3, %v878_v15 }
 0x18e   : > { %v1857_v20 = vpop.permute.xlu0 %1856  ;;  %1222 = vrot.lane.b32.xlu1 %v1088_v19, %s10487_s22 }
 0x190   : > { %v8379_v21 = vpop.permute.xlu1 %2512  ;;  %2854 = vrot.lane.b32.xlu0 %v2398_v17, %s10488_s0  ;;  %v1447_v22 = vld [vmem:[#allocation11 + $0x8] sm:$0xff] }
 0x191   : > { %v1652_v23 = vadd.f32 %v1531_v0, %v1447_v22  ;;  %v1091_v17 = vld [vmem:[#allocation6 + $0x71] sm:$0xff] }
 0x192   : > { %v1448_v26 = vld [vmem:[#allocation11 + $0x10] sm:$0xff]  ;;  %v1774_v27 = vld [vmem:[#allocation11] sm:$0xff]  ;;  %v8382_v28 = vpop.permute.xlu0 %2186  ;;  %1550 = vrot.lane.b32.xlu1 %v1742_v63, %s10483_s25 }
 0x193   : > { %v1653_v29 = vadd.f32 %v1533_v16, %v1448_v26  ;;  %v1979_v30 = vadd.f32 %v1857_v20, %v1774_v27  ;;  %1693 = vst.msk [vmem:[#allocation11 + $0x8] sm:$0xff] %vm655_vm2, %v1652_v23 }
 0x194   : > { %v1207_v33 = vpop.permute.xlu1 %1206  ;;  %1224 = vrot.lane.b32.xlu0 %v1089_v31, %s10487_s22  ;;  %v1746_v31 = vld [vmem:[#allocation6 + $0x7a] sm:$0xff] }
 0x195   : > { %1694 = vst.msk [vmem:[#allocation11 + $0x10] sm:$0xff] %vm655_vm2, %v1653_v29  ;;  %2020 = vst.msk [vmem:[#allocation11] sm:$0xff] %vm655_vm2, %v1979_v30  ;;  %v1326_v34 = vadd.f32 %v1207_v33, %v1121_v32  ;;  %v2073_v33 = vld [vmem:[#allocation6 + $0x73] sm:$0xff] }
 0x196   : > { %v8391_v36 = vpop.permute.xlu0 %2514  ;;  %1876 = vrot.lane.b32.xlu1 %v1743_v35, %s10484_s1 }
 0x197   : > { %1367 = vst.msk [vmem:[#allocation11 + $0x18] sm:$0xff] %vm655_vm2, %v1326_v34 }
 0x198   : > { %v1535_v37 = vpop.permute.xlu1 %1534  ;;  %1552 = vrot.lane.b32.xlu0 %v1743_v35, %s10483_s25  ;;  %v1124_v35 = vld [vmem:[#allocation11 + $0x30] sm:$0xff] }
 0x19a   : > { %v1209_v42 = vpop.permute.xlu0 %1208  ;;  %2204 = vrot.lane.b32.xlu1 %v2071_v39, %s10443_s21  ;;  %v1775_v48 = vld [vmem:[#allocation11 + $0x8] sm:$0xff] }
 0x19b   : > { %v1327_v44 = vadd.f32 %v1209_v42, %v1122_v41  ;;  %v2074_v39 = vld [vmem:[#allocation6 + $0x7b] sm:$0xff] }
 0x19c   : > { %v2102_v47 = vld [vmem:[#allocation11] sm:$0xff]  ;;  %v1859_v49 = vpop.permute.xlu1 %1858  ;;  %1878 = vrot.lane.b32.xlu0 %v1744_v45, %s10484_s1  ;;  %v1776_v58 = vld [vmem:[#allocation11 + $0x10] sm:$0xff] }
 0x19d   : > { %v2307_v50 = vadd.f32 %v2185_v18, %v2102_v47  ;;  %1368 = vst.msk [vmem:[#allocation11 + $0x20] sm:$0xff] %vm655_vm2, %v1327_v44  ;;  %v1980_v51 = vadd.f32 %v1859_v49, %v1775_v48  ;;  %v7645_v18 = vpop.f32.mrb[59].mxu0  ;;  %v627_v42 = vld [vmem:[%s8152_s26 + $0x150] sm:$0xff] }
 0x19e   : > { %v1449_v53 = vld [vmem:[#allocation11 + $0x18] sm:$0xff]  ;;  %v1537_v54 = vpop.permute.xlu0 %1536  ;;  %2532 = vrot.lane.b32.xlu1 %v2399_v52, %s10485_s27  ;;  %v883_v20 = vpop.f32.mrb[60].mxu0  ;;  %v652_v46 = vpack.c.bf16 %v628_v43, %v627_v42  ;;  %v1022_v47 = vld [vmem:[#allocation6 + $0xe0] sm:$0xff] }
 0x19f   : > { %2348 = vst.msk [vmem:[#allocation11] sm:$0xff] %vm655_vm2, %v2307_v50  ;;  %v1654_v55 = vadd.f32 %v1535_v37, %v1449_v53  ;;  %2021 = vst.msk [vmem:[#allocation11 + $0x8] sm:$0xff] %vm655_vm2, %v1980_v51  ;;  %v7648_v22 = vpop.f32.mrb[61].mxu0  ;;  %v1093_v18 = vld [vmem:[#allocation6 + $0x81] sm:$0xff] }
 0x1a0   : > { %v2189_v57 = vpop.permute.xlu1 %2188  ;;  %2206 = vrot.lane.b32.xlu0 %v2072_v56, %s10443_s21  ;;  %977 = vst.msk [vmem:[#allocation6 + $0xf0] sm:$0xff] %vm946_vm3, %v883_v20  ;;  %7671 = vmatmul.mubr.msk.bf16.gmra.mrb[84].mxu0 %vm655_vm2, %v652_v46  ;;  %v1023_v56 = vld [vmem:[#allocation6 + $0xe8] sm:$0xff] }
 0x1a1   : > { %1695 = vst.msk [vmem:[#allocation11 + $0x18] sm:$0xff] %vm655_vm2, %v1654_v55  ;;  %1063 = vst.msk [vmem:[#allocation11 + $0xe0] sm:$0xff] %vm655_vm2, %v1022_v47  ;;  %v2402_v55 = vld [vmem:[#allocation6 + $0x7c] sm:$0xff]  ;;  %7674 = vmatprep.mubr.msk.bf16.mxu0 %vm7947_vm1, %v7946_v2  ;;  %v2729_v22 = vld [vmem:[#allocation6 + $0x84] sm:$0xff] }
 0x1a2   : > { %v1861_v59 = vpop.permute.xlu0 %1860  ;;  %2856 = vrot.lane.b32.xlu1 %v2399_v52, %s10488_s0  ;;  %1064 = vst.msk [vmem:[#allocation11 + $0xe8] sm:$0xff] %vm655_vm2, %v1023_v56 }
 0x1a3   : > { %v1981_v60 = vadd.f32 %v1861_v59, %v1776_v58 }
 0x1a4   : > { %v1450_v62 = vld [vmem:[#allocation11 + $0x20] sm:$0xff]  ;;  %v2517_v63 = vpop.permute.xlu1 %2516  ;;  %2534 = vrot.lane.b32.xlu0 %v2400_v61, %s10485_s27 }
 0x1a5   : > { %v1655_v0 = vadd.f32 %v1537_v54, %v1450_v62  ;;  %2022 = vst.msk [vmem:[#allocation11 + $0x10] sm:$0xff] %vm655_vm2, %v1981_v60 }
 0x1a6   : > { %v2430_v5 = vld [vmem:[#allocation11] sm:$0xff]  ;;  %v2103_v6 = vld [vmem:[#allocation11 + $0x8] sm:$0xff]  ;;  %v8409_v7 = vpop.permute.xlu0 %2190  ;;  %1226 = vrot.lane.b32.xlu1 %v1090_v1, %s10487_s22 }
 0x1a7   : > { %v2635_v8 = vadd.f32 %v8379_v21, %v2430_v5  ;;  %v2308_v9 = vadd.f32 %v8382_v28, %v2103_v6  ;;  %1696 = vst.msk [vmem:[#allocation11 + $0x20] sm:$0xff] %vm655_vm2, %v1655_v0  ;;  %v1092_v21 = vld [vmem:[#allocation6 + $0x79] sm:$0xff] }
 0x1a8   : > { %v2841_v10 = vpop.permute.xlu1 %2840  ;;  %2858 = vrot.lane.b32.xlu0 %v2400_v61, %s10488_s0  ;;  %v1777_v40 = vld [vmem:[#allocation11 + $0x18] sm:$0xff] }
 0x1a9   : > { %2676 = vst.msk [vmem:[#allocation11] sm:$0xff] %vm655_vm2, %v2635_v8  ;;  %2349 = vst.msk [vmem:[#allocation11 + $0x8] sm:$0xff] %vm655_vm2, %v2308_v9  ;;  %v1421_v8 = vld [vmem:[#allocation6 + $0x82] sm:$0xff] }
 0x1aa   : > { %v8420_v11 = vpop.permute.xlu0 %2518  ;;  %1554 = vrot.lane.b32.xlu1 %v1744_v45, %s10483_s25  ;;  %v2401_v45 = vld [vmem:[#allocation6 + $0x74] sm:$0xff] }
 0x1ac   : > { %v2104_v13 = vld [vmem:[#allocation11 + $0x10] sm:$0xff]  ;;  %v3169_v14 = vpop.permute.xlu1 %3168  ;;  %1556 = vrot.lane.b32.xlu0 %v1419_v12, %s10483_s25 }
 0x1ad   : > { %v2309_v16 = vadd.f32 %v2189_v57, %v2104_v13 }
 0x1ae   : > { %v2843_v19 = vpop.permute.xlu0 %2842  ;;  %1228 = vrot.lane.b32.xlu1 %v1091_v17, %s10487_s22  ;;  %v1778_v58 = vld [vmem:[#allocation11 + $0x20] sm:$0xff] }
 0x1af   : > { %2350 = vst.msk [vmem:[#allocation11 + $0x10] sm:$0xff] %vm655_vm2, %v2309_v16 }
 0x1b0   : > { %v2758_v23 = vld [vmem:[#allocation11] sm:$0xff]  ;;  %v2431_v24 = vld [vmem:[#allocation11 + $0x8] sm:$0xff]  ;;  %v1211_v26 = vpop.permute.xlu1 %1210  ;;  %1230 = vrot.lane.b32.xlu0 %v1092_v21, %s10487_s22 }
 0x1b1   : > { %v2963_v27 = vadd.f32 %v2841_v10, %v2758_v23  ;;  %v2636_v28 = vadd.f32 %v8391_v36, %v2431_v24  ;;  %v1328_v29 = vadd.f32 %v1211_v26, %v1123_v25  ;;  %v2075_v24 = vld [vmem:[#allocation6 + $0x83] sm:$0xff] }
 0x1b2   : > { %v8430_v30 = vpop.permute.xlu0 %3170  ;;  %1880 = vrot.lane.b32.xlu1 %v1419_v12, %s10484_s1  ;;  %v1125_v25 = vld [vmem:[#allocation11 + $0x38] sm:$0xff] }
 0x1b3   : > { %3004 = vst.msk [vmem:[#allocation11] sm:$0xff] %vm655_vm2, %v2963_v27  ;;  %2677 = vst.msk [vmem:[#allocation11 + $0x8] sm:$0xff] %vm655_vm2, %v2636_v28 }
 0x1b4   : > { %1369 = vst.msk [vmem:[#allocation11 + $0x28] sm:$0xff] %vm655_vm2, %v1328_v29  ;;  %v1539_v32 = vpop.permute.xlu1 %1538  ;;  %1882 = vrot.lane.b32.xlu0 %v1746_v31, %s10484_s1 }
 0x1b6   : > { %v2432_v34 = vld [vmem:[#allocation11 + $0x10] sm:$0xff]  ;;  %v1213_v36 = vpop.permute.xlu0 %1212  ;;  %2208 = vrot.lane.b32.xlu1 %v2073_v33, %s10443_s21 }
 0x1b7   : > { %v2637_v37 = vadd.f32 %v2517_v63, %v2432_v34  ;;  %v1329_v38 = vadd.f32 %v1213_v36, %v1124_v35  ;;  %v886_v63 = vpop.f32.mrb[62].mxu0  ;;  %v1024_v35 = vld [vmem:[#allocation6 + $0xf0] sm:$0xff] }
 0x1b8   : > { %v1863_v41 = vpop.permute.xlu1 %1862  ;;  %2210 = vrot.lane.b32.xlu0 %v2074_v39, %s10443_s21  ;;  %978 = vst.msk [vmem:[#allocation6 + $0xf8] sm:$0xff] %vm946_vm3, %v886_v63  ;;  %v7649_v1 = vpop.f32.mrb[63].mxu0 }
 0x1b9   : > { %2678 = vst.msk [vmem:[#allocation11 + $0x10] sm:$0xff] %vm655_vm2, %v2637_v37  ;;  %1370 = vst.msk [vmem:[#allocation11 + $0x30] sm:$0xff] %vm655_vm2, %v1329_v38  ;;  %v1982_v44 = vadd.f32 %v1863_v41, %v1777_v40  ;;  %v891_v5 = vpop.f32.mrb[64].mxu0 }
 0x1ba   : > { %v3086_v48 = vld [vmem:[#allocation11] sm:$0xff]  ;;  %v2759_v49 = vld [vmem:[#allocation11 + $0x8] sm:$0xff]  ;;  %v1541_v51 = vpop.permute.xlu0 %1540  ;;  %2536 = vrot.lane.b32.xlu1 %v2401_v45, %s10485_s27  ;;  %979 = vst.msk [vmem:[#allocation6 + $0x100] sm:$0xff] %vm946_vm3, %v891_v5  ;;  %v7652_v9 = vpop.f32.mrb[65].mxu0 }
 0x1bb   : > { %v1451_v50 = vld [vmem:[#allocation11 + $0x28] sm:$0xff]  ;;  %v3291_v52 = vadd.f32 %v3169_v14, %v3086_v48  ;;  %v2964_v53 = vadd.f32 %v2843_v19, %v2759_v49  ;;  %2023 = vst.msk [vmem:[#allocation11 + $0x18] sm:$0xff] %vm655_vm2, %v1982_v44  ;;  %1065 = vst.msk [vmem:[#allocation11 + $0xf0] sm:$0xff] %vm655_vm2, %v1024_v35  ;;  %v1094_v44 = vld [vmem:[#allocation6 + $0x89] sm:$0xff] }
 0x1bc   : > { %v1656_v54 = vadd.f32 %v1539_v32, %v1451_v50  ;;  %v2193_v57 = vpop.permute.xlu1 %2192  ;;  %2538 = vrot.lane.b32.xlu0 %v2402_v55, %s10485_s27  ;;  %v2076_v49 = vld [vmem:[#allocation6 + $0x8b] sm:$0xff]  ;;  %v2077_v9 = vld [vmem:[#allocation6 + $0x93] sm:$0xff] }
 0x1bd   : > { %3332 = vst.msk [vmem:[#allocation11] sm:$0xff] %vm655_vm2, %v3291_v52  ;;  %3005 = vst.msk [vmem:[#allocation11 + $0x8] sm:$0xff] %vm655_vm2, %v2964_v53  ;;  %v1126_v52 = vld [vmem:[#allocation11 + $0x40] sm:$0xff] }
 0x1be   : > { %1697 = vst.msk [vmem:[#allocation11 + $0x28] sm:$0xff] %vm655_vm2, %v1656_v54  ;;  %v1865_v59 = vpop.permute.xlu0 %1864  ;;  %2860 = vrot.lane.b32.xlu1 %v2401_v45, %s10488_s0 }
 0x1bf   : > { %v1983_v60 = vadd.f32 %v1865_v59, %v1778_v58 }
 0x1c0   : > { %v1452_v61 = vld [vmem:[#allocation11 + $0x30] sm:$0xff]  ;;  %v8455_v62 = vpop.permute.xlu1 %2520  ;;  %2862 = vrot.lane.b32.xlu0 %v2402_v55, %s10488_s0 }
 0x1c1   : > { %v1657_v0 = vadd.f32 %v1541_v51, %v1452_v61  ;;  %2024 = vst.msk [vmem:[#allocation11 + $0x20] sm:$0xff] %vm655_vm2, %v1983_v60  ;;  %v2760_v13 = vld [vmem:[#allocation11 + $0x10] sm:$0xff] }
 0x1c2   : > { %v2105_v3 = vld [vmem:[#allocation11 + $0x18] sm:$0xff]  ;;  %v1867_v4 = vpop.permute.xlu0 %1866  ;;  %1558 = vrot.lane.b32.xlu1 %v1746_v31, %s10483_s25  ;;  %v1025_v31 = vld [vmem:[#allocation6 + $0xf8] sm:$0xff]  ;;  %v1026_v5 = vld [vmem:[#allocation6 + $0x100] sm:$0xff] }
 0x1c3   : > { %v2310_v6 = vadd.f32 %v8409_v7, %v2105_v3  ;;  %1698 = vst.msk [vmem:[#allocation11 + $0x30] sm:$0xff] %vm655_vm2, %v1657_v0  ;;  %1066 = vst.msk [vmem:[#allocation11 + $0xf8] sm:$0xff] %vm655_vm2, %v1025_v31  ;;  %v1095_v0 = vld [vmem:[#allocation6 + $0x91] sm:$0xff] }
 0x1c4   : > { %v3087_v10 = vld [vmem:[#allocation11 + $0x8] sm:$0xff]  ;;  %v2845_v14 = vpop.permute.xlu1 %2844  ;;  %1560 = vrot.lane.b32.xlu0 %v1421_v8, %s10483_s25  ;;  %1067 = vst.msk [vmem:[#allocation11 + $0x100] sm:$0xff] %vm655_vm2, %v1026_v5 }
 0x1c5   : > { %v1779_v12 = vld [vmem:[#allocation11 + $0x28] sm:$0xff]  ;;  %v3292_v15 = vadd.f32 %v8430_v30, %v3087_v10  ;;  %2351 = vst.msk [vmem:[#allocation11 + $0x18] sm:$0xff] %vm655_vm2, %v2310_v6  ;;  %v2965_v17 = vadd.f32 %v2845_v14, %v2760_v13  ;;  %v1422_v30 = vld [vmem:[#allocation6 + $0x8a] sm:$0xff] }
 0x1c6   : > { %v1984_v16 = vadd.f32 %v1867_v4, %v1779_v12  ;;  %v2195_v7 = vpop.permute.xlu0 %2194  ;;  %1232 = vrot.lane.b32.xlu1 %v1093_v18, %s10487_s22 }
 0x1c7   : > { %3333 = vst.msk [vmem:[#allocation11 + $0x8] sm:$0xff] %vm655_vm2, %v3292_v15  ;;  %3006 = vst.msk [vmem:[#allocation11 + $0x10] sm:$0xff] %vm655_vm2, %v2965_v17 }
 0x1c8   : > { %2025 = vst.msk [vmem:[#allocation11 + $0x28] sm:$0xff] %vm655_vm2, %v1984_v16  ;;  %v2106_v19 = vld [vmem:[#allocation11 + $0x20] sm:$0xff]  ;;  %v3173_v20 = vpop.permute.xlu1 %3172  ;;  %1884 = vrot.lane.b32.xlu0 %v1421_v8, %s10484_s1 }
 0x1c9   : > { %v2311_v21 = vadd.f32 %v2193_v57, %v2106_v19  ;;  %v2730_v57 = vld [vmem:[#allocation6 + $0x8c] sm:$0xff] }
 0x1ca   : > { %v2523_v23 = vpop.permute.xlu0 %2522  ;;  %2864 = vrot.lane.b32.xlu1 %v2729_v22, %s10488_s0  ;;  %v1780_v46 = vld [vmem:[#allocation11 + $0x30] sm:$0xff] }
 0x1cb   : > { %2352 = vst.msk [vmem:[#allocation11 + $0x20] sm:$0xff] %vm655_vm2, %v2311_v21 }
 0x1cc   : > { %v1215_v26 = vpop.permute.xlu1 %1214  ;;  %2212 = vrot.lane.b32.xlu0 %v2075_v24, %s10443_s21  ;;  %v2433_v27 = vld [vmem:[#allocation11 + $0x18] sm:$0xff] }
 0x1cd   : > { %v1330_v28 = vadd.f32 %v1215_v26, %v1125_v25  ;;  %v2638_v29 = vadd.f32 %v8420_v11, %v2433_v27  ;;  %v894_v11 = vpop.f32.mrb[66].mxu0  ;;  %v1750_v25 = vld [vmem:[#allocation6 + $0x9a] sm:$0xff] }
 0x1ce   : > { %v3088_v33 = vld [vmem:[#allocation11 + $0x10] sm:$0xff]  ;;  %v2847_v34 = vpop.permute.xlu0 %2846  ;;  %1562 = vrot.lane.b32.xlu1 %v1422_v30, %s10483_s25  ;;  %980 = vst.msk [vmem:[#allocation6 + $0x108] sm:$0xff] %vm946_vm3, %v894_v11  ;;  %v7653_v39 = vpop.f32.mrb[67].mxu0 }
 0x1cf   : > { %v2107_v32 = vld [vmem:[#allocation11 + $0x28] sm:$0xff]  ;;  %v3293_v37 = vadd.f32 %v3173_v20, %v3088_v33  ;;  %1371 = vst.msk [vmem:[#allocation11 + $0x38] sm:$0xff] %vm655_vm2, %v1330_v28  ;;  %2679 = vst.msk [vmem:[#allocation11 + $0x18] sm:$0xff] %vm655_vm2, %v2638_v29  ;;  %v899_v42 = vpop.f32.mrb[68].mxu0 }
 0x1d0   : > { %v2312_v36 = vadd.f32 %v2195_v7, %v2107_v32  ;;  %v1543_v38 = vpop.permute.xlu1 %1542  ;;  %2540 = vrot.lane.b32.xlu0 %v2729_v22, %s10485_s27  ;;  %981 = vst.msk [vmem:[#allocation6 + $0x110] sm:$0xff] %vm946_vm3, %v899_v42  ;;  %v7656_v45 = vpop.f32.mrb[69].mxu0  ;;  %v2405_v22 = vld [vmem:[#allocation6 + $0x94] sm:$0xff] }
 0x1d1   : > { %3334 = vst.msk [vmem:[#allocation11 + $0x10] sm:$0xff] %vm655_vm2, %v3293_v37  ;;  %v902_v15 = vpop.f32.mrb[70].mxu0  ;;  %v1127_v28 = vld [vmem:[#allocation11 + $0x48] sm:$0xff] }
 0x1d2   : > { %2353 = vst.msk [vmem:[#allocation11 + $0x28] sm:$0xff] %vm655_vm2, %v2312_v36  ;;  %v2434_v40 = vld [vmem:[#allocation11 + $0x20] sm:$0xff]  ;;  %v3175_v41 = vpop.permute.xlu0 %3174  ;;  %1886 = vrot.lane.b32.xlu1 %v1422_v30, %s10484_s1  ;;  %v7657_v19 = vpop.f32.mrb[71].mxu0  ;;  %v2078_v32 = vld [vmem:[#allocation6 + $0x9b] sm:$0xff] }
 0x1d3   : > { %v2639_v43 = vadd.f32 %v8455_v62, %v2434_v40  ;;  %v1749_v62 = vld [vmem:[#allocation6 + $0x92] sm:$0xff]  ;;  %982 = vst.msk [vmem:[#allocation6 + $0x118] sm:$0xff] %vm946_vm3, %v902_v15  ;;  %v907_v21 = vpop.f32.mrb[72].mxu0 }
 0x1d4   : > { %v1869_v47 = vpop.permute.xlu1 %1868  ;;  %1234 = vrot.lane.b32.xlu0 %v1094_v44, %s10487_s22  ;;  %983 = vst.msk [vmem:[#allocation6 + $0x120] sm:$0xff] %vm946_vm3, %v907_v21  ;;  %v1096_v39 = vld [vmem:[#allocation6 + $0x99] sm:$0xff]  ;;  %v2079_v21 = vld [vmem:[#allocation6 + $0xa3] sm:$0xff] }
 0x1d5   : > { %2680 = vst.msk [vmem:[#allocation11 + $0x20] sm:$0xff] %vm655_vm2, %v2639_v43  ;;  %v1985_v48 = vadd.f32 %v1869_v47, %v1780_v46  ;;  %v1027_v1 = vld [vmem:[#allocation6 + $0x108] sm:$0xff]  ;;  %v1128_v43 = vld [vmem:[#allocation11 + $0x50] sm:$0xff] }
 0x1d6   : > { %v2761_v50 = vld [vmem:[#allocation11 + $0x18] sm:$0xff]  ;;  %v1217_v53 = vpop.permute.xlu0 %1216  ;;  %2214 = vrot.lane.b32.xlu1 %v2076_v49, %s10443_s21  ;;  %1068 = vst.msk [vmem:[#allocation11 + $0x108] sm:$0xff] %vm655_vm2, %v1027_v1 }
 0x1d7   : > { %v1453_v51 = vld [vmem:[#allocation11 + $0x38] sm:$0xff]  ;;  %v2966_v54 = vadd.f32 %v2847_v34, %v2761_v50  ;;  %2026 = vst.msk [vmem:[#allocation11 + $0x30] sm:$0xff] %vm655_vm2, %v1985_v48  ;;  %v1331_v56 = vadd.f32 %v1217_v53, %v1126_v52  ;;  %v1028_v45 = vld [vmem:[#allocation6 + $0x110] sm:$0xff] }
 0x1d8   : > { %v1658_v55 = vadd.f32 %v1543_v38, %v1453_v51  ;;  %v2197_v59 = vpop.permute.xlu1 %2196  ;;  %2866 = vrot.lane.b32.xlu0 %v2730_v57, %s10488_s0  ;;  %1069 = vst.msk [vmem:[#allocation11 + $0x110] sm:$0xff] %vm655_vm2, %v1028_v45  ;;  %v1100_v45 = vld [vmem:[#allocation6 + $0xb9] sm:$0xff] }
 0x1d9   : > { %v2435_v58 = vld [vmem:[#allocation11 + $0x28] sm:$0xff]  ;;  %3007 = vst.msk [vmem:[#allocation11 + $0x18] sm:$0xff] %vm655_vm2, %v2966_v54  ;;  %1372 = vst.msk [vmem:[#allocation11 + $0x40] sm:$0xff] %vm655_vm2, %v1331_v56 }
 0x1da   : > { %v2640_v60 = vadd.f32 %v2523_v23, %v2435_v58  ;;  %1699 = vst.msk [vmem:[#allocation11 + $0x38] sm:$0xff] %vm655_vm2, %v1658_v55  ;;  %v1545_v61 = vpop.permute.xlu0 %1544  ;;  %2542 = vrot.lane.b32.xlu1 %v2730_v57, %s10485_s27  ;;  %v7660_v23 = vpop.f32.mrb[73].mxu0  ;;  %v1029_v42 = vld [vmem:[#allocation6 + $0x118] sm:$0xff]  ;;  %v8529_v55 = vld [vmem:[#allocation6 + $0xa4] sm:$0xff] }
 0x1db   : > { %1070 = vst.msk [vmem:[#allocation11 + $0x118] sm:$0xff] %vm655_vm2, %v1029_v42  ;;  %v910_v49 = vpop.f32.mrb[74].mxu0  ;;  %v1030_v19 = vld [vmem:[#allocation6 + $0x120] sm:$0xff] }
 0x1dc   : > { %2681 = vst.msk [vmem:[#allocation11 + $0x28] sm:$0xff] %vm655_vm2, %v2640_v60  ;;  %v2525_v63 = vpop.permute.xlu1 %2524  ;;  %1888 = vrot.lane.b32.xlu0 %v1749_v62, %s10484_s1  ;;  %v2762_v8 = vld [vmem:[#allocation11 + $0x20] sm:$0xff]  ;;  %v7661_v51 = vpop.f32.mrb[75].mxu0  ;;  %1071 = vst.msk [vmem:[#allocation11 + $0x120] sm:$0xff] %vm655_vm2, %v1030_v19 }
 0x1dd   : > { %984 = vst.msk [vmem:[#allocation6 + $0x128] sm:$0xff] %vm946_vm3, %v910_v49  ;;  %v915_v56 = vpop.f32.mrb[76].mxu0  ;;  %v1428_v49 = vld [vmem:[#allocation6 + $0xba] sm:$0xff] }
 0x1de   : > { %v2108_v3 = vld [vmem:[#allocation11 + $0x30] sm:$0xff]  ;;  %v1871_v4 = vpop.permute.xlu0 %1870  ;;  %1236 = vrot.lane.b32.xlu1 %v1095_v0, %s10487_s22  ;;  %985 = vst.msk [vmem:[#allocation6 + $0x130] sm:$0xff] %vm946_vm3, %v915_v56 }
 0x1df   : > { %v2313_v6 = vadd.f32 %v2197_v59, %v2108_v3  ;;  %v7664_v59 = vpop.f32.mrb[77].mxu0 }
 0x1e0   : > { %v3089_v10 = vld [vmem:[#allocation11 + $0x18] sm:$0xff]  ;;  %v1454_v12 = vld [vmem:[#allocation11 + $0x40] sm:$0xff]  ;;  %v2849_v14 = vpop.permute.xlu1 %2848  ;;  %2216 = vrot.lane.b32.xlu0 %v2077_v9, %s10443_s21 }
 0x1e1   : > { %v1781_v13 = vld [vmem:[#allocation11 + $0x38] sm:$0xff]  ;;  %v3294_v16 = vadd.f32 %v3175_v41, %v3089_v10  ;;  %2354 = vst.msk [vmem:[#allocation11 + $0x30] sm:$0xff] %vm655_vm2, %v2313_v6  ;;  %v1659_v17 = vadd.f32 %v1545_v61, %v1454_v12  ;;  %v2967_v7 = vadd.f32 %v2849_v14, %v2762_v8  ;;  %v2406_v41 = vld [vmem:[#allocation6 + $0x9c] sm:$0xff] }
 0x1e2   : > { %v1986_v18 = vadd.f32 %v1871_v4, %v1781_v13  ;;  %v2199_v20 = vpop.permute.xlu0 %2198  ;;  %1564 = vrot.lane.b32.xlu1 %v1749_v62, %s10483_s25  ;;  %v1097_v61 = vld [vmem:[#allocation6 + $0xa1] sm:$0xff]  ;;  %v1426_v9 = vld [vmem:[#allocation6 + $0xaa] sm:$0xff] }
 0x1e3   : > { %3335 = vst.msk [vmem:[#allocation11 + $0x18] sm:$0xff] %vm655_vm2, %v3294_v16  ;;  %1700 = vst.msk [vmem:[#allocation11 + $0x40] sm:$0xff] %vm655_vm2, %v1659_v17  ;;  %v2763_v35 = vld [vmem:[#allocation11 + $0x28] sm:$0xff]  ;;  %v1425_v4 = vld [vmem:[#allocation6 + $0xa2] sm:$0xff] }
 0x1e4   : > { %2027 = vst.msk [vmem:[#allocation11 + $0x38] sm:$0xff] %vm655_vm2, %v1986_v18  ;;  %3008 = vst.msk [vmem:[#allocation11 + $0x20] sm:$0xff] %vm655_vm2, %v2967_v7  ;;  %v3177_v24 = vpop.permute.xlu1 %3176  ;;  %2544 = vrot.lane.b32.xlu0 %v2405_v22, %s10485_s27  ;;  %v1129_v17 = vld [vmem:[#allocation11 + $0x58] sm:$0xff]  ;;  %v918_v7 = vpop.f32.mrb[78].mxu0 }
 0x1e5   : > { %986 = vst.msk [vmem:[#allocation6 + $0x138] sm:$0xff] %vm946_vm3, %v918_v7  ;;  %v1031_v23 = vld [vmem:[#allocation6 + $0x128] sm:$0xff] }
 0x1e6   : > { %v2527_v26 = vpop.permute.xlu0 %2526  ;;  %1890 = vrot.lane.b32.xlu1 %v1750_v25, %s10484_s1  ;;  %1072 = vst.msk [vmem:[#allocation11 + $0x128] sm:$0xff] %vm655_vm2, %v1031_v23 }
 0x1e8   : > { %v2436_v27 = vld [vmem:[#allocation11 + $0x30] sm:$0xff]  ;;  %v1219_v29 = vpop.permute.xlu1 %1218  ;;  %2868 = vrot.lane.b32.xlu0 %v2405_v22, %s10488_s0  ;;  %v7665_v22 = vpop.f32.mrb[79].mxu0 }
 0x1e9   : > { %v2641_v30 = vadd.f32 %v2525_v63, %v2436_v27  ;;  %v1332_v31 = vadd.f32 %v1219_v29, %v1127_v28  ;;  %v1098_v63 = vld [vmem:[#allocation6 + $0xa9] sm:$0xff]  ;;  %v923_v28 = vpop.f32.mrb[80].mxu0  ;;  %v1132_v22 = vld [vmem:[#allocation11 + $0x70] sm:$0xff] }
 0x1ea   : > { %v2851_v36 = vpop.permute.xlu0 %2850  ;;  %2218 = vrot.lane.b32.xlu1 %v2078_v32, %s10443_s21  ;;  %v1782_v47 = vld [vmem:[#allocation11 + $0x40] sm:$0xff]  ;;  %987 = vst.msk [vmem:[#allocation6 + $0x140] sm:$0xff] %vm946_vm3, %v923_v28 }
 0x1eb   : > { %v2109_v33 = vld [vmem:[#allocation11 + $0x38] sm:$0xff]  ;;  %v3090_v34 = vld [vmem:[#allocation11 + $0x20] sm:$0xff]  ;;  %2682 = vst.msk [vmem:[#allocation11 + $0x30] sm:$0xff] %vm655_vm2, %v2641_v30  ;;  %1373 = vst.msk [vmem:[#allocation11 + $0x48] sm:$0xff] %vm655_vm2, %v1332_v31  ;;  %v2968_v11 = vadd.f32 %v2851_v36, %v2763_v35  ;;  %v7668_v31 = vpop.f32.mrb[81].mxu0 }
 0x1ec   : > { %v2314_v37 = vadd.f32 %v2199_v20, %v2109_v33  ;;  %v3295_v38 = vadd.f32 %v3177_v24, %v3090_v34  ;;  %v1547_v40 = vpop.permute.xlu1 %1546  ;;  %1238 = vrot.lane.b32.xlu0 %v1096_v39, %s10487_s22  ;;  %v2080_v27 = vld [vmem:[#allocation6 + $0xab] sm:$0xff]  ;;  %v1033_v59 = vld [vmem:[#allocation6 + $0x138] sm:$0xff] }
 0x1ed   : > { %3009 = vst.msk [vmem:[#allocation11 + $0x28] sm:$0xff] %vm655_vm2, %v2968_v11  ;;  %v1130_v34 = vld [vmem:[#allocation11 + $0x60] sm:$0xff]  ;;  %1074 = vst.msk [vmem:[#allocation11 + $0x138] sm:$0xff] %vm655_vm2, %v1033_v59  ;;  %v1104_v59 = vld [vmem:[#allocation6 + $0xd9] sm:$0xff] }
 0x1ee   : > { %2355 = vst.msk [vmem:[#allocation11 + $0x38] sm:$0xff] %vm655_vm2, %v2314_v37  ;;  %3336 = vst.msk [vmem:[#allocation11 + $0x20] sm:$0xff] %vm655_vm2, %v3295_v38  ;;  %v1221_v44 = vpop.permute.xlu0 %1220  ;;  %2546 = vrot.lane.b32.xlu1 %v2406_v41, %s10485_s27  ;;  %v8557_v38 = vld [vmem:[#allocation6 + $0xac] sm:$0xff] }
 0x1ef   : > { %v1333_v46 = vadd.f32 %v1221_v44, %v1128_v43  ;;  %v1430_v31 = vld [vmem:[#allocation6 + $0xca] sm:$0xff] }
 0x1f0   : > { %v1873_v48 = vpop.permute.xlu1 %1872  ;;  %1566 = vrot.lane.b32.xlu0 %v1750_v25, %s10483_s25 }
 0x1f1   : > { %1374 = vst.msk [vmem:[#allocation11 + $0x50] sm:$0xff] %vm655_vm2, %v1333_v46  ;;  %v1987_v50 = vadd.f32 %v1873_v48, %v1782_v47  ;;  %v1427_v47 = vld [vmem:[#allocation6 + $0xb2] sm:$0xff] }
 0x1f2   : > { %v1455_v52 = vld [vmem:[#allocation11 + $0x48] sm:$0xff]  ;;  %v1549_v53 = vpop.permute.xlu0 %1548  ;;  %2870 = vrot.lane.b32.xlu1 %v2406_v41, %s10488_s0  ;;  %v2764_v12 = vld [vmem:[#allocation11 + $0x30] sm:$0xff] }
 0x1f3   : > { %v1660_v54 = vadd.f32 %v1547_v40, %v1455_v52  ;;  %2028 = vst.msk [vmem:[#allocation11 + $0x40] sm:$0xff] %vm655_vm2, %v1987_v50  ;;  %v1099_v41 = vld [vmem:[#allocation6 + $0xb1] sm:$0xff] }
 0x1f4   : > { %v2201_v58 = vpop.permute.xlu1 %2200  ;;  %2872 = vrot.lane.b32.xlu0 %v8529_v55, %s10488_s0 }
 0x1f5   : > { %v2437_v57 = vld [vmem:[#allocation11 + $0x38] sm:$0xff]  ;;  %1701 = vst.msk [vmem:[#allocation11 + $0x48] sm:$0xff] %vm655_vm2, %v1660_v54 }
 0x1f6   : > { %v2642_v60 = vadd.f32 %v2527_v26, %v2437_v57  ;;  %v1875_v62 = vpop.permute.xlu0 %1874  ;;  %1240 = vrot.lane.b32.xlu1 %v1097_v61, %s10487_s22 }
 0x1f8   : > { %2683 = vst.msk [vmem:[#allocation11 + $0x38] sm:$0xff] %vm655_vm2, %v2642_v60  ;;  %v1456_v0 = vld [vmem:[#allocation11 + $0x50] sm:$0xff]  ;;  %v2529_v1 = vpop.permute.xlu1 %2528  ;;  %1242 = vrot.lane.b32.xlu0 %v1098_v63, %s10487_s22 }
 0x1f9   : > { %v1661_v3 = vadd.f32 %v1549_v53, %v1456_v0 }
 0x1fa   : > { %v2110_v5 = vld [vmem:[#allocation11 + $0x40] sm:$0xff]  ;;  %v2203_v6 = vpop.permute.xlu0 %2202  ;;  %1568 = vrot.lane.b32.xlu1 %v1425_v4, %s10483_s25 }
 0x1fb   : > { %1702 = vst.msk [vmem:[#allocation11 + $0x50] sm:$0xff] %vm655_vm2, %v1661_v3  ;;  %v2315_v8 = vadd.f32 %v2201_v58, %v2110_v5  ;;  %v1032_v58 = vld [vmem:[#allocation6 + $0x130] sm:$0xff]  ;;  %v1131_v5 = vld [vmem:[#allocation11 + $0x68] sm:$0xff] }
 0x1fc   : > { %v1783_v10 = vld [vmem:[#allocation11 + $0x48] sm:$0xff]  ;;  %v2853_v13 = vpop.permute.xlu1 %2852  ;;  %1570 = vrot.lane.b32.xlu0 %v1426_v9, %s10483_s25  ;;  %1073 = vst.msk [vmem:[#allocation11 + $0x130] sm:$0xff] %vm655_vm2, %v1032_v58 }
 0x1fd   : > { %2356 = vst.msk [vmem:[#allocation11 + $0x40] sm:$0xff] %vm655_vm2, %v2315_v8  ;;  %v1988_v14 = vadd.f32 %v1875_v62, %v1783_v10  ;;  %v2969_v15 = vadd.f32 %v2853_v13, %v2764_v12 }
 0x1fe   : > { %v2531_v16 = vpop.permute.xlu0 %2530  ;;  %1892 = vrot.lane.b32.xlu1 %v1425_v4, %s10484_s1  ;;  %v2082_v4 = vld [vmem:[#allocation6 + $0xbb] sm:$0xff] }
 0x1ff   : > { %2029 = vst.msk [vmem:[#allocation11 + $0x48] sm:$0xff] %vm655_vm2, %v1988_v14  ;;  %3010 = vst.msk [vmem:[#allocation11 + $0x30] sm:$0xff] %vm655_vm2, %v2969_v15  ;;  %v2765_v24 = vld [vmem:[#allocation11 + $0x38] sm:$0xff]  ;;  %v2410_v14 = vld [vmem:[#allocation6 + $0xbc] sm:$0xff] }
 0x200   : > { %v1223_v18 = vpop.permute.xlu1 %1222  ;;  %1894 = vrot.lane.b32.xlu0 %v1426_v9, %s10484_s1  ;;  %v2409_v9 = vld [vmem:[#allocation6 + $0xb4] sm:$0xff] }
 0x201   : > { %v1334_v20 = vadd.f32 %v1223_v18, %v1129_v17  ;;  %v1101_v18 = vld [vmem:[#allocation6 + $0xc1] sm:$0xff] }
 0x202   : > { %v2855_v25 = vpop.permute.xlu0 %2854  ;;  %2220 = vrot.lane.b32.xlu1 %v2079_v21, %s10443_s21  ;;  %v1784_v11 = vld [vmem:[#allocation11 + $0x50] sm:$0xff]  ;;  %v1102_v21 = vld [vmem:[#allocation6 + $0xc9] sm:$0xff] }
 0x203   : > { %1375 = vst.msk [vmem:[#allocation11 + $0x58] sm:$0xff] %vm655_vm2, %v1334_v20  ;;  %v2970_v26 = vadd.f32 %v2855_v25, %v2765_v24  ;;  %v1429_v25 = vld [vmem:[#allocation6 + $0xc2] sm:$0xff] }
 0x204   : > { %v2438_v29 = vld [vmem:[#allocation11 + $0x40] sm:$0xff]  ;;  %v1551_v30 = vpop.permute.xlu1 %1550  ;;  %2222 = vrot.lane.b32.xlu0 %v2080_v27, %s10443_s21  ;;  %v1133_v27 = vld [vmem:[#allocation11 + $0x78] sm:$0xff] }
 0x205   : > { %v2643_v32 = vadd.f32 %v2529_v1, %v2438_v29  ;;  %3011 = vst.msk [vmem:[#allocation11 + $0x38] sm:$0xff] %vm655_vm2, %v2970_v26  ;;  %v2081_v1 = vld [vmem:[#allocation6 + $0xb3] sm:$0xff] }
 0x206   : > { %v2111_v33 = vld [vmem:[#allocation11 + $0x48] sm:$0xff]  ;;  %v1225_v35 = vpop.permute.xlu0 %1224  ;;  %2548 = vrot.lane.b32.xlu1 %v8529_v55, %s10485_s27 }
 0x207   : > { %2684 = vst.msk [vmem:[#allocation11 + $0x40] sm:$0xff] %vm655_vm2, %v2643_v32  ;;  %v2316_v36 = vadd.f32 %v2203_v6, %v2111_v33  ;;  %v1335_v37 = vadd.f32 %v1225_v35, %v1130_v34 }
 0x208   : > { %v1877_v39 = vpop.permute.xlu1 %1876  ;;  %2550 = vrot.lane.b32.xlu0 %v8557_v38, %s10485_s27 }
 0x209   : > { %2357 = vst.msk [vmem:[#allocation11 + $0x48] sm:$0xff] %vm655_vm2, %v2316_v36  ;;  %1376 = vst.msk [vmem:[#allocation11 + $0x60] sm:$0xff] %vm655_vm2, %v1335_v37  ;;  %v1989_v40 = vadd.f32 %v1877_v39, %v1784_v11  ;;  %v2083_v39 = vld [vmem:[#allocation6 + $0xc3] sm:$0xff] }
 0x20a   : > { %v1457_v42 = vld [vmem:[#allocation11 + $0x58] sm:$0xff]  ;;  %v1553_v43 = vpop.permute.xlu0 %1552  ;;  %1244 = vrot.lane.b32.xlu1 %v1099_v41, %s10487_s22 }
 0x20b   : > { %v1662_v44 = vadd.f32 %v1551_v30, %v1457_v42  ;;  %2030 = vst.msk [vmem:[#allocation11 + $0x50] sm:$0xff] %vm655_vm2, %v1989_v40  ;;  %v2084_v42 = vld [vmem:[#allocation6 + $0xcb] sm:$0xff] }
 0x20c   : > { %v2205_v46 = vpop.permute.xlu1 %2204  ;;  %1246 = vrot.lane.b32.xlu0 %v1100_v45, %s10487_s22 }
 0x20d   : > { %1703 = vst.msk [vmem:[#allocation11 + $0x58] sm:$0xff] %vm655_vm2, %v1662_v44 }
 0x20e   : > { %v1879_v48 = vpop.permute.xlu0 %1878  ;;  %1572 = vrot.lane.b32.xlu1 %v1427_v47, %s10483_s25  ;;  %v2766_v61 = vld [vmem:[#allocation11 + $0x40] sm:$0xff] }
 0x210   : > { %v2439_v50 = vld [vmem:[#allocation11 + $0x48] sm:$0xff]  ;;  %v1458_v51 = vld [vmem:[#allocation11 + $0x60] sm:$0xff]  ;;  %v2533_v52 = vpop.permute.xlu1 %2532  ;;  %1574 = vrot.lane.b32.xlu0 %v1428_v49, %s10483_s25 }
 0x211   : > { %v2644_v53 = vadd.f32 %v2531_v16, %v2439_v50  ;;  %v1663_v54 = vadd.f32 %v1553_v43, %v1458_v51  ;;  %v8605_v51 = vld [vmem:[#allocation6 + $0xcc] sm:$0xff] }
 0x212   : > { %v2112_v55 = vld [vmem:[#allocation11 + $0x50] sm:$0xff]  ;;  %v2207_v56 = vpop.permute.xlu0 %2206  ;;  %1896 = vrot.lane.b32.xlu1 %v1427_v47, %s10484_s1 }
 0x213   : > { %2685 = vst.msk [vmem:[#allocation11 + $0x48] sm:$0xff] %vm655_vm2, %v2644_v53  ;;  %1704 = vst.msk [vmem:[#allocation11 + $0x60] sm:$0xff] %vm655_vm2, %v1663_v54  ;;  %v2317_v57 = vadd.f32 %v2205_v46, %v2112_v55  ;;  %v8599_v47 = vld [vmem:[#allocation6 + $0xc4] sm:$0xff]  ;;  %v1103_v55 = vld [vmem:[#allocation6 + $0xd1] sm:$0xff] }
 0x214   : > { %v1785_v60 = vld [vmem:[#allocation11 + $0x58] sm:$0xff]  ;;  %v2857_v62 = vpop.permute.xlu1 %2856  ;;  %1898 = vrot.lane.b32.xlu0 %v1428_v49, %s10484_s1 }
 0x215   : > { %2358 = vst.msk [vmem:[#allocation11 + $0x50] sm:$0xff] %vm655_vm2, %v2317_v57  ;;  %v1990_v63 = vadd.f32 %v1879_v48, %v1785_v60  ;;  %v2971_v0 = vadd.f32 %v2857_v62, %v2766_v61 }
 0x216   : > { %v2535_v3 = vpop.permute.xlu0 %2534  ;;  %2224 = vrot.lane.b32.xlu1 %v2081_v1, %s10443_s21 }
 0x217   : > { %2031 = vst.msk [vmem:[#allocation11 + $0x58] sm:$0xff] %vm655_vm2, %v1990_v63  ;;  %3012 = vst.msk [vmem:[#allocation11 + $0x40] sm:$0xff] %vm655_vm2, %v2971_v0  ;;  %v1431_v63 = vld [vmem:[#allocation6 + $0xd2] sm:$0xff] }
 0x218   : > { %v1227_v6 = vpop.permute.xlu1 %1226  ;;  %2226 = vrot.lane.b32.xlu0 %v2082_v4, %s10443_s21  ;;  %v1432_v4 = vld [vmem:[#allocation6 + $0xda] sm:$0xff] }
 0x219   : > { %v1336_v8 = vadd.f32 %v1227_v6, %v1131_v5  ;;  %v1134_v6 = vld [vmem:[#allocation11 + $0x80] sm:$0xff] }
 0x21a   : > { %v2767_v10 = vld [vmem:[#allocation11 + $0x48] sm:$0xff]  ;;  %v2859_v12 = vpop.permute.xlu0 %2858  ;;  %2552 = vrot.lane.b32.xlu1 %v2409_v9, %s10485_s27  ;;  %v1786_v32 = vld [vmem:[#allocation11 + $0x60] sm:$0xff] }
 0x21b   : > { %1377 = vst.msk [vmem:[#allocation11 + $0x68] sm:$0xff] %vm655_vm2, %v1336_v8  ;;  %v2972_v13 = vadd.f32 %v2859_v12, %v2767_v10 }
 0x21c   : > { %v2440_v15 = vld [vmem:[#allocation11 + $0x50] sm:$0xff]  ;;  %v1555_v16 = vpop.permute.xlu1 %1554  ;;  %2554 = vrot.lane.b32.xlu0 %v2410_v14, %s10485_s27 }
 0x21d   : > { %v2645_v17 = vadd.f32 %v2533_v52, %v2440_v15  ;;  %3013 = vst.msk [vmem:[#allocation11 + $0x48] sm:$0xff] %vm655_vm2, %v2972_v13 }
 0x21e   : > { %v2113_v7 = vld [vmem:[#allocation11 + $0x58] sm:$0xff]  ;;  %v1557_v19 = vpop.permute.xlu0 %1556  ;;  %1248 = vrot.lane.b32.xlu1 %v1101_v18, %s10487_s22  ;;  %v2086_v18 = vld [vmem:[#allocation6 + $0xdb] sm:$0xff] }
 0x21f   : > { %2686 = vst.msk [vmem:[#allocation11 + $0x50] sm:$0xff] %vm655_vm2, %v2645_v17  ;;  %v2318_v20 = vadd.f32 %v2207_v56, %v2113_v7 }
 0x220   : > { %v1229_v23 = vpop.permute.xlu1 %1228  ;;  %1250 = vrot.lane.b32.xlu0 %v1102_v21, %s10487_s22  ;;  %v8625_v21 = vld [vmem:[#allocation6 + $0xd4] sm:$0xff] }
 0x221   : > { %2359 = vst.msk [vmem:[#allocation11 + $0x58] sm:$0xff] %vm655_vm2, %v2318_v20  ;;  %v1337_v24 = vadd.f32 %v1229_v23, %v1132_v22 }
 0x222   : > { %v1459_v26 = vld [vmem:[#allocation11 + $0x68] sm:$0xff]  ;;  %v1231_v28 = vpop.permute.xlu0 %1230  ;;  %1576 = vrot.lane.b32.xlu1 %v1429_v25, %s10483_s25 }
 0x223   : > { %v1664_v29 = vadd.f32 %v1555_v16, %v1459_v26  ;;  %1378 = vst.msk [vmem:[#allocation11 + $0x70] sm:$0xff] %vm655_vm2, %v1337_v24  ;;  %v1338_v30 = vadd.f32 %v1231_v28, %v1133_v27  ;;  %v2085_v16 = vld [vmem:[#allocation6 + $0xd3] sm:$0xff]  ;;  %v8630_v26 = vld [vmem:[#allocation6 + $0xdc] sm:$0xff] }
 0x224   : > { %v1881_v33 = vpop.permute.xlu1 %1880  ;;  %1578 = vrot.lane.b32.xlu0 %v1430_v31, %s10483_s25 }
 0x225   : > { %1705 = vst.msk [vmem:[#allocation11 + $0x68] sm:$0xff] %vm655_vm2, %v1664_v29  ;;  %1379 = vst.msk [vmem:[#allocation11 + $0x78] sm:$0xff] %vm655_vm2, %v1338_v30  ;;  %v1991_v34 = vadd.f32 %v1881_v33, %v1786_v32  ;;  %v1105_v33 = vld [vmem:[#allocation6 + $0xe1] sm:$0xff] }
 0x226   : > { %v1883_v35 = vpop.permute.xlu0 %1882  ;;  %1900 = vrot.lane.b32.xlu1 %v1429_v25, %s10484_s1  ;;  %v2768_v52 = vld [vmem:[#allocation11 + $0x50] sm:$0xff] }
 0x227   : > { %2032 = vst.msk [vmem:[#allocation11 + $0x60] sm:$0xff] %vm655_vm2, %v1991_v34  ;;  %v1135_v34 = vld [vmem:[#allocation11 + $0x88] sm:$0xff] }
 0x228   : > { %v2441_v36 = vld [vmem:[#allocation11 + $0x58] sm:$0xff]  ;;  %v2209_v37 = vpop.permute.xlu1 %2208  ;;  %1902 = vrot.lane.b32.xlu0 %v1430_v31, %s10484_s1 }
 0x229   : > { %v2646_v11 = vadd.f32 %v2535_v3, %v2441_v36 }
 0x22a   : > { %v2211_v40 = vpop.permute.xlu0 %2210  ;;  %2228 = vrot.lane.b32.xlu1 %v2083_v39, %s10443_s21  ;;  %v1460_v41 = vld [vmem:[#allocation11 + $0x70] sm:$0xff] }
 0x22b   : > { %2687 = vst.msk [vmem:[#allocation11 + $0x58] sm:$0xff] %vm655_vm2, %v2646_v11  ;;  %v1665_v43 = vadd.f32 %v1557_v19, %v1460_v41  ;;  %v1433_v39 = vld [vmem:[#allocation6 + $0xe2] sm:$0xff] }
 0x22c   : > { %v1787_v44 = vld [vmem:[#allocation11 + $0x68] sm:$0xff]  ;;  %v2537_v45 = vpop.permute.xlu1 %2536  ;;  %2230 = vrot.lane.b32.xlu0 %v2084_v42, %s10443_s21  ;;  %v1461_v61 = vld [vmem:[#allocation11 + $0x78] sm:$0xff] }
 0x22d   : > { %v1992_v46 = vadd.f32 %v1883_v35, %v1787_v44  ;;  %1706 = vst.msk [vmem:[#allocation11 + $0x70] sm:$0xff] %vm655_vm2, %v1665_v43  ;;  %v1434_v43 = vld [vmem:[#allocation6 + $0xea] sm:$0xff] }
 0x22e   : > { %v2114_v48 = vld [vmem:[#allocation11 + $0x60] sm:$0xff]  ;;  %v2539_v49 = vpop.permute.xlu0 %2538  ;;  %2556 = vrot.lane.b32.xlu1 %v8599_v47, %s10485_s27 }
 0x22f   : > { %2033 = vst.msk [vmem:[#allocation11 + $0x68] sm:$0xff] %vm655_vm2, %v1992_v46  ;;  %v2319_v50 = vadd.f32 %v2209_v37, %v2114_v48  ;;  %v1106_v37 = vld [vmem:[#allocation6 + $0xe9] sm:$0xff] }
 0x230   : > { %v2861_v53 = vpop.permute.xlu1 %2860  ;;  %2558 = vrot.lane.b32.xlu0 %v8605_v51, %s10485_s27 }
 0x231   : > { %2360 = vst.msk [vmem:[#allocation11 + $0x60] sm:$0xff] %vm655_vm2, %v2319_v50  ;;  %v2973_v54 = vadd.f32 %v2861_v53, %v2768_v52 }
 0x232   : > { %v2769_v56 = vld [vmem:[#allocation11 + $0x58] sm:$0xff]  ;;  %v2863_v57 = vpop.permute.xlu0 %2862  ;;  %1252 = vrot.lane.b32.xlu1 %v1103_v55, %s10487_s22 }
 0x233   : > { %3014 = vst.msk [vmem:[#allocation11 + $0x50] sm:$0xff] %vm655_vm2, %v2973_v54  ;;  %v2974_v58 = vadd.f32 %v2863_v57, %v2769_v56  ;;  %v1136_v54 = vld [vmem:[#allocation11 + $0x90] sm:$0xff] }
 0x234   : > { %v1559_v60 = vpop.permute.xlu1 %1558  ;;  %1254 = vrot.lane.b32.xlu0 %v1104_v59, %s10487_s22  ;;  %v1788_v12 = vld [vmem:[#allocation11 + $0x70] sm:$0xff] }
 0x235   : > { %3015 = vst.msk [vmem:[#allocation11 + $0x58] sm:$0xff] %vm655_vm2, %v2974_v58  ;;  %v1666_v62 = vadd.f32 %v1559_v60, %v1461_v61  ;;  %v2087_v58 = vld [vmem:[#allocation6 + $0xe3] sm:$0xff]  ;;  %v2088_v61 = vld [vmem:[#allocation6 + $0xeb] sm:$0xff] }
 0x236   : > { %v2115_v0 = vld [vmem:[#allocation11 + $0x68] sm:$0xff]  ;;  %v1561_v1 = vpop.permute.xlu0 %1560  ;;  %1580 = vrot.lane.b32.xlu1 %v1431_v63, %s10483_s25 }
 0x237   : > { %v2320_v3 = vadd.f32 %v2211_v40, %v2115_v0  ;;  %1707 = vst.msk [vmem:[#allocation11 + $0x78] sm:$0xff] %vm655_vm2, %v1666_v62 }
 0x238   : > { %v2442_v5 = vld [vmem:[#allocation11 + $0x60] sm:$0xff]  ;;  %v1233_v8 = vpop.permute.xlu1 %1232  ;;  %1582 = vrot.lane.b32.xlu0 %v1432_v4, %s10483_s25 }
 0x239   : > { %2361 = vst.msk [vmem:[#allocation11 + $0x68] sm:$0xff] %vm655_vm2, %v2320_v3  ;;  %v2647_v9 = vadd.f32 %v2537_v45, %v2442_v5  ;;  %v1339_v10 = vadd.f32 %v1233_v8, %v1134_v6 }
 0x23a   : > { %v1885_v13 = vpop.permute.xlu0 %1884  ;;  %1904 = vrot.lane.b32.xlu1 %v1431_v63, %s10484_s1  ;;  %v8653_v63 = vld [vmem:[#allocation6 + $0xe4] sm:$0xff] }
 0x23b   : > { %2688 = vst.msk [vmem:[#allocation11 + $0x60] sm:$0xff] %vm655_vm2, %v2647_v9  ;;  %1380 = vst.msk [vmem:[#allocation11 + $0x80] sm:$0xff] %vm655_vm2, %v1339_v10  ;;  %v1993_v14 = vadd.f32 %v1885_v13, %v1788_v12  ;;  %v1107_v9 = vld [vmem:[#allocation6 + $0xf1] sm:$0xff] }
 0x23c   : > { %v2865_v15 = vpop.permute.xlu1 %2864  ;;  %1906 = vrot.lane.b32.xlu0 %v1432_v4, %s10484_s1 }
 0x23d   : > { %2034 = vst.msk [vmem:[#allocation11 + $0x70] sm:$0xff] %vm655_vm2, %v1993_v14 }
 0x23e   : > { %v2213_v17 = vpop.permute.xlu0 %2212  ;;  %2232 = vrot.lane.b32.xlu1 %v2085_v16, %s10443_s21  ;;  %v1789_v29 = vld [vmem:[#allocation11 + $0x78] sm:$0xff] }
 0x240   : > { %v2443_v7 = vld [vmem:[#allocation11 + $0x68] sm:$0xff]  ;;  %v1563_v19 = vpop.permute.xlu1 %1562  ;;  %2234 = vrot.lane.b32.xlu0 %v2086_v18, %s10443_s21 }
 0x241   : > { %v2648_v20 = vadd.f32 %v2539_v49, %v2443_v7  ;;  %v1436_v18 = vld [vmem:[#allocation6 + $0xfa] sm:$0xff] }
 0x242   : > { %v2770_v22 = vld [vmem:[#allocation11 + $0x60] sm:$0xff]  ;;  %v2541_v23 = vpop.permute.xlu0 %2540  ;;  %2560 = vrot.lane.b32.xlu1 %v8625_v21, %s10485_s27 }
 0x243   : > { %v1462_v24 = vld [vmem:[#allocation11 + $0x80] sm:$0xff]  ;;  %2689 = vst.msk [vmem:[#allocation11 + $0x68] sm:$0xff] %vm655_vm2, %v2648_v20  ;;  %v2975_v25 = vadd.f32 %v2865_v15, %v2770_v22  ;;  %v1137_v20 = vld [vmem:[#allocation11 + $0x98] sm:$0xff] }
 0x244   : > { %v1667_v27 = vadd.f32 %v1561_v1, %v1462_v24  ;;  %v2116_v28 = vld [vmem:[#allocation11 + $0x70] sm:$0xff]  ;;  %v1887_v30 = vpop.permute.xlu1 %1886  ;;  %2562 = vrot.lane.b32.xlu0 %v8630_v26, %s10485_s27 }
 0x245   : > { %3016 = vst.msk [vmem:[#allocation11 + $0x60] sm:$0xff] %vm655_vm2, %v2975_v25  ;;  %v2321_v31 = vadd.f32 %v2213_v17, %v2116_v28  ;;  %v1994_v32 = vadd.f32 %v1887_v30, %v1789_v29  ;;  %v1108_v1 = vld [vmem:[#allocation6 + $0xf9] sm:$0xff] }
 0x246   : > { %1708 = vst.msk [vmem:[#allocation11 + $0x80] sm:$0xff] %vm655_vm2, %v1667_v27  ;;  %v1235_v35 = vpop.permute.xlu0 %1234  ;;  %1256 = vrot.lane.b32.xlu1 %v1105_v33, %s10487_s22  ;;  %v2090_v29 = vld [vmem:[#allocation6 + $0xfb] sm:$0xff] }
 0x247   : > { %2362 = vst.msk [vmem:[#allocation11 + $0x70] sm:$0xff] %vm655_vm2, %v2321_v31  ;;  %2035 = vst.msk [vmem:[#allocation11 + $0x78] sm:$0xff] %vm655_vm2, %v1994_v32  ;;  %v1340_v36 = vadd.f32 %v1235_v35, %v1135_v34  ;;  %v2089_v35 = vld [vmem:[#allocation6 + $0xf3] sm:$0xff] }
 0x248   : > { %v2215_v11 = vpop.permute.xlu1 %2214  ;;  %1258 = vrot.lane.b32.xlu0 %v1106_v37, %s10487_s22  ;;  %v1110_v37 = vld [vmem:[#allocation6 + $0x109] sm:$0xff] }
 0x249   : > { %1381 = vst.msk [vmem:[#allocation11 + $0x88] sm:$0xff] %vm655_vm2, %v1340_v36 }
 0x24a   : > { %v2771_v40 = vld [vmem:[#allocation11 + $0x68] sm:$0xff]  ;;  %v2867_v41 = vpop.permute.xlu0 %2866  ;;  %1584 = vrot.lane.b32.xlu1 %v1433_v39, %s10483_s25 }
 0x24b   : > { %v2976_v42 = vadd.f32 %v2867_v41, %v2771_v40 }
 0x24c   : > { %v2543_v44 = vpop.permute.xlu1 %2542  ;;  %1586 = vrot.lane.b32.xlu0 %v1434_v43, %s10483_s25 }
 0x24d   : > { %3017 = vst.msk [vmem:[#allocation11 + $0x68] sm:$0xff] %vm655_vm2, %v2976_v42  ;;  %v1790_v48 = vld [vmem:[#allocation11 + $0x80] sm:$0xff] }
 0x24e   : > { %v2444_v45 = vld [vmem:[#allocation11 + $0x70] sm:$0xff]  ;;  %v2117_v46 = vld [vmem:[#allocation11 + $0x78] sm:$0xff]  ;;  %v1889_v49 = vpop.permute.xlu0 %1888  ;;  %1908 = vrot.lane.b32.xlu1 %v1433_v39, %s10484_s1  ;;  %v1138_v39 = vld [vmem:[#allocation11 + $0xa0] sm:$0xff] }
 0x24f   : > { %v2649_v50 = vadd.f32 %v2541_v23, %v2444_v45  ;;  %v2322_v52 = vadd.f32 %v2215_v11, %v2117_v46  ;;  %v1995_v53 = vadd.f32 %v1889_v49, %v1790_v48  ;;  %v1438_v48 = vld [vmem:[#allocation6 + $0x10a] sm:$0xff] }
 0x250   : > { %v1237_v55 = vpop.permute.xlu1 %1236  ;;  %1910 = vrot.lane.b32.xlu0 %v1434_v43, %s10484_s1  ;;  %v1463_v56 = vld [vmem:[#allocation11 + $0x88] sm:$0xff]  ;;  %v1109_v43 = vld [vmem:[#allocation6 + $0x101] sm:$0xff] }
 0x251   : > { %2690 = vst.msk [vmem:[#allocation11 + $0x70] sm:$0xff] %vm655_vm2, %v2649_v50  ;;  %2363 = vst.msk [vmem:[#allocation11 + $0x78] sm:$0xff] %vm655_vm2, %v2322_v52  ;;  %v1341_v57 = vadd.f32 %v1237_v55, %v1136_v54  ;;  %v1668_v59 = vadd.f32 %v1563_v19, %v1463_v56  ;;  %v1435_v19 = vld [vmem:[#allocation6 + $0xf2] sm:$0xff] }
 0x252   : > { %2036 = vst.msk [vmem:[#allocation11 + $0x80] sm:$0xff] %vm655_vm2, %v1995_v53  ;;  %v2217_v60 = vpop.permute.xlu0 %2216  ;;  %2236 = vrot.lane.b32.xlu1 %v2087_v58, %s10443_s21  ;;  %v1437_v53 = vld [vmem:[#allocation6 + $0x102] sm:$0xff] }
 0x253   : > { %1382 = vst.msk [vmem:[#allocation11 + $0x90] sm:$0xff] %vm655_vm2, %v1341_v57  ;;  %1709 = vst.msk [vmem:[#allocation11 + $0x88] sm:$0xff] %vm655_vm2, %v1668_v59 }
 0x254   : > { %v1565_v62 = vpop.permute.xlu1 %1564  ;;  %2238 = vrot.lane.b32.xlu0 %v2088_v61, %s10443_s21 }
 0x256   : > { %v2545_v0 = vpop.permute.xlu0 %2544  ;;  %2564 = vrot.lane.b32.xlu1 %v8653_v63, %s10485_s27 }
 0x258   : > { %v2445_v3 = vld [vmem:[#allocation11 + $0x78] sm:$0xff]  ;;  %v1891_v5 = vpop.permute.xlu1 %1890  ;;  %1262 = vrot.lane.b32.xlu0 %v1108_v1, %s10487_s22  ;;  %v2772_v13 = vld [vmem:[#allocation11 + $0x70] sm:$0xff] }
 0x259   : > { %v2118_v4 = vld [vmem:[#allocation11 + $0x80] sm:$0xff]  ;;  %v2650_v6 = vadd.f32 %v2543_v44, %v2445_v3  ;;  %v1139_v44 = vld [vmem:[#allocation11 + $0xa8] sm:$0xff] }
 0x25a   : > { %v2323_v8 = vadd.f32 %v2217_v60, %v2118_v4  ;;  %v1464_v10 = vld [vmem:[#allocation11 + $0x90] sm:$0xff]  ;;  %v1791_v12 = vld [vmem:[#allocation11 + $0x88] sm:$0xff]  ;;  %v2869_v14 = vpop.permute.xlu0 %2868  ;;  %1260 = vrot.lane.b32.xlu1 %v1107_v9, %s10487_s22  ;;  %v2092_v3 = vld [vmem:[#allocation6 + $0x10b] sm:$0xff] }
 0x25b   : > { %2691 = vst.msk [vmem:[#allocation11 + $0x78] sm:$0xff] %vm655_vm2, %v2650_v6  ;;  %v1669_v15 = vadd.f32 %v1565_v62, %v1464_v10  ;;  %v1996_v16 = vadd.f32 %v1891_v5, %v1791_v12  ;;  %v2977_v17 = vadd.f32 %v2869_v14, %v2772_v13  ;;  %v1112_v10 = vld [vmem:[#allocation6 + $0x119] sm:$0xff]  ;;  %v1111_v13 = vld [vmem:[#allocation6 + $0x111] sm:$0xff] }
 0x25c   : > { %2364 = vst.msk [vmem:[#allocation11 + $0x80] sm:$0xff] %vm655_vm2, %v2323_v8  ;;  %v2219_v7 = vpop.permute.xlu1 %2218  ;;  %1590 = vrot.lane.b32.xlu0 %v1436_v18, %s10483_s25  ;;  %v2091_v8 = vld [vmem:[#allocation6 + $0x103] sm:$0xff] }
 0x25d   : > { %1710 = vst.msk [vmem:[#allocation11 + $0x90] sm:$0xff] %vm655_vm2, %v1669_v15  ;;  %2037 = vst.msk [vmem:[#allocation11 + $0x88] sm:$0xff] %vm655_vm2, %v1996_v16 }
 0x25e   : > { %3018 = vst.msk [vmem:[#allocation11 + $0x70] sm:$0xff] %vm655_vm2, %v2977_v17  ;;  %v1239_v22 = vpop.permute.xlu0 %1238  ;;  %1588 = vrot.lane.b32.xlu1 %v1435_v19, %s10483_s25  ;;  %v1440_v17 = vld [vmem:[#allocation6 + $0x11a] sm:$0xff] }
 0x25f   : > { %v1342_v23 = vadd.f32 %v1239_v22, %v1137_v20 }
 0x260   : > { %v2547_v24 = vpop.permute.xlu1 %2546  ;;  %1914 = vrot.lane.b32.xlu0 %v1436_v18, %s10484_s1 }
 0x261   : > { %1383 = vst.msk [vmem:[#allocation11 + $0x98] sm:$0xff] %vm655_vm2, %v1342_v23  ;;  %v1439_v23 = vld [vmem:[#allocation6 + $0x112] sm:$0xff] }
 0x262   : > { %v1567_v27 = vpop.permute.xlu0 %1566  ;;  %1912 = vrot.lane.b32.xlu1 %v1435_v19, %s10484_s1  ;;  %v2773_v31 = vld [vmem:[#allocation11 + $0x78] sm:$0xff] }
 0x263   : > { %v2446_v25 = vld [vmem:[#allocation11 + $0x80] sm:$0xff] }
 0x264   : > { %v2651_v28 = vadd.f32 %v2545_v0, %v2446_v25  ;;  %v2119_v30 = vld [vmem:[#allocation11 + $0x88] sm:$0xff]  ;;  %v2871_v32 = vpop.permute.xlu1 %2870  ;;  %2242 = vrot.lane.b32.xlu0 %v2090_v29, %s10443_s21  ;;  %v1792_v57 = vld [vmem:[#allocation11 + $0x90] sm:$0xff] }
 0x265   : > { %v2324_v33 = vadd.f32 %v2219_v7, %v2119_v30  ;;  %v2978_v34 = vadd.f32 %v2871_v32, %v2773_v31  ;;  %v1140_v7 = vld [vmem:[#allocation11 + $0xb0] sm:$0xff]  ;;  %v3050_v30 = vld [vmem:[#allocation6 + $0x4d] sm:$0xff] }
 0x266   : > { %2692 = vst.msk [vmem:[#allocation11 + $0x80] sm:$0xff] %vm655_vm2, %v2651_v28  ;;  %v2873_v36 = vpop.permute.xlu0 %2872  ;;  %2240 = vrot.lane.b32.xlu1 %v2089_v35, %s10443_s21 }
 0x267   : > { %2365 = vst.msk [vmem:[#allocation11 + $0x88] sm:$0xff] %vm655_vm2, %v2324_v33  ;;  %3019 = vst.msk [vmem:[#allocation11 + $0x78] sm:$0xff] %vm655_vm2, %v2978_v34 }
 0x268   : > { %v1465_v11 = vld [vmem:[#allocation11 + $0x98] sm:$0xff]  ;;  %v1241_v40 = vpop.permute.xlu1 %1240  ;;  %1266 = vrot.lane.b32.xlu0 %v1110_v37, %s10487_s22 }
 0x269   : > { %v1670_v41 = vadd.f32 %v1567_v27, %v1465_v11  ;;  %v1343_v42 = vadd.f32 %v1241_v40, %v1138_v39 }
 0x26a   : > { %v1243_v45 = vpop.permute.xlu0 %1242  ;;  %1264 = vrot.lane.b32.xlu1 %v1109_v43, %s10487_s22  ;;  %v1768_v43 = vld [vmem:[#allocation6 + $0x12a] sm:$0xff] }
 0x26b   : > { %1711 = vst.msk [vmem:[#allocation11 + $0x98] sm:$0xff] %vm655_vm2, %v1670_v41  ;;  %1384 = vst.msk [vmem:[#allocation11 + $0xa0] sm:$0xff] %vm655_vm2, %v1343_v42  ;;  %v1344_v46 = vadd.f32 %v1243_v45, %v1139_v44 }
 0x26c   : > { %v1569_v50 = vpop.permute.xlu1 %1568  ;;  %1594 = vrot.lane.b32.xlu0 %v1438_v48, %s10483_s25 }
 0x26d   : > { %v2774_v49 = vld [vmem:[#allocation11 + $0x80] sm:$0xff]  ;;  %1385 = vst.msk [vmem:[#allocation11 + $0xa8] sm:$0xff] %vm655_vm2, %v1344_v46 }
 0x26e   : > { %v2979_v52 = vadd.f32 %v2873_v36, %v2774_v49  ;;  %v2447_v54 = vld [vmem:[#allocation11 + $0x88] sm:$0xff]  ;;  %v1571_v55 = vpop.permute.xlu0 %1570  ;;  %1592 = vrot.lane.b32.xlu1 %v1437_v53, %s10483_s25 }
 0x26f   : > { %v2652_v56 = vadd.f32 %v2547_v24, %v2447_v54  ;;  %v1141_v24 = vld [vmem:[#allocation11 + $0xb8] sm:$0xff]  ;;  %v3052_v49 = vld [vmem:[#allocation6 + $0x5d] sm:$0xff] }
 0x270   : > { %3020 = vst.msk [vmem:[#allocation11 + $0x80] sm:$0xff] %vm655_vm2, %v2979_v52  ;;  %v1893_v58 = vpop.permute.xlu1 %1892  ;;  %1918 = vrot.lane.b32.xlu0 %v1438_v48, %s10484_s1  ;;  %v3051_v52 = vld [vmem:[#allocation6 + $0x55] sm:$0xff] }
 0x271   : > { %2693 = vst.msk [vmem:[#allocation11 + $0x88] sm:$0xff] %vm655_vm2, %v2652_v56  ;;  %v1997_v59 = vadd.f32 %v1893_v58, %v1792_v57  ;;  %v3054_v58 = vld [vmem:[#allocation6 + $0x6d] sm:$0xff] }
 0x272   : > { %v1466_v60 = vld [vmem:[#allocation11 + $0xa0] sm:$0xff]  ;;  %v1793_v61 = vld [vmem:[#allocation11 + $0x98] sm:$0xff]  ;;  %v1895_v62 = vpop.permute.xlu0 %1894  ;;  %1916 = vrot.lane.b32.xlu1 %v1437_v53, %s10484_s1  ;;  %v926_v53 = vpop.f32.mrb[82].mxu0 }
 0x273   : > { %v1671_v0 = vadd.f32 %v1569_v50, %v1466_v60  ;;  %2038 = vst.msk [vmem:[#allocation11 + $0x90] sm:$0xff] %vm655_vm2, %v1997_v59  ;;  %v1998_v1 = vadd.f32 %v1895_v62, %v1793_v61  ;;  %v7669_v56 = vpop.f32.mrb[83].mxu0  ;;  %v1142_v61 = vld [vmem:[#allocation11 + $0xc0] sm:$0xff] }
 0x274   : > { %v1467_v4 = vld [vmem:[#allocation11 + $0xa8] sm:$0xff]  ;;  %v2221_v5 = vpop.permute.xlu1 %2220  ;;  %2246 = vrot.lane.b32.xlu0 %v2092_v3, %s10443_s21  ;;  %988 = vst.msk [vmem:[#allocation6 + $0x148] sm:$0xff] %vm946_vm3, %v926_v53  ;;  %v931_v59 = vpop.f32.mrb[84].mxu0 }
 0x275   : > { %1712 = vst.msk [vmem:[#allocation11 + $0xa0] sm:$0xff] %vm655_vm2, %v1671_v0  ;;  %v1672_v6 = vadd.f32 %v1571_v55, %v1467_v4  ;;  %2039 = vst.msk [vmem:[#allocation11 + $0x98] sm:$0xff] %vm655_vm2, %v1998_v1  ;;  %v7672_v0 = vpop.f32.mrb[85].mxu0  ;;  %v3053_v4 = vld [vmem:[#allocation6 + $0x65] sm:$0xff] }
 0x276   : > { %v2223_v9 = vpop.permute.xlu0 %2222  ;;  %2244 = vrot.lane.b32.xlu1 %v2091_v8, %s10443_s21  ;;  %989 = vst.msk [vmem:[#allocation6 + $0x150] sm:$0xff] %vm946_vm3, %v931_v59  ;;  %v3376_v53 = vld [vmem:[#allocation6 + $0x3e] sm:$0xff]  ;;  %v3377_v0 = vld [vmem:[#allocation6 + $0x46] sm:$0xff] }
 0x277   : > { %1713 = vst.msk [vmem:[#allocation11 + $0xa8] sm:$0xff] %vm655_vm2, %v1672_v6 }
 0x278   : > { %v2549_v12 = vpop.permute.xlu1 %2548  ;;  %1270 = vrot.lane.b32.xlu0 %v1112_v10, %s10487_s22 }
 0x27a   : > { %v2120_v14 = vld [vmem:[#allocation11 + $0x90] sm:$0xff]  ;;  %v2551_v15 = vpop.permute.xlu0 %2550  ;;  %1268 = vrot.lane.b32.xlu1 %v1111_v13, %s10487_s22 }
 0x27b   : > { %v2325_v16 = vadd.f32 %v2221_v5, %v2120_v14  ;;  %v1143_v5 = vld [vmem:[#allocation11 + $0xc8] sm:$0xff]  ;;  %v3058_v14 = vld [vmem:[#allocation6 + $0x8d] sm:$0xff] }
 0x27c   : > { %v2121_v18 = vld [vmem:[#allocation11 + $0x98] sm:$0xff]  ;;  %v1245_v19 = vpop.permute.xlu1 %1244  ;;  %1598 = vrot.lane.b32.xlu0 %v1440_v17, %s10483_s25  ;;  %v1794_v32 = vld [vmem:[#allocation11 + $0xa0] sm:$0xff] }
 0x27d   : > { %2366 = vst.msk [vmem:[#allocation11 + $0x90] sm:$0xff] %vm655_vm2, %v2325_v16  ;;  %v2326_v20 = vadd.f32 %v2223_v9, %v2121_v18  ;;  %v1345_v22 = vadd.f32 %v1245_v19, %v1140_v7  ;;  %v3056_v9 = vld [vmem:[#allocation6 + $0x7d] sm:$0xff]  ;;  %v3057_v19 = vld [vmem:[#allocation6 + $0x85] sm:$0xff] }
 0x27e   : > { %v1247_v25 = vpop.permute.xlu0 %1246  ;;  %1596 = vrot.lane.b32.xlu1 %v1439_v23, %s10483_s25  ;;  %v1795_v11 = vld [vmem:[#allocation11 + $0xa8] sm:$0xff] }
 0x27f   : > { %2367 = vst.msk [vmem:[#allocation11 + $0x98] sm:$0xff] %vm655_vm2, %v2326_v20  ;;  %1386 = vst.msk [vmem:[#allocation11 + $0xb0] sm:$0xff] %vm655_vm2, %v1345_v22  ;;  %v1346_v27 = vadd.f32 %v1247_v25, %v1141_v24 }
 0x280   : > { %v1573_v28 = vpop.permute.xlu1 %1572  ;;  %1922 = vrot.lane.b32.xlu0 %v1440_v17, %s10484_s1 }
 0x281   : > { %1387 = vst.msk [vmem:[#allocation11 + $0xb8] sm:$0xff] %vm655_vm2, %v1346_v27 }
 0x282   : > { %v1575_v29 = vpop.permute.xlu0 %1574  ;;  %1920 = vrot.lane.b32.xlu1 %v1439_v23, %s10484_s1 }
 0x284   : > { %v2448_v31 = vld [vmem:[#allocation11 + $0x90] sm:$0xff]  ;;  %v1897_v33 = vpop.permute.xlu1 %1896  ;;  %3178 = vrot.lane.b32.xlu0 %v3050_v30, %s10486_s2 }
 0x285   : > { %v2653_v34 = vadd.f32 %v2549_v12, %v2448_v31  ;;  %v1999_v35 = vadd.f32 %v1897_v33, %v1794_v32  ;;  %v3055_v12 = vld [vmem:[#allocation6 + $0x75] sm:$0xff] }
 0x286   : > { %v2449_v36 = vld [vmem:[#allocation11 + $0x98] sm:$0xff]  ;;  %v1468_v37 = vld [vmem:[#allocation11 + $0xb0] sm:$0xff]  ;;  %v1899_v39 = vpop.permute.xlu0 %1898  ;;  %2874 = vrot.lane.b32.xlu1 %v8557_v38, %s10488_s0  ;;  %v2093_v33 = vld [vmem:[#allocation6 + $0x113] sm:$0xff] }
 0x287   : > { %2694 = vst.msk [vmem:[#allocation11 + $0x90] sm:$0xff] %vm655_vm2, %v2653_v34  ;;  %v2654_v40 = vadd.f32 %v2551_v15, %v2449_v36  ;;  %v1673_v41 = vadd.f32 %v1573_v28, %v1468_v37  ;;  %2040 = vst.msk [vmem:[#allocation11 + $0xa0] sm:$0xff] %vm655_vm2, %v1999_v35  ;;  %v2000_v42 = vadd.f32 %v1899_v39, %v1795_v11  ;;  %v1767_v38 = vld [vmem:[#allocation6 + $0x122] sm:$0xff]  ;;  %v2096_v36 = vld [vmem:[#allocation6 + $0x12b] sm:$0xff] }
 0x288   : > { %v1469_v44 = vld [vmem:[#allocation11 + $0xb8] sm:$0xff]  ;;  %v2225_v45 = vpop.permute.xlu1 %2224  ;;  %1926 = vrot.lane.b32.xlu0 %v1768_v43, %s10484_s1  ;;  %v1034_v34 = vld [vmem:[#allocation6 + $0x140] sm:$0xf] }
 0x289   : > { %2695 = vst.msk [vmem:[#allocation11 + $0x98] sm:$0xff] %vm655_vm2, %v2654_v40  ;;  %1714 = vst.msk [vmem:[#allocation11 + $0xb0] sm:$0xff] %vm655_vm2, %v1673_v41  ;;  %v1674_v46 = vadd.f32 %v1575_v29, %v1469_v44  ;;  %v2094_v29 = vld [vmem:[#allocation6 + $0x11b] sm:$0xff]  ;;  %v2095_v11 = vld [vmem:[#allocation6 + $0x123] sm:$0xff] }
 0x28a   : > { %2041 = vst.msk [vmem:[#allocation11 + $0xa8] sm:$0xff] %vm655_vm2, %v2000_v42  ;;  %v2227_v48 = vpop.permute.xlu0 %2226  ;;  %1924 = vrot.lane.b32.xlu1 %v1767_v38, %s10484_s1  ;;  %v3374_v42 = vld [vmem:[#allocation6 + $0x2e] sm:$0xff]  ;;  %v1144_v44 = vld [vmem:[#allocation11 + $0xd0] sm:$0xff] }
 0x28b   : > { %1715 = vst.msk [vmem:[#allocation11 + $0xb8] sm:$0xff] %vm655_vm2, %v1674_v46 }
 0x28c   : > { %v2553_v50 = vpop.permute.xlu1 %2552  ;;  %3182 = vrot.lane.b32.xlu0 %v3052_v49, %s10486_s2  ;;  %1076 = vst.msk [vmem:[#allocation11 + $0x140] sm:$0xf] %vm1075_vm4, %v1034_v34  ;;  %v1145_v49 = vld [vmem:[#allocation11 + $0xd8] sm:$0xff] }
 0x28e   : > { %v2122_v54 = vld [vmem:[#allocation11 + $0xa0] sm:$0xff]  ;;  %v2555_v55 = vpop.permute.xlu0 %2554  ;;  %3180 = vrot.lane.b32.xlu1 %v3051_v52, %s10486_s2 }
 0x28f   : > { %v2327_v57 = vadd.f32 %v2225_v45, %v2122_v54 }
 0x290   : > { %v1249_v62 = vpop.permute.xlu1 %1248  ;;  %3186 = vrot.lane.b32.xlu0 %v3054_v58, %s10486_s2  ;;  %v1796_v16 = vld [vmem:[#allocation11 + $0xb0] sm:$0xff] }
 0x291   : > { %v2123_v60 = vld [vmem:[#allocation11 + $0xa8] sm:$0xff]  ;;  %2368 = vst.msk [vmem:[#allocation11 + $0xa0] sm:$0xff] %vm655_vm2, %v2327_v57  ;;  %v1347_v3 = vadd.f32 %v1249_v62, %v1142_v61  ;;  %v8745_v57 = vld [vmem:[#allocation6 + $0xec] sm:$0xff] }
 0x292   : > { %v2328_v1 = vadd.f32 %v2227_v48, %v2123_v60  ;;  %v1251_v6 = vpop.permute.xlu0 %1250  ;;  %3184 = vrot.lane.b32.xlu1 %v3053_v4, %s10486_s2  ;;  %v1797_v23 = vld [vmem:[#allocation11 + $0xb8] sm:$0xff] }
 0x293   : > { %1388 = vst.msk [vmem:[#allocation11 + $0xc0] sm:$0xff] %vm655_vm2, %v1347_v3  ;;  %v1348_v8 = vadd.f32 %v1251_v6, %v1143_v5  ;;  %v3373_v48 = vld [vmem:[#allocation6 + $0x26] sm:$0xff] }
 0x294   : > { %2369 = vst.msk [vmem:[#allocation11 + $0xa8] sm:$0xff] %vm655_vm2, %v2328_v1  ;;  %v1577_v10 = vpop.permute.xlu1 %1576  ;;  %3190 = vrot.lane.b32.xlu0 %v3056_v9, %s10486_s2 }
 0x295   : > { %1389 = vst.msk [vmem:[#allocation11 + $0xc8] sm:$0xff] %vm655_vm2, %v1348_v8 }
 0x296   : > { %v1579_v13 = vpop.permute.xlu0 %1578  ;;  %3188 = vrot.lane.b32.xlu1 %v3055_v12, %s10486_s2 }
 0x298   : > { %v2450_v15 = vld [vmem:[#allocation11 + $0xa0] sm:$0xff]  ;;  %v1901_v17 = vpop.permute.xlu1 %1900  ;;  %3194 = vrot.lane.b32.xlu0 %v3058_v14, %s10486_s2 }
 0x299   : > { %v2655_v18 = vadd.f32 %v2553_v50, %v2450_v15  ;;  %v2001_v7 = vadd.f32 %v1901_v17, %v1796_v16  ;;  %v8759_v15 = vld [vmem:[#allocation6 + $0xf4] sm:$0xff]  ;;  %v8764_v17 = vld [vmem:[#allocation6 + $0x10c] sm:$0xff] }
 0x29a   : > { %v1470_v22 = vld [vmem:[#allocation11 + $0xc0] sm:$0xff]  ;;  %v1903_v24 = vpop.permute.xlu0 %1902  ;;  %3192 = vrot.lane.b32.xlu1 %v3057_v19, %s10486_s2 }
 0x29b   : > { %v2451_v20 = vld [vmem:[#allocation11 + $0xa8] sm:$0xff]  ;;  %2696 = vst.msk [vmem:[#allocation11 + $0xa0] sm:$0xff] %vm655_vm2, %v2655_v18  ;;  %v1675_v27 = vadd.f32 %v1577_v10, %v1470_v22  ;;  %2042 = vst.msk [vmem:[#allocation11 + $0xb0] sm:$0xff] %vm655_vm2, %v2001_v7  ;;  %v2002_v28 = vadd.f32 %v1903_v24, %v1797_v23  ;;  %v8768_v7 = vld [vmem:[#allocation6 + $0x104] sm:$0xff] }
 0x29c   : > { %v2656_v25 = vadd.f32 %v2555_v55, %v2451_v20  ;;  %v1471_v30 = vld [vmem:[#allocation11 + $0xc8] sm:$0xff]  ;;  %v2229_v31 = vpop.permute.xlu1 %2228  ;;  %2250 = vrot.lane.b32.xlu0 %v2094_v29, %s10443_s21 }
 0x29d   : > { %1716 = vst.msk [vmem:[#allocation11 + $0xc0] sm:$0xff] %vm655_vm2, %v1675_v27  ;;  %v1676_v32 = vadd.f32 %v1579_v13, %v1471_v30  ;;  %2043 = vst.msk [vmem:[#allocation11 + $0xb8] sm:$0xff] %vm655_vm2, %v2002_v28  ;;  %v3375_v55 = vld [vmem:[#allocation6 + $0x36] sm:$0xff] }
 0x29e   : > { %2697 = vst.msk [vmem:[#allocation11 + $0xa8] sm:$0xff] %vm655_vm2, %v2656_v25  ;;  %v2231_v35 = vpop.permute.xlu0 %2230  ;;  %2248 = vrot.lane.b32.xlu1 %v2093_v33, %s10443_s21  ;;  %v8752_v10 = vld [vmem:[#allocation6 + $0xfc] sm:$0xff]  ;;  %v1146_v25 = vld [vmem:[#allocation11 + $0xe0] sm:$0xff] }
 0x29f   : > { %1717 = vst.msk [vmem:[#allocation11 + $0xc8] sm:$0xff] %vm655_vm2, %v1676_v32  ;;  %v2736_v23 = vld [vmem:[#allocation6 + $0xbc] sm:$0xff]  ;;  %v2735_v30 = vld [vmem:[#allocation6 + $0xb4] sm:$0xff] }
 0x2a0   : > { %v2557_v37 = vpop.permute.xlu1 %2556  ;;  %2254 = vrot.lane.b32.xlu0 %v2096_v36, %s10443_s21 }
 0x2a2   : > { %v2124_v39 = vld [vmem:[#allocation11 + $0xb0] sm:$0xff]  ;;  %v2559_v40 = vpop.permute.xlu0 %2558  ;;  %2252 = vrot.lane.b32.xlu1 %v2095_v11, %s10443_s21  ;;  %s10448_s21 = smov 48  }
 0x2a3   : > { %v2329_v41 = vadd.f32 %v2229_v31, %v2124_v39  ;;  %v1147_v31 = vld [vmem:[#allocation11 + $0xe8] sm:$0xff] }
 0x2a4   : > { %v2125_v43 = vld [vmem:[#allocation11 + $0xb8] sm:$0xff]  ;;  %v1253_v45 = vpop.permute.xlu1 %1252  ;;  %3498 = vrot.lane.b32.xlu0 %v3374_v42, %s10445_s20  ;;  %v1798_v59 = vld [vmem:[#allocation11 + $0xc0] sm:$0xff] }
 0x2a5   : > { %2370 = vst.msk [vmem:[#allocation11 + $0xb0] sm:$0xff] %vm655_vm2, %v2329_v41  ;;  %v2330_v46 = vadd.f32 %v2231_v35, %v2125_v43  ;;  %v1349_v38 = vadd.f32 %v1253_v45, %v1144_v44 }
 0x2a6   : > { %v1255_v50 = vpop.permute.xlu0 %1254  ;;  %3496 = vrot.lane.b32.xlu1 %v3373_v48, %s10445_s20  ;;  %v1799_v4 = vld [vmem:[#allocation11 + $0xc8] sm:$0xff] }
 0x2a7   : > { %2371 = vst.msk [vmem:[#allocation11 + $0xb8] sm:$0xff] %vm655_vm2, %v2330_v46  ;;  %1390 = vst.msk [vmem:[#allocation11 + $0xd0] sm:$0xff] %vm655_vm2, %v1349_v38  ;;  %v1350_v52 = vadd.f32 %v1255_v50, %v1145_v49 }
 0x2a8   : > { %v1581_v54 = vpop.permute.xlu1 %1580  ;;  %3502 = vrot.lane.b32.xlu0 %v3376_v53, %s10445_s20  ;;  %v3059_v53 = vld [vmem:[#allocation6 + $0x95] sm:$0xff] }
 0x2a9   : > { %1391 = vst.msk [vmem:[#allocation11 + $0xd8] sm:$0xff] %vm655_vm2, %v1350_v52 }
 0x2aa   : > { %v1583_v56 = vpop.permute.xlu0 %1582  ;;  %3500 = vrot.lane.b32.xlu1 %v3375_v55, %s10445_s20  ;;  %v7956_v55 = vmov 0  }
 0x2ab   : > { %4076 = vmatprep.mubr.bf16.mxu1 %v7956_v55 }
 0x2ac   : > { %v2452_v58 = vld [vmem:[#allocation11 + $0xb0] sm:$0xff]  ;;  %v1905_v60 = vpop.permute.xlu1 %1904  ;;  %2566 = vrot.lane.b32.xlu0 %v8745_v57, %s10485_s27 }
 0x2ad   : > { %v2657_v61 = vadd.f32 %v2557_v37, %v2452_v58  ;;  %v2003_v62 = vadd.f32 %v1905_v60, %v1798_v59  ;;  %v3061_v60 = vld [vmem:[#allocation6 + $0xa5] sm:$0xff] }
 0x2ae   : > { %v2453_v1 = vld [vmem:[#allocation11 + $0xb8] sm:$0xff]  ;;  %v1472_v3 = vld [vmem:[#allocation11 + $0xd0] sm:$0xff]  ;;  %v1907_v5 = vpop.permute.xlu0 %1906  ;;  %3504 = vrot.lane.b32.xlu1 %v3377_v0, %s10445_s20  ;;  %s10490_s20 = smov 64  }
 0x2af   : > { %2698 = vst.msk [vmem:[#allocation11 + $0xb0] sm:$0xff] %vm655_vm2, %v2657_v61  ;;  %v2658_v6 = vadd.f32 %v2559_v40, %v2453_v1  ;;  %v1677_v8 = vadd.f32 %v1581_v54, %v1472_v3  ;;  %2044 = vst.msk [vmem:[#allocation11 + $0xc0] sm:$0xff] %vm655_vm2, %v2003_v62  ;;  %v2004_v9 = vadd.f32 %v1907_v5, %v1799_v4  ;;  %v1148_v62 = vld [vmem:[#allocation11 + $0xf0] sm:$0xff] }
 0x2b0   : > { %v1473_v12 = vld [vmem:[#allocation11 + $0xd8] sm:$0xff]  ;;  %v2233_v13 = vpop.permute.xlu1 %2232  ;;  %2570 = vrot.lane.b32.xlu0 %v8752_v10, %s10485_s27  ;;  %v3060_v4 = vld [vmem:[#allocation6 + $0x9d] sm:$0xff] }
 0x2b1   : > { %2699 = vst.msk [vmem:[#allocation11 + $0xb8] sm:$0xff] %vm655_vm2, %v2658_v6  ;;  %1718 = vst.msk [vmem:[#allocation11 + $0xd0] sm:$0xff] %vm655_vm2, %v1677_v8  ;;  %v1678_v14 = vadd.f32 %v1583_v56, %v1473_v12  ;;  %v3378_v6 = vld [vmem:[#allocation6 + $0x4e] sm:$0xff] }
 0x2b2   : > { %2045 = vst.msk [vmem:[#allocation11 + $0xc8] sm:$0xff] %vm655_vm2, %v2004_v9  ;;  %v2235_v16 = vpop.permute.xlu0 %2234  ;;  %2568 = vrot.lane.b32.xlu1 %v8759_v15, %s10485_s27  ;;  %v3062_v9 = vld [vmem:[#allocation6 + $0xad] sm:$0xff] }
 0x2b3   : > { %1719 = vst.msk [vmem:[#allocation11 + $0xd8] sm:$0xff] %vm655_vm2, %v1678_v14 }
 0x2b4   : > { %v2561_v18 = vpop.permute.xlu1 %2560  ;;  %2574 = vrot.lane.b32.xlu0 %v8764_v17, %s10485_s27 }
 0x2b6   : > { %v2126_v19 = vld [vmem:[#allocation11 + $0xc0] sm:$0xff]  ;;  %v2563_v20 = vpop.permute.xlu0 %2562  ;;  %2572 = vrot.lane.b32.xlu1 %v8768_v7, %s10485_s27 }
 0x2b7   : > { %v2331_v22 = vadd.f32 %v2233_v13, %v2126_v19 }
 0x2b8   : > { %v1257_v27 = vpop.permute.xlu1 %1256  ;;  %2878 = vrot.lane.b32.xlu0 %v2736_v23, %s10488_s0  ;;  %v1800_v37 = vld [vmem:[#allocation11 + $0xd0] sm:$0xff] }
 0x2b9   : > { %v2127_v24 = vld [vmem:[#allocation11 + $0xc8] sm:$0xff]  ;;  %2372 = vst.msk [vmem:[#allocation11 + $0xc0] sm:$0xff] %vm655_vm2, %v2331_v22  ;;  %v1351_v29 = vadd.f32 %v1257_v27, %v1146_v25 }
 0x2ba   : > { %v2332_v28 = vadd.f32 %v2235_v16, %v2127_v24  ;;  %v1259_v32 = vpop.permute.xlu0 %1258  ;;  %2876 = vrot.lane.b32.xlu1 %v2735_v30, %s10488_s0  ;;  %v1801_v41 = vld [vmem:[#allocation11 + $0xd8] sm:$0xff]  ;;  %v3379_v25 = vld [vmem:[#allocation6 + $0x56] sm:$0xff] }
 0x2bb   : > { %1392 = vst.msk [vmem:[#allocation11 + $0xe0] sm:$0xff] %vm655_vm2, %v1351_v29  ;;  %v1352_v33 = vadd.f32 %v1259_v32, %v1147_v31  ;;  %v3382_v30 = vld [vmem:[#allocation6 + $0x6e] sm:$0xff]  ;;  %v3381_v32 = vld [vmem:[#allocation6 + $0x66] sm:$0xff] }
 0x2bc   : > { %2373 = vst.msk [vmem:[#allocation11 + $0xc8] sm:$0xff] %vm655_vm2, %v2332_v28  ;;  %v1585_v34 = vpop.permute.xlu1 %1584  ;;  %2882 = vrot.lane.b32.xlu0 %v8605_v51, %s10488_s0  ;;  %v4008_v51 = vld [vmem:[%s10489_s3] sm:$0xff]  ;;  %s10492_s3 = smov 96  }
 0x2bd   : > { %1393 = vst.msk [vmem:[#allocation11 + $0xe8] sm:$0xff] %vm655_vm2, %v1352_v33  ;;  %v7429_v46 = vcombine.high %v4008_v51, %v4008_v51  ;;  %v7428_v49 = vcombine.low %v4008_v51, %v4008_v51  ;;  %v1151_v33 = vld [vmem:[#allocation11 + $0x108] sm:$0xff] }
 0x2be   : > { %v1587_v35 = vpop.permute.xlu0 %1586  ;;  %2880 = vrot.lane.b32.xlu1 %v8599_v47, %s10488_s0 }
 0x2bf   : > { %7430 = vmatprep.subr.msk.bf16.mxu1 %vm725_vm0, %v7429_v46  ;;  %v4039_v52 = vsel %vm725_vm0, %v7428_v49, 0  ;;  %v2422_v49 = vld [vmem:[#allocation6 + $0x11c] sm:$0xff] }
 0x2c0   : > { %v2454_v36 = vld [vmem:[#allocation11 + $0xc0] sm:$0xff]  ;;  %v1909_v11 = vpop.permute.xlu1 %1908  ;;  %2886 = vrot.lane.b32.xlu0 %v8630_v26, %s10488_s0  ;;  %4045 = vmatpush1.bf16.msra.mxu1 %v4039_v52 }
 0x2c1   : > { %v2659_v39 = vadd.f32 %v2561_v18, %v2454_v36  ;;  %v2005_v40 = vadd.f32 %v1909_v11, %v1800_v37  ;;  %v3384_v36 = vld [vmem:[#allocation6 + $0x7e] sm:$0xff]  ;;  %v1150_v11 = vld [vmem:[#allocation11 + $0x100] sm:$0xff] }
 0x2c2   : > { %v1474_v43 = vld [vmem:[#allocation11 + $0xe0] sm:$0xff]  ;;  %v1911_v44 = vpop.permute.xlu0 %1910  ;;  %2884 = vrot.lane.b32.xlu1 %v8625_v21, %s10488_s0 }
 0x2c3   : > { %v2455_v42 = vld [vmem:[#allocation11 + $0xc8] sm:$0xff]  ;;  %2700 = vst.msk [vmem:[#allocation11 + $0xc0] sm:$0xff] %vm655_vm2, %v2659_v39  ;;  %v1679_v45 = vadd.f32 %v1585_v34, %v1474_v43  ;;  %2046 = vst.msk [vmem:[#allocation11 + $0xd0] sm:$0xff] %vm655_vm2, %v2005_v40  ;;  %v2006_v26 = vadd.f32 %v1911_v44, %v1801_v41 }
 0x2c4   : > { %v2660_v47 = vadd.f32 %v2563_v20, %v2455_v42  ;;  %v1475_v38 = vld [vmem:[#allocation11 + $0xe8] sm:$0xff]  ;;  %v2237_v48 = vpop.permute.xlu1 %2236  ;;  %2890 = vrot.lane.b32.xlu0 %v8745_v57, %s10488_s0  ;;  %v1149_v57 = vld [vmem:[#allocation11 + $0xf8] sm:$0xff] }
 0x2c5   : > { %1720 = vst.msk [vmem:[#allocation11 + $0xe0] sm:$0xff] %vm655_vm2, %v1679_v45  ;;  %v1680_v21 = vadd.f32 %v1587_v35, %v1475_v38  ;;  %2047 = vst.msk [vmem:[#allocation11 + $0xd8] sm:$0xff] %vm655_vm2, %v2006_v26  ;;  %v3383_v42 = vld [vmem:[#allocation6 + $0x76] sm:$0xff]  ;;  %v3385_v26 = vld [vmem:[#allocation6 + $0x86] sm:$0xff] }
 0x2c6   : > { %2701 = vst.msk [vmem:[#allocation11 + $0xc8] sm:$0xff] %vm655_vm2, %v2660_v47  ;;  %v2239_v50 = vpop.permute.xlu0 %2238  ;;  %2888 = vrot.lane.b32.xlu1 %v8653_v63, %s10488_s0  ;;  %v3386_v47 = vld [vmem:[#allocation6 + $0x8e] sm:$0xff] }
 0x2c7   : > { %1721 = vst.msk [vmem:[#allocation11 + $0xe8] sm:$0xff] %vm655_vm2, %v1680_v21 }
 0x2c8   : > { %v2565_v54 = vpop.permute.xlu1 %2564  ;;  %3196 = vrot.lane.b32.xlu0 %v3059_v53, %s10486_s2 }
 0x2ca   : > { %v2128_v56 = vld [vmem:[#allocation11 + $0xd0] sm:$0xff]  ;;  %v1263_v58 = vpop.permute.xlu0 %1262  ;;  %2892 = vrot.lane.b32.xlu1 %v8759_v15, %s10488_s0 }
 0x2cb   : > { %v2333_v59 = vadd.f32 %v2237_v48, %v2128_v56  ;;  %v1354_v63 = vadd.f32 %v1263_v58, %v1149_v57  ;;  %v3380_v15 = vld [vmem:[#allocation6 + $0x5e] sm:$0xff]  ;;  %v2421_v56 = vld [vmem:[#allocation6 + $0x114] sm:$0xff] }
 0x2cc   : > { %v2129_v61 = vld [vmem:[#allocation11 + $0xd8] sm:$0xff]  ;;  %v1261_v0 = vpop.permute.xlu1 %1260  ;;  %3200 = vrot.lane.b32.xlu0 %v3061_v60, %s10486_s2  ;;  %v1802_v19 = vld [vmem:[#allocation11 + $0xe0] sm:$0xff] }
 0x2cd   : > { %2374 = vst.msk [vmem:[#allocation11 + $0xd0] sm:$0xff] %vm655_vm2, %v2333_v59  ;;  %v2334_v1 = vadd.f32 %v2239_v50, %v2129_v61  ;;  %1395 = vst.msk [vmem:[#allocation11 + $0xf8] sm:$0xff] %vm655_vm2, %v1354_v63  ;;  %v1353_v3 = vadd.f32 %v1261_v0, %v1148_v62  ;;  %v8835_v63 = vld [vmem:[#allocation6 + $0x12c] sm:$0xff]  ;;  %v8840_v61 = vld [vmem:[#allocation6 + $0x124] sm:$0xff] }
 0x2ce   : > { %v1591_v5 = vpop.permute.xlu0 %1590  ;;  %3198 = vrot.lane.b32.xlu1 %v3060_v4, %s10486_s2  ;;  %v1803_v12 = vld [vmem:[#allocation11 + $0xe8] sm:$0xff]  ;;  %v1153_v62 = vld [vmem:[#allocation11 + $0x118] sm:$0xff]  ;;  %v1152_v4 = vld [vmem:[#allocation11 + $0x110] sm:$0xff] }
 0x2cf   : > { %2375 = vst.msk [vmem:[#allocation11 + $0xd8] sm:$0xff] %vm655_vm2, %v2334_v1  ;;  %1394 = vst.msk [vmem:[#allocation11 + $0xf0] sm:$0xff] %vm655_vm2, %v1353_v3 }
 0x2d0   : > { %v1589_v8 = vpop.permute.xlu1 %1588  ;;  %3506 = vrot.lane.b32.xlu0 %v3378_v6, %s10490_s20 }
 0x2d2   : > { %v1915_v13 = vpop.permute.xlu0 %1914  ;;  %3202 = vrot.lane.b32.xlu1 %v3062_v9, %s10486_s2 }
 0x2d3   : > { %v2008_v14 = vadd.f32 %v1915_v13, %v1803_v12 }
 0x2d4   : > { %v2456_v16 = vld [vmem:[#allocation11 + $0xd0] sm:$0xff]  ;;  %v1477_v18 = vld [vmem:[#allocation11 + $0xf8] sm:$0xff]  ;;  %v1913_v20 = vpop.permute.xlu1 %1912  ;;  %3510 = vrot.lane.b32.xlu0 %v3380_v15, %s10490_s20 }
 0x2d5   : > { %v2661_v22 = vadd.f32 %v2565_v54, %v2456_v16  ;;  %v1682_v23 = vadd.f32 %v1591_v5, %v1477_v18  ;;  %2049 = vst.msk [vmem:[#allocation11 + $0xe8] sm:$0xff] %vm655_vm2, %v2008_v14  ;;  %v2007_v24 = vadd.f32 %v1913_v20, %v1802_v19  ;;  %v3063_v18 = vld [vmem:[#allocation6 + $0xb5] sm:$0xff] }
 0x2d6   : > { %v1476_v27 = vld [vmem:[#allocation11 + $0xf0] sm:$0xff]  ;;  %v2243_v28 = vpop.permute.xlu0 %2242  ;;  %3508 = vrot.lane.b32.xlu1 %v3379_v25, %s10490_s20  ;;  %v3091_v25 = vld [vmem:[#allocation11 + $0x28] sm:$0xff] }
 0x2d7   : > { %2702 = vst.msk [vmem:[#allocation11 + $0xd0] sm:$0xff] %vm655_vm2, %v2661_v22  ;;  %1723 = vst.msk [vmem:[#allocation11 + $0xf8] sm:$0xff] %vm655_vm2, %v1682_v23  ;;  %v1681_v29 = vadd.f32 %v1589_v8, %v1476_v27 }
 0x2d8   : > { %2048 = vst.msk [vmem:[#allocation11 + $0xe0] sm:$0xff] %vm655_vm2, %v2007_v24  ;;  %v2241_v31 = vpop.permute.xlu1 %2240  ;;  %3514 = vrot.lane.b32.xlu0 %v3382_v30, %s10490_s20  ;;  %v2775_v30 = vld [vmem:[#allocation11 + $0x88] sm:$0xff] }
 0x2d9   : > { %1722 = vst.msk [vmem:[#allocation11 + $0xf0] sm:$0xff] %vm655_vm2, %v1681_v29  ;;  %v3065_v29 = vld [vmem:[#allocation6 + $0xc5] sm:$0xff] }
 0x2da   : > { %v1267_v34 = vpop.permute.xlu0 %1266  ;;  %3512 = vrot.lane.b32.xlu1 %v3381_v32, %s10490_s20 }
 0x2db   : > { %v1356_v35 = vadd.f32 %v1267_v34, %v1151_v33  ;;  %v3064_v33 = vld [vmem:[#allocation6 + $0xbd] sm:$0xff] }
 0x2dc   : > { %v2131_v37 = vld [vmem:[#allocation11 + $0xe8] sm:$0xff]  ;;  %v1265_v39 = vpop.permute.xlu1 %1264  ;;  %3518 = vrot.lane.b32.xlu0 %v3384_v36, %s10490_s20 }
 0x2dd   : > { %v2336_v40 = vadd.f32 %v2243_v28, %v2131_v37  ;;  %1397 = vst.msk [vmem:[#allocation11 + $0x108] sm:$0xff] %vm655_vm2, %v1356_v35  ;;  %v1355_v41 = vadd.f32 %v1265_v39, %v1150_v11  ;;  %v3067_v35 = vld [vmem:[#allocation6 + $0xd5] sm:$0xff]  ;;  %v3066_v37 = vld [vmem:[#allocation6 + $0xcd] sm:$0xff] }
 0x2de   : > { %v1595_v44 = vpop.permute.xlu0 %1594  ;;  %3516 = vrot.lane.b32.xlu1 %v3383_v42, %s10490_s20  ;;  %v1805_v46 = vld [vmem:[#allocation11 + $0xf8] sm:$0xff] }
 0x2df   : > { %v2130_v43 = vld [vmem:[#allocation11 + $0xe0] sm:$0xff]  ;;  %2377 = vst.msk [vmem:[#allocation11 + $0xe8] sm:$0xff] %vm655_vm2, %v2336_v40  ;;  %1396 = vst.msk [vmem:[#allocation11 + $0x100] sm:$0xff] %vm655_vm2, %v1355_v41  ;;  %v3093_v39 = vld [vmem:[#allocation11 + $0x38] sm:$0xff] }
 0x2e0   : > { %v2335_v51 = vadd.f32 %v2241_v31, %v2130_v43  ;;  %v1593_v45 = vpop.permute.xlu1 %1592  ;;  %3522 = vrot.lane.b32.xlu0 %v3386_v47, %s10490_s20  ;;  %v1804_v50 = vld [vmem:[#allocation11 + $0xf0] sm:$0xff] }
 0x2e1   : > { %v3069_v43 = vld [vmem:[#allocation6 + $0xe5] sm:$0xff] }
 0x2e2   : > { %2376 = vst.msk [vmem:[#allocation11 + $0xe0] sm:$0xff] %vm655_vm2, %v2335_v51  ;;  %v1919_v38 = vpop.permute.xlu0 %1918  ;;  %3520 = vrot.lane.b32.xlu1 %v3385_v26, %s10490_s20  ;;  %v3092_v51 = vld [vmem:[#allocation11 + $0x30] sm:$0xff] }
 0x2e3   : > { %v2010_v48 = vadd.f32 %v1919_v38, %v1805_v46  ;;  %v3068_v46 = vld [vmem:[#allocation6 + $0xdd] sm:$0xff] }
 0x2e4   : > { %v1479_v21 = vld [vmem:[#allocation11 + $0x108] sm:$0xff]  ;;  %v1917_v52 = vpop.permute.xlu1 %1916  ;;  %2578 = vrot.lane.b32.xlu0 %v2422_v49, %s10485_s27 }
 0x2e5   : > { %v1684_v53 = vadd.f32 %v1595_v44, %v1479_v21  ;;  %2051 = vst.msk [vmem:[#allocation11 + $0xf8] sm:$0xff] %vm655_vm2, %v2010_v48  ;;  %v2009_v54 = vadd.f32 %v1917_v52, %v1804_v50  ;;  %v3095_v38 = vld [vmem:[#allocation11 + $0x48] sm:$0xff]  ;;  %v3094_v50 = vld [vmem:[#allocation11 + $0x40] sm:$0xff] }
 0x2e6   : > { %v1478_v57 = vld [vmem:[#allocation11 + $0x100] sm:$0xff]  ;;  %v2247_v58 = vpop.permute.xlu0 %2246  ;;  %2576 = vrot.lane.b32.xlu1 %v2421_v56, %s10485_s27 }
 0x2e7   : > { %1725 = vst.msk [vmem:[#allocation11 + $0x108] sm:$0xff] %vm655_vm2, %v1684_v53  ;;  %v1683_v59 = vadd.f32 %v1593_v45, %v1478_v57  ;;  %2050 = vst.msk [vmem:[#allocation11 + $0xf0] sm:$0xff] %vm655_vm2, %v2009_v54  ;;  %v3071_v21 = vld [vmem:[#allocation6 + $0xf5] sm:$0xff]  ;;  %v3070_v54 = vld [vmem:[#allocation6 + $0xed] sm:$0xff] }
 0x2e8   : > { %v2245_v60 = vpop.permute.xlu1 %2244  ;;  %2582 = vrot.lane.b32.xlu0 %v8835_v63, %s10485_s27 }
 0x2e9   : > { %1724 = vst.msk [vmem:[#allocation11 + $0x100] sm:$0xff] %vm655_vm2, %v1683_v59  ;;  %v3388_v59 = vld [vmem:[#allocation6 + $0x9e] sm:$0xff] }
 0x2ea   : > { %v1271_v0 = vpop.permute.xlu0 %1270  ;;  %2580 = vrot.lane.b32.xlu1 %v8840_v61, %s10485_s27 }
 0x2eb   : > { %v1358_v1 = vadd.f32 %v1271_v0, %v1153_v62 }
 0x2ec   : > { %v2133_v3 = vld [vmem:[#allocation11 + $0xf8] sm:$0xff]  ;;  %v1269_v5 = vpop.permute.xlu1 %1268  ;;  %2896 = vrot.lane.b32.xlu0 %v8768_v7, %s10488_s0 }
 0x2ed   : > { %v2338_v6 = vadd.f32 %v2247_v58, %v2133_v3  ;;  %1399 = vst.msk [vmem:[#allocation11 + $0x118] sm:$0xff] %vm655_vm2, %v1358_v1  ;;  %v1357_v8 = vadd.f32 %v1269_v5, %v1152_v4  ;;  %v3387_v1 = vld [vmem:[#allocation6 + $0x96] sm:$0xff] }
 0x2ee   : > { %v2132_v9 = vld [vmem:[#allocation11 + $0xf0] sm:$0xff]  ;;  %v1599_v12 = vpop.permute.xlu0 %1598  ;;  %2894 = vrot.lane.b32.xlu1 %v8752_v10, %s10488_s0  ;;  %v1807_v7 = vld [vmem:[#allocation11 + $0x108] sm:$0xff] }
 0x2ef   : > { %2379 = vst.msk [vmem:[#allocation11 + $0xf8] sm:$0xff] %vm655_vm2, %v2338_v6  ;;  %v2337_v13 = vadd.f32 %v2245_v60, %v2132_v9  ;;  %1398 = vst.msk [vmem:[#allocation11 + $0x110] sm:$0xff] %vm655_vm2, %v1357_v8  ;;  %v3096_v60 = vld [vmem:[#allocation11 + $0x50] sm:$0xff]  ;;  %v3099_v3 = vld [vmem:[#allocation11 + $0x68] sm:$0xff] }
 0x2f0   : > { %v1597_v14 = vpop.permute.xlu1 %1596  ;;  %2900 = vrot.lane.b32.xlu0 %v2421_v56, %s10488_s0  ;;  %v1806_v20 = vld [vmem:[#allocation11 + $0x100] sm:$0xff]  ;;  %v3097_v56 = vld [vmem:[#allocation11 + $0x58] sm:$0xff] }
 0x2f1   : > { %2378 = vst.msk [vmem:[#allocation11 + $0xf0] sm:$0xff] %vm655_vm2, %v2337_v13  ;;  %v3390_v6 = vld [vmem:[#allocation6 + $0xae] sm:$0xff]  ;;  %v3389_v13 = vld [vmem:[#allocation6 + $0xa6] sm:$0xff] }
 0x2f2   : > { %v1923_v15 = vpop.permute.xlu0 %1922  ;;  %2898 = vrot.lane.b32.xlu1 %v8764_v17, %s10488_s0  ;;  %v3098_v8 = vld [vmem:[#allocation11 + $0x60] sm:$0xff] }
 0x2f3   : > { %v2012_v16 = vadd.f32 %v1923_v15, %v1807_v7 }
 0x2f4   : > { %v1481_v19 = vld [vmem:[#allocation11 + $0x118] sm:$0xff]  ;;  %v1921_v10 = vpop.permute.xlu1 %1920  ;;  %3204 = vrot.lane.b32.xlu0 %v3063_v18, %s10486_s2 }
 0x2f5   : > { %v1686_v22 = vadd.f32 %v1599_v12, %v1481_v19  ;;  %2053 = vst.msk [vmem:[#allocation11 + $0x108] sm:$0xff] %vm655_vm2, %v2012_v16  ;;  %v2011_v23 = vadd.f32 %v1921_v10, %v1806_v20 }
 0x2f6   : > { %v1480_v24 = vld [vmem:[#allocation11 + $0x110] sm:$0xff]  ;;  %v3179_v27 = vpop.permute.xlu0 %3178  ;;  %2902 = vrot.lane.b32.xlu1 %v2422_v49, %s10488_s0 }
 0x2f7   : > { %1727 = vst.msk [vmem:[#allocation11 + $0x118] sm:$0xff] %vm655_vm2, %v1686_v22  ;;  %v1685_v28 = vadd.f32 %v1597_v14, %v1480_v24  ;;  %2052 = vst.msk [vmem:[#allocation11 + $0x100] sm:$0xff] %vm655_vm2, %v2011_v23  ;;  %v3296_v17 = vadd.f32 %v3179_v27, %v3091_v25  ;;  %v2752_v23 = vld [vmem:[#allocation6 + $0x13c] sm:$0xff] }
 0x2f8   : > { %v2875_v31 = vpop.permute.xlu1 %2874  ;;  %3208 = vrot.lane.b32.xlu0 %v3065_v29, %s10486_s2  ;;  %v3073_v29 = vld [vmem:[#allocation6 + $0x105] sm:$0xff] }
 0x2f9   : > { %1726 = vst.msk [vmem:[#allocation11 + $0x110] sm:$0xff] %vm655_vm2, %v1685_v28  ;;  %3337 = vst.msk [vmem:[#allocation11 + $0x28] sm:$0xff] %vm655_vm2, %v3296_v17  ;;  %v2980_v32 = vadd.f32 %v2875_v31, %v2775_v30  ;;  %v3415_v28 = vld [vmem:[#allocation11 + $0x8] sm:$0xff]  ;;  %v3414_v30 = vld [vmem:[#allocation11] sm:$0xff] }
 0x2fa   : > { %3206 = vrot.lane.b32.xlu1 %v3064_v33, %s10486_s2  ;;  %v1927_v34 = vpop.permute.xlu0 %1926  ;;  %v3072_v33 = vld [vmem:[#allocation6 + $0xfd] sm:$0xff] }
 0x2fb   : > { %3021 = vst.msk [vmem:[#allocation11 + $0x88] sm:$0xff] %vm655_vm2, %v2980_v32 }
 0x2fc   : > { %v1925_v36 = vpop.permute.xlu1 %1924  ;;  %3212 = vrot.lane.b32.xlu0 %v3067_v35, %s10486_s2  ;;  %v2135_v14 = vld [vmem:[#allocation11 + $0x108] sm:$0xff] }
 0x2fe   : > { %v1809_v11 = vld [vmem:[#allocation11 + $0x118] sm:$0xff]  ;;  %3210 = vrot.lane.b32.xlu1 %v3066_v37, %s10486_s2  ;;  %v3183_v40 = vpop.permute.xlu0 %3182  ;;  %v2134_v16 = vld [vmem:[#allocation11 + $0x100] sm:$0xff] }
 0x2ff   : > { %v2014_v41 = vadd.f32 %v1927_v34, %v1809_v11  ;;  %v3298_v42 = vadd.f32 %v3183_v40, %v3093_v39  ;;  %v3417_v34 = vld [vmem:[#allocation11 + $0x18] sm:$0xff]  ;;  %v3075_v37 = vld [vmem:[#allocation6 + $0x115] sm:$0xff]  ;;  %v3416_v11 = vld [vmem:[#allocation11 + $0x10] sm:$0xff] }
 0x300   : > { %v1808_v44 = vld [vmem:[#allocation11 + $0x110] sm:$0xff]  ;;  %v3181_v47 = vpop.permute.xlu1 %3180  ;;  %3216 = vrot.lane.b32.xlu0 %v3069_v43, %s10486_s2  ;;  %v2457_v43 = vld [vmem:[#allocation11 + $0xd8] sm:$0xff] }
 0x301   : > { %2055 = vst.msk [vmem:[#allocation11 + $0x118] sm:$0xff] %vm655_vm2, %v2014_v41  ;;  %v2013_v45 = vadd.f32 %v1925_v36, %v1808_v44  ;;  %3339 = vst.msk [vmem:[#allocation11 + $0x38] sm:$0xff] %vm655_vm2, %v3298_v42  ;;  %v3297_v26 = vadd.f32 %v3181_v47, %v3092_v51  ;;  %v3074_v41 = vld [vmem:[#allocation6 + $0x10d] sm:$0xff]  ;;  %v3391_v47 = vld [vmem:[#allocation6 + $0xb6] sm:$0xff] }
 0x302   : > { %3214 = vrot.lane.b32.xlu1 %v3068_v46, %s10486_s2  ;;  %v3187_v48 = vpop.permute.xlu0 %3186  ;;  %v8904_v42 = vld [vmem:[%s10491_s24] ss:$0 sm:$0xff] }
 0x303   : > { %2054 = vst.msk [vmem:[#allocation11 + $0x110] sm:$0xff] %vm655_vm2, %v2013_v45  ;;  %3338 = vst.msk [vmem:[#allocation11 + $0x30] sm:$0xff] %vm655_vm2, %v3297_v26  ;;  %v3300_v49 = vadd.f32 %v3187_v48, %v3095_v38  ;;  %v3418_v26 = vld [vmem:[#allocation11 + $0x20] sm:$0xff] }
 0x304   : > { %v3185_v52 = vpop.permute.xlu1 %3184  ;;  %3220 = vrot.lane.b32.xlu0 %v3071_v21, %s10486_s2 }
 0x305   : > { %3341 = vst.msk [vmem:[#allocation11 + $0x48] sm:$0xff] %vm655_vm2, %v3300_v49  ;;  %v3299_v53 = vadd.f32 %v3185_v52, %v3094_v50  ;;  %v3076_v49 = vld [vmem:[#allocation6 + $0x11d] sm:$0xff] }
 0x306   : > { %3218 = vrot.lane.b32.xlu1 %v3070_v54, %s10486_s2  ;;  %v3191_v57 = vpop.permute.xlu0 %3190  ;;  %v2459_v50 = vld [vmem:[#allocation11 + $0xe8] sm:$0xff] }
 0x307   : > { %3340 = vst.msk [vmem:[#allocation11 + $0x40] sm:$0xff] %vm655_vm2, %v3299_v53  ;;  %v3302_v58 = vadd.f32 %v3191_v57, %v3097_v56  ;;  %v3393_v57 = vld [vmem:[#allocation6 + $0xc6] sm:$0xff] }
 0x308   : > { %v3189_v62 = vpop.permute.xlu1 %3188  ;;  %3526 = vrot.lane.b32.xlu0 %v3388_v59, %s10490_s20  ;;  %v2137_v20 = vld [vmem:[#allocation11 + $0x118] sm:$0xff]  ;;  %v2458_v59 = vld [vmem:[#allocation11 + $0xe0] sm:$0xff] }
 0x309   : > { %3343 = vst.msk [vmem:[#allocation11 + $0x58] sm:$0xff] %vm655_vm2, %v3302_v58  ;;  %v3301_v0 = vadd.f32 %v3189_v62, %v3096_v60 }
 0x30a   : > { %3524 = vrot.lane.b32.xlu1 %v3387_v1, %s10490_s20  ;;  %v3195_v4 = vpop.permute.xlu0 %3194  ;;  %v2136_v24 = vld [vmem:[#allocation11 + $0x110] sm:$0xff] }
 0x30b   : > { %3342 = vst.msk [vmem:[#allocation11 + $0x50] sm:$0xff] %vm655_vm2, %v3301_v0  ;;  %v3304_v5 = vadd.f32 %v3195_v4, %v3099_v3  ;;  %v3392_v3 = vld [vmem:[#allocation6 + $0xbe] sm:$0xff] }
 0x30c   : > { %v3193_v9 = vpop.permute.xlu1 %3192  ;;  %3530 = vrot.lane.b32.xlu0 %v3390_v6, %s10490_s20 }
 0x30d   : > { %3345 = vst.msk [vmem:[#allocation11 + $0x68] sm:$0xff] %vm655_vm2, %v3304_v5  ;;  %v3303_v12 = vadd.f32 %v3193_v9, %v3098_v8  ;;  %v2461_v5 = vld [vmem:[#allocation11 + $0xf8] sm:$0xff] }
 0x30e   : > { %3528 = vrot.lane.b32.xlu1 %v3389_v13, %s10490_s20  ;;  %v2251_v7 = vpop.permute.xlu0 %2250  ;;  %v3395_v13 = vld [vmem:[#allocation6 + $0xd6] sm:$0xff] }
 0x30f   : > { %3344 = vst.msk [vmem:[#allocation11 + $0x60] sm:$0xff] %vm655_vm2, %v3303_v12  ;;  %v2340_v15 = vadd.f32 %v2251_v7, %v2135_v14  ;;  %v2460_v14 = vld [vmem:[#allocation11 + $0xf0] sm:$0xff] }
 0x310   : > { %v2249_v18 = vpop.permute.xlu1 %2248  ;;  %2906 = vrot.lane.b32.xlu0 %v8835_v63, %s10488_s0  ;;  %v2751_v63 = vld [vmem:[#allocation6 + $0x134] sm:$0xff] }
 0x311   : > { %2381 = vst.msk [vmem:[#allocation11 + $0x108] sm:$0xff] %vm655_vm2, %v2340_v15  ;;  %v2339_v19 = vadd.f32 %v2249_v18, %v2134_v16  ;;  %v3394_v18 = vld [vmem:[#allocation6 + $0xce] sm:$0xff] }
 0x312   : > { %2904 = vrot.lane.b32.xlu1 %v8840_v61, %s10488_s0  ;;  %v2255_v10 = vpop.permute.xlu0 %2254 }
 0x313   : > { %2380 = vst.msk [vmem:[#allocation11 + $0x100] sm:$0xff] %vm655_vm2, %v2339_v19  ;;  %v2342_v22 = vadd.f32 %v2255_v10, %v2137_v20  ;;  %v2777_v20 = vld [vmem:[#allocation11 + $0x98] sm:$0xff] }
 0x314   : > { %v2253_v25 = vpop.permute.xlu1 %2252  ;;  %2910 = vrot.lane.b32.xlu0 %v2752_v23, %s10488_s0 }
 0x315   : > { %2383 = vst.msk [vmem:[#allocation11 + $0x118] sm:$0xff] %vm655_vm2, %v2342_v22  ;;  %v2341_v27 = vadd.f32 %v2253_v25, %v2136_v24  ;;  %v3397_v24 = vld [vmem:[#allocation6 + $0xe6] sm:$0xff] }
 0x316   : > { %v3499_v17 = vpop.permute.xlu0 %3498  ;;  %2908 = vrot.lane.b32.xlu1 %v2751_v63, %s10488_s0  ;;  %v2776_v25 = vld [vmem:[#allocation11 + $0x90] sm:$0xff] }
 0x317   : > { %2382 = vst.msk [vmem:[#allocation11 + $0x110] sm:$0xff] %vm655_vm2, %v2341_v27  ;;  %v3620_v61 = vadd.f32 %v3499_v17, %v3415_v28  ;;  %v3396_v17 = vld [vmem:[#allocation6 + $0xde] sm:$0xff] }
 0x318   : > { %v3497_v31 = vpop.permute.xlu1 %3496  ;;  %3224 = vrot.lane.b32.xlu0 %v3073_v29, %s10486_s2 }
 0x319   : > { %3661 = vst.msk [vmem:[#allocation11 + $0x8] sm:$0xff] %vm655_vm2, %v3620_v61  ;;  %v3619_v32 = vadd.f32 %v3497_v31, %v3414_v30  ;;  %v2779_v61 = vld [vmem:[#allocation11 + $0xa8] sm:$0xff] }
 0x31a   : > { %v3503_v35 = vpop.permute.xlu0 %3502  ;;  %3222 = vrot.lane.b32.xlu1 %v3072_v33, %s10486_s2  ;;  %v3399_v31 = vld [vmem:[#allocation6 + $0xf6] sm:$0xff] }
 0x31b   : > { %3660 = vst.msk [vmem:[#allocation11] sm:$0xff] %vm655_vm2, %v3619_v32  ;;  %v3622_v36 = vadd.f32 %v3503_v35, %v3417_v34  ;;  %v2778_v32 = vld [vmem:[#allocation11 + $0xa0] sm:$0xff] }
 0x31c   : > { %v3501_v39 = vpop.permute.xlu1 %3500  ;;  %3228 = vrot.lane.b32.xlu0 %v3075_v37, %s10486_s2  ;;  %v3398_v35 = vld [vmem:[#allocation6 + $0xee] sm:$0xff] }
 0x31d   : > { %3663 = vst.msk [vmem:[#allocation11 + $0x18] sm:$0xff] %vm655_vm2, %v3622_v36  ;;  %v3621_v40 = vadd.f32 %v3501_v39, %v3416_v11  ;;  %v2781_v36 = vld [vmem:[#allocation11 + $0xb8] sm:$0xff] }
 0x31e   : > { %v2567_v44 = vpop.permute.xlu0 %2566  ;;  %3226 = vrot.lane.b32.xlu1 %v3074_v41, %s10486_s2  ;;  %v3078_v39 = vld [vmem:[#allocation6 + $0x12d] sm:$0xff] }
 0x31f   : > { %3662 = vst.msk [vmem:[#allocation11 + $0x10] sm:$0xff] %vm655_vm2, %v3621_v40  ;;  %v2662_v51 = vadd.f32 %v2567_v44, %v2457_v43  ;;  %v2780_v43 = vld [vmem:[#allocation11 + $0xb0] sm:$0xff] }
 0x320   : > { %v3702_v45 = vld [vmem:[#allocation11 + $0x8] sm:$0xff]  ;;  %v3505_v46 = vpop.permute.xlu1 %3504  ;;  %3532 = vrot.lane.b32.xlu0 %v3391_v47, %s10490_s20  ;;  %v3077_v47 = vld [vmem:[#allocation6 + $0x125] sm:$0xff] }
 0x321   : > { %v3750_v38 = vadd.f32 %v8904_v42, %v3702_v45  ;;  %2703 = vst.msk [vmem:[#allocation11 + $0xd8] sm:$0xff] %vm655_vm2, %v2662_v51  ;;  %v3623_v48 = vadd.f32 %v3505_v46, %v3418_v26  ;;  %v2783_v46 = vld [vmem:[#allocation11 + $0xc8] sm:$0xff] }
 0x322   : > { %v3701_v21 = vld [vmem:[#allocation11] sm:$0xff]  ;;  %v2571_v52 = vpop.permute.xlu0 %2570  ;;  %3230 = vrot.lane.b32.xlu1 %v3076_v49, %s10486_s2 }
 0x323   : > { %v3791_v53 = vmax.f32 %v3750_v38, 0.0  ;;  %v3749_v54 = vadd.f32 %v8904_v42, %v3701_v21  ;;  %3664 = vst.msk [vmem:[#allocation11 + $0x20] sm:$0xff] %vm655_vm2, %v3623_v48  ;;  %v2664_v56 = vadd.f32 %v2571_v52, %v2459_v50  ;;  %v3080_v50 = vld [vmem:[#allocation6 + $0x13d] sm:$0xff]  ;;  %v2782_v52 = vld [vmem:[#allocation11 + $0xc0] sm:$0xff] }
 0x324   : > { %v3704_v58 = vld [vmem:[#allocation11 + $0x18] sm:$0xff]  ;;  %v2569_v60 = vpop.permute.xlu1 %2568  ;;  %3536 = vrot.lane.b32.xlu0 %v3393_v57, %s10490_s20  ;;  %v3079_v57 = vld [vmem:[#allocation6 + $0x135] sm:$0xff] }
 0x325   : > { %3832 = vst.msk [vmem:[#allocation11 + $0x8] sm:$0xff] %vm655_vm2, %v3791_v53  ;;  %v3790_v62 = vmax.f32 %v3749_v54, 0.0  ;;  %v3752_v0 = vadd.f32 %v8904_v42, %v3704_v58  ;;  %2705 = vst.msk [vmem:[#allocation11 + $0xe8] sm:$0xff] %vm655_vm2, %v2664_v56  ;;  %v2663_v1 = vadd.f32 %v2569_v60, %v2458_v59  ;;  %v3100_v58 = vld [vmem:[#allocation11 + $0x70] sm:$0xff] }
 0x326   : > { %v3703_v4 = vld [vmem:[#allocation11 + $0x10] sm:$0xff]  ;;  %v2575_v6 = vpop.permute.xlu0 %2574  ;;  %3534 = vrot.lane.b32.xlu1 %v3392_v3, %s10490_s20 }
 0x327   : > { %3831 = vst.msk [vmem:[#allocation11] sm:$0xff] %vm655_vm2, %v3790_v62  ;;  %v3793_v8 = vmax.f32 %v3752_v0, 0.0  ;;  %v3751_v9 = vadd.f32 %v8904_v42, %v3703_v4  ;;  %2704 = vst.msk [vmem:[#allocation11 + $0xe0] sm:$0xff] %vm655_vm2, %v2663_v1  ;;  %v2666_v12 = vadd.f32 %v2575_v6, %v2461_v5  ;;  %v3401_v62 = vld [vmem:[#allocation6 + $0x106] sm:$0xff]  ;;  %v3400_v4 = vld [vmem:[#allocation6 + $0xfe] sm:$0xff] }
 0x328   : > { %v2573_v7 = vpop.permute.xlu1 %2572  ;;  %3540 = vrot.lane.b32.xlu0 %v3395_v13, %s10490_s20  ;;  %v2784_v0 = vld [vmem:[#allocation11 + $0xd0] sm:$0xff]  ;;  %v3102_v5 = vld [vmem:[#allocation11 + $0x80] sm:$0xff] }
 0x329   : > { %3834 = vst.msk [vmem:[#allocation11 + $0x18] sm:$0xff] %vm655_vm2, %v3793_v8  ;;  %v3792_v15 = vmax.f32 %v3751_v9, 0.0  ;;  %2707 = vst.msk [vmem:[#allocation11 + $0xf8] sm:$0xff] %vm655_vm2, %v2666_v12  ;;  %v2665_v16 = vadd.f32 %v2573_v7, %v2460_v14  ;;  %v3403_v9 = vld [vmem:[#allocation6 + $0x116] sm:$0xff]  ;;  %v3101_v12 = vld [vmem:[#allocation11 + $0x78] sm:$0xff] }
 0x32a   : > { %v3705_v19 = vld [vmem:[#allocation11 + $0x20] sm:$0xff]  ;;  %v2879_v10 = vpop.permute.xlu0 %2878  ;;  %3538 = vrot.lane.b32.xlu1 %v3394_v18, %s10490_s20 }
 0x32b   : > { %3833 = vst.msk [vmem:[#allocation11 + $0x10] sm:$0xff] %vm655_vm2, %v3792_v15  ;;  %v3753_v22 = vadd.f32 %v8904_v42, %v3705_v19  ;;  %2706 = vst.msk [vmem:[#allocation11 + $0xf0] sm:$0xff] %vm655_vm2, %v2665_v16  ;;  %v2982_v23 = vadd.f32 %v2879_v10, %v2777_v20  ;;  %v3984_v14 = vld [vmem:[#allocation2] sm:$0xff]  ;;  %v3419_v16 = vld [vmem:[#allocation11 + $0x28] sm:$0xff] }
 0x32c   : > { %v2877_v27 = vpop.permute.xlu1 %2876  ;;  %3544 = vrot.lane.b32.xlu0 %v3397_v24, %s10490_s20  ;;  %v3402_v15 = vld [vmem:[#allocation6 + $0x10e] sm:$0xff]  ;;  %v3405_v10 = vld [vmem:[#allocation6 + $0x126] sm:$0xff] }
 0x32d   : > { %v3794_v63 = vmax.f32 %v3753_v22, 0.0  ;;  %3023 = vst.msk [vmem:[#allocation11 + $0x98] sm:$0xff] %vm655_vm2, %v2982_v23  ;;  %v2981_v28 = vadd.f32 %v2877_v27, %v2776_v25  ;;  %v3103_v23 = vld [vmem:[#allocation11 + $0x88] sm:$0xff] }
 0x32e   : > { %v2883_v29 = vpop.permute.xlu0 %2882  ;;  %3542 = vrot.lane.b32.xlu1 %v3396_v17, %s10490_s20  ;;  %v3889_v40 = vld [vmem:[#allocation11] ss:$2 sm:$0xff]  ;;  %v3891_v41 = vld [vmem:[#allocation11 + $0x1] ss:$2 sm:$0xff] }
 0x32f   : > { %3835 = vst.msk [vmem:[#allocation11 + $0x20] sm:$0xff] %vm655_vm2, %v3794_v63  ;;  %3022 = vst.msk [vmem:[#allocation11 + $0x90] sm:$0xff] %vm655_vm2, %v2981_v28  ;;  %v2984_v30 = vadd.f32 %v2883_v29, %v2779_v61  ;;  %v3892_v48 = vmax.f32 %v3889_v40, %v3891_v41  ;;  %v3404_v27 = vld [vmem:[#allocation6 + $0x11e] sm:$0xff]  ;;  %v3421_v63 = vld [vmem:[#allocation11 + $0x38] sm:$0xff] }
 0x330   : > { %v2881_v33 = vpop.permute.xlu1 %2880  ;;  %3548 = vrot.lane.b32.xlu0 %v3399_v31, %s10490_s20  ;;  %v3407_v61 = vld [vmem:[#allocation6 + $0x136] sm:$0xff]  ;;  %v3420_v29 = vld [vmem:[#allocation11 + $0x30] sm:$0xff] }
 0x331   : > { %3025 = vst.msk [vmem:[#allocation11 + $0xa8] sm:$0xff] %vm655_vm2, %v2984_v30  ;;  %v2983_v34 = vadd.f32 %v2881_v33, %v2778_v32  ;;  %v3406_v32 = vld [vmem:[#allocation6 + $0x12e] sm:$0xff]  ;;  %v3423_v33 = vld [vmem:[#allocation11 + $0x48] sm:$0xff] }
 0x332   : > { %v2887_v37 = vpop.permute.xlu0 %2886  ;;  %3546 = vrot.lane.b32.xlu1 %v3398_v35, %s10490_s20  ;;  %v3408_v41 = vld [vmem:[#allocation6 + $0x13e] sm:$0xff] }
 0x333   : > { %3024 = vst.msk [vmem:[#allocation11 + $0xa0] sm:$0xff] %vm655_vm2, %v2983_v34  ;;  %v2986_v11 = vadd.f32 %v2887_v37, %v2781_v36  ;;  %v3422_v37 = vld [vmem:[#allocation11 + $0x40] sm:$0xff] }
 0x334   : > { %v2885_v44 = vpop.permute.xlu1 %2884  ;;  %3234 = vrot.lane.b32.xlu0 %v3078_v39, %s10486_s2 }
 0x335   : > { %3027 = vst.msk [vmem:[#allocation11 + $0xb8] sm:$0xff] %vm655_vm2, %v2986_v11  ;;  %v2985_v51 = vadd.f32 %v2885_v44, %v2780_v43  ;;  %v3425_v43 = vld [vmem:[#allocation11 + $0x58] sm:$0xff] }
 0x336   : > { %v3894_v45 = vld [vmem:[#allocation11 + $0x12] ss:$2 sm:$0xff]  ;;  %v3896_v26 = vld [vmem:[#allocation11 + $0x13] ss:$2 sm:$0xff]  ;;  %v2891_v38 = vpop.permute.xlu0 %2890  ;;  %3232 = vrot.lane.b32.xlu1 %v3077_v47, %s10486_s2 }
 0x337   : > { %v3897_v49 = vmax.f32 %v3894_v45, %v3896_v26  ;;  %3026 = vst.msk [vmem:[#allocation11 + $0xb0] sm:$0xff] %vm655_vm2, %v2985_v51  ;;  %v2988_v21 = vadd.f32 %v2891_v38, %v2783_v46  ;;  %v3424_v26 = vld [vmem:[#allocation11 + $0x50] sm:$0xff] }
 0x338   : > { %v2889_v53 = vpop.permute.xlu1 %2888  ;;  %3238 = vrot.lane.b32.xlu0 %v3080_v50, %s10486_s2 }
 0x339   : > { %v3898_v54 = vmax.f32 %v3892_v48, %v3897_v49  ;;  %3029 = vst.msk [vmem:[#allocation11 + $0xc8] sm:$0xff] %vm655_vm2, %v2988_v21  ;;  %v2987_v56 = vadd.f32 %v2889_v53, %v2782_v52  ;;  %v3427_v21 = vld [vmem:[#allocation11 + $0x68] sm:$0xff] }
 0x33a   : > { %v3197_v59 = vpop.permute.xlu0 %3196  ;;  %3236 = vrot.lane.b32.xlu1 %v3079_v57, %s10486_s2  ;;  %v3426_v57 = vld [vmem:[#allocation11 + $0x60] sm:$0xff] }
 0x33b   : > { %3899 = vst.msk [vmem:[#allocation2 + $0xb] sm:$0xff] %vm655_vm2, %v3898_v54  ;;  %3028 = vst.msk [vmem:[#allocation11 + $0xc0] sm:$0xff] %vm655_vm2, %v2987_v56  ;;  %v3305_v60 = vadd.f32 %v3197_v59, %v3100_v58 }
 0x33c   : > { %v2893_v1 = vpop.permute.xlu1 %2892  ;;  %3552 = vrot.lane.b32.xlu0 %v3401_v62, %s10490_s20 }
 0x33d   : > { %3346 = vst.msk [vmem:[#allocation11 + $0x70] sm:$0xff] %vm655_vm2, %v3305_v60  ;;  %v2989_v3 = vadd.f32 %v2893_v1, %v2784_v0  ;;  %v2463_v1 = vld [vmem:[#allocation11 + $0x108] sm:$0xff] }
 0x33e   : > { %v3201_v6 = vpop.permute.xlu0 %3200  ;;  %3550 = vrot.lane.b32.xlu1 %v3400_v4, %s10490_s20 }
 0x33f   : > { %3030 = vst.msk [vmem:[#allocation11 + $0xd0] sm:$0xff] %vm655_vm2, %v2989_v3  ;;  %v3307_v8 = vadd.f32 %v3201_v6, %v3102_v5 }
 0x340   : > { %v3199_v13 = vpop.permute.xlu1 %3198  ;;  %3556 = vrot.lane.b32.xlu0 %v3403_v9, %s10490_s20  ;;  %v2462_v9 = vld [vmem:[#allocation11 + $0x100] sm:$0xff] }
 0x341   : > { %3348 = vst.msk [vmem:[#allocation11 + $0x80] sm:$0xff] %vm655_vm2, %v3307_v8  ;;  %v3306_v7 = vadd.f32 %v3199_v13, %v3101_v12 }
 0x342   : > { %v3507_v18 = vpop.permute.xlu0 %3506  ;;  %3554 = vrot.lane.b32.xlu1 %v3402_v15, %s10490_s20  ;;  %v3985_v19 = vld [vmem:[#allocation2 + $0x8] sm:$0xff] }
 0x343   : > { %3347 = vst.msk [vmem:[#allocation11 + $0x78] sm:$0xff] %vm655_vm2, %v3306_v7  ;;  %v3624_v20 = vadd.f32 %v3507_v18, %v3419_v16  ;;  %v4000_v22 = vpack.c.bf16 %v3985_v19, %v3984_v14  ;;  %v2465_v16 = vld [vmem:[#allocation11 + $0x118] sm:$0xff] }
 0x344   : > { %v3203_v24 = vpop.permute.xlu1 %3202  ;;  %3560 = vrot.lane.b32.xlu0 %v3405_v10, %s10490_s20 }
 0x345   : > { %3665 = vst.msk [vmem:[#allocation11 + $0x28] sm:$0xff] %vm655_vm2, %v3624_v20  ;;  %v3308_v25 = vadd.f32 %v3203_v24, %v3103_v23  ;;  %7431 = vmatmul.mubr.msk.bf16.vlgmr.msra.gmra.mrb[0].mxu1 %vm655_vm2, %v4000_v22  ;;  %v2464_v23 = vld [vmem:[#allocation11 + $0x110] sm:$0xff] }
 0x346   : > { %v3511_v28 = vpop.permute.xlu0 %3510  ;;  %3558 = vrot.lane.b32.xlu1 %v3404_v27, %s10490_s20  ;;  %4086 = vmatprep.mubr.bf16.mxu1 %v7956_v55 }
 0x347   : > { %3349 = vst.msk [vmem:[#allocation11 + $0x88] sm:$0xff] %vm655_vm2, %v3308_v25  ;;  %v3626_v17 = vadd.f32 %v3511_v28, %v3421_v63 }
 0x348   : > { %v3509_v30 = vpop.permute.xlu1 %3508  ;;  %3564 = vrot.lane.b32.xlu0 %v3407_v61, %s10490_s20 }
 0x349   : > { %3667 = vst.msk [vmem:[#allocation11 + $0x38] sm:$0xff] %vm655_vm2, %v3626_v17  ;;  %v3625_v31 = vadd.f32 %v3509_v30, %v3420_v29  ;;  %v2786_v17 = vld [vmem:[#allocation11 + $0xe0] sm:$0xff] }
 0x34a   : > { %v3515_v34 = vpop.permute.xlu0 %3514  ;;  %3562 = vrot.lane.b32.xlu1 %v3406_v32, %s10490_s20 }
 0x34b   : > { %3666 = vst.msk [vmem:[#allocation11 + $0x30] sm:$0xff] %vm655_vm2, %v3625_v31  ;;  %v3628_v35 = vadd.f32 %v3515_v34, %v3423_v33 }
 0x34c   : > { %v3706_v36 = vld [vmem:[#allocation11 + $0x28] sm:$0xff]  ;;  %v3513_v11 = vpop.permute.xlu1 %3512 }
 0x34d   : > { %v3754_v39 = vadd.f32 %v8904_v42, %v3706_v36  ;;  %3669 = vst.msk [vmem:[#allocation11 + $0x48] sm:$0xff] %vm655_vm2, %v3628_v35  ;;  %v3627_v40 = vadd.f32 %v3513_v11, %v3422_v37  ;;  %v2785_v35 = vld [vmem:[#allocation11 + $0xd8] sm:$0xff] }
 0x34e   : > { %v3519_v44 = vpop.permute.xlu0 %3518  ;;  %3566 = vrot.lane.b32.xlu1 %v3408_v41, %s10490_s20 }
 0x34f   : > { %v3795_v51 = vmax.f32 %v3754_v39, 0.0  ;;  %3668 = vst.msk [vmem:[#allocation11 + $0x40] sm:$0xff] %vm655_vm2, %v3627_v40  ;;  %v3630_v47 = vadd.f32 %v3519_v44, %v3425_v43  ;;  %v2788_v40 = vld [vmem:[#allocation11 + $0xf0] sm:$0xff] }
 0x350   : > { %v3708_v45 = vld [vmem:[#allocation11 + $0x38] sm:$0xff]  ;;  %v3517_v46 = vpop.permute.xlu1 %3516 }
 0x351   : > { %3836 = vst.msk [vmem:[#allocation11 + $0x28] sm:$0xff] %vm655_vm2, %v3795_v51  ;;  %v3756_v38 = vadd.f32 %v8904_v42, %v3708_v45  ;;  %3671 = vst.msk [vmem:[#allocation11 + $0x58] sm:$0xff] %vm655_vm2, %v3630_v47  ;;  %v3629_v48 = vadd.f32 %v3517_v46, %v3424_v26  ;;  %v2787_v45 = vld [vmem:[#allocation11 + $0xe8] sm:$0xff] }
 0x352   : > { %v3707_v49 = vld [vmem:[#allocation11 + $0x30] sm:$0xff]  ;;  %v3523_v50 = vpop.permute.xlu0 %3522 }
 0x353   : > { %v3797_v52 = vmax.f32 %v3756_v38, 0.0  ;;  %v3755_v53 = vadd.f32 %v8904_v42, %v3707_v49  ;;  %3670 = vst.msk [vmem:[#allocation11 + $0x50] sm:$0xff] %vm655_vm2, %v3629_v48  ;;  %v3632_v54 = vadd.f32 %v3523_v50, %v3427_v21  ;;  %v3104_v38 = vld [vmem:[#allocation11 + $0x90] sm:$0xff] }
 0x354   : > { %v3710_v56 = vld [vmem:[#allocation11 + $0x48] sm:$0xff]  ;;  %v3521_v58 = vpop.permute.xlu1 %3520 }
 0x355   : > { %3838 = vst.msk [vmem:[#allocation11 + $0x38] sm:$0xff] %vm655_vm2, %v3797_v52  ;;  %v3796_v59 = vmax.f32 %v3755_v53, 0.0  ;;  %v3758_v60 = vadd.f32 %v8904_v42, %v3710_v56  ;;  %3673 = vst.msk [vmem:[#allocation11 + $0x68] sm:$0xff] %vm655_vm2, %v3632_v54  ;;  %v3631_v62 = vadd.f32 %v3521_v58, %v3426_v57  ;;  %v2789_v53 = vld [vmem:[#allocation11 + $0xf8] sm:$0xff]  ;;  %v3106_v58 = vld [vmem:[#allocation11 + $0xa0] sm:$0xff] }
 0x356   : > { %v3709_v0 = vld [vmem:[#allocation11 + $0x40] sm:$0xff]  ;;  %v2579_v3 = vpop.permute.xlu0 %2578 }
 0x357   : > { %3837 = vst.msk [vmem:[#allocation11 + $0x30] sm:$0xff] %vm655_vm2, %v3796_v59  ;;  %v3799_v4 = vmax.f32 %v3758_v60, 0.0  ;;  %v3757_v5 = vadd.f32 %v8904_v42, %v3709_v0  ;;  %3672 = vst.msk [vmem:[#allocation11 + $0x60] sm:$0xff] %vm655_vm2, %v3631_v62  ;;  %v2668_v6 = vadd.f32 %v2579_v3, %v2463_v1  ;;  %v3105_v3 = vld [vmem:[#allocation11 + $0x98] sm:$0xff] }
 0x358   : > { %v3712_v8 = vld [vmem:[#allocation11 + $0x58] sm:$0xff]  ;;  %v2577_v12 = vpop.permute.xlu1 %2576 }
 0x359   : > { %3840 = vst.msk [vmem:[#allocation11 + $0x48] sm:$0xff] %vm655_vm2, %v3799_v4  ;;  %v3798_v13 = vmax.f32 %v3757_v5, 0.0  ;;  %v3760_v14 = vadd.f32 %v8904_v42, %v3712_v8  ;;  %2709 = vst.msk [vmem:[#allocation11 + $0x108] sm:$0xff] %vm655_vm2, %v2668_v6  ;;  %v2667_v7 = vadd.f32 %v2577_v12, %v2462_v9  ;;  %v3108_v6 = vld [vmem:[#allocation11 + $0xb0] sm:$0xff] }
 0x35a   : > { %v3711_v15 = vld [vmem:[#allocation11 + $0x50] sm:$0xff]  ;;  %v2583_v18 = vpop.permute.xlu0 %2582 }
 0x35b   : > { %3839 = vst.msk [vmem:[#allocation11 + $0x40] sm:$0xff] %vm655_vm2, %v3798_v13  ;;  %v3801_v19 = vmax.f32 %v3760_v14, 0.0  ;;  %v3759_v20 = vadd.f32 %v8904_v42, %v3711_v15  ;;  %2708 = vst.msk [vmem:[#allocation11 + $0x100] sm:$0xff] %vm655_vm2, %v2667_v7  ;;  %v2670_v10 = vadd.f32 %v2583_v18, %v2465_v16  ;;  %v3107_v13 = vld [vmem:[#allocation11 + $0xa8] sm:$0xff]  ;;  %v3110_v7 = vld [vmem:[#allocation11 + $0xc0] sm:$0xff] }
 0x35c   : > { %v3714_v22 = vld [vmem:[#allocation11 + $0x68] sm:$0xff]  ;;  %v2581_v24 = vpop.permute.xlu1 %2580 }
 0x35d   : > { %3842 = vst.msk [vmem:[#allocation11 + $0x58] sm:$0xff] %vm655_vm2, %v3801_v19  ;;  %v3800_v25 = vmax.f32 %v3759_v20, 0.0  ;;  %v3762_v27 = vadd.f32 %v8904_v42, %v3714_v22  ;;  %2711 = vst.msk [vmem:[#allocation11 + $0x118] sm:$0xff] %vm655_vm2, %v2670_v10  ;;  %v2669_v63 = vadd.f32 %v2581_v24, %v2464_v23  ;;  %v3109_v19 = vld [vmem:[#allocation11 + $0xb8] sm:$0xff]  ;;  %v3112_v10 = vld [vmem:[#allocation11 + $0xd0] sm:$0xff] }
 0x35e   : > { %v3713_v28 = vld [vmem:[#allocation11 + $0x60] sm:$0xff]  ;;  %v2897_v61 = vpop.permute.xlu0 %2896 }
 0x35f   : > { %3841 = vst.msk [vmem:[#allocation11 + $0x50] sm:$0xff] %vm655_vm2, %v3800_v25  ;;  %v3803_v29 = vmax.f32 %v3762_v27, 0.0  ;;  %v3761_v30 = vadd.f32 %v8904_v42, %v3713_v28  ;;  %2710 = vst.msk [vmem:[#allocation11 + $0x110] sm:$0xff] %vm655_vm2, %v2669_v63  ;;  %v2991_v31 = vadd.f32 %v2897_v61, %v2786_v17  ;;  %v3901_v32 = vld [vmem:[#allocation11 + $0x24] ss:$2 sm:$0xff]  ;;  %v3429_v61 = vld [vmem:[#allocation11 + $0x78] sm:$0xff] }
 0x360   : > { %v3903_v33 = vld [vmem:[#allocation11 + $0x25] ss:$2 sm:$0xff]  ;;  %v2895_v34 = vpop.permute.xlu1 %2894 }
 0x361   : > { %3844 = vst.msk [vmem:[#allocation11 + $0x68] sm:$0xff] %vm655_vm2, %v3803_v29  ;;  %v3802_v36 = vmax.f32 %v3761_v30, 0.0  ;;  %3032 = vst.msk [vmem:[#allocation11 + $0xe0] sm:$0xff] %vm655_vm2, %v2991_v31  ;;  %v2990_v37 = vadd.f32 %v2895_v34, %v2785_v35  ;;  %v3904_v43 = vmax.f32 %v3901_v32, %v3903_v33  ;;  %v3111_v28 = vld [vmem:[#allocation11 + $0xc8] sm:$0xff]  ;;  %v3428_v32 = vld [vmem:[#allocation11 + $0x70] sm:$0xff] }
 0x362   : > { %v3906_v11 = vld [vmem:[#allocation11 + $0x36] ss:$2 sm:$0xff]  ;;  %v3908_v39 = vld [vmem:[#allocation11 + $0x37] ss:$2 sm:$0xff]  ;;  %v2901_v41 = vpop.permute.xlu0 %2900  ;;  %v3431_v34 = vld [vmem:[#allocation11 + $0x88] sm:$0xff] }
 0x363   : > { %v3909_v44 = vmax.f32 %v3906_v11, %v3908_v39  ;;  %3843 = vst.msk [vmem:[#allocation11 + $0x60] sm:$0xff] %vm655_vm2, %v3802_v36  ;;  %3031 = vst.msk [vmem:[#allocation11 + $0xd8] sm:$0xff] %vm655_vm2, %v2990_v37  ;;  %v2993_v51 = vadd.f32 %v2901_v41, %v2788_v40  ;;  %v3430_v11 = vld [vmem:[#allocation11 + $0x80] sm:$0xff]  ;;  %v2791_v40 = vld [vmem:[#allocation11 + $0x108] sm:$0xff] }
 0x364   : > { %v2899_v47 = vpop.permute.xlu1 %2898 }
 0x365   : > { %v3910_v26 = vmax.f32 %v3904_v43, %v3909_v44  ;;  %3034 = vst.msk [vmem:[#allocation11 + $0xf0] sm:$0xff] %vm655_vm2, %v2993_v51  ;;  %v2992_v46 = vadd.f32 %v2899_v47, %v2787_v45  ;;  %v2790_v51 = vld [vmem:[#allocation11 + $0x100] sm:$0xff] }
 0x366   : > { %v3205_v48 = vpop.permute.xlu0 %3204  ;;  %v3913_v21 = vld [vmem:[#allocation11 + $0x48] ss:$2 sm:$0xff]  ;;  %v3915_v50 = vld [vmem:[#allocation11 + $0x49] ss:$2 sm:$0xff] }
 0x367   : > { %3911 = vst.msk [vmem:[#allocation2 + $0x15] sm:$0xff] %vm655_vm2, %v3910_v26  ;;  %3033 = vst.msk [vmem:[#allocation11 + $0xe8] sm:$0xff] %vm655_vm2, %v2992_v46  ;;  %v3309_v49 = vadd.f32 %v3205_v48, %v3104_v38  ;;  %v3916_v60 = vmax.f32 %v3913_v21, %v3915_v50  ;;  %v2793_v38 = vld [vmem:[#allocation11 + $0x118] sm:$0xff] }
 0x368   : > { %v2903_v52 = vpop.permute.xlu1 %2902 }
 0x369   : > { %3350 = vst.msk [vmem:[#allocation11 + $0x90] sm:$0xff] %vm655_vm2, %v3309_v49  ;;  %v2994_v54 = vadd.f32 %v2903_v52, %v2789_v53  ;;  %v2792_v53 = vld [vmem:[#allocation11 + $0x110] sm:$0xff] }
 0x36a   : > { %v3918_v56 = vld [vmem:[#allocation11 + $0x5a] ss:$2 sm:$0xff]  ;;  %v3920_v57 = vld [vmem:[#allocation11 + $0x5b] ss:$2 sm:$0xff]  ;;  %v3209_v59 = vpop.permute.xlu0 %3208 }
 0x36b   : > { %v3921_v62 = vmax.f32 %v3918_v56, %v3920_v57  ;;  %3035 = vst.msk [vmem:[#allocation11 + $0xf8] sm:$0xff] %vm655_vm2, %v2994_v54  ;;  %v3311_v0 = vadd.f32 %v3209_v59, %v3106_v58 }
 0x36c   : > { %v3207_v1 = vpop.permute.xlu1 %3206 }
 0x36d   : > { %v3922_v4 = vmax.f32 %v3916_v60, %v3921_v62  ;;  %3352 = vst.msk [vmem:[#allocation11 + $0xa0] sm:$0xff] %vm655_vm2, %v3311_v0  ;;  %v3310_v5 = vadd.f32 %v3207_v1, %v3105_v3  ;;  %v3114_v60 = vld [vmem:[#allocation11 + $0xe0] sm:$0xff] }
 0x36e   : > { %v3213_v8 = vpop.permute.xlu0 %3212  ;;  %v3986_v23 = vld [vmem:[#allocation2 + $0x10] sm:$0xff] }
 0x36f   : > { %3923 = vst.msk [vmem:[#allocation2 + $0x1f] sm:$0xff] %vm655_vm2, %v3922_v4  ;;  %3351 = vst.msk [vmem:[#allocation11 + $0x98] sm:$0xff] %vm655_vm2, %v3310_v5  ;;  %v3313_v9 = vadd.f32 %v3213_v8, %v3108_v6  ;;  %v3113_v4 = vld [vmem:[#allocation11 + $0xd8] sm:$0xff] }
 0x370   : > { %v3211_v12 = vpop.permute.xlu1 %3210 }
 0x371   : > { %3354 = vst.msk [vmem:[#allocation11 + $0xb0] sm:$0xff] %vm655_vm2, %v3313_v9  ;;  %v3312_v14 = vadd.f32 %v3211_v12, %v3107_v13  ;;  %v3116_v9 = vld [vmem:[#allocation11 + $0xf0] sm:$0xff] }
 0x372   : > { %v3217_v15 = vpop.permute.xlu0 %3216 }
 0x373   : > { %3353 = vst.msk [vmem:[#allocation11 + $0xa8] sm:$0xff] %vm655_vm2, %v3312_v14  ;;  %v3315_v16 = vadd.f32 %v3217_v15, %v3110_v7  ;;  %v3115_v14 = vld [vmem:[#allocation11 + $0xe8] sm:$0xff] }
 0x374   : > { %v3215_v18 = vpop.permute.xlu1 %3214 }
 0x375   : > { %3356 = vst.msk [vmem:[#allocation11 + $0xc0] sm:$0xff] %vm655_vm2, %v3315_v16  ;;  %v3314_v20 = vadd.f32 %v3215_v18, %v3109_v19  ;;  %v3432_v16 = vld [vmem:[#allocation11 + $0x90] sm:$0xff] }
 0x376   : > { %v3221_v22 = vpop.permute.xlu0 %3220  ;;  %v3987_v24 = vld [vmem:[#allocation2 + $0x18] sm:$0xff] }
 0x377   : > { %3355 = vst.msk [vmem:[#allocation11 + $0xb8] sm:$0xff] %vm655_vm2, %v3314_v20  ;;  %v3317_v25 = vadd.f32 %v3221_v22, %v3112_v10  ;;  %v4001_v27 = vpack.c.bf16 %v3987_v24, %v3986_v23  ;;  %v3117_v22 = vld [vmem:[#allocation11 + $0xf8] sm:$0xff] }
 0x378   : > { %v3219_v63 = vpop.permute.xlu1 %3218 }
 0x379   : > { %3358 = vst.msk [vmem:[#allocation11 + $0xd0] sm:$0xff] %vm655_vm2, %v3317_v25  ;;  %v3316_v17 = vadd.f32 %v3219_v63, %v3111_v28  ;;  %7432 = vmatmul.mubr.msk.bf16.gmra.mrb[4].mxu1 %vm655_vm2, %v4001_v27  ;;  %v3434_v63 = vld [vmem:[#allocation11 + $0xa0] sm:$0xff] }
 0x37a   : > { %v3527_v29 = vpop.permute.xlu0 %3526  ;;  %4096 = vmatprep.mubr.bf16.mxu1 %v7956_v55 }
 0x37b   : > { %3357 = vst.msk [vmem:[#allocation11 + $0xc8] sm:$0xff] %vm655_vm2, %v3316_v17  ;;  %v3634_v30 = vadd.f32 %v3527_v29, %v3429_v61 }
 0x37c   : > { %v3525_v31 = vpop.permute.xlu1 %3524 }
 0x37d   : > { %3675 = vst.msk [vmem:[#allocation11 + $0x78] sm:$0xff] %vm655_vm2, %v3634_v30  ;;  %v3633_v33 = vadd.f32 %v3525_v31, %v3428_v32  ;;  %v3433_v30 = vld [vmem:[#allocation11 + $0x98] sm:$0xff] }
 0x37e   : > { %v3531_v35 = vpop.permute.xlu0 %3530 }
 0x37f   : > { %3674 = vst.msk [vmem:[#allocation11 + $0x70] sm:$0xff] %vm655_vm2, %v3633_v33  ;;  %v3636_v36 = vadd.f32 %v3531_v35, %v3431_v34  ;;  %v3436_v34 = vld [vmem:[#allocation11 + $0xb0] sm:$0xff] }
 0x380   : > { %v3529_v37 = vpop.permute.xlu1 %3528 }
 0x381   : > { %3677 = vst.msk [vmem:[#allocation11 + $0x88] sm:$0xff] %vm655_vm2, %v3636_v36  ;;  %v3635_v39 = vadd.f32 %v3529_v37, %v3430_v11  ;;  %v3435_v11 = vld [vmem:[#allocation11 + $0xa8] sm:$0xff] }
 0x382   : > { %v2907_v41 = vpop.permute.xlu0 %2906 }
 0x383   : > { %3676 = vst.msk [vmem:[#allocation11 + $0x80] sm:$0xff] %vm655_vm2, %v3635_v39  ;;  %v2996_v43 = vadd.f32 %v2907_v41, %v2791_v40 }
 0x384   : > { %v3716_v44 = vld [vmem:[#allocation11 + $0x78] sm:$0xff]  ;;  %v2905_v47 = vpop.permute.xlu1 %2904 }
 0x385   : > { %v3764_v45 = vadd.f32 %v8904_v42, %v3716_v44  ;;  %3037 = vst.msk [vmem:[#allocation11 + $0x108] sm:$0xff] %vm655_vm2, %v2996_v43  ;;  %v2995_v26 = vadd.f32 %v2905_v47, %v2790_v51  ;;  %v3438_v43 = vld [vmem:[#allocation11 + $0xc0] sm:$0xff] }
 0x386   : > { %v3715_v46 = vld [vmem:[#allocation11 + $0x70] sm:$0xff]  ;;  %v2911_v48 = vpop.permute.xlu0 %2910 }
 0x387   : > { %v3805_v49 = vmax.f32 %v3764_v45, 0.0  ;;  %v3763_v21 = vadd.f32 %v8904_v42, %v3715_v46  ;;  %3036 = vst.msk [vmem:[#allocation11 + $0x100] sm:$0xff] %vm655_vm2, %v2995_v26  ;;  %v2998_v50 = vadd.f32 %v2911_v48, %v2793_v38  ;;  %v3437_v26 = vld [vmem:[#allocation11 + $0xb8] sm:$0xff] }
 0x388   : > { %v3718_v52 = vld [vmem:[#allocation11 + $0x88] sm:$0xff]  ;;  %v2909_v54 = vpop.permute.xlu1 %2908 }
 0x389   : > { %3846 = vst.msk [vmem:[#allocation11 + $0x78] sm:$0xff] %vm655_vm2, %v3805_v49  ;;  %v3804_v56 = vmax.f32 %v3763_v21, 0.0  ;;  %v3766_v57 = vadd.f32 %v8904_v42, %v3718_v52  ;;  %3039 = vst.msk [vmem:[#allocation11 + $0x118] sm:$0xff] %vm655_vm2, %v2998_v50  ;;  %v2997_v58 = vadd.f32 %v2909_v54, %v2792_v53  ;;  %v3988_v49 = vld [vmem:[#allocation2 + $0x20] sm:$0xff]  ;;  %v3440_v50 = vld [vmem:[#allocation11 + $0xd0] sm:$0xff] }
 0x38a   : > { %v3717_v59 = vld [vmem:[#allocation11 + $0x80] sm:$0xff]  ;;  %v3225_v62 = vpop.permute.xlu0 %3224 }
 0x38b   : > { %3845 = vst.msk [vmem:[#allocation11 + $0x70] sm:$0xff] %vm655_vm2, %v3804_v56  ;;  %v3807_v0 = vmax.f32 %v3766_v57, 0.0  ;;  %v3765_v1 = vadd.f32 %v8904_v42, %v3717_v59  ;;  %3038 = vst.msk [vmem:[#allocation11 + $0x110] sm:$0xff] %vm655_vm2, %v2997_v58  ;;  %v3319_v3 = vadd.f32 %v3225_v62, %v3114_v60  ;;  %v3439_v60 = vld [vmem:[#allocation11 + $0xc8] sm:$0xff] }
 0x38c   : > { %v3223_v5 = vpop.permute.xlu1 %3222 }
 0x38d   : > { %3848 = vst.msk [vmem:[#allocation11 + $0x88] sm:$0xff] %vm655_vm2, %v3807_v0  ;;  %v3806_v6 = vmax.f32 %v3765_v1, 0.0  ;;  %3360 = vst.msk [vmem:[#allocation11 + $0xe0] sm:$0xff] %vm655_vm2, %v3319_v3  ;;  %v3318_v8 = vadd.f32 %v3223_v5, %v3113_v4  ;;  %v3119_v5 = vld [vmem:[#allocation11 + $0x108] sm:$0xff] }
 0x38e   : > { %v3229_v12 = vpop.permute.xlu0 %3228 }
 0x38f   : > { %3847 = vst.msk [vmem:[#allocation11 + $0x80] sm:$0xff] %vm655_vm2, %v3806_v6  ;;  %3359 = vst.msk [vmem:[#allocation11 + $0xd8] sm:$0xff] %vm655_vm2, %v3318_v8  ;;  %v3321_v13 = vadd.f32 %v3229_v12, %v3116_v9 }
 0x390   : > { %v3227_v7 = vpop.permute.xlu1 %3226 }
 0x391   : > { %3362 = vst.msk [vmem:[#allocation11 + $0xf0] sm:$0xff] %vm655_vm2, %v3321_v13  ;;  %v3320_v15 = vadd.f32 %v3227_v7, %v3115_v14  ;;  %v3118_v14 = vld [vmem:[#allocation11 + $0x100] sm:$0xff] }
 0x392   : > { %v3533_v18 = vpop.permute.xlu0 %3532  ;;  %v3925_v20 = vld [vmem:[#allocation11 + $0x6c] ss:$2 sm:$0xff]  ;;  %v3927_v10 = vld [vmem:[#allocation11 + $0x6d] ss:$2 sm:$0xff] }
 0x393   : > { %3361 = vst.msk [vmem:[#allocation11 + $0xe8] sm:$0xff] %vm655_vm2, %v3320_v15  ;;  %v3637_v19 = vadd.f32 %v3533_v18, %v3432_v16  ;;  %v3928_v17 = vmax.f32 %v3925_v20, %v3927_v10  ;;  %v3121_v20 = vld [vmem:[#allocation11 + $0x118] sm:$0xff] }
 0x394   : > { %v3231_v23 = vpop.permute.xlu1 %3230 }
 0x395   : > { %3678 = vst.msk [vmem:[#allocation11 + $0x90] sm:$0xff] %vm655_vm2, %v3637_v19  ;;  %v3322_v24 = vadd.f32 %v3231_v23, %v3117_v22 }
 0x396   : > { %v3930_v25 = vld [vmem:[#allocation11 + $0x7e] ss:$2 sm:$0xff]  ;;  %v3932_v27 = vld [vmem:[#allocation11 + $0x7f] ss:$2 sm:$0xff]  ;;  %v3537_v28 = vpop.permute.xlu0 %3536 }
 0x397   : > { %v3933_v61 = vmax.f32 %v3930_v25, %v3932_v27  ;;  %3363 = vst.msk [vmem:[#allocation11 + $0xf8] sm:$0xff] %vm655_vm2, %v3322_v24  ;;  %v3639_v29 = vadd.f32 %v3537_v28, %v3434_v63  ;;  %v3120_v27 = vld [vmem:[#allocation11 + $0x110] sm:$0xff] }
 0x398   : > { %v3535_v31 = vpop.permute.xlu1 %3534 }
 0x399   : > { %v3934_v32 = vmax.f32 %v3928_v17, %v3933_v61  ;;  %3680 = vst.msk [vmem:[#allocation11 + $0xa0] sm:$0xff] %vm655_vm2, %v3639_v29  ;;  %v3638_v33 = vadd.f32 %v3535_v31, %v3433_v30  ;;  %v3442_v30 = vld [vmem:[#allocation11 + $0xe0] sm:$0xff] }
 0x39a   : > { %v3541_v35 = vpop.permute.xlu0 %3540 }
 0x39b   : > { %3935 = vst.msk [vmem:[#allocation2 + $0x29] sm:$0xff] %vm655_vm2, %v3934_v32  ;;  %3679 = vst.msk [vmem:[#allocation11 + $0x98] sm:$0xff] %vm655_vm2, %v3638_v33  ;;  %v3641_v36 = vadd.f32 %v3541_v35, %v3436_v34 }
 0x39c   : > { %v3719_v37 = vld [vmem:[#allocation11 + $0x90] sm:$0xff]  ;;  %v3539_v39 = vpop.permute.xlu1 %3538 }
 0x39d   : > { %v3767_v40 = vadd.f32 %v8904_v42, %v3719_v37  ;;  %3682 = vst.msk [vmem:[#allocation11 + $0xb0] sm:$0xff] %vm655_vm2, %v3641_v36  ;;  %v3640_v41 = vadd.f32 %v3539_v39, %v3435_v11  ;;  %v3441_v37 = vld [vmem:[#allocation11 + $0xd8] sm:$0xff] }
 0x39e   : > { %v3545_v44 = vpop.permute.xlu0 %3544 }
 0x39f   : > { %v3808_v51 = vmax.f32 %v3767_v40, 0.0  ;;  %3681 = vst.msk [vmem:[#allocation11 + $0xa8] sm:$0xff] %vm655_vm2, %v3640_v41  ;;  %v3643_v47 = vadd.f32 %v3545_v44, %v3438_v43  ;;  %v3444_v44 = vld [vmem:[#allocation11 + $0xf0] sm:$0xff] }
 0x3a0   : > { %v3721_v45 = vld [vmem:[#allocation11 + $0xa0] sm:$0xff]  ;;  %v3543_v46 = vpop.permute.xlu1 %3542 }
 0x3a1   : > { %3849 = vst.msk [vmem:[#allocation11 + $0x90] sm:$0xff] %vm655_vm2, %v3808_v51  ;;  %v3769_v38 = vadd.f32 %v8904_v42, %v3721_v45  ;;  %3684 = vst.msk [vmem:[#allocation11 + $0xc0] sm:$0xff] %vm655_vm2, %v3643_v47  ;;  %v3642_v48 = vadd.f32 %v3543_v46, %v3437_v26  ;;  %v3443_v26 = vld [vmem:[#allocation11 + $0xe8] sm:$0xff] }
 0x3a2   : > { %v3720_v21 = vld [vmem:[#allocation11 + $0x98] sm:$0xff]  ;;  %v3549_v52 = vpop.permute.xlu0 %3548  ;;  %v3989_v53 = vld [vmem:[#allocation2 + $0x28] sm:$0xff] }
 0x3a3   : > { %v3810_v54 = vmax.f32 %v3769_v38, 0.0  ;;  %v3768_v56 = vadd.f32 %v8904_v42, %v3720_v21  ;;  %3683 = vst.msk [vmem:[#allocation11 + $0xb8] sm:$0xff] %vm655_vm2, %v3642_v48  ;;  %v3645_v57 = vadd.f32 %v3549_v52, %v3440_v50  ;;  %v4002_v58 = vpack.c.bf16 %v3989_v53, %v3988_v49 }
 0x3a4   : > { %v3723_v59 = vld [vmem:[#allocation11 + $0xb0] sm:$0xff]  ;;  %v3547_v62 = vpop.permute.xlu1 %3546 }
 0x3a5   : > { %3851 = vst.msk [vmem:[#allocation11 + $0xa0] sm:$0xff] %vm655_vm2, %v3810_v54  ;;  %v3809_v0 = vmax.f32 %v3768_v56, 0.0  ;;  %v3771_v1 = vadd.f32 %v8904_v42, %v3723_v59  ;;  %3686 = vst.msk [vmem:[#allocation11 + $0xd0] sm:$0xff] %vm655_vm2, %v3645_v57  ;;  %v3644_v3 = vadd.f32 %v3547_v62, %v3439_v60  ;;  %7433 = vmatmul.mubr.msk.bf16.gmra.mrb[8].mxu1 %vm655_vm2, %v4002_v58  ;;  %v3445_v56 = vld [vmem:[#allocation11 + $0xf8] sm:$0xff]  ;;  %v7878_v58 = vld [vmem:[%s10491_s24] ss:$0 sm:$0xff] }
 0x3a6   : > { %v3722_v4 = vld [vmem:[#allocation11 + $0xa8] sm:$0xff]  ;;  %v3235_v6 = vpop.permute.xlu0 %3234  ;;  %4106 = vmatprep.mubr.bf16.mxu1 %v7956_v55 }
 0x3a7   : > { %3850 = vst.msk [vmem:[#allocation11 + $0x98] sm:$0xff] %vm655_vm2, %v3809_v0  ;;  %v3812_v8 = vmax.f32 %v3771_v1, 0.0  ;;  %v3770_v9 = vadd.f32 %v8904_v42, %v3722_v4  ;;  %3685 = vst.msk [vmem:[#allocation11 + $0xc8] sm:$0xff] %vm655_vm2, %v3644_v3  ;;  %v3324_v12 = vadd.f32 %v3235_v6, %v3119_v5 }
 0x3a8   : > { %v3725_v13 = vld [vmem:[#allocation11 + $0xc0] sm:$0xff]  ;;  %v3233_v7 = vpop.permute.xlu1 %3232 }
 0x3a9   : > { %3853 = vst.msk [vmem:[#allocation11 + $0xb0] sm:$0xff] %vm655_vm2, %v3812_v8  ;;  %v3811_v15 = vmax.f32 %v3770_v9, 0.0  ;;  %v3773_v16 = vadd.f32 %v8904_v42, %v3725_v13  ;;  %3365 = vst.msk [vmem:[#allocation11 + $0x108] sm:$0xff] %vm655_vm2, %v3324_v12  ;;  %v3323_v18 = vadd.f32 %v3233_v7, %v3118_v14 }
 0x3aa   : > { %v3724_v19 = vld [vmem:[#allocation11 + $0xb8] sm:$0xff]  ;;  %v3239_v10 = vpop.permute.xlu0 %3238 }
 0x3ab   : > { %3852 = vst.msk [vmem:[#allocation11 + $0xa8] sm:$0xff] %vm655_vm2, %v3811_v15  ;;  %v3814_v22 = vmax.f32 %v3773_v16, 0.0  ;;  %v3772_v23 = vadd.f32 %v8904_v42, %v3724_v19  ;;  %3364 = vst.msk [vmem:[#allocation11 + $0x100] sm:$0xff] %vm655_vm2, %v3323_v18  ;;  %v3326_v24 = vadd.f32 %v3239_v10, %v3121_v20 }
 0x3ac   : > { %v3727_v25 = vld [vmem:[#allocation11 + $0xd0] sm:$0xff]  ;;  %v3237_v63 = vpop.permute.xlu1 %3236 }
 0x3ad   : > { %3855 = vst.msk [vmem:[#allocation11 + $0xc0] sm:$0xff] %vm655_vm2, %v3814_v22  ;;  %v3813_v28 = vmax.f32 %v3772_v23, 0.0  ;;  %v3775_v17 = vadd.f32 %v8904_v42, %v3727_v25  ;;  %3367 = vst.msk [vmem:[#allocation11 + $0x118] sm:$0xff] %vm655_vm2, %v3326_v24  ;;  %v3325_v61 = vadd.f32 %v3237_v63, %v3120_v27 }
 0x3ae   : > { %v3726_v29 = vld [vmem:[#allocation11 + $0xc8] sm:$0xff]  ;;  %v3553_v31 = vpop.permute.xlu0 %3552  ;;  %v3937_v35 = vld [vmem:[#allocation11 + $0x90] ss:$2 sm:$0xff]  ;;  %v3939_v36 = vld [vmem:[#allocation11 + $0x91] ss:$2 sm:$0xff] }
 0x3af   : > { %3854 = vst.msk [vmem:[#allocation11 + $0xb8] sm:$0xff] %vm655_vm2, %v3813_v28  ;;  %v3816_v32 = vmax.f32 %v3775_v17, 0.0  ;;  %v3774_v33 = vadd.f32 %v8904_v42, %v3726_v29  ;;  %3366 = vst.msk [vmem:[#allocation11 + $0x110] sm:$0xff] %vm655_vm2, %v3325_v61  ;;  %v3647_v34 = vadd.f32 %v3553_v31, %v3442_v30  ;;  %v3940_v47 = vmax.f32 %v3937_v35, %v3939_v36 }
 0x3b0   : > { %v3551_v11 = vpop.permute.xlu1 %3550  ;;  %v3447_v7 = vld [vmem:[#allocation11 + $0x108] sm:$0xff] }
 0x3b1   : > { %3857 = vst.msk [vmem:[#allocation11 + $0xd0] sm:$0xff] %vm655_vm2, %v3816_v32  ;;  %v3815_v39 = vmax.f32 %v3774_v33, 0.0  ;;  %3688 = vst.msk [vmem:[#allocation11 + $0xe0] sm:$0xff] %vm655_vm2, %v3647_v34  ;;  %v3646_v40 = vadd.f32 %v3551_v11, %v3441_v37 }
 0x3b2   : > { %v3942_v41 = vld [vmem:[#allocation11 + $0xa2] ss:$2 sm:$0xff]  ;;  %v3944_v43 = vld [vmem:[#allocation11 + $0xa3] ss:$2 sm:$0xff]  ;;  %v3557_v51 = vpop.permute.xlu0 %3556 }
 0x3b3   : > { %v3945_v45 = vmax.f32 %v3942_v41, %v3944_v43  ;;  %3856 = vst.msk [vmem:[#allocation11 + $0xc8] sm:$0xff] %vm655_vm2, %v3815_v39  ;;  %3687 = vst.msk [vmem:[#allocation11 + $0xd8] sm:$0xff] %vm655_vm2, %v3646_v40  ;;  %v3649_v42 = vadd.f32 %v3557_v51, %v3444_v44  ;;  %v3446_v49 = vld [vmem:[#allocation11 + $0x100] sm:$0xff] }
 0x3b4   : > { %v3555_v46 = vpop.permute.xlu1 %3554  ;;  %v3449_v25 = vld [vmem:[#allocation11 + $0x118] sm:$0xff] }
 0x3b5   : > { %v3946_v38 = vmax.f32 %v3940_v47, %v3945_v45  ;;  %3690 = vst.msk [vmem:[#allocation11 + $0xf0] sm:$0xff] %vm655_vm2, %v3649_v42  ;;  %v3648_v48 = vadd.f32 %v3555_v46, %v3443_v26 }
 0x3b6   : > { %v3561_v21 = vpop.permute.xlu0 %3560  ;;  %v3949_v50 = vld [vmem:[#allocation11 + $0xb4] ss:$2 sm:$0xff]  ;;  %v3951_v52 = vld [vmem:[#allocation11 + $0xb5] ss:$2 sm:$0xff] }
 0x3b7   : > { %3947 = vst.msk [vmem:[#allocation2 + $0x33] sm:$0xff] %vm655_vm2, %v3946_v38  ;;  %3689 = vst.msk [vmem:[#allocation11 + $0xe8] sm:$0xff] %vm655_vm2, %v3648_v48  ;;  %v3651_v53 = vadd.f32 %v3561_v21, %v3446_v49  ;;  %v3448_v62 = vld [vmem:[#allocation11 + $0x110] sm:$0xff]  ;;  %v3952_v0 = vmax.f32 %v3949_v50, %v3951_v52 }
 0x3b8   : > { %v3729_v54 = vld [vmem:[#allocation11 + $0xe0] sm:$0xff]  ;;  %v3559_v57 = vpop.permute.xlu1 %3558 }
 0x3b9   : > { %v3777_v59 = vadd.f32 %v7878_v58, %v3729_v54  ;;  %3692 = vst.msk [vmem:[#allocation11 + $0x100] sm:$0xff] %vm655_vm2, %v3651_v53  ;;  %v3650_v60 = vadd.f32 %v3559_v57, %v3445_v56 }
 0x3ba   : > { %v3954_v1 = vld [vmem:[#allocation11 + $0xc6] ss:$2 sm:$0xff]  ;;  %v3956_v3 = vld [vmem:[#allocation11 + $0xc7] ss:$2 sm:$0xff]  ;;  %v3728_v4 = vld [vmem:[#allocation11 + $0xd8] sm:$0xff]  ;;  %v3565_v5 = vpop.permute.xlu0 %3564 }
 0x3bb   : > { %v3957_v6 = vmax.f32 %v3954_v1, %v3956_v3  ;;  %v3818_v8 = vmax.f32 %v3777_v59, 0.0  ;;  %v3776_v9 = vadd.f32 %v7878_v58, %v3728_v4  ;;  %3691 = vst.msk [vmem:[#allocation11 + $0xf8] sm:$0xff] %vm655_vm2, %v3650_v60  ;;  %v3653_v12 = vadd.f32 %v3565_v5, %v3448_v62  ;;  %v3996_v62 = vld [vmem:[#allocation2 + $0x60] sm:$0xff]  ;;  %v3998_v3 = vld [vmem:[#allocation2 + $0x70] sm:$0xff]  ;;  %v3999_v4 = vld [vmem:[#allocation2 + $0x78] sm:$0x3] }
 0x3bc   : > { %v3731_v13 = vld [vmem:[#allocation11 + $0xf0] sm:$0xff]  ;;  %v3563_v14 = vpop.permute.xlu1 %3562  ;;  %v4007_v5 = vpack.c.bf16 %v3999_v4, %v3998_v3 }
 0x3bd   : > { %v3958_v15 = vmax.f32 %v3952_v0, %v3957_v6  ;;  %3859 = vst.msk [vmem:[#allocation11 + $0xe0] sm:$0xff] %vm655_vm2, %v3818_v8  ;;  %v3817_v16 = vmax.f32 %v3776_v9, 0.0  ;;  %v3779_v18 = vadd.f32 %v7878_v58, %v3731_v13  ;;  %3694 = vst.msk [vmem:[#allocation11 + $0x110] sm:$0xff] %vm655_vm2, %v3653_v12  ;;  %v3652_v19 = vadd.f32 %v3563_v14, %v3447_v7  ;;  %v3997_v0 = vld [vmem:[#allocation2 + $0x68] sm:$0xff] }
 0x3be   : > { %v3730_v20 = vld [vmem:[#allocation11 + $0xe8] sm:$0xff]  ;;  %v3990_v36 = vld [vmem:[#allocation2 + $0x30] sm:$0xff]  ;;  %v4006_v1 = vpack.c.bf16 %v3997_v0, %v3996_v62 }
 0x3bf   : > { %3959 = vst.msk [vmem:[#allocation2 + $0x3d] sm:$0xff] %vm655_vm2, %v3958_v15  ;;  %3858 = vst.msk [vmem:[#allocation11 + $0xd8] sm:$0xff] %vm655_vm2, %v3817_v16  ;;  %v3820_v10 = vmax.f32 %v3779_v18, 0.0  ;;  %v3778_v22 = vadd.f32 %v7878_v58, %v3730_v20 }
 0x3c0   : > { %3693 = vst.msk [vmem:[#allocation11 + $0x108] sm:$0xff] %vm655_vm2, %v3652_v19  ;;  %v3733_v23 = vld [vmem:[#allocation11 + $0x100] sm:$0xff]  ;;  %v3567_v24 = vpop.permute.xlu1 %3566 }
 0x3c1   : > { %3861 = vst.msk [vmem:[#allocation11 + $0xf0] sm:$0xff] %vm655_vm2, %v3820_v10  ;;  %v3819_v27 = vmax.f32 %v3778_v22, 0.0  ;;  %v3781_v63 = vadd.f32 %v7878_v58, %v3733_v23  ;;  %v3654_v28 = vadd.f32 %v3567_v24, %v3449_v25 }
 0x3c2   : > { %v3732_v17 = vld [vmem:[#allocation11 + $0xf8] sm:$0xff] }
 0x3c3   : > { %3860 = vst.msk [vmem:[#allocation11 + $0xe8] sm:$0xff] %vm655_vm2, %v3819_v27  ;;  %v3822_v61 = vmax.f32 %v3781_v63, 0.0  ;;  %v3780_v29 = vadd.f32 %v7878_v58, %v3732_v17  ;;  %3695 = vst.msk [vmem:[#allocation11 + $0x118] sm:$0xff] %vm655_vm2, %v3654_v28 }
 0x3c4   : > { %v3735_v30 = vld [vmem:[#allocation11 + $0x110] sm:$0xff] }
 0x3c5   : > { %3863 = vst.msk [vmem:[#allocation11 + $0x100] sm:$0xff] %vm655_vm2, %v3822_v61  ;;  %v3821_v31 = vmax.f32 %v3780_v29, 0.0  ;;  %v3783_v32 = vadd.f32 %v7878_v58, %v3735_v30 }
 0x3c6   : > { %v3991_v37 = vld [vmem:[#allocation2 + $0x38] sm:$0xff] }
 0x3c7   : > { %v3734_v33 = vld [vmem:[#allocation11 + $0x108] sm:$0xff]  ;;  %3862 = vst.msk [vmem:[#allocation11 + $0xf8] sm:$0xff] %vm655_vm2, %v3821_v31  ;;  %v3824_v34 = vmax.f32 %v3783_v32, 0.0  ;;  %v4003_v11 = vpack.c.bf16 %v3991_v37, %v3990_v36  ;;  %v3961_v43 = vld [vmem:[#allocation11 + $0xd8] ss:$2 sm:$0xff] }
 0x3c8   : > { %v3782_v35 = vadd.f32 %v7878_v58, %v3734_v33  ;;  %v3963_v44 = vld [vmem:[#allocation11 + $0xd9] ss:$2 sm:$0xff] }
 0x3c9   : > { %3865 = vst.msk [vmem:[#allocation11 + $0x110] sm:$0xff] %vm655_vm2, %v3824_v34  ;;  %7434 = vmatmul.mubr.msk.bf16.gmra.mrb[12].mxu1 %vm655_vm2, %v4003_v11  ;;  %v3964_v42 = vmax.f32 %v3961_v43, %v3963_v44 }
 0x3ca   : > { %v3823_v39 = vmax.f32 %v3782_v35, 0.0  ;;  %v3736_v40 = vld [vmem:[#allocation11 + $0x118] sm:$0xff]  ;;  %4116 = vmatprep.mubr.bf16.mxu1 %v7956_v55 }
 0x3cb   : > { %v3784_v41 = vadd.f32 %v7878_v58, %v3736_v40 }
 0x3cc   : > { %3864 = vst.msk [vmem:[#allocation11 + $0x108] sm:$0xff] %vm655_vm2, %v3823_v39 }
 0x3cd   : > { %v3825_v51 = vmax.f32 %v3784_v41, 0.0 }
 0x3ce   : > { %v3966_v47 = vld [vmem:[#allocation11 + $0xea] ss:$2 sm:$0xff]  ;;  %v3968_v45 = vld [vmem:[#allocation11 + $0xeb] ss:$2 sm:$0xff] }
 0x3cf   : > { %v3969_v26 = vmax.f32 %v3966_v47, %v3968_v45  ;;  %3866 = vst.msk [vmem:[#allocation11 + $0x118] sm:$0xff] %vm655_vm2, %v3825_v51 }
 0x3d1   : > { %v3970_v46 = vmax.f32 %v3964_v42, %v3969_v26 }
 0x3d3   : > { %3971 = vst.msk [vmem:[#allocation2 + $0x47] sm:$0xff] %vm655_vm2, %v3970_v46  ;;  %v3973_v38 = vld [vmem:[#allocation11 + $0xfc] ss:$2 sm:$0xff]  ;;  %v3975_v48 = vld [vmem:[#allocation11 + $0xfd] ss:$2 sm:$0xff] }
 0x3d4   : > { %v3976_v50 = vmax.f32 %v3973_v38, %v3975_v48 }
 0x3d6   : > { %v3978_v49 = vld [vmem:[#allocation11 + $0x10e] ss:$2 sm:$0xff]  ;;  %v3980_v21 = vld [vmem:[#allocation11 + $0x10f] ss:$2 sm:$0xff] }
 0x3d7   : > { %v3981_v52 = vmax.f32 %v3978_v49, %v3980_v21 }
 0x3d9   : > { %v3982_v53 = vmax.f32 %v3976_v50, %v3981_v52 }
 0x3da   : > { %v3992_v54 = vld [vmem:[#allocation2 + $0x40] sm:$0xff]  ;;  %v3993_v56 = vld [vmem:[#allocation2 + $0x48] sm:$0xff] }
 0x3db   : > { %3983 = vst.msk [vmem:[#allocation2 + $0x51] sm:$0xff] %vm655_vm2, %v3982_v53  ;;  %v4004_v57 = vpack.c.bf16 %v3993_v56, %v3992_v54 }
 0x3dd   : > { %7435 = vmatmul.mubr.msk.bf16.gmra.mrb[16].mxu1 %vm655_vm2, %v4004_v57 }
 0x3de   : > { %4126 = vmatprep.mubr.bf16.mxu1 %v7956_v55 }
 0x3e2   : > { %v3994_v58 = vld [vmem:[#allocation2 + $0x50] sm:$0xff]  ;;  %v3995_v59 = vld [vmem:[#allocation2 + $0x58] sm:$0xff] }
 0x3e3   : > { %v4005_v60 = vpack.c.bf16 %v3995_v59, %v3994_v58 }
 0x3e5   : > { %7436 = vmatmul.mubr.msk.bf16.gmra.mrb[20].mxu1 %vm655_vm2, %v4005_v60 }
 0x3e6   : > { %4136 = vmatprep.mubr.bf16.mxu1 %v7956_v55 }
 0x3ed   : > { %7437 = vmatmul.mubr.msk.bf16.gmra.mrb[24].mxu1 %vm655_vm2, %v4006_v1 }
 0x3ee   : > { %4146 = vmatprep.mubr.bf16.mxu1 %v7956_v55 }
 0x3f5   : > { %7438 = vmatmul.mubr.msk.bf16.gmra.mrb[28].mxu1 %vm655_vm2, %v4007_v5 }
 0x3f6   : > { %5425 = vmatprep.mubr.bf16.mxu1 %v7956_v55 }
 0x418   : > { %v4078_v6 = vpop.f32.mrb[0].mxu1 }
 0x419   : > { %4157 = vst [vmem:[#allocation7] sm:$0xff] %v4078_v6  ;;  %v4080_v8 = vpop.f32.mrb[1].mxu1  ;;  %4204 = vst.msk [vmem:[#allocation12] sm:$0xff] %vm4158_vm6, %v4078_v6 }
 0x41a   : > { %v4082_v9 = vpop.f32.mrb[2].mxu1 }
 0x41b   : > { %4160 = vst [vmem:[#allocation7 + $0x10] sm:$0xff] %v4082_v9  ;;  %v4084_v12 = vpop.f32.mrb[3].mxu1  ;;  %4205 = vst.msk [vmem:[#allocation12 + $0x8] sm:$0xff] %vm4158_vm6, %v4082_v9  ;;  %v4259_v15 = vrot.slane %v4082_v9, 1  ;;  %v4389_v19 = vrot.slane %v4082_v9, 2 }
 0x420   : > { %v4218_v13 = vld [vmem:[#allocation7] sm:$0xfe]  ;;  %v4231_v9 = vld [vmem:[#allocation12] sm:$0xff] }
 0x421   : > { %v4348_v14 = vld [vmem:[#allocation7] sm:$0xfc]  ;;  %v4258_v7 = vrot.slane %v4218_v13, 1 }
 0x422   : > { %v4388_v18 = vrot.slane %v4348_v14, 2  ;;  %v4478_v10 = vld [vmem:[#allocation7 + $0x10] sm:$0xfc] }
 0x423   : > { %v4260_v16 = vsel %vm4257_vm7, %v4258_v7, %v4259_v15  ;;  %v4517_v25 = vrot.slane %v4478_v10, 2  ;;  %v4607_v28 = vld [vmem:[#allocation7 + $0x10] sm:$0xf8] }
 0x424   : > { %4283 = vrot.lane.b32.xlu0 %v4260_v16, %s10483_s25  ;;  %v4390_v20 = vsel %vm4387_vm8, %v4388_v18, %v4389_v19  ;;  %v4647_v35 = vrot.slane %v4607_v28, 3  ;;  %v4737_v39 = vld [vmem:[#allocation7 + $0x10] sm:$0xf0] }
 0x425   : > { %v4776_v51 = vrot.slane %v4737_v39, 4 }
 0x428   : > { %4413 = vrot.lane.b32.xlu0 %v4390_v20, %s10492_s3 }
 0x44c   : > { %v4088_v22 = vpop.f32.mrb[4].mxu1 }
 0x44d   : > { %4162 = vst [vmem:[#allocation7 + $0x20] sm:$0xff] %v4088_v22  ;;  %v4090_v23 = vpop.f32.mrb[5].mxu1  ;;  %v4261_v24 = vrot.slane %v4088_v22, 1  ;;  %v4518_v27 = vrot.slane %v4088_v22, 2  ;;  %4206 = vst.msk [vmem:[#allocation12 + $0x10] sm:$0xff] %vm4158_vm6, %v4088_v22  ;;  %v4648_v31 = vrot.slane %v4088_v22, 3 }
 0x44e   : > { %4163 = vst.msk [vmem:[#allocation7 + $0x28] sm:$0xff] %vm4158_vm6, %v4090_v23  ;;  %v9123_v63 = vpop.f32.mrb[6].mxu1  ;;  %v4777_v36 = vrot.slane %v4088_v22, 4 }
 0x44f   : > { %v4094_v17 = vpop.f32.mrb[7].mxu1  ;;  %v4262_v61 = vsel %vm4257_vm7, %v4259_v15, %v4261_v24  ;;  %v4519_v29 = vsel %vm4387_vm8, %v4517_v25, %v4518_v27  ;;  %v4392_v30 = vsel %vm4387_vm8, %v4389_v19, %v4518_v27  ;;  %4207 = vst.msk [vmem:[#allocation12 + $0x18] sm:$0xff] %vm4158_vm6, %v9123_v63  ;;  %v4520_v32 = vrot.slane %v9123_v63, 2 }
 0x450   : > { %4165 = vst.msk [vmem:[#allocation7 + $0x38] sm:$0xff] %vm4158_vm6, %v4094_v17  ;;  %4285 = vrot.lane.b32.xlu1 %v4262_v61, %s10483_s25  ;;  %4542 = vrot.lane.b32.xlu0 %v4519_v29, %s10488_s0  ;;  %v4650_v33 = vrot.slane %v9123_v63, 3  ;;  %v4263_v34 = vrot.slane %v9123_v63, 1  ;;  %v9137_v37 = vrot.slane %v9123_v63, 4  ;;  %v4649_v43 = vsel %vm4646_vm9, %v4647_v35, %v4648_v31 }
 0x451   : > { %v4521_v11 = vsel %vm4387_vm8, %v4518_v27, %v4520_v32  ;;  %v4778_v47 = vsel %vm725_vm0, %v4776_v51, %v4777_v36  ;;  %v5038_v21 = vrot.slane %v9123_v63, 5 }
 0x452   : > { %v4651_v40 = vsel %vm4646_vm9, %v4648_v31, %v4650_v33  ;;  %v4264_v41 = vsel %vm4257_vm7, %v4261_v24, %v4263_v34  ;;  %v4780_v44 = vsel %vm725_vm0, %v4777_v36, %v9137_v37 }
 0x454   : > { %4415 = vrot.lane.b32.xlu1 %v4392_v30, %s10492_s3  ;;  %4672 = vrot.lane.b32.xlu0 %v4649_v43, %s10490_s20 }
 0x456   : > { %v4234_v63 = vld [vmem:[#allocation12 + $0x18] sm:$0xff] }
 0x458   : > { %4544 = vrot.lane.b32.xlu1 %v4521_v11, %s10488_s0  ;;  %4801 = vrot.lane.b32.xlu0 %v4778_v47, %s10448_s21 }
 0x45c   : > { %4674 = vrot.lane.b32.xlu1 %v4651_v40, %s10490_s20  ;;  %4287 = vrot.lane.b32.xlu0 %v4264_v41, %s10483_s25 }
 0x460   : > { %4803 = vrot.lane.b32.xlu1 %v4780_v44, %s10448_s21  ;;  %4417 = vrot.lane.b32.xlu0 %v4521_v11, %s10492_s3 }
 0x478   : > { %v4098_v45 = vpop.f32.mrb[8].mxu1 }
 0x479   : > { %v4100_v42 = vpop.f32.mrb[9].mxu1  ;;  %v4265_v26 = vrot.slane %v4098_v45, 1  ;;  %v4522_v46 = vrot.slane %v4098_v45, 2  ;;  %v4652_v38 = vrot.slane %v4098_v45, 3  ;;  %v4781_v48 = vrot.slane %v4098_v45, 4  ;;  %4208 = vst.msk [vmem:[#allocation12 + $0x20] sm:$0xff] %vm4158_vm6, %v4098_v45 }
 0x47a   : > { %4167 = vst.msk [vmem:[#allocation7 + $0x48] sm:$0xff] %vm4158_vm6, %v4100_v42  ;;  %v9156_v49 = vpop.f32.mrb[10].mxu1  ;;  %v5040_v50 = vrot.slane %v4098_v45, 5 }
 0x47b   : > { %v4104_v52 = vpop.f32.mrb[11].mxu1  ;;  %v4266_v53 = vsel %vm4257_vm7, %v4263_v34, %v4265_v26  ;;  %v4523_v54 = vsel %vm4387_vm8, %v4520_v32, %v4522_v46  ;;  %v4653_v56 = vsel %vm4646_vm9, %v4650_v33, %v4652_v38  ;;  %v4524_v57 = vrot.slane %v9156_v49, 2  ;;  %4209 = vst.msk [vmem:[#allocation12 + $0x28] sm:$0xff] %vm4158_vm6, %v9156_v49 }
 0x47c   : > { %4169 = vst.msk [vmem:[#allocation7 + $0x58] sm:$0xff] %vm4158_vm6, %v4104_v52  ;;  %4289 = vrot.lane.b32.xlu1 %v4266_v53, %s10483_s25  ;;  %4546 = vrot.lane.b32.xlu0 %v4523_v54, %s10488_s0  ;;  %v9170_v58 = vsel %vm725_vm0, %v9137_v37, %v4781_v48  ;;  %v4654_v59 = vrot.slane %v9156_v49, 3  ;;  %v4267_v60 = vrot.slane %v9156_v49, 1  ;;  %v4783_v62 = vrot.slane %v9156_v49, 4 }
 0x47d   : > { %v4525_v0 = vsel %vm4387_vm8, %v4522_v46, %v4524_v57  ;;  %v5042_v1 = vrot.slane %v9156_v49, 5  ;;  %v9180_v3 = vsel %vm5036_vm10, %v5038_v21, %v5040_v50 }
 0x47e   : > { %v4655_v4 = vsel %vm4646_vm9, %v4652_v38, %v4654_v59  ;;  %v4268_v5 = vsel %vm4257_vm7, %v4265_v26, %v4267_v60  ;;  %v9185_v6 = vsel %vm725_vm0, %v4781_v48, %v4783_v62 }
 0x47f   : > { %v9188_v8 = vsel %vm5036_vm10, %v5040_v50, %v5042_v1 }
 0x480   : > { %4419 = vrot.lane.b32.xlu1 %v4523_v54, %s10492_s3  ;;  %4676 = vrot.lane.b32.xlu0 %v4653_v56, %s10490_s20 }
 0x484   : > { %4548 = vrot.lane.b32.xlu1 %v4525_v0, %s10488_s0  ;;  %4805 = vrot.lane.b32.xlu0 %v9170_v58, %s10448_s21 }
 0x488   : > { %4678 = vrot.lane.b32.xlu1 %v4655_v4, %s10490_s20  ;;  %4291 = vrot.lane.b32.xlu0 %v4268_v5, %s10483_s25 }
 0x48c   : > { %4807 = vrot.lane.b32.xlu1 %v9185_v6, %s10448_s21  ;;  %4421 = vrot.lane.b32.xlu0 %v4525_v0, %s10492_s3 }
 0x496   : > { %v4284_v12 = vpop.permute.xlu0 %4283 }
 0x497   : > { %v4322_v13 = vadd.f32 %v4284_v12, %v4231_v9 }
 0x499   : > { %4335 = vst.msk [vmem:[#allocation12] sm:$0xff] %vm4158_vm6, %v4322_v13 }
 0x49a   : > { %v4414_v23 = vpop.permute.xlu0 %4413 }
 0x49c   : > { %v4108_v14 = vpop.f32.mrb[12].mxu1 }
 0x49d   : > { %v4110_v7 = vpop.f32.mrb[13].mxu1  ;;  %v4526_v15 = vrot.slane %v4108_v14, 2  ;;  %v4269_v16 = vrot.slane %v4108_v14, 1  ;;  %v4656_v18 = vrot.slane %v4108_v14, 3  ;;  %v4785_v19 = vrot.slane %v4108_v14, 4  ;;  %4210 = vst.msk [vmem:[#allocation12 + $0x30] sm:$0xff] %vm4158_vm6, %v4108_v14 }
 0x49e   : > { %4171 = vst.msk [vmem:[#allocation7 + $0x68] sm:$0xff] %vm4158_vm6, %v4110_v7  ;;  %v4112_v20 = vpop.f32.mrb[14].mxu1  ;;  %v5044_v10 = vrot.slane %v4108_v14, 5 }
 0x49f   : > { %v4114_v24 = vpop.f32.mrb[15].mxu1  ;;  %v4527_v25 = vsel %vm4387_vm8, %v4524_v57, %v4526_v15  ;;  %v4270_v27 = vsel %vm4257_vm7, %v4267_v60, %v4269_v16  ;;  %v4657_v28 = vsel %vm4646_vm9, %v4654_v59, %v4656_v18  ;;  %v9207_v17 = vsel %vm725_vm0, %v4783_v62, %v4785_v19  ;;  %4211 = vst.msk [vmem:[#allocation12 + $0x38] sm:$0xff] %vm4158_vm6, %v4112_v20 }
 0x4a0   : > { %v4361_v22 = vld [vmem:[#allocation12] sm:$0xff]  ;;  %4173 = vst.msk [vmem:[#allocation7 + $0x78] sm:$0xff] %vm4158_vm6, %v4114_v24  ;;  %4550 = vrot.lane.b32.xlu0 %v4527_v25, %s10488_s0  ;;  %4293 = vrot.lane.b32.xlu1 %v4270_v27, %s10483_s25  ;;  %v4528_v29 = vrot.slane %v4112_v20, 2  ;;  %v4658_v30 = vrot.slane %v4112_v20, 3  ;;  %v4271_v31 = vrot.slane %v4112_v20, 1  ;;  %v4787_v32 = vrot.slane %v4112_v20, 4 }
 0x4a1   : > { %v4452_v61 = vadd.f32 %v4414_v23, %v4361_v22  ;;  %v5046_v33 = vrot.slane %v4112_v20, 5  ;;  %v9214_v34 = vsel %vm5036_vm10, %v5042_v1, %v5044_v10 }
 0x4a2   : > { %v4529_v35 = vsel %vm4387_vm8, %v4526_v15, %v4528_v29  ;;  %v4659_v36 = vsel %vm4646_vm9, %v4656_v18, %v4658_v30  ;;  %v4272_v11 = vsel %vm4257_vm7, %v4269_v16, %v4271_v31  ;;  %v9221_v39 = vsel %vm725_vm0, %v4785_v19, %v4787_v32 }
 0x4a3   : > { %4465 = vst.msk [vmem:[#allocation12] sm:$0xff] %vm4158_vm6, %v4452_v61  ;;  %v9224_v40 = vsel %vm5036_vm10, %v5044_v10, %v5046_v33 }
 0x4a4   : > { %4680 = vrot.lane.b32.xlu0 %v4657_v28, %s10490_s20  ;;  %4423 = vrot.lane.b32.xlu1 %v4527_v25, %s10492_s3 }
 0x4a8   : > { %4809 = vrot.lane.b32.xlu0 %v9207_v17, %s10448_s21  ;;  %4552 = vrot.lane.b32.xlu1 %v4529_v35, %s10488_s0 }
 0x4ac   : > { %4682 = vrot.lane.b32.xlu1 %v4659_v36, %s10490_s20  ;;  %4295 = vrot.lane.b32.xlu0 %v4272_v11, %s10483_s25  ;;  %v4866_v36 = vld [vmem:[#allocation7 + $0x20] sm:$0xf0] }
 0x4b0   : > { %v4118_v41 = vpop.f32.mrb[16].mxu1  ;;  %4811 = vrot.lane.b32.xlu1 %v9221_v39, %s10448_s21  ;;  %4425 = vrot.lane.b32.xlu0 %v4529_v35, %s10492_s3 }
 0x4b1   : > { %v4120_v43 = vpop.f32.mrb[17].mxu1  ;;  %v4530_v44 = vrot.slane %v4118_v41, 2  ;;  %v4273_v51 = vrot.slane %v4118_v41, 1  ;;  %v4660_v47 = vrot.slane %v4118_v41, 3  ;;  %v4789_v45 = vrot.slane %v4118_v41, 4  ;;  %4212 = vst.msk [vmem:[#allocation12 + $0x40] sm:$0xff] %vm4158_vm6, %v4118_v41 }
 0x4b2   : > { %4175 = vst.msk [vmem:[#allocation7 + $0x88] sm:$0xff] %vm4158_vm6, %v4120_v43  ;;  %v4122_v42 = vpop.f32.mrb[18].mxu1  ;;  %v5048_v26 = vrot.slane %v4118_v41, 5  ;;  %v4232_v43 = vld [vmem:[#allocation12 + $0x8] sm:$0xff] }
 0x4b3   : > { %v4124_v46 = vpop.f32.mrb[19].mxu1  ;;  %v4531_v38 = vsel %vm4387_vm8, %v4528_v29, %v4530_v44  ;;  %v4274_v48 = vsel %vm4257_vm7, %v4271_v31, %v4273_v51  ;;  %v4661_v49 = vsel %vm4646_vm9, %v4658_v30, %v4660_v47  ;;  %v4532_v50 = vrot.slane %v4122_v42, 2  ;;  %4213 = vst.msk [vmem:[#allocation12 + $0x48] sm:$0xff] %vm4158_vm6, %v4122_v42 }
 0x4b4   : > { %4177 = vst.msk [vmem:[#allocation7 + $0x98] sm:$0xff] %vm4158_vm6, %v4124_v46  ;;  %v4275_v52 = vrot.slane %v4122_v42, 1  ;;  %v4662_v53 = vrot.slane %v4122_v42, 3  ;;  %v9244_v54 = vsel %vm725_vm0, %v4787_v32, %v4789_v45  ;;  %v4791_v56 = vrot.slane %v4122_v42, 4  ;;  %4554 = vrot.lane.b32.xlu0 %v4531_v38, %s10488_s0  ;;  %4297 = vrot.lane.b32.xlu1 %v4274_v48, %s10483_s25 }
 0x4b5   : > { %v9249_v57 = vsel %vm4387_vm8, %v4530_v44, %v4532_v50  ;;  %v5050_v59 = vrot.slane %v4122_v42, 5  ;;  %v9252_v60 = vsel %vm5036_vm10, %v5046_v33, %v5048_v26 }
 0x4b6   : > { %v4276_v62 = vsel %vm4257_vm7, %v4273_v51, %v4275_v52  ;;  %v4663_v0 = vsel %vm4646_vm9, %v4660_v47, %v4662_v53  ;;  %v9257_v1 = vsel %vm725_vm0, %v4789_v45, %v4791_v56  ;;  %v4491_v51 = vld [vmem:[#allocation12] sm:$0xff] }
 0x4b7   : > { %v9260_v4 = vsel %vm5036_vm10, %v5048_v26, %v5050_v59 }
 0x4b8   : > { %v9262_v5 = vpop.f32.mrb[20].mxu1  ;;  %4684 = vrot.lane.b32.xlu0 %v4661_v49, %s10490_s20  ;;  %4427 = vrot.lane.b32.xlu1 %v4531_v38, %s10492_s3  ;;  %v4905_v49 = vrot.slane %v4866_v36, 4 }
 0x4b9   : > { %4178 = vst [vmem:[#allocation7 + $0xa0] sm:$0xff] %v9262_v5  ;;  %v4130_v9 = vpop.f32.mrb[21].mxu1  ;;  %v4277_v12 = vrot.slane %v9262_v5, 1  ;;  %v4407_v13 = vrot.slane %v9262_v5, 2  ;;  %v4664_v14 = vrot.slane %v9262_v5, 3  ;;  %v4793_v7 = vrot.slane %v9262_v5, 4 }
 0x4ba   : > { %4179 = vst.msk [vmem:[#allocation7 + $0xa8] sm:$0xff] %vm4158_vm6, %v4130_v9  ;;  %v9272_v15 = vpop.f32.mrb[22].mxu1  ;;  %v5052_v16 = vrot.slane %v9262_v5, 5 }
 0x4bb   : > { %4180 = vst [vmem:[#allocation7 + $0xb0] sm:$0xff] %v9272_v15  ;;  %v4134_v18 = vpop.f32.mrb[23].mxu1  ;;  %v4278_v19 = vsel %vm4257_vm7, %v4275_v52, %v4277_v12  ;;  %v9278_v20 = vsel %vm4387_vm8, %v4532_v50, %v4407_v13  ;;  %v9281_v10 = vsel %vm4646_vm9, %v4662_v53, %v4664_v14  ;;  %v4536_v22 = vrot.slane %v9272_v15, 2 }
 0x4bc   : > { %4181 = vst.msk [vmem:[#allocation7 + $0xb8] sm:$0xff] %vm4158_vm6, %v4134_v18  ;;  %v9286_v23 = vsel %vm725_vm0, %v4791_v56, %v4793_v7  ;;  %v4666_v24 = vrot.slane %v9272_v15, 3  ;;  %v9290_v25 = vrot.slane %v9272_v15, 4  ;;  %v5054_v27 = vrot.slane %v9272_v15, 5  ;;  %4556 = vrot.lane.b32.xlu1 %v9249_v57, %s10488_s0  ;;  %4299 = vrot.lane.b32.xlu0 %v4276_v62, %s10483_s25  ;;  %v4233_v18 = vld [vmem:[#allocation12 + $0x10] sm:$0xff] }
 0x4bd   : > { %v9299_v28 = vsel %vm4387_vm8, %v4407_v13, %v4536_v22  ;;  %v9302_v61 = vsel %vm5036_vm10, %v5050_v59, %v5052_v16  ;;  %v2429_v15 = vld [vmem:[#allocation6 + $0x154] sm:$0xf] }
 0x4be   : > { %v9307_v29 = vsel %vm4646_vm9, %v4664_v14, %v4666_v24  ;;  %v9311_v30 = vsel %vm725_vm0, %v4793_v7, %v9290_v25  ;;  %v9314_v31 = vsel %vm5036_vm10, %v5052_v16, %v5054_v27 }
 0x4c0   : > { %v9316_v32 = vpop.f32.mrb[24].mxu1  ;;  %v4201_v33 = vld [vmem:[#allocation7 + $0xa0] sm:$0xff]  ;;  %4686 = vrot.lane.b32.xlu1 %v4663_v0, %s10490_s20  ;;  %4813 = vrot.lane.b32.xlu0 %v9244_v54, %s10448_s21  ;;  %v4907_v0 = vsel %vm725_vm0, %v4905_v49, %v9137_v37  ;;  %s10459_s21 = smov 32  }
 0x4c1   : > { %4182 = vst [vmem:[#allocation7 + $0xc0] sm:$0xff] %v9316_v32  ;;  %v4140_v35 = vpop.f32.mrb[25].mxu1  ;;  %v4924_v11 = vrot.slane %v9316_v32, 4  ;;  %v5056_v41 = vrot.slane %v9316_v32, 5  ;;  %4214 = vst.msk [vmem:[#allocation12 + $0x50] sm:$0xff] %vm4158_vm6, %v4201_v33 }
 0x4c2   : > { %4183 = vst.msk [vmem:[#allocation7 + $0xc8] sm:$0xff] %vm4158_vm6, %v4140_v35  ;;  %v4286_v44 = vpop.permute.xlu1 %4285  ;;  %v4543_v47 = vpop.permute.xlu0 %4542  ;;  %v9326_v45 = vld [vmem:[#allocation7 + $0xb0] sm:$0xff] }
 0x4c3   : > { %v4323_v42 = vadd.f32 %v4286_v44, %v4232_v43  ;;  %v4581_v26 = vadd.f32 %v4543_v47, %v4491_v51  ;;  %v4142_v46 = vpop.f32.mrb[26].mxu1  ;;  %v9332_v38 = vsel %vm725_vm0, %v9290_v25, %v4924_v11  ;;  %v9337_v48 = vsel %vm5036_vm10, %v5054_v27, %v5056_v41  ;;  %4215 = vst.msk [vmem:[#allocation12 + $0x58] sm:$0xff] %vm4158_vm6, %v9326_v45 }
 0x4c4   : > { %4184 = vst [vmem:[#allocation7 + $0xd0] sm:$0xff] %v4142_v46  ;;  %v4144_v50 = vpop.f32.mrb[27].mxu1  ;;  %v4279_v52 = vrot.slane %v9326_v45, 1  ;;  %v4409_v53 = vrot.slane %v9326_v45, 2  ;;  %4429 = vrot.lane.b32.xlu0 %v9249_v57, %s10492_s3  ;;  %4301 = vrot.lane.b32.xlu1 %v4278_v19, %s10483_s25 }
 0x4c5   : > { %4336 = vst.msk [vmem:[#allocation12 + $0x8] sm:$0xff] %vm4158_vm6, %v4323_v42  ;;  %4594 = vst.msk [vmem:[#allocation12] sm:$0xff] %vm4158_vm6, %v4581_v26 }
 0x4c6   : > { %4185 = vst.msk [vmem:[#allocation7 + $0xd8] sm:$0xff] %vm4158_vm6, %v4144_v50  ;;  %v4673_v56 = vpop.permute.xlu0 %4672  ;;  %v9352_v59 = vsel %vm4257_vm7, %v4277_v12, %v4279_v52  ;;  %v9357_v62 = vsel %vm4387_vm8, %v4407_v13, %v4409_v53  ;;  %v4416_v14 = vpop.permute.xlu1 %4415 }
 0x4c8   : > { %v4148_v5 = vpop.f32.mrb[28].mxu1  ;;  %4930 = vrot.lane.b32.xlu0 %v4907_v0, %s10459_s21  ;;  %4815 = vrot.lane.b32.xlu1 %v9257_v1, %s10493_s29  ;;  %v4203_v12 = vld [vmem:[#allocation7 + $0xc0] sm:$0xf] }
 0x4c9   : > { %4186 = vst [vmem:[#allocation7 + $0xe0] sm:$0xff] %v4148_v5  ;;  %v4150_v57 = vpop.f32.mrb[29].mxu1  ;;  %4217 = vst.msk [vmem:[#allocation12 + $0x60] sm:$0xf] %vm4216_vm11, %v4203_v12  ;;  %v9877_v45 = vld [vmem:[#allocation7 + $0xc0] sm:$0xff] }
 0x4ca   : > { %v4802_v9 = vpop.permute.xlu0 %4801  ;;  %4187 = vst.msk [vmem:[#allocation7 + $0xe8] sm:$0xff] %vm4158_vm6, %v4150_v57  ;;  %v4545_v33 = vpop.permute.xlu1 %4544 }
 0x4cc   : > { %v4362_v13 = vld [vmem:[#allocation12 + $0x8] sm:$0xff]  ;;  %v4620_v7 = vld [vmem:[#allocation12] sm:$0xff]  ;;  %4934 = vrot.lane.b32.xlu0 %v9185_v6, %s10459_s21  ;;  %4431 = vrot.lane.b32.xlu1 %v9278_v20, %s10492_s3 }
 0x4cd   : > { %v4453_v37 = vadd.f32 %v4416_v14, %v4362_v13  ;;  %v4711_v16 = vadd.f32 %v4673_v56, %v4620_v7  ;;  %v7798_v56 = vld [vmem:[%s10494_s5] ss:$12 sps:$4 sm:$0xff]  }
 0x4ce   : > { %v4288_v19 = vpop.permute.xlu0 %4287 }
 0x4cf   : > { %4466 = vst.msk [vmem:[#allocation12 + $0x8] sm:$0xff] %vm4158_vm6, %v4453_v37  ;;  %4724 = vst.msk [vmem:[#allocation12] sm:$0xff] %vm4158_vm6, %v4711_v16  ;;  %v4324_v27 = vadd.f32 %v4288_v19, %v4233_v18  ;;  %v4236_v18 = vld [vmem:[#allocation12 + $0x28] sm:$0xff] }
 0x4d0   : > { %4558 = vrot.lane.b32.xlu0 %v9278_v20, %s10488_s0  ;;  %4932 = vrot.lane.b32.xlu1 %v9170_v58, %s10459_s21  ;;  %v4995_v58 = vld [vmem:[#allocation7 + $0x20] sm:$0xe0] }
 0x4d1   : > { %4337 = vst.msk [vmem:[#allocation12 + $0x10] sm:$0xff] %vm4158_vm6, %v4324_v27  ;;  %v5037_v47 = vrot.slane %v4995_v58, 5 }
 0x4d2   : > { %v4418_v51 = vpop.permute.xlu0 %4417 }
 0x4d4   : > { %4938 = vrot.lane.b32.xlu0 %v9221_v39, %s10459_s21  ;;  %4936 = vrot.lane.b32.xlu1 %v9207_v17, %s10459_s21  ;;  %v4675_v39 = vpop.permute.xlu1 %4674 }
 0x4d6   : > { %v4492_v6 = vld [vmem:[#allocation12 + $0x8] sm:$0xff]  ;;  %v4750_v35 = vld [vmem:[#allocation12] sm:$0xff] }
 0x4d7   : > { %v4582_v36 = vadd.f32 %v4545_v33, %v4492_v6  ;;  %v4840_v43 = vadd.f32 %v4802_v9, %v4750_v35 }
 0x4d8   : > { %v4363_v44 = vld [vmem:[#allocation12 + $0x10] sm:$0xff]  ;;  %4688 = vrot.lane.b32.xlu0 %v9281_v10, %s10490_s20  ;;  %4560 = vrot.lane.b32.xlu1 %v9299_v28, %s10488_s0  ;;  %v5039_v10 = vsel %vm5036_vm10, %v5037_v47, %v5038_v21 }
 0x4d9   : > { %4595 = vst.msk [vmem:[#allocation12 + $0x8] sm:$0xff] %vm4158_vm6, %v4582_v36  ;;  %4853 = vst.msk [vmem:[#allocation12] sm:$0xff] %vm4158_vm6, %v4840_v43  ;;  %v4454_v20 = vadd.f32 %v4418_v51, %v4363_v44 }
 0x4db   : > { %4467 = vst.msk [vmem:[#allocation12 + $0x10] sm:$0xff] %vm4158_vm6, %v4454_v20 }
 0x4dc   : > { %4817 = vrot.lane.b32.xlu0 %v9286_v23, %s10493_s29  ;;  %4940 = vrot.lane.b32.xlu1 %v9244_v54, %s10459_s21 }
 0x4e0   : > { %v4621_v17 = vld [vmem:[#allocation12 + $0x8] sm:$0xff]  ;;  %4942 = vrot.lane.b32.xlu0 %v9257_v1, %s10459_s21  ;;  %4690 = vrot.lane.b32.xlu1 %v9307_v29, %s10490_s20  ;;  %v4804_v1 = vpop.permute.xlu1 %4803 }
 0x4e1   : > { %v4712_v42 = vadd.f32 %v4675_v39, %v4621_v17 }
 0x4e3   : > { %4725 = vst.msk [vmem:[#allocation12 + $0x8] sm:$0xff] %vm4158_vm6, %v4712_v42 }
 0x4e4   : > { %5064 = vrot.lane.b32.xlu0 %v5039_v10, %s10456_s19  ;;  %4944 = vrot.lane.b32.xlu1 %v9286_v23, %s10459_s21  ;;  %v4493_v23 = vld [vmem:[#allocation12 + $0x10] sm:$0xff] }
 0x4e8   : > { %5068 = vrot.lane.b32.xlu0 %v9188_v8, %s10456_s19  ;;  %5066 = vrot.lane.b32.xlu1 %v9180_v3, %s10456_s19 }
 0x4ea   : > { %v4751_v54 = vld [vmem:[#allocation12 + $0x8] sm:$0xff] }
 0x4eb   : > { %v4841_v28 = vadd.f32 %v4804_v1, %v4751_v54  ;;  %v4237_v54 = vld [vmem:[#allocation12 + $0x30] sm:$0xff] }
 0x4ec   : > { %4946 = vrot.lane.b32.xlu0 %v9311_v30, %s10459_s21  ;;  %4819 = vrot.lane.b32.xlu1 %v9311_v30, %s10493_s29 }
 0x4ed   : > { %4854 = vst.msk [vmem:[#allocation12 + $0x8] sm:$0xff] %vm4158_vm6, %v4841_v28 }
 0x4ee   : > { %v4290_v21 = vpop.permute.xlu1 %4289  ;;  %v4547_v29 = vpop.permute.xlu0 %4546 }
 0x4ef   : > { %v4325_v26 = vadd.f32 %v4290_v21, %v4234_v63  ;;  %v4583_v8 = vadd.f32 %v4547_v29, %v4493_v23 }
 0x4f0   : > { %5072 = vrot.lane.b32.xlu0 %v9224_v40, %s10456_s19  ;;  %5070 = vrot.lane.b32.xlu1 %v9214_v34, %s10456_s19  ;;  %v7800_v34 = vld [vmem:[%s10494_s5 + $0x4] ss:$12 sps:$4 sm:$0xff]  }
 0x4f1   : > { %4338 = vst.msk [vmem:[#allocation12 + $0x18] sm:$0xff] %vm4158_vm6, %v4325_v26  ;;  %4596 = vst.msk [vmem:[#allocation12 + $0x10] sm:$0xff] %vm4158_vm6, %v4583_v8  ;;  %5393 = vmatprep.subr.bf16.mxu1 %v7800_v34  ;;  %v4238_v26 = vld [vmem:[#allocation12 + $0x38] sm:$0xff] }
 0x4f2   : > { %v4677_v3 = vpop.permute.xlu0 %4676  ;;  %v4420_v49 = vpop.permute.xlu1 %4419  ;;  %5394 = vmatpush1.bf16.msra.mxu1 %v7798_v56 }
 0x4f4   : > { %5076 = vrot.lane.b32.xlu0 %v9260_v4, %s10456_s19  ;;  %4948 = vrot.lane.b32.xlu1 %v9332_v38, %s10459_s21  ;;  %v4235_v4 = vld [vmem:[#allocation12 + $0x20] sm:$0xff] }
 0x4f6   : > { %v4806_v30 = vpop.permute.xlu0 %4805 }
 0x4f8   : > { %v4364_v46 = vld [vmem:[#allocation12 + $0x18] sm:$0xff]  ;;  %v4622_v50 = vld [vmem:[#allocation12 + $0x10] sm:$0xff]  ;;  %5080 = vrot.lane.b32.xlu0 %v9314_v31, %s10456_s19  ;;  %5074 = vrot.lane.b32.xlu1 %v9252_v60, %s10456_s19  ;;  %v4549_v31 = vpop.permute.xlu1 %4548 }
 0x4f9   : > { %v4455_v0 = vadd.f32 %v4420_v49, %v4364_v46  ;;  %v4713_v40 = vadd.f32 %v4677_v3, %v4622_v50 }
 0x4fa   : > { %v4292_v38 = vpop.permute.xlu0 %4291 }
 0x4fb   : > { %4468 = vst.msk [vmem:[#allocation12 + $0x18] sm:$0xff] %vm4158_vm6, %v4455_v0  ;;  %4726 = vst.msk [vmem:[#allocation12 + $0x10] sm:$0xff] %vm4158_vm6, %v4713_v40  ;;  %v4326_v5 = vadd.f32 %v4292_v38, %v4235_v4  ;;  %v4239_v4 = vld [vmem:[#allocation12 + $0x40] sm:$0xff] }
 0x4fc   : > { %5078 = vrot.lane.b32.xlu1 %v9302_v61, %s10456_s19  ;;  %v4679_v37 = vpop.permute.xlu1 %4678 }
 0x4fd   : > { %4339 = vst.msk [vmem:[#allocation12 + $0x20] sm:$0xff] %vm4158_vm6, %v4326_v5 }
 0x4fe   : > { %v4422_v14 = vpop.permute.xlu0 %4421 }
 0x500   : > { %5082 = vrot.lane.b32.xlu1 %v9337_v48, %s10456_s19  ;;  %v4808_v48 = vpop.permute.xlu1 %4807 }
 0x502   : > { %v4494_v60 = vld [vmem:[#allocation12 + $0x18] sm:$0xff]  ;;  %v4752_v57 = vld [vmem:[#allocation12 + $0x10] sm:$0xff] }
 0x503   : > { %v4584_v9 = vadd.f32 %v4549_v31, %v4494_v60  ;;  %v4842_v12 = vadd.f32 %v4806_v30, %v4752_v57 }
 0x504   : > { %v4365_v13 = vld [vmem:[#allocation12 + $0x20] sm:$0xff] }
 0x505   : > { %4597 = vst.msk [vmem:[#allocation12 + $0x18] sm:$0xff] %vm4158_vm6, %v4584_v9  ;;  %4855 = vst.msk [vmem:[#allocation12 + $0x10] sm:$0xff] %vm4158_vm6, %v4842_v12  ;;  %v4456_v7 = vadd.f32 %v4422_v14, %v4365_v13 }
 0x507   : > { %4469 = vst.msk [vmem:[#allocation12 + $0x20] sm:$0xff] %vm4158_vm6, %v4456_v7  ;;  %v9459_v7 = vld [vmem:[%s10494_s5 + $0x8] ss:$12 sps:$4 sm:$0xff]  }
 0x508   : > { %7678 = vmatprep.subr.bf16.mxu1 %v9459_v7 }
 0x50c   : > { %v4623_v16 = vld [vmem:[#allocation12 + $0x18] sm:$0xff] }
 0x50d   : > { %v4714_v61 = vadd.f32 %v4679_v37, %v4623_v16  ;;  %v4240_v16 = vld [vmem:[#allocation12 + $0x48] sm:$0xff] }
 0x50e   : > { %v4495_v27 = vld [vmem:[#allocation12 + $0x20] sm:$0xff] }
 0x50f   : > { %4727 = vst.msk [vmem:[#allocation12 + $0x18] sm:$0xff] %vm4158_vm6, %v4714_v61 }
 0x512   : > { %v4294_v19 = vpop.permute.xlu1 %4293  ;;  %v4551_v6 = vpop.permute.xlu0 %4550 }
 0x513   : > { %v4327_v33 = vadd.f32 %v4294_v19, %v4236_v18  ;;  %v4585_v35 = vadd.f32 %v4551_v6, %v4495_v27 }
 0x515   : > { %4340 = vst.msk [vmem:[#allocation12 + $0x28] sm:$0xff] %vm4158_vm6, %v4327_v33  ;;  %4598 = vst.msk [vmem:[#allocation12 + $0x20] sm:$0xff] %vm4158_vm6, %v4585_v35 }
 0x516   : > { %v4753_v36 = vld [vmem:[#allocation12 + $0x18] sm:$0xff]  ;;  %v4424_v44 = vpop.permute.xlu1 %4423  ;;  %v4681_v51 = vpop.permute.xlu0 %4680 }
 0x517   : > { %v4843_v43 = vadd.f32 %v4808_v48, %v4753_v36  ;;  %v4879_v36 = vld [vmem:[#allocation12] sm:$0xff] }
 0x519   : > { %4856 = vst.msk [vmem:[#allocation12 + $0x18] sm:$0xff] %vm4158_vm6, %v4843_v43 }
 0x51a   : > { %v4553_v20 = vpop.permute.xlu1 %4552  ;;  %v4810_v58 = vpop.permute.xlu0 %4809 }
 0x51c   : > { %v4366_v17 = vld [vmem:[#allocation12 + $0x28] sm:$0xff]  ;;  %v4624_v39 = vld [vmem:[#allocation12 + $0x20] sm:$0xff] }
 0x51d   : > { %v4457_v47 = vadd.f32 %v4424_v44, %v4366_v17  ;;  %v4715_v42 = vadd.f32 %v4681_v51, %v4624_v39 }
 0x51e   : > { %v4683_v10 = vpop.permute.xlu1 %4682  ;;  %v4296_v1 = vpop.permute.xlu0 %4295 }
 0x51f   : > { %4470 = vst.msk [vmem:[#allocation12 + $0x28] sm:$0xff] %vm4158_vm6, %v4457_v47  ;;  %4728 = vst.msk [vmem:[#allocation12 + $0x20] sm:$0xff] %vm4158_vm6, %v4715_v42  ;;  %v4328_v28 = vadd.f32 %v4296_v1, %v4237_v54  ;;  %v4881_v47 = vld [vmem:[#allocation12 + $0x10] sm:$0xff] }
 0x521   : > { %4341 = vst.msk [vmem:[#allocation12 + $0x30] sm:$0xff] %vm4158_vm6, %v4328_v28  ;;  %v4152_v28 = vpop.f32.mrb[30].mxu1 }
 0x522   : > { %v4812_v63 = vpop.permute.xlu1 %4811  ;;  %v4426_v21 = vpop.permute.xlu0 %4425  ;;  %4188 = vst [vmem:[#allocation7 + $0xf0] sm:$0x3] %v4152_v28  ;;  %v5129_v28 = vld [vmem:[#allocation7 + $0x28] sm:$0xc0] }
 0x526   : > { %v4496_v23 = vld [vmem:[#allocation12 + $0x28] sm:$0xff]  ;;  %v4754_v29 = vld [vmem:[#allocation12 + $0x20] sm:$0xff]  ;;  %v4298_v8 = vpop.permute.xlu1 %4297  ;;  %v4555_v3 = vpop.permute.xlu0 %4554 }
 0x527   : > { %v4586_v30 = vadd.f32 %v4553_v20, %v4496_v23  ;;  %v4844_v46 = vadd.f32 %v4810_v58, %v4754_v29  ;;  %v4329_v49 = vadd.f32 %v4298_v8, %v4238_v26 }
 0x528   : > { %v4367_v50 = vld [vmem:[#allocation12 + $0x30] sm:$0xff] }
 0x529   : > { %4599 = vst.msk [vmem:[#allocation12 + $0x28] sm:$0xff] %vm4158_vm6, %v4586_v30  ;;  %4857 = vst.msk [vmem:[#allocation12 + $0x20] sm:$0xff] %vm4158_vm6, %v4844_v46  ;;  %v4458_v56 = vadd.f32 %v4426_v21, %v4367_v50  ;;  %v4882_v50 = vld [vmem:[#allocation12 + $0x18] sm:$0xff] }
 0x52a   : > { %4342 = vst.msk [vmem:[#allocation12 + $0x38] sm:$0xff] %vm4158_vm6, %v4329_v49  ;;  %v4428_v0 = vpop.permute.xlu1 %4427  ;;  %v4685_v40 = vpop.permute.xlu0 %4684 }
 0x52b   : > { %4471 = vst.msk [vmem:[#allocation12 + $0x30] sm:$0xff] %vm4158_vm6, %v4458_v56 }
 0x52e   : > { %v4557_v34 = vpop.permute.xlu1 %4556  ;;  %v4300_v38 = vpop.permute.xlu0 %4299 }
 0x52f   : > { %v4330_v5 = vadd.f32 %v4300_v38, %v4239_v4 }
 0x530   : > { %v4625_v60 = vld [vmem:[#allocation12 + $0x28] sm:$0xff] }
 0x531   : > { %v4368_v31 = vld [vmem:[#allocation12 + $0x38] sm:$0xff]  ;;  %v4716_v57 = vadd.f32 %v4683_v10, %v4625_v60  ;;  %4343 = vst.msk [vmem:[#allocation12 + $0x40] sm:$0xff] %vm4158_vm6, %v4330_v5 }
 0x532   : > { %v4459_v9 = vadd.f32 %v4428_v0, %v4368_v31  ;;  %v4497_v12 = vld [vmem:[#allocation12 + $0x30] sm:$0xff]  ;;  %v4687_v13 = vpop.permute.xlu1 %4686  ;;  %v4814_v14 = vpop.permute.xlu0 %4813  ;;  %v4883_v0 = vld [vmem:[#allocation12 + $0x20] sm:$0xff] }
 0x533   : > { %4729 = vst.msk [vmem:[#allocation12 + $0x28] sm:$0xff] %vm4158_vm6, %v4716_v57  ;;  %v4587_v37 = vadd.f32 %v4555_v3, %v4497_v12  ;;  %v4154_v3 = vpop.f32.mrb[31].mxu1 }
 0x534   : > { %4472 = vst.msk [vmem:[#allocation12 + $0x38] sm:$0xff] %vm4158_vm6, %v4459_v9 }
 0x535   : > { %4600 = vst.msk [vmem:[#allocation12 + $0x30] sm:$0xff] %vm4158_vm6, %v4587_v37 }
 0x536   : > { %v4302_v61 = vpop.permute.xlu1 %4301  ;;  %v4430_v48 = vpop.permute.xlu0 %4429  ;;  %4190 = vst.msk [vmem:[#allocation7 + $0xf8] sm:$0x3] %vm4189_vm12, %v4154_v3  ;;  %vm5560_vm12 = vcmask 257024  }
 0x537   : > { %v4331_v18 = vadd.f32 %v4302_v61, %v4240_v16 }
 0x538   : > { %v4369_v19 = vld [vmem:[#allocation12 + $0x40] sm:$0xff] }
 0x539   : > { %4344 = vst.msk [vmem:[#allocation12 + $0x48] sm:$0xff] %vm4158_vm6, %v4331_v18  ;;  %v4460_v27 = vadd.f32 %v4430_v48, %v4369_v19 }
 0x53a   : > { %v4755_v6 = vld [vmem:[#allocation12 + $0x28] sm:$0xff]  ;;  %v4816_v35 = vpop.permute.xlu1 %4815  ;;  %v4931_v43 = vpop.permute.xlu0 %4930 }
 0x53b   : > { %v4498_v33 = vld [vmem:[#allocation12 + $0x38] sm:$0xff]  ;;  %v4845_v44 = vadd.f32 %v4812_v63, %v4755_v6  ;;  %4473 = vst.msk [vmem:[#allocation12 + $0x40] sm:$0xff] %vm4158_vm6, %v4460_v27  ;;  %v4969_v20 = vadd.f32 %v4931_v43, %v4879_v36  ;;  %v4880_v63 = vld [vmem:[#allocation12 + $0x8] sm:$0xff] }
 0x53c   : > { %v4588_v51 = vadd.f32 %v4557_v34, %v4498_v33  ;;  %v4626_v58 = vld [vmem:[#allocation12 + $0x30] sm:$0xff] }
 0x53d   : > { %4858 = vst.msk [vmem:[#allocation12 + $0x28] sm:$0xff] %vm4158_vm6, %v4845_v44  ;;  %v4717_v17 = vadd.f32 %v4685_v40, %v4626_v58  ;;  %4982 = vst.msk [vmem:[#allocation12] sm:$0xff] %vm4158_vm6, %v4969_v20 }
 0x53e   : > { %4601 = vst.msk [vmem:[#allocation12 + $0x38] sm:$0xff] %vm4158_vm6, %v4588_v51  ;;  %v4432_v39 = vpop.permute.xlu1 %4431  ;;  %v4935_v42 = vpop.permute.xlu0 %4934 }
 0x53f   : > { %4730 = vst.msk [vmem:[#allocation12 + $0x30] sm:$0xff] %vm4158_vm6, %v4717_v17  ;;  %v4971_v10 = vadd.f32 %v4935_v42, %v4881_v47  ;;  %v5130_v47 = vld [vmem:[#allocation7 + $0x38] sm:$0xff] }
 0x540   : > { %v4370_v54 = vld [vmem:[#allocation12 + $0x48] sm:$0xff] }
 0x541   : > { %v4461_v1 = vadd.f32 %v4432_v39, %v4370_v54  ;;  %4984 = vst.msk [vmem:[#allocation12 + $0x10] sm:$0xff] %vm4158_vm6, %v4971_v10 }
 0x542   : > { %v4933_v21 = vpop.permute.xlu1 %4932  ;;  %v4499_v23 = vld [vmem:[#allocation12 + $0x40] sm:$0xff]  ;;  %v4559_v29 = vpop.permute.xlu0 %4558 }
 0x543   : > { %4474 = vst.msk [vmem:[#allocation12 + $0x48] sm:$0xff] %vm4158_vm6, %v4461_v1  ;;  %v4970_v26 = vadd.f32 %v4933_v21, %v4880_v63  ;;  %v4589_v8 = vadd.f32 %v4559_v29, %v4499_v23  ;;  %v5172_v23 = vrot.slane %v5130_v47, 6  ;;  %v5131_v29 = vld [vmem:[#allocation7 + $0x48] sm:$0xff] }
 0x544   : > { %v4884_v37 = vld [vmem:[#allocation12 + $0x28] sm:$0xff]  ;;  %v5009_v51 = vld [vmem:[#allocation12] sm:$0xff] }
 0x545   : > { %v4627_v30 = vld [vmem:[#allocation12 + $0x38] sm:$0xff]  ;;  %4983 = vst.msk [vmem:[#allocation12 + $0x8] sm:$0xff] %vm4158_vm6, %v4970_v26  ;;  %4602 = vst.msk [vmem:[#allocation12 + $0x40] sm:$0xff] %vm4158_vm6, %v4589_v8  ;;  %v5132_v26 = vld [vmem:[#allocation7 + $0x58] sm:$0xff]  ;;  %v5171_v8 = vrot.slane %v5129_v28, 6 }
 0x546   : > { %v4718_v46 = vadd.f32 %v4687_v13, %v4627_v30  ;;  %v4756_v49 = vld [vmem:[#allocation12 + $0x30] sm:$0xff]  ;;  %v4937_v56 = vpop.permute.xlu1 %4936  ;;  %v4939_v40 = vpop.permute.xlu0 %4938 }
 0x547   : > { %v4846_v34 = vadd.f32 %v4814_v14, %v4756_v49  ;;  %v4972_v4 = vadd.f32 %v4937_v56, %v4882_v50  ;;  %v4973_v38 = vadd.f32 %v4939_v40, %v4883_v0  ;;  %v5173_v50 = vsel %vm5170_vm13, %v5171_v8, %v5172_v23 }
 0x548   : > { %4731 = vst.msk [vmem:[#allocation12 + $0x38] sm:$0xff] %vm4158_vm6, %v4718_v46  ;;  %v5011_v54 = vld [vmem:[#allocation12 + $0x10] sm:$0xff]  ;;  %v5174_v0 = vrot.slane %v5131_v29, 6  ;;  %v5176_v40 = vrot.slane %v5132_v26, 6 }
 0x549   : > { %4859 = vst.msk [vmem:[#allocation12 + $0x30] sm:$0xff] %vm4158_vm6, %v4846_v34  ;;  %4985 = vst.msk [vmem:[#allocation12 + $0x18] sm:$0xff] %vm4158_vm6, %v4972_v4 }
 0x54a   : > { %4986 = vst.msk [vmem:[#allocation12 + $0x20] sm:$0xff] %vm4158_vm6, %v4973_v38  ;;  %v4500_v5 = vld [vmem:[#allocation12 + $0x48] sm:$0xff]  ;;  %v4561_v60 = vpop.permute.xlu1 %4560  ;;  %v4689_v31 = vpop.permute.xlu0 %4688 }
 0x54b   : > { %v4590_v57 = vadd.f32 %v4561_v60, %v4500_v5 }
 0x54c   : > { %v4628_v9 = vld [vmem:[#allocation12 + $0x40] sm:$0xff]  ;;  %v5010_v42 = vld [vmem:[#allocation12 + $0x8] sm:$0xff] }
 0x54d   : > { %4603 = vst.msk [vmem:[#allocation12 + $0x48] sm:$0xff] %vm4158_vm6, %v4590_v57  ;;  %v4719_v12 = vadd.f32 %v4689_v31, %v4628_v9 }
 0x54e   : > { %v4941_v16 = vpop.permute.xlu1 %4940  ;;  %v4818_v14 = vpop.permute.xlu0 %4817 }
 0x54f   : > { %v4757_v13 = vld [vmem:[#allocation12 + $0x38] sm:$0xff]  ;;  %4732 = vst.msk [vmem:[#allocation12 + $0x40] sm:$0xff] %vm4158_vm6, %v4719_v12  ;;  %v4974_v48 = vadd.f32 %v4941_v16, %v4884_v37  ;;  %v5177_v16 = vsel %vm5170_vm13, %v5174_v0, %v5176_v40 }
 0x550   : > { %v4847_v61 = vadd.f32 %v4816_v35, %v4757_v13  ;;  %v4885_v19 = vld [vmem:[#allocation12 + $0x30] sm:$0xff]  ;;  %v5012_v5 = vld [vmem:[#allocation12 + $0x18] sm:$0xff]  ;;  %v5175_v13 = vsel %vm5170_vm13, %v5172_v23, %v5174_v0 }
 0x551   : > { %4987 = vst.msk [vmem:[#allocation12 + $0x28] sm:$0xff] %vm4158_vm6, %v4974_v48  ;;  %v5013_v31 = vld [vmem:[#allocation12 + $0x20] sm:$0xff] }
 0x552   : > { %4860 = vst.msk [vmem:[#allocation12 + $0x38] sm:$0xff] %vm4158_vm6, %v4847_v61  ;;  %v4691_v18 = vpop.permute.xlu1 %4690  ;;  %v4943_v27 = vpop.permute.xlu0 %4942 }
 0x553   : > { %v4975_v6 = vadd.f32 %v4943_v27, %v4885_v19  ;;  %v9498_v19 = vld [vmem:[#allocation7 + $0x78] sm:$0xff] }
 0x554   : > { %v4629_v33 = vld [vmem:[#allocation12 + $0x48] sm:$0xff] }
 0x555   : > { %v4720_v36 = vadd.f32 %v4691_v18, %v4629_v33  ;;  %4988 = vst.msk [vmem:[#allocation12 + $0x30] sm:$0xff] %vm4158_vm6, %v4975_v6  ;;  %v5133_v18 = vld [vmem:[#allocation7 + $0x68] sm:$0xff] }
 0x556   : > { %v4758_v43 = vld [vmem:[#allocation12 + $0x40] sm:$0xff]  ;;  %v4945_v44 = vpop.permute.xlu1 %4944  ;;  %v5065_v20 = vpop.permute.xlu0 %5064 }
 0x557   : > { %v4848_v35 = vadd.f32 %v4818_v14, %v4758_v43  ;;  %4733 = vst.msk [vmem:[#allocation12 + $0x48] sm:$0xff] %vm4158_vm6, %v4720_v36  ;;  %v5103_v58 = vadd.f32 %v5065_v20, %v5009_v51  ;;  %v9506_v43 = vld [vmem:[%s10412_s4] ss:$0 sm:$0xff]  ;;  %v5180_v51 = vrot.slane %v9498_v19, 6 }
 0x559   : > { %v4886_v17 = vld [vmem:[#allocation12 + $0x38] sm:$0xff]  ;;  %4861 = vst.msk [vmem:[#allocation12 + $0x40] sm:$0xff] %vm4158_vm6, %v4848_v35  ;;  %5116 = vst.msk [vmem:[#allocation12] sm:$0xff] %vm4158_vm6, %v5103_v58  ;;  %v9509_v58 = vld [vmem:[#allocation7 + $0x98] sm:$0xff] }
 0x55a   : > { %v4976_v39 = vadd.f32 %v4945_v44, %v4886_v17  ;;  %v5067_v10 = vpop.permute.xlu1 %5066  ;;  %v5069_v1 = vpop.permute.xlu0 %5068  ;;  %v5178_v44 = vrot.slane %v5133_v18, 6  ;;  %v5184_v8 = vrot.slane %v9509_v58, 6 }
 0x55b   : > { %v5104_v63 = vadd.f32 %v5067_v10, %v5010_v42  ;;  %v5105_v21 = vadd.f32 %v5069_v1, %v5011_v54  ;;  %v5135_v1 = vld [vmem:[#allocation7 + $0x88] sm:$0xff] }
 0x55c   : > { %4989 = vst.msk [vmem:[#allocation12 + $0x38] sm:$0xff] %vm4158_vm6, %v4976_v39  ;;  %v5015_v6 = vld [vmem:[#allocation12 + $0x30] sm:$0xff]  ;;  %v5014_v39 = vld [vmem:[#allocation12 + $0x28] sm:$0xff]  ;;  %v5181_v29 = vsel %vm5170_vm13, %v5178_v44, %v5180_v51  ;;  %v5182_v0 = vrot.slane %v5135_v1, 6 }
 0x55d   : > { %5117 = vst.msk [vmem:[#allocation12 + $0x8] sm:$0xff] %vm4158_vm6, %v5104_v63  ;;  %5118 = vst.msk [vmem:[#allocation12 + $0x10] sm:$0xff] %vm4158_vm6, %v5105_v21  ;;  %v5179_v21 = vsel %vm5170_vm13, %v5176_v40, %v5178_v44  ;;  %v9532_v44 = vld [vmem:[#allocation7 + $0xc8] sm:$0xff] }
 0x55e   : > { %v4759_v3 = vld [vmem:[#allocation12 + $0x48] sm:$0xff]  ;;  %v4820_v30 = vpop.permute.xlu1 %4819  ;;  %v4947_v46 = vpop.permute.xlu0 %4946  ;;  %v5183_v18 = vsel %vm5170_vm13, %v5180_v51, %v5182_v0 }
 0x55f   : > { %v4849_v49 = vadd.f32 %v4820_v30, %v4759_v3 }
 0x560   : > { %v5143_v56 = vld [vmem:[#allocation12] sm:$0xff] }
 0x561   : > { %v4887_v34 = vld [vmem:[#allocation12 + $0x40] sm:$0xff]  ;;  %v5211_v4 = vadd.f32 %v5173_v50, %v5143_v56  ;;  %4862 = vst.msk [vmem:[#allocation12 + $0x48] sm:$0xff] %vm4158_vm6, %v4849_v49  ;;  %v5138_v49 = vld [vmem:[#allocation7 + $0xb8] sm:$0xff] }
 0x562   : > { %v4977_v38 = vadd.f32 %v4947_v46, %v4887_v34  ;;  %v5071_v60 = vpop.permute.xlu1 %5070  ;;  %v5073_v57 = vpop.permute.xlu0 %5072 }
 0x563   : > { %5224 = vst.msk [vmem:[#allocation12] sm:$0xff] %vm4158_vm6, %v5211_v4  ;;  %v5106_v9 = vadd.f32 %v5071_v60, %v5012_v5  ;;  %v5107_v12 = vadd.f32 %v5073_v57, %v5013_v31  ;;  %v5016_v34 = vld [vmem:[#allocation12 + $0x38] sm:$0xff]  ;;  %v5137_v5 = vld [vmem:[#allocation7 + $0xa8] sm:$0xff]  ;;  %v5185_v31 = vsel %vm5170_vm13, %v5182_v0, %v5184_v8 }
 0x564   : > { %4990 = vst.msk [vmem:[#allocation12 + $0x40] sm:$0xff] %vm4158_vm6, %v4977_v38  ;;  %v5144_v37 = vld [vmem:[#allocation12 + $0x8] sm:$0xff]  ;;  %v5145_v14 = vld [vmem:[#allocation12 + $0x10] sm:$0xff] }
 0x565   : > { %v5212_v61 = vadd.f32 %v5175_v13, %v5144_v37  ;;  %v5213_v48 = vadd.f32 %v5177_v16, %v5145_v14  ;;  %5119 = vst.msk [vmem:[#allocation12 + $0x18] sm:$0xff] %vm4158_vm6, %v5106_v9  ;;  %5120 = vst.msk [vmem:[#allocation12 + $0x20] sm:$0xff] %vm4158_vm6, %v5107_v12  ;;  %v5188_v9 = vrot.slane %v5138_v49, 6  ;;  %v5186_v16 = vrot.slane %v5137_v5, 6 }
 0x566   : > { %v4949_v27 = vpop.permute.xlu1 %4948  ;;  %v5077_v33 = vpop.permute.xlu0 %5076 }
 0x567   : > { %5225 = vst.msk [vmem:[#allocation12 + $0x8] sm:$0xff] %vm4158_vm6, %v5212_v61  ;;  %5226 = vst.msk [vmem:[#allocation12 + $0x10] sm:$0xff] %vm4158_vm6, %v5213_v48  ;;  %v5109_v36 = vadd.f32 %v5077_v33, %v5015_v6 }
 0x568   : > { %v4888_v20 = vld [vmem:[#allocation12 + $0x48] sm:$0xff] }
 0x569   : > { %v4978_v35 = vadd.f32 %v4949_v27, %v4888_v20  ;;  %5122 = vst.msk [vmem:[#allocation12 + $0x30] sm:$0xff] %vm4158_vm6, %v5109_v36  ;;  %v5189_v27 = vsel %vm5170_vm13, %v5186_v16, %v5188_v9 }
 0x56a   : > { %v5237_v17 = vld [vmem:[#allocation12] sm:$0xff]  ;;  %v5075_v47 = vpop.permute.xlu1 %5074  ;;  %v5081_v10 = vpop.permute.xlu0 %5080 }
 0x56b   : > { %v5017_v42 = vld [vmem:[#allocation12 + $0x40] sm:$0xff]  ;;  %v5257_v54 = vadd.f32 %v9506_v43, %v5237_v17  ;;  %4991 = vst.msk [vmem:[#allocation12 + $0x48] sm:$0xff] %vm4158_vm6, %v4978_v35  ;;  %v5108_v28 = vadd.f32 %v5075_v47, %v5014_v39  ;;  %v5187_v47 = vsel %vm5170_vm13, %v5184_v8, %v5186_v16 }
 0x56c   : > { %v5111_v63 = vadd.f32 %v5081_v10, %v5017_v42  ;;  %v5146_v23 = vld [vmem:[#allocation12 + $0x18] sm:$0xff]  ;;  %v5147_v26 = vld [vmem:[#allocation12 + $0x20] sm:$0xff]  ;;  %v5190_v10 = vrot.slane %v9532_v44, 6 }
 0x56d   : > { %v5270_v3 = vmax.f32 %v5257_v54, 0.0  ;;  %v5214_v30 = vadd.f32 %v5179_v21, %v5146_v23  ;;  %v5215_v46 = vadd.f32 %v5181_v29, %v5147_v26  ;;  %5121 = vst.msk [vmem:[#allocation12 + $0x28] sm:$0xff] %vm4158_vm6, %v5108_v28 }
 0x56e   : > { %5124 = vst.msk [vmem:[#allocation12 + $0x40] sm:$0xff] %vm4158_vm6, %v5111_v63  ;;  %v5238_v50 = vld [vmem:[#allocation12 + $0x8] sm:$0xff]  ;;  %v5239_v56 = vld [vmem:[#allocation12 + $0x10] sm:$0xff]  ;;  %v5079_v4 = vpop.permute.xlu1 %5078  ;;  %v5191_v8 = vsel %vm5170_vm13, %v5188_v9, %v5190_v10 }
 0x56f   : > { %5283 = vst.msk [vmem:[#allocation12] sm:$0xff] %vm4158_vm6, %v5270_v3  ;;  %v5258_v40 = vadd.f32 %v9506_v43, %v5238_v50  ;;  %v5259_v38 = vadd.f32 %v9506_v43, %v5239_v56  ;;  %5227 = vst.msk [vmem:[#allocation12 + $0x18] sm:$0xff] %vm4158_vm6, %v5214_v30  ;;  %v5110_v60 = vadd.f32 %v5079_v4, %v5016_v34 }
 0x570   : > { %5228 = vst.msk [vmem:[#allocation12 + $0x20] sm:$0xff] %vm4158_vm6, %v5215_v46  ;;  %v5149_v57 = vld [vmem:[#allocation12 + $0x30] sm:$0xff] }
 0x571   : > { %v5271_v12 = vmax.f32 %v5258_v40, 0.0  ;;  %v5272_v13 = vmax.f32 %v5259_v38, 0.0  ;;  %v5217_v37 = vadd.f32 %v5185_v31, %v5149_v57  ;;  %5123 = vst.msk [vmem:[#allocation12 + $0x38] sm:$0xff] %vm4158_vm6, %v5110_v60 }
 0x572   : > { %v5018_v14 = vld [vmem:[#allocation12 + $0x48] sm:$0xff]  ;;  %v5083_v61 = vpop.permute.xlu1 %5082 }
 0x573   : > { %5284 = vst.msk [vmem:[#allocation12 + $0x8] sm:$0xff] %vm4158_vm6, %v5271_v12  ;;  %5285 = vst.msk [vmem:[#allocation12 + $0x10] sm:$0xff] %vm4158_vm6, %v5272_v13  ;;  %v5112_v48 = vadd.f32 %v5083_v61, %v5018_v14 }
 0x574   : > { %5230 = vst.msk [vmem:[#allocation12 + $0x30] sm:$0xff] %vm4158_vm6, %v5217_v37  ;;  %v5148_v19 = vld [vmem:[#allocation12 + $0x28] sm:$0xff] }
 0x575   : > { %v5151_v6 = vld [vmem:[#allocation12 + $0x40] sm:$0xff]  ;;  %v5216_v33 = vadd.f32 %v5183_v18, %v5148_v19  ;;  %5125 = vst.msk [vmem:[#allocation12 + $0x48] sm:$0xff] %vm4158_vm6, %v5112_v48 }
 0x576   : > { %v5219_v36 = vadd.f32 %v5189_v27, %v5151_v6  ;;  %v5303_v20 = vld [vmem:[#allocation12] ss:$2 sm:$0xf]  ;;  %v5240_v35 = vld [vmem:[#allocation12 + $0x18] sm:$0xff] }
 0x577   : > { %v5241_v58 = vld [vmem:[#allocation12 + $0x20] sm:$0xff]  ;;  %5229 = vst.msk [vmem:[#allocation12 + $0x28] sm:$0xff] %vm4158_vm6, %v5216_v33  ;;  %v5260_v51 = vadd.f32 %v9506_v43, %v5240_v35 }
 0x578   : > { %5232 = vst.msk [vmem:[#allocation12 + $0x40] sm:$0xff] %vm4158_vm6, %v5219_v36  ;;  %v5305_v17 = vld [vmem:[#allocation12 + $0x1] ss:$2 sm:$0xf]  ;;  %v5261_v39 = vadd.f32 %v9506_v43, %v5241_v58  ;;  %v5150_v42 = vld [vmem:[#allocation12 + $0x38] sm:$0xff] }
 0x579   : > { %v5218_v54 = vadd.f32 %v5187_v47, %v5150_v42  ;;  %v5306_v63 = vmax.f32 %v5303_v20, %v5305_v17  ;;  %v5273_v23 = vmax.f32 %v5260_v51, 0.0 }
 0x57a   : > { %v5308_v1 = vld [vmem:[#allocation12 + $0xa] ss:$2 sm:$0xf]  ;;  %v5310_v28 = vld [vmem:[#allocation12 + $0xb] ss:$2 sm:$0xf] }
 0x57b   : > { %v5311_v21 = vmax.f32 %v5308_v1, %v5310_v28  ;;  %v5274_v29 = vmax.f32 %v5261_v39, 0.0  ;;  %v5243_v26 = vld [vmem:[#allocation12 + $0x30] sm:$0xff]  ;;  %5231 = vst.msk [vmem:[#allocation12 + $0x38] sm:$0xff] %vm4158_vm6, %v5218_v54  ;;  %5286 = vst.msk [vmem:[#allocation12 + $0x18] sm:$0xff] %vm4158_vm6, %v5273_v23 }
 0x57c   : > { %v5263_v3 = vadd.f32 %v9506_v43, %v5243_v26  ;;  %v5152_v30 = vld [vmem:[#allocation12 + $0x48] sm:$0xff]  ;;  %v5355_v26 = vld [vmem:[#allocation3 + $0x28] sm:$0xff] }
 0x57d   : > { %v5312_v46 = vmax.f32 %v5306_v63, %v5311_v21  ;;  %5287 = vst.msk [vmem:[#allocation12 + $0x20] sm:$0xff] %vm4158_vm6, %v5274_v29  ;;  %v5220_v49 = vadd.f32 %v5191_v8, %v5152_v30  ;;  %v5354_v29 = vld [vmem:[#allocation3 + $0x20] sm:$0xff]  ;;  %v5356_v30 = vld [vmem:[#allocation3 + $0x30] sm:$0x3] }
 0x57e   : > { %v5276_v50 = vmax.f32 %v5263_v3, 0.0  ;;  %v5242_v56 = vld [vmem:[#allocation12 + $0x28] sm:$0xff]  ;;  %v5359_v3 = vpack.c.bf16 %v5355_v26, %v5354_v29  ;;  %v5360_v8 = vpack.c.bf16 %v5356_v30, %v5356_v30 }
 0x57f   : > { %v5245_v0 = vld [vmem:[#allocation12 + $0x40] sm:$0xff]  ;;  %v5262_v34 = vadd.f32 %v9506_v43, %v5242_v56  ;;  %5233 = vst.msk [vmem:[#allocation12 + $0x48] sm:$0xff] %vm4158_vm6, %v5220_v49 }
 0x580   : > { %v5265_v4 = vadd.f32 %v9506_v43, %v5245_v0  ;;  %5313 = vst.msk [vmem:[#allocation3 + $0x7] sm:$0xf] %vm4216_vm11, %v5312_v46 }
 0x581   : > { %5289 = vst.msk [vmem:[#allocation12 + $0x30] sm:$0xff] %vm4158_vm6, %v5276_v50  ;;  %v5275_v40 = vmax.f32 %v5262_v34, 0.0 }
 0x582   : > { %v5278_v38 = vmax.f32 %v5265_v4, 0.0  ;;  %v5244_v5 = vld [vmem:[#allocation12 + $0x38] sm:$0xff] }
 0x583   : > { %5288 = vst.msk [vmem:[#allocation12 + $0x28] sm:$0xff] %vm4158_vm6, %v5275_v40  ;;  %v5264_v60 = vadd.f32 %v9506_v43, %v5244_v5  ;;  %v5315_v31 = vld [vmem:[#allocation12 + $0x14] ss:$2 sm:$0xf] }
 0x584   : > { %5291 = vst.msk [vmem:[#allocation12 + $0x40] sm:$0xff] %vm4158_vm6, %v5278_v38  ;;  %v5317_v57 = vld [vmem:[#allocation12 + $0x15] ss:$2 sm:$0xf] }
 0x585   : > { %v5318_v9 = vmax.f32 %v5315_v31, %v5317_v57  ;;  %v5320_v12 = vld [vmem:[#allocation12 + $0x1e] ss:$2 sm:$0xf]  ;;  %v5322_v13 = vld [vmem:[#allocation12 + $0x1f] ss:$2 sm:$0xf] }
 0x586   : > { %v5323_v37 = vmax.f32 %v5320_v12, %v5322_v13  ;;  %v5277_v16 = vmax.f32 %v5264_v60, 0.0  ;;  %v5246_v14 = vld [vmem:[#allocation12 + $0x48] sm:$0xff] }
 0x587   : > { %v5266_v61 = vadd.f32 %v9506_v43, %v5246_v14  ;;  %v5350_v17 = vld [vmem:[#allocation3] sm:$0xff] }
 0x588   : > { %v5324_v48 = vmax.f32 %v5318_v9, %v5323_v37  ;;  %5290 = vst.msk [vmem:[#allocation12 + $0x38] sm:$0xff] %vm4158_vm6, %v5277_v16 }
 0x589   : > { %v5279_v18 = vmax.f32 %v5266_v61, 0.0 }
 0x58a   : > { %5325 = vst.msk [vmem:[#allocation3 + $0xd] sm:$0xf] %vm4216_vm11, %v5324_v48  ;;  %v5327_v19 = vld [vmem:[#allocation12 + $0x28] ss:$2 sm:$0xf] }
 0x58b   : > { %5292 = vst.msk [vmem:[#allocation12 + $0x48] sm:$0xff] %vm4158_vm6, %v5279_v18  ;;  %v5329_v27 = vld [vmem:[#allocation12 + $0x29] ss:$2 sm:$0xf] }
 0x58c   : > { %v5330_v35 = vmax.f32 %v5327_v19, %v5329_v27 }
 0x58f   : > { %v5332_v6 = vld [vmem:[#allocation12 + $0x32] ss:$2 sm:$0xf]  ;;  %v5334_v33 = vld [vmem:[#allocation12 + $0x33] ss:$2 sm:$0xf] }
 0x590   : > { %v5339_v36 = vld [vmem:[#allocation12 + $0x3c] ss:$2 sm:$0xf]  ;;  %v5341_v20 = vld [vmem:[#allocation12 + $0x3d] ss:$2 sm:$0xf]  ;;  %v5335_v58 = vmax.f32 %v5332_v6, %v5334_v33 }
 0x591   : > { %v5351_v51 = vld [vmem:[#allocation3 + $0x8] sm:$0xff]  ;;  %v5342_v54 = vmax.f32 %v5339_v36, %v5341_v20 }
 0x592   : > { %v5344_v39 = vld [vmem:[#allocation12 + $0x46] ss:$2 sm:$0xf]  ;;  %v5346_v43 = vld [vmem:[#allocation12 + $0x47] ss:$2 sm:$0xf]  ;;  %v5357_v47 = vpack.c.bf16 %v5351_v51, %v5350_v17  ;;  %v5336_v42 = vmax.f32 %v5330_v35, %v5335_v58 }
 0x593   : > { %v5347_v1 = vmax.f32 %v5344_v39, %v5346_v43 }
 0x594   : > { %7443 = vmatmul.mubr.msk.bf16.vlgmr.msra.gmra.mrb[32].mxu1 %vm4158_vm6, %v5357_v47  ;;  %5337 = vst.msk [vmem:[#allocation3 + $0x13] sm:$0xf] %vm4216_vm11, %v5336_v42 }
 0x595   : > { %5435 = vmatprep.mubr.bf16.mxu1 %v7956_v55  ;;  %v5348_v28 = vmax.f32 %v5342_v54, %v5347_v1  ;;  %7679 = vmatpush3.bf16.msra.mxu1 %v9459_v7 }
 0x597   : > { %5349 = vst.msk [vmem:[#allocation3 + $0x19] sm:$0xf] %vm4216_vm11, %v5348_v28 }
 0x59b   : > { %v5352_v63 = vld [vmem:[#allocation3 + $0x10] sm:$0xff] }
 0x59e   : > { %v5353_v21 = vld [vmem:[#allocation3 + $0x18] sm:$0xff] }
 0x59f   : > { %v5358_v23 = vpack.c.bf16 %v5353_v21, %v5352_v63 }
 0x5a1   : > { %7444 = vmatmul.mubr.msk.bf16.gmra.mrb[36].mxu1 %vm4158_vm6, %v5358_v23 }
 0x5a2   : > { %5445 = vmatprep.mubr.bf16.mxu1 %v7956_v55 }
 0x5a9   : > { %7445 = vmatmul.mubr.msk.bf16.gmra.mrb[40].mxu1 %vm4158_vm6, %v5359_v3 }
 0x5aa   : > { %5455 = vmatprep.mubr.bf16.mxu1 %v7956_v55 }
 0x5b1   : > { %7446 = vmatmul.mubr.msk.bf16.gmra.mrb[44].mxu1 %vm4158_vm6, %v5360_v8 }
 0x5b2   : > { %7680 = vmatprep.mubr.msk.bf16.mxu1 %vm4158_vm6, %v5357_v47 }
 0x5b9   : > { %7681 = vmatmul.mubr.msk.bf16.vlgmr.msra.gmra.mrb[48].mxu1 %vm4158_vm6, %v5358_v23 }
 0x5ba   : > { %7684 = vmatprep.mubr.msk.bf16.mxu1 %vm4158_vm6, %v5359_v3 }
 0x5c1   : > { %7685 = vmatmul.mubr.msk.bf16.gmra.mrb[52].mxu1 %vm4158_vm6, %v5360_v8 }
 0x5c2   : > { %6104 = vmatprep.mubr.bf16.mxu1 %v7956_v55 }
 0x667   : > { %v5427_v7 = vpop.f32.mrb[32].mxu1 }
 0x668   : > { %5528 = vst [vmem:[#allocation8] sm:$0xff] %v5427_v7  ;;  %v5429_v46 = vpop.f32.mrb[33].mxu1  ;;  %5556 = vst.msk [vmem:[#allocation13] sm:$0xff] %vm5530_vm14, %v5427_v7 }
 0x669   : > { %5529 = vst [vmem:[#allocation8 + $0x8] sm:$0xff] %v5429_v46  ;;  %v9583_v49 = vpop.f32.mrb[34].mxu1 }
 0x66a   : > { %v9585_v50 = vpop.f32.mrb[35].mxu1  ;;  %5557 = vst.msk [vmem:[#allocation13 + $0x8] sm:$0xff] %vm5530_vm14, %v9583_v49  ;;  %v5578_v34 = vrot.slane %v9583_v49, 1  ;;  %v5627_v31 = vrot.slane %v9583_v49, 2  ;;  %v5678_v37 = vrot.slane %v9583_v49, 6 }
 0x66b   : > { %5533 = vst [vmem:[#allocation8 + $0x20] sm:$0xff] %v9585_v50  ;;  %v5732_v16 = vrot.slane %v9585_v50, 7 }
 0x66f   : > { %v5562_v56 = vld [vmem:[#allocation8] sm:$0xfe] }
 0x670   : > { %v5577_v0 = vrot.slane %v5562_v56, 1  ;;  %v5611_v40 = vld [vmem:[#allocation8] sm:$0xfc] }
 0x671   : > { %v5626_v13 = vrot.slane %v5611_v40, 2  ;;  %v5660_v39 = vld [vmem:[#allocation8] sm:$0xc0] }
 0x672   : > { %v5579_v4 = vsel %vm4257_vm7, %v5577_v0, %v5578_v34  ;;  %v5677_v29 = vrot.slane %v5660_v39, 6  ;;  %v7807_v39 = vld [vmem:[%s10415_s7 + $0x2c] ss:$20 sps:$4 sm:$0xff]  }
 0x673   : > { %5586 = vrot.lane.b32.xlu0 %v5579_v4, %s10492_s3  ;;  %v5628_v1 = vsel %vm4387_vm8, %v5626_v13, %v5627_v31 }
 0x674   : > { %v5437_v38 = vpop.f32.mrb[36].mxu1 }
 0x675   : > { %v9593_v5 = vpop.f32.mrb[37].mxu1  ;;  %v5580_v60 = vrot.slane %v5437_v38, 1  ;;  %v5629_v57 = vrot.slane %v5437_v38, 2  ;;  %v5680_v9 = vrot.slane %v5437_v38, 6  ;;  %5558 = vst.msk [vmem:[#allocation13 + $0x10] sm:$0xff] %vm5530_vm14, %v5437_v38 }
 0x676   : > { %v9597_v12 = vpop.f32.mrb[38].mxu1  ;;  %v5734_v14 = vrot.slane %v9593_v5, 7  ;;  %v5813_v36 = vrot.slane %v9593_v5, 4  ;;  %v5864_v17 = vrot.slane %v9593_v5, 5 }
 0x677   : > { %5538 = vst [vmem:[#allocation8 + $0x48] sm:$0xff] %v9597_v12  ;;  %v9603_v61 = vpop.f32.mrb[39].mxu1  ;;  %v5581_v48 = vsel %vm4257_vm7, %v5578_v34, %v5580_v60  ;;  %v5582_v18 = vrot.slane %v9597_v12, 1  ;;  %v5630_v19 = vsel %vm4387_vm8, %v5627_v31, %v5629_v57  ;;  %v5631_v27 = vrot.slane %v9597_v12, 2 }
 0x678   : > { %5588 = vrot.lane.b32.xlu1 %v5581_v48, %s10492_s3  ;;  %v5681_v6 = vsel %vm5170_vm13, %v5678_v37, %v5680_v9  ;;  %v5682_v33 = vrot.slane %v9597_v12, 6  ;;  %v5815_v20 = vrot.slane %v9603_v61, 4  ;;  %v5866_v51 = vrot.slane %v9603_v61, 5 }
 0x679   : > { %v5583_v35 = vsel %vm4257_vm7, %v5580_v60, %v5582_v18  ;;  %v5632_v58 = vsel %vm4387_vm8, %v5629_v57, %v5631_v27  ;;  %v9628_v42 = vsel %vm5730_vm5, %v5732_v16, %v5734_v14  ;;  %v5736_v54 = vrot.slane %v9603_v61, 7  ;;  %v5797_v57 = vld [vmem:[#allocation8 + $0x20] sm:$0xf0] }
 0x67a   : > { %5590 = vrot.lane.b32.xlu0 %v5583_v35, %s10492_s3  ;;  %v5683_v43 = vsel %vm5170_vm13, %v5680_v9, %v5682_v33  ;;  %v5816_v47 = vsel %vm725_vm0, %v5813_v36, %v5815_v20  ;;  %v5867_v28 = vsel %vm5036_vm10, %v5864_v17, %v5866_v51  ;;  %v5679_v34 = vsel %vm5170_vm13, %v5677_v29, %v5678_v37 }
 0x67b   : > { %v9639_v21 = vsel %vm5730_vm5, %v5734_v14, %v5736_v54  ;;  %v5812_v9 = vrot.slane %v5797_v57, 4  ;;  %v4538_v12 = vrot.slane %v9877_v45, 2 }
 0x67c   : > { %v9633_v63 = vpop.f32.mrb[40].mxu1  ;;  %5635 = vrot.lane.b32.xlu1 %v5628_v1, %s10490_s20  ;;  %v5567_v1 = vld [vmem:[#allocation13] sm:$0xff] }
 0x67d   : > { %5541 = vst [vmem:[#allocation8 + $0x60] sm:$0xff] %v9633_v63  ;;  %v9642_v23 = vpop.f32.mrb[41].mxu1  ;;  %v5684_v26 = vrot.slane %v9633_v63, 6  ;;  %v5814_v14 = vsel %vm725_vm0, %v5812_v9, %v5813_v36 }
 0x67e   : > { %5542 = vst [vmem:[#allocation8 + $0x68] sm:$0xff] %v9642_v23  ;;  %5637 = vrot.lane.b32.xlu0 %v5630_v19, %s10490_s20  ;;  %v5451_v3 = vpop.f32.mrb[42].mxu1  ;;  %v5817_v30 = vrot.slane %v9642_v23, 4  ;;  %v5868_v8 = vrot.slane %v9642_v23, 5  ;;  %v5554_v7 = vld [vmem:[#allocation8 + $0x48] sm:$0xff] }
 0x67f   : > { %5544 = vst [vmem:[#allocation8 + $0x78] sm:$0xff] %v5451_v3  ;;  %v5453_v46 = vpop.f32.mrb[43].mxu1  ;;  %v9652_v49 = vsel %vm5170_vm13, %v5682_v33, %v5684_v26  ;;  %5559 = vst.msk [vmem:[#allocation13 + $0x18] sm:$0xff] %vm5530_vm14, %v5554_v7  ;;  %v5846_v19 = vld [vmem:[#allocation8 + $0x20] sm:$0xe0]  ;;  %v5568_v3 = vld [vmem:[#allocation13 + $0x8] sm:$0xff] }
 0x680   : > { %5545 = vst [vmem:[#allocation8 + $0x80] sm:$0xff] %v5453_v46  ;;  %5639 = vrot.lane.b32.xlu1 %v5632_v58, %s10490_s20  ;;  %v5818_v56 = vsel %vm725_vm0, %v5815_v20, %v5817_v30  ;;  %v5869_v0 = vsel %vm5036_vm10, %v5866_v51, %v5868_v8  ;;  %v7804_v51 = vld [vmem:[%s10415_s7 + $0x4] ss:$20 sps:$4 sm:$0xff]  }
 0x681   : > { %6072 = vmatprep.subr.bf16.mxu1 %v7804_v51 }
 0x682   : > { %5688 = vrot.lane.b32.xlu0 %v5679_v34, %s10459_s21 }
 0x684   : > { %v5457_v4 = vpop.f32.mrb[44].mxu1  ;;  %5690 = vrot.lane.b32.xlu1 %v5681_v6, %s10459_s21  ;;  %v5555_v38 = vld [vmem:[#allocation8 + $0x60] sm:$0xf] }
 0x685   : > { %v5459_v40 = vpop.f32.mrb[45].mxu1  ;;  %5561 = vst.msk [vmem:[#allocation13 + $0x20] sm:$0xf] %vm5560_vm12, %v5555_v38 }
 0x686   : > { %5548 = vst [vmem:[#allocation8 + $0x98] sm:$0x3] %v5459_v40  ;;  %v5461_v60 = vpop.f32.mrb[46].mxu1  ;;  %5692 = vrot.lane.b32.xlu0 %v5683_v43, %s10459_s21  ;;  %v7805_v43 = vld [vmem:[%s10415_s7 + $0x28] ss:$20 sps:$4 sm:$0xff]  }
 0x687   : > { %v5462_v31 = vpop.f32.mrb[47].mxu1  ;;  %v629_v60 = vld [vmem:[%s8152_s26 + $0x160] sm:$0xff] }
 0x688   : > { %5772 = vrot.lane.b32.xlu1 %v9585_v50, %s10492_s3  ;;  %v630_v31 = vld [vmem:[%s8152_s26 + $0x168] sm:$0x3]  ;;  %s10498_s26 = sld [smem:[#allocation23_spill]] }
 0x689   : > { %v653_v57 = vpack.c.bf16 %v630_v31, %v629_v60 }
 0x68a   : > { %5774 = vrot.lane.b32.xlu0 %v9593_v5, %s10492_s3  ;;  %v5863_v5 = vrot.slane %v5846_v19, 5 }
 0x68b   : > { %7675 = vmatmul.mubr.msk.bf16.gmra.mrb[88].mxu0 %vm655_vm2, %v653_v57 }
 0x68c   : > { %v7682_v13 = vpop.f32.mrb[48].mxu1  ;;  %5776 = vrot.lane.b32.xlu1 %v9603_v61, %s10492_s3  ;;  %v5865_v33 = vsel %vm5036_vm10, %v5863_v5, %v5864_v17  ;;  %v7802_v17 = vld [vmem:[%s10415_s7] ss:$20 sps:$4 sm:$0xff]   ;;  %6806 = vmatprep.mubr.bf16.mxu0 %v7956_v55 }
 0x68d   : > { %5537 = vst.msk [vmem:[#allocation8 + $0x40] sm:$0xff] %vm5530_vm14, %v7682_v13  ;;  %v5498_v37 = vpop.f32.mrb[49].mxu1  ;;  %6073 = vmatpush1.bf16.msra.mxu1 %v7802_v17 }
 0x68e   : > { %v7683_v48 = vpop.f32.mrb[50].mxu1  ;;  %5821 = vrot.lane.b32.xlu0 %v5814_v14, %s10490_s20  ;;  %6074 = vmatprep.subr.bf16.mxu1 %v7807_v39 }
 0x68f   : > { %5540 = vst.msk [vmem:[#allocation8 + $0x58] sm:$0xff] %vm5530_vm14, %v7683_v48  ;;  %v5501_v6 = vpop.f32.mrb[51].mxu1 }
 0x690   : > { %5534 = vst.msk [vmem:[#allocation8 + $0x28] sm:$0xff] %vm5530_vm14, %v5501_v6  ;;  %5823 = vrot.lane.b32.xlu1 %v5816_v47, %s10490_s20  ;;  %v7810_v47 = vld [vmem:[%s10415_s7 + $0xc] ss:$20 sps:$4 sm:$0xff]  }
 0x691   : > { %6075 = vmatpush1.bf16.msra.mxu1 %v7805_v43 }
 0x692   : > { %5825 = vrot.lane.b32.xlu0 %v5818_v56, %s10490_s20  ;;  %6125 = vmatprep.subr.bf16.mxu1 %v7810_v47  ;;  %v5569_v56 = vld [vmem:[#allocation13 + $0x10] sm:$0xff] }
 0x694   : > { %v7686_v20 = vpop.f32.mrb[52].mxu1  ;;  %5874 = vrot.lane.b32.xlu1 %v5865_v33, %s10459_s21 }
 0x695   : > { %5550 = vst.msk [vmem:[#allocation8 + $0xa0] sm:$0x3] %vm5549_vm15, %v7686_v20  ;;  %v5514_v36 = vpop.f32.mrb[53].mxu1  ;;  %v5713_v20 = vld [vmem:[#allocation8 + $0x8] sm:$0x80] }
 0x696   : > { %5543 = vst.msk [vmem:[#allocation8 + $0x70] sm:$0xff] %vm5530_vm14, %v5514_v36  ;;  %5876 = vrot.lane.b32.xlu0 %v5867_v28, %s10459_s21  ;;  %v7687_v35 = vpop.f32.mrb[54].mxu1  ;;  %v5731_v17 = vrot.slane %v5713_v20, 7  ;;  %v5900_v20 = vld [vmem:[#allocation8 + $0x40] sm:$0xff] }
 0x697   : > { %v5517_v58 = vpop.f32.mrb[55].mxu1 }
 0x698   : > { %5878 = vrot.lane.b32.xlu1 %v5869_v0, %s10459_s21  ;;  %5546 = vst.msk [vmem:[#allocation8 + $0x88] sm:$0xff] %vm5530_vm14, %v5517_v58  ;;  %v5733_v47 = vsel %vm5730_vm5, %v5731_v17, %v5732_v16 }
 0x6e5   : > { %v5587_v28 = vpop.permute.xlu0 %5586 }
 0x6e6   : > { %v5601_v29 = vadd.f32 %v5587_v28, %v5567_v1 }
 0x6e8   : > { %5606 = vst.msk [vmem:[#allocation13] sm:$0xff] %vm5530_vm14, %v5601_v29 }
 0x6ea   : > { %v5589_v7 = vpop.permute.xlu1 %5588 }
 0x6eb   : > { %v5602_v46 = vadd.f32 %v5589_v7, %v5568_v3 }
 0x6ec   : > { %v5591_v0 = vpop.permute.xlu0 %5590 }
 0x6ed   : > { %5607 = vst.msk [vmem:[#allocation13 + $0x8] sm:$0xff] %vm5530_vm14, %v5602_v46  ;;  %v5603_v34 = vadd.f32 %v5591_v0, %v5569_v56 }
 0x6ee   : > { %v5636_v4 = vpop.permute.xlu1 %5635 }
 0x6ef   : > { %5608 = vst.msk [vmem:[#allocation13 + $0x10] sm:$0xff] %vm5530_vm14, %v5603_v34  ;;  %v5616_v40 = vld [vmem:[#allocation13] sm:$0xff] }
 0x6f0   : > { %v5650_v38 = vadd.f32 %v5636_v4, %v5616_v40  ;;  %v5638_v9 = vpop.permute.xlu0 %5637 }
 0x6f2   : > { %5655 = vst.msk [vmem:[#allocation13] sm:$0xff] %vm5530_vm14, %v5650_v38  ;;  %v5640_v14 = vpop.permute.xlu1 %5639 }
 0x6f4   : > { %v5617_v13 = vld [vmem:[#allocation13 + $0x8] sm:$0xff]  ;;  %v5689_v5 = vpop.permute.xlu0 %5688 }
 0x6f5   : > { %v5651_v37 = vadd.f32 %v5638_v9, %v5617_v13 }
 0x6f6   : > { %v5618_v48 = vld [vmem:[#allocation13 + $0x10] sm:$0xff]  ;;  %v5691_v36 = vpop.permute.xlu1 %5690 }
 0x6f7   : > { %5656 = vst.msk [vmem:[#allocation13 + $0x8] sm:$0xff] %vm5530_vm14, %v5651_v37  ;;  %v5652_v19 = vadd.f32 %v5640_v14, %v5618_v48 }
 0x6f8   : > { %v5693_v39 = vpop.permute.xlu0 %5692 }
 0x6f9   : > { %5657 = vst.msk [vmem:[#allocation13 + $0x10] sm:$0xff] %vm5530_vm14, %v5652_v19  ;;  %v5666_v6 = vld [vmem:[#allocation13] sm:$0xff] }
 0x6fa   : > { %v5703_v33 = vadd.f32 %v5689_v5, %v5666_v6  ;;  %v5773_v56 = vpop.permute.xlu1 %5772 }
 0x6fc   : > { %5708 = vst.msk [vmem:[#allocation13] sm:$0xff] %vm5530_vm14, %v5703_v33  ;;  %v5775_v50 = vpop.permute.xlu0 %5774  ;;  %v5899_v33 = vld [vmem:[#allocation8 + $0x28] sm:$0xc0] }
 0x6fe   : > { %v5667_v35 = vld [vmem:[#allocation13 + $0x8] sm:$0xff]  ;;  %v5777_v40 = vpop.permute.xlu1 %5776 }
 0x6ff   : > { %v5704_v58 = vadd.f32 %v5691_v36, %v5667_v35 }
 0x700   : > { %v5668_v51 = vld [vmem:[#allocation13 + $0x10] sm:$0xff]  ;;  %v5822_v31 = vpop.permute.xlu0 %5821 }
 0x701   : > { %5709 = vst.msk [vmem:[#allocation13 + $0x8] sm:$0xff] %vm5530_vm14, %v5704_v58  ;;  %v5705_v43 = vadd.f32 %v5693_v39, %v5668_v51  ;;  %v5916_v58 = vrot.slane %v5899_v33, 6 }
 0x702   : > { %v5824_v57 = vpop.permute.xlu1 %5823 }
 0x703   : > { %5710 = vst.msk [vmem:[#allocation13 + $0x10] sm:$0xff] %vm5530_vm14, %v5705_v43  ;;  %v5719_v1 = vld [vmem:[#allocation13] sm:$0xff]  ;;  %v5917_v43 = vrot.slane %v5900_v20, 6 }
 0x704   : > { %v5747_v28 = vadd.f32 %v5733_v47, %v5719_v1  ;;  %v5826_v14 = vpop.permute.xlu0 %5825  ;;  %v5901_v47 = vld [vmem:[#allocation8 + $0x58] sm:$0xff] }
 0x706   : > { %5752 = vst.msk [vmem:[#allocation13] sm:$0xff] %vm5530_vm14, %v5747_v28  ;;  %v5875_v19 = vpop.permute.xlu1 %5874 }
 0x708   : > { %v5720_v29 = vld [vmem:[#allocation13 + $0x8] sm:$0xff]  ;;  %v5877_v35 = vpop.permute.xlu0 %5876 }
 0x709   : > { %v5748_v3 = vadd.f32 %v9628_v42, %v5720_v29  ;;  %v5918_v29 = vsel %vm5170_vm13, %v5916_v58, %v5917_v43 }
 0x70a   : > { %v5721_v7 = vld [vmem:[#allocation13 + $0x10] sm:$0xff]  ;;  %v5879_v51 = vpop.permute.xlu1 %5878 }
 0x70b   : > { %5753 = vst.msk [vmem:[#allocation13 + $0x8] sm:$0xff] %vm5530_vm14, %v5748_v3  ;;  %v5749_v46 = vadd.f32 %v9639_v21, %v5721_v7  ;;  %v9733_v3 = vld [vmem:[#allocation8 + $0x70] sm:$0xff] }
 0x70d   : > { %v5762_v0 = vld [vmem:[#allocation13] sm:$0xff]  ;;  %5754 = vst.msk [vmem:[#allocation13 + $0x10] sm:$0xff] %vm5530_vm14, %v5749_v46  ;;  %v5919_v46 = vrot.slane %v5901_v47, 6 }
 0x70e   : > { %v5787_v34 = vadd.f32 %v5773_v56, %v5762_v0  ;;  %v5921_v56 = vrot.slane %v9733_v3, 6 }
 0x70f   : > { %v5920_v0 = vsel %vm5170_vm13, %v5917_v43, %v5919_v46 }
 0x710   : > { %5792 = vst.msk [vmem:[#allocation13] sm:$0xff] %vm5530_vm14, %v5787_v34 }
 0x712   : > { %v5763_v16 = vld [vmem:[#allocation13 + $0x8] sm:$0xff] }
 0x713   : > { %v5788_v4 = vadd.f32 %v5775_v50, %v5763_v16 }
 0x714   : > { %v5764_v38 = vld [vmem:[#allocation13 + $0x10] sm:$0xff] }
 0x715   : > { %5793 = vst.msk [vmem:[#allocation13 + $0x8] sm:$0xff] %vm5530_vm14, %v5788_v4  ;;  %v5789_v42 = vadd.f32 %v5777_v40, %v5764_v38  ;;  %v5922_v4 = vsel %vm5170_vm13, %v5919_v46, %v5921_v56  ;;  %v7451_v40 = vld [vmem:[%s10414_s6] ss:$0 sm:$0xff]  ;;  %v7813_v46 = vld [vmem:[%s10415_s7 + $0x34] ss:$20 sps:$4 sm:$0xff]  }
 0x717   : > { %5794 = vst.msk [vmem:[#allocation13 + $0x10] sm:$0xff] %vm5530_vm14, %v5789_v42  ;;  %v5802_v60 = vld [vmem:[#allocation13] sm:$0xff] }
 0x718   : > { %v5836_v21 = vadd.f32 %v5822_v31, %v5802_v60 }
 0x71a   : > { %5841 = vst.msk [vmem:[#allocation13] sm:$0xff] %vm5530_vm14, %v5836_v21 }
 0x71c   : > { %v5803_v9 = vld [vmem:[#allocation13 + $0x8] sm:$0xff] }
 0x71d   : > { %v5837_v13 = vadd.f32 %v5824_v57, %v5803_v9 }
 0x71e   : > { %v5804_v37 = vld [vmem:[#allocation13 + $0x10] sm:$0xff] }
 0x71f   : > { %5842 = vst.msk [vmem:[#allocation13 + $0x8] sm:$0xff] %vm5530_vm14, %v5837_v13  ;;  %v5838_v48 = vadd.f32 %v5826_v14, %v5804_v37 }
 0x721   : > { %5843 = vst.msk [vmem:[#allocation13 + $0x10] sm:$0xff] %vm5530_vm14, %v5838_v48  ;;  %v5852_v6 = vld [vmem:[#allocation13] sm:$0xff] }
 0x722   : > { %v5889_v5 = vadd.f32 %v5875_v19, %v5852_v6 }
 0x724   : > { %5894 = vst.msk [vmem:[#allocation13] sm:$0xff] %vm5530_vm14, %v5889_v5 }
 0x726   : > { %v5853_v36 = vld [vmem:[#allocation13 + $0x8] sm:$0xff] }
 0x727   : > { %v5890_v17 = vadd.f32 %v5877_v35, %v5853_v36 }
 0x728   : > { %v5854_v39 = vld [vmem:[#allocation13 + $0x10] sm:$0xff] }
 0x729   : > { %5895 = vst.msk [vmem:[#allocation13 + $0x8] sm:$0xff] %vm5530_vm14, %v5890_v17  ;;  %v5891_v1 = vadd.f32 %v5879_v51, %v5854_v39 }
 0x72b   : > { %v5905_v28 = vld [vmem:[#allocation13] sm:$0xff]  ;;  %5896 = vst.msk [vmem:[#allocation13 + $0x10] sm:$0xff] %vm5530_vm14, %v5891_v1 }
 0x72c   : > { %v5932_v7 = vadd.f32 %v5918_v29, %v5905_v28  ;;  %v7808_v29 = vld [vmem:[%s10415_s7 + $0x8] ss:$20 sps:$4 sm:$0xff]  }
 0x72e   : > { %5937 = vst.msk [vmem:[#allocation13] sm:$0xff] %vm5530_vm14, %v5932_v7 }
 0x730   : > { %v5906_v34 = vld [vmem:[#allocation13 + $0x8] sm:$0xff] }
 0x731   : > { %v5933_v50 = vadd.f32 %v5920_v0, %v5906_v34  ;;  %v5998_v0 = vld [vmem:[#allocation4 + $0x10] sm:$0xff]  ;;  %v5999_v34 = vld [vmem:[#allocation4 + $0x18] sm:$0x3] }
 0x732   : > { %v5907_v16 = vld [vmem:[#allocation13 + $0x10] sm:$0xff] }
 0x733   : > { %5938 = vst.msk [vmem:[#allocation13 + $0x8] sm:$0xff] %vm5530_vm14, %v5933_v50  ;;  %v5934_v38 = vadd.f32 %v5922_v4, %v5907_v16  ;;  %v7811_v50 = vld [vmem:[%s10415_s7 + $0x30] ss:$20 sps:$4 sm:$0xff]   ;;  %v6001_v4 = vpack.c.bf16 %v5999_v34, %v5998_v0 }
 0x734   : > { %v7814_v16 = vld [vmem:[%s10415_s7 + $0x10] ss:$20 sps:$4 sm:$0xff]  }
 0x735   : > { %v5942_v42 = vld [vmem:[#allocation13] sm:$0xff]  ;;  %5939 = vst.msk [vmem:[#allocation13 + $0x10] sm:$0xff] %vm5530_vm14, %v5934_v38 }
 0x736   : > { %v5954_v60 = vadd.f32 %v7451_v40, %v5942_v42  ;;  %v7816_v38 = vld [vmem:[%s10417_s9 + $0x10] ss:$36 sps:$4 sm:$0xff]  }
 0x737   : > { %v7818_v42 = vld [vmem:[%s10417_s9 + $0x14] ss:$36 sps:$4 sm:$0xff]  }
 0x738   : > { %v5959_v31 = vmax.f32 %v5954_v60, 0.0  ;;  %6774 = vmatprep.subr.bf16.mxu0 %v7818_v42 }
 0x739   : > { %6775 = vmatpush1.bf16.msra.mxu0 %v7816_v38 }
 0x73a   : > { %5964 = vst.msk [vmem:[#allocation13] sm:$0xff] %vm5530_vm14, %v5959_v31  ;;  %v5943_v21 = vld [vmem:[#allocation13 + $0x8] sm:$0xff] }
 0x73b   : > { %v5955_v57 = vadd.f32 %v7451_v40, %v5943_v21 }
 0x73c   : > { %v5944_v9 = vld [vmem:[#allocation13 + $0x10] sm:$0xff] }
 0x73d   : > { %v5960_v13 = vmax.f32 %v5955_v57, 0.0  ;;  %v5956_v37 = vadd.f32 %v7451_v40, %v5944_v9  ;;  %v7815_v40 = vld [vmem:[%s10415_s7 + $0x38] ss:$20 sps:$4 sm:$0xff]   ;;  %v934_v9 = vpop.f32.mrb[86].mxu0 }
 0x73e   : > { %990 = vst.msk [vmem:[#allocation6 + $0x158] sm:$0xff] %vm946_vm3, %v934_v9 }
 0x73f   : > { %5965 = vst.msk [vmem:[#allocation13 + $0x8] sm:$0xff] %vm5530_vm14, %v5960_v13  ;;  %v5961_v14 = vmax.f32 %v5956_v37, 0.0  ;;  %v7673_v13 = vpop.f32.mrb[87].mxu0 }
 0x741   : > { %5966 = vst.msk [vmem:[#allocation13 + $0x10] sm:$0xff] %vm5530_vm14, %v5961_v14  ;;  %v5973_v48 = vld [vmem:[#allocation13] ss:$2 sm:$0x3] }
 0x742   : > { %v5975_v19 = vld [vmem:[#allocation13 + $0x1] ss:$2 sm:$0x3] }
 0x743   : > { %v5976_v33 = vmax.f32 %v5973_v48, %v5975_v19 }
 0x746   : > { %v5978_v6 = vld [vmem:[#allocation13 + $0x6] ss:$2 sm:$0x3]  ;;  %v5980_v5 = vld [vmem:[#allocation13 + $0x7] ss:$2 sm:$0x3] }
 0x747   : > { %v5981_v20 = vmax.f32 %v5978_v6, %v5980_v5  ;;  %v5985_v36 = vld [vmem:[#allocation13 + $0xc] ss:$2 sm:$0x3]  ;;  %v5987_v35 = vld [vmem:[#allocation13 + $0xd] ss:$2 sm:$0x3] }
 0x748   : > { %v5990_v58 = vld [vmem:[#allocation13 + $0x12] ss:$2 sm:$0x3]  ;;  %v5992_v17 = vld [vmem:[#allocation13 + $0x13] ss:$2 sm:$0x3]  ;;  %v5988_v39 = vmax.f32 %v5985_v36, %v5987_v35 }
 0x749   : > { %v5982_v51 = vmax.f32 %v5976_v33, %v5981_v20  ;;  %v5993_v43 = vmax.f32 %v5990_v58, %v5992_v17 }
 0x74b   : > { %5983 = vst.msk [vmem:[#allocation4 + $0x5] sm:$0x3] %vm5549_vm15, %v5982_v51  ;;  %v5994_v47 = vmax.f32 %v5988_v39, %v5993_v43 }
 0x74d   : > { %5995 = vst.msk [vmem:[#allocation4 + $0x9] sm:$0x3] %vm5549_vm15, %v5994_v47  ;;  %vm6231_vm15 = vcmask 523264  }
 0x74e   : > { %6425 = vst.msk [vmem:[#allocation5] sm:$0xff] %vm6231_vm15, %v7946_v2  ;;  %6426 = vst.msk [vmem:[#allocation5 + $0x8] sm:$0xff] %vm6231_vm15, %v7946_v2 }
 0x752   : > { %v5996_v1 = vld [vmem:[#allocation4] sm:$0xff] }
 0x754   : > { %v5997_v28 = vld [vmem:[#allocation4 + $0x8] sm:$0xff] }
 0x755   : > { %v6000_v7 = vpack.c.bf16 %v5997_v28, %v5996_v1 }
 0x757   : > { %7462 = vmatmul.mubr.msk.bf16.vlgmr.msra.gmra.mrb[56].mxu1 %vm5530_vm14, %v6000_v7 }
 0x758   : > { %6114 = vmatprep.mubr.bf16.mxu1 %v7956_v55  ;;  %6126 = vmatpush1.bf16.msra.mxu1 %v7808_v29  ;;  %v7819_v29 = vld [vmem:[%s10417_s9 + $0x58] ss:$36 sps:$4 sm:$0xff]  }
 0x759   : > { %6127 = vmatprep.subr.bf16.mxu1 %v7813_v46 }
 0x75c   : > { %6128 = vmatpush1.bf16.msra.mxu1 %v7811_v50 }
 0x75d   : > { %7688 = vmatprep.subr.bf16.mxu1 %v7814_v16 }
 0x75e   : > { %v939_v37 = vpop.f32.mrb[88].mxu0 }
 0x75f   : > { %7463 = vmatmul.mubr.msk.bf16.gmra.mrb[60].mxu1 %vm5530_vm14, %v6001_v4  ;;  %991 = vst.msk [vmem:[#allocation6 + $0x160] sm:$0xff] %vm946_vm3, %v939_v37  ;;  %v7676_v19 = vpop.f32.mrb[89].mxu0  ;;  %vm992_vm3 = vcmask 582656   ;;  %v1113_v37 = vld [vmem:[#allocation6 + $0x121] sm:$0xff] }
 0x760   : > { %6157 = vmatprep.mubr.bf16.mxu1 %v7956_v55  ;;  %v942_v13 = vpop.f32.mrb[90].mxu0  ;;  %v1115_v19 = vld [vmem:[#allocation6 + $0x131] sm:$0xff] }
 0x761   : > { %993 = vst.msk [vmem:[#allocation6 + $0x168] sm:$0x3] %vm992_vm3, %v942_v13  ;;  %vm6247_vm3 = vcmask 517120   ;;  %v7824_v13 = vld [vmem:[%s10417_s9 + $0xa4] ss:$36 sps:$4 sm:$0xff]  }
 0x767   : > { %7464 = vmatmul.mubr.msk.bf16.vlgmr.msra.gmra.mrb[64].mxu1 %vm5530_vm14, %v6000_v7 }
 0x768   : > { %6167 = vmatprep.mubr.bf16.mxu1 %v7956_v55  ;;  %7689 = vmatpush3.bf16.msra.mxu1 %v7814_v16 }
 0x769   : > { %7690 = vmatprep.subr.bf16.mxu1 %v7815_v40 }
 0x76c   : > { %7691 = vmatpush3.bf16.msra.mxu1 %v7815_v40 }
 0x76f   : > { %7465 = vmatmul.mubr.msk.bf16.gmra.mrb[68].mxu1 %vm5530_vm14, %v6001_v4 }
 0x770   : > { %7692 = vmatprep.mubr.msk.bf16.mxu1 %vm5530_vm14, %v6000_v7  ;;  %v7821_v7 = vld [vmem:[%s10417_s9 + $0x5c] ss:$36 sps:$4 sm:$0xff]  }
 0x771   : > { %6776 = vmatprep.subr.bf16.mxu0 %v7821_v7 }
 0x772   : > { %6777 = vmatpush1.bf16.msra.mxu0 %v7819_v29 }
 0x773   : > { %6778 = vmatprep.subr.bf16.mxu0 %v7824_v13  ;;  %v9951_v13 = vld [vmem:[#allocation7 + $0xd0] sm:$0xff] }
 0x777   : > { %7693 = vmatmul.mubr.msk.bf16.vlgmr.msra.gmra.mrb[72].mxu1 %vm5530_vm14, %v6001_v4 }
 0x778   : > { %6704 = vmatprep.mubr.bf16.mxu1 %v7956_v55 }
 0x82a   : > { %v6106_v60 = vpop.f32.mrb[56].mxu1 }
 0x82b   : > { %6227 = vst [vmem:[#allocation9] sm:$0xff] %v6106_v60  ;;  %v6108_v31 = vpop.f32.mrb[57].mxu1  ;;  %6251 = vst.msk [vmem:[#allocation14] sm:$0xff] %vm6231_vm15, %v6106_v60 }
 0x82c   : > { %6228 = vst [vmem:[#allocation9 + $0x8] sm:$0xff] %v6108_v31  ;;  %v9787_v21 = vpop.f32.mrb[58].mxu1 }
 0x82d   : > { %v9789_v57 = vpop.f32.mrb[59].mxu1  ;;  %6252 = vst.msk [vmem:[#allocation14 + $0x8] sm:$0xff] %vm6231_vm15, %v9787_v21  ;;  %v6262_v33 = vrot.slane %v9787_v21, 1  ;;  %v1445_v21 = vld [vmem:[#allocation6 + $0x142] sm:$0xf] }
 0x82e   : > { %v6304_v58 = vrot.slane %v9789_v57, 4 }
 0x832   : > { %v6116_v14 = vpop.f32.mrb[60].mxu1  ;;  %v6253_v48 = vld [vmem:[#allocation9] sm:$0xfe] }
 0x833   : > { %6238 = vst [vmem:[#allocation9 + $0x50] sm:$0xff] %v6116_v14  ;;  %v6118_v6 = vpop.f32.mrb[61].mxu1  ;;  %v6261_v5 = vrot.slane %v6253_v48, 1  ;;  %v6295_v20 = vld [vmem:[#allocation9 + $0x8] sm:$0xf0]  ;;  %v7677_v14 = vpop.f32.mrb[91].mxu0 }
 0x834   : > { %6239 = vst [vmem:[#allocation9 + $0x58] sm:$0xff] %v6118_v6  ;;  %v6120_v36 = vpop.f32.mrb[62].mxu1  ;;  %v6303_v35 = vrot.slane %v6295_v20, 4  ;;  %v1114_v48 = vld [vmem:[#allocation6 + $0x129] sm:$0xff]  ;;  %v1116_v6 = vld [vmem:[#allocation6 + $0x139] sm:$0xff] }
 0x835   : > { %v6263_v17 = vsel %vm4257_vm7, %v6261_v5, %v6262_v33  ;;  %v6122_v51 = vpop.f32.mrb[63].mxu1  ;;  %v1117_v5 = vld [vmem:[#allocation6 + $0x141] sm:$0xf]  ;;  %v4230_v20 = vld [vmem:[#allocation7 + $0xc0] sm:$0x1f] }
 0x836   : > { %6266 = vrot.lane.b32.xlu0 %v6263_v17, %s10490_s20  ;;  %v6305_v39 = vsel %vm725_vm0, %v6303_v35, %v6304_v58  ;;  %v1441_v36 = vld [vmem:[#allocation6 + $0x122] sm:$0xff]  ;;  %v4281_v35 = vrot.slane %v4230_v20, 1  ;;  %v5566_v17 = vld [vmem:[#allocation8 + $0x60] sm:$0x1f] }
 0x837   : > { %6308 = vrot.lane.b32.xlu1 %v6305_v39, %s10490_s20  ;;  %v5584_v39 = vrot.slane %v5566_v17, 1  ;;  %v4490_v14 = vld [vmem:[#allocation7 + $0xd0] sm:$0x3f] }
 0x838   : > { %v4282_v51 = vsel %vm4257_vm7, %v4279_v52, %v4281_v35  ;;  %v1442_v52 = vld [vmem:[#allocation6 + $0x12a] sm:$0xff] }
 0x83a   : > { %v6159_v43 = vpop.f32.mrb[64].mxu1 }
 0x83b   : > { %6229 = vst [vmem:[#allocation9 + $0x10] sm:$0xff] %v6159_v43  ;;  %v6161_v47 = vpop.f32.mrb[65].mxu1  ;;  %v6255_v43 = vld [vmem:[#allocation9 + $0x50] sm:$0x1] }
 0x83c   : > { %v9805_v1 = vpop.f32.mrb[66].mxu1  ;;  %v5585_v47 = vsel %vm4257_vm7, %v5582_v18, %v5584_v39  ;;  %v6264_v29 = vrot.slane %v6255_v43, 1  ;;  %v1443_v18 = vld [vmem:[#allocation6 + $0x132] sm:$0xff]  ;;  %v7830_v43 = vld [vmem:[%s10417_s9 + $0x4c] ss:$36 sps:$4 sm:$0xff]  }
 0x83d   : > { %v9807_v28 = vpop.f32.mrb[67].mxu1  ;;  %v6346_v16 = vrot.slane %v9805_v1, 6 }
 0x83e   : > { %6236 = vst [vmem:[#allocation9 + $0x40] sm:$0xff] %v9807_v28 }
 0x842   : > { %v6169_v46 = vpop.f32.mrb[68].mxu1  ;;  %v6337_v0 = vld [vmem:[#allocation9 + $0x10] sm:$0xc0] }
 0x843   : > { %6240 = vst [vmem:[#allocation9 + $0x60] sm:$0xff] %v6169_v46  ;;  %v9816_v34 = vpop.f32.mrb[69].mxu1  ;;  %v6345_v50 = vrot.slane %v6337_v0, 6 }
 0x844   : > { %6241 = vst [vmem:[#allocation9 + $0x68] sm:$0xff] %v9816_v34  ;;  %v6377_v4 = vrot.slane %v9816_v34, 1  ;;  %v6173_v40 = vpop.f32.mrb[70].mxu1 }
 0x845   : > { %v6347_v38 = vsel %vm5170_vm13, %v6345_v50, %v6346_v16  ;;  %v6368_v42 = vld [vmem:[#allocation9 + $0x40] sm:$0xfe]  ;;  %v6175_v60 = vpop.f32.mrb[71].mxu1 }
 0x846   : > { %6350 = vrot.lane.b32.xlu0 %v6347_v38, %s10490_s20  ;;  %v6376_v31 = vrot.slane %v6368_v42, 1  ;;  %6246 = vst [vmem:[#allocation9 + $0x90] sm:$0x3] %v6175_v60  ;;  %v1444_v40 = vld [vmem:[#allocation6 + $0x13a] sm:$0xff]  ;;  %v4360_v38 = vld [vmem:[#allocation7 + $0xc0] sm:$0x3f] }
 0x847   : > { %v5615_v42 = vld [vmem:[#allocation8 + $0x60] sm:$0x3f] }
 0x848   : > { %v6378_v9 = vsel %vm4257_vm7, %v6376_v31, %v6377_v4  ;;  %v5633_v31 = vrot.slane %v5615_v42, 2 }
 0x849   : > { %6381 = vrot.lane.b32.xlu1 %v6378_v9, %s10490_s20  ;;  %v7822_v9 = vld [vmem:[%s10417_s9 + $0xa0] ss:$36 sps:$4 sm:$0xff]  }
 0x84a   : > { %1272 = vrot.lane.b32.xlu0 %v1113_v37, %s10487_s22  ;;  %v7694_v7 = vpop.f32.mrb[72].mxu1  ;;  %6779 = vmatpush1.bf16.msra.mxu0 %v7822_v9  ;;  %v1772_v37 = vld [vmem:[#allocation6 + $0x14a] sm:$0xff] }
 0x84b   : > { %6242 = vst.msk [vmem:[#allocation9 + $0x70] sm:$0xff] %vm6231_vm15, %v7694_v7  ;;  %v6212_v46 = vpop.f32.mrb[73].mxu1  ;;  %v4619_v7 = vld [vmem:[#allocation7 + $0xd0] sm:$0x7f] }
 0x84c   : > { %v7695_v0 = vpop.f32.mrb[74].mxu1  ;;  %v2101_v46 = vld [vmem:[#allocation6 + $0x153] sm:$0xf]  ;;  %v2427_v9 = vld [vmem:[#allocation6 + $0x144] sm:$0xff] }
 0x84d   : > { %1274 = vrot.lane.b32.xlu1 %v1114_v48, %s10487_s22  ;;  %v6215_v50 = vpop.f32.mrb[75].mxu1  ;;  %6248 = vst.msk [vmem:[#allocation9 + $0x98] sm:$0x3] %vm6247_vm3, %v7695_v0  ;;  %v4540_v48 = vrot.slane %v4490_v14, 2  ;;  %vm6427_vm3 = vcmask 516096  }
 0x84e   : > { %1276 = vrot.lane.b32.xlu0 %v1115_v19, %s10487_s22  ;;  %6237 = vst.msk [vmem:[#allocation9 + $0x48] sm:$0xff] %vm6231_vm15, %v6215_v50  ;;  %v4539_v19 = vsel %vm4387_vm8, %v4536_v22, %v4538_v12  ;;  %v7827_v22 = vld [vmem:[%s10417_s9 + $0x4] ss:$36 sps:$4 sm:$0xff]   ;;  %v7837_v0 = vld [vmem:[%s10417_s9 + $0xd8] ss:$36 sps:$4 sm:$0xff]  }
 0x84f   : > { %6672 = vmatprep.subr.bf16.mxu1 %v7827_v22  ;;  %6428 = vst.msk [vmem:[#allocation5 + $0x10] sm:$0x1] %vm6427_vm3, %v7946_v2  ;;  %v2100_v50 = vld [vmem:[#allocation6 + $0x14b] sm:$0xff]  ;;  %v6339_v14 = vld [vmem:[#allocation9 + $0x60] sm:$0x3f] }
 0x851   : > { %1278 = vrot.lane.b32.xlu1 %v1116_v6, %s10487_s22  ;;  %v5665_v6 = vld [vmem:[#allocation8 + $0x78] sm:$0x3] }
 0x852   : > { %1280 = vrot.lane.b32.xlu0 %v1117_v5, %s10487_s22  ;;  %v4541_v5 = vsel %vm4387_vm8, %v4538_v12, %v4540_v48  ;;  %v5686_v20 = vrot.slane %v5665_v6, 6  ;;  %v6276_v6 = vld [vmem:[#allocation9 + $0x8] sm:$0xfc]  ;;  %s574_s22 = sand.u32 1, %s7936_s30  }
 0x853   : > { %s10340_s23 = scalar_lea.vmem [#allocation17], %s574_s22  ;;  %s7310_s28 = scalar_lea.sflag [#allocation18], %s574_s22 }
 0x855   : > { %1600 = vrot.lane.b32.xlu1 %v1441_v36, %s10483_s25  ;;  %v6297_v36 = vld [vmem:[#allocation9 + $0x58] sm:$0xf] }
 0x856   : > { %4303 = vrot.lane.b32.xlu0 %v9352_v59, %s10483_s25  ;;  %v6265_v59 = vsel %vm4257_vm7, %v6262_v33, %v6264_v29  ;;  %v4411_v33 = vrot.slane %v4360_v38, 2  ;;  %v6306_v17 = vrot.slane %v6297_v36, 4  ;;  %v7836_v29 = vld [vmem:[%s10417_s9 + $0x94] ss:$36 sps:$4 sm:$0xff]   ;;  %v4670_v38 = vrot.slane %v4619_v7, 3  ;;  %v1154_v7 = vld [vmem:[#allocation11 + $0x120] sm:$0xff] }
 0x857   : > { %v6285_v36 = vrot.slane %v9789_v57, 2 }
 0x858   : > { %v4412_v60 = vsel %vm4387_vm8, %v4409_v53, %v4411_v33  ;;  %v1771_v53 = vld [vmem:[#allocation6 + $0x142] sm:$0xff]  ;;  %v6307_v63 = vsel %vm725_vm0, %v6304_v58, %v6306_v17 }
 0x859   : > { %4305 = vrot.lane.b32.xlu1 %v4282_v51, %s10483_s25  ;;  %v5687_v51 = vsel %vm5170_vm13, %v5684_v26, %v5686_v20  ;;  %v7831_v26 = vld [vmem:[%s10417_s9 + $0xe8] ss:$36 sps:$4 sm:$0xff]   ;;  %v7834_v58 = vld [vmem:[%s10417_s9 + $0x90] ss:$36 sps:$4 sm:$0xff]   ;;  %v6284_v20 = vrot.slane %v6276_v6, 2 }
 0x85a   : > { %4307 = vrot.lane.b32.xlu0 %v4281_v35, %s10483_s25  ;;  %v7825_v35 = vld [vmem:[%s10417_s9] ss:$36 sps:$4 sm:$0xff]  }
 0x85b   : > { %6673 = vmatpush1.bf16.msra.mxu1 %v7825_v35  ;;  %v9975_v35 = vld [vmem:[%s10417_s9 + $0x20] ss:$36 sps:$4 sm:$0xff]   ;;  %v6286_v17 = vsel %vm4387_vm8, %v6284_v20, %v6285_v36  ;;  %v3084_v20 = vld [vmem:[#allocation6 + $0x15d] sm:$0xff] }
 0x85c   : > { %6674 = vmatprep.subr.bf16.mxu1 %v7830_v43  ;;  %v9985_v43 = vld [vmem:[#allocation7 + $0xe0] sm:$0xff] }
 0x85d   : > { %5592 = vrot.lane.b32.xlu1 %v5585_v47, %s10492_s3  ;;  %v2097_v47 = vld [vmem:[#allocation6 + $0x133] sm:$0xff] }
 0x85e   : > { %5594 = vrot.lane.b32.xlu0 %v5584_v39, %s10492_s3  ;;  %v7828_v39 = vld [vmem:[%s10417_s9 + $0x48] ss:$36 sps:$4 sm:$0xff]  }
 0x85f   : > { %6675 = vmatpush1.bf16.msra.mxu1 %v7828_v39  ;;  %v2756_v39 = vld [vmem:[#allocation6 + $0x15c] sm:$0xff] }
 0x860   : > { %6676 = vmatprep.subr.bf16.mxu1 %v7836_v29  ;;  %v9995_v29 = vld [vmem:[#allocation8 + $0x80] sm:$0xff] }
 0x861   : > { %6268 = vrot.lane.b32.xlu1 %v6265_v59, %s10490_s20  ;;  %v2098_v59 = vld [vmem:[#allocation6 + $0x13b] sm:$0xff] }
 0x862   : > { %1602 = vrot.lane.b32.xlu0 %v1442_v52, %s10483_s25  ;;  %v2099_v52 = vld [vmem:[#allocation6 + $0x143] sm:$0xff] }
 0x863   : > { %6677 = vmatpush1.bf16.msra.mxu1 %v7834_v58 }
 0x865   : > { %1604 = vrot.lane.b32.xlu1 %v1443_v18, %s10483_s25 }
 0x866   : > { %1606 = vrot.lane.b32.xlu0 %v1444_v40, %s10483_s25 }
 0x869   : > { %1608 = vrot.lane.b32.xlu1 %v1445_v21, %s10483_s25  ;;  %v7842_v21 = vld [vmem:[%s10417_s9 + $0xc] ss:$36 sps:$4 sm:$0xff]   ;;  %s7960_s25 = smov [#allocation17]  }
 0x86a   : > { %4433 = vrot.lane.b32.xlu0 %v9357_v62, %s10492_s3  ;;  %v5634_v62 = vsel %vm4387_vm8, %v5631_v27, %v5633_v31  ;;  %v1773_v27 = vld [vmem:[#allocation6 + $0x152] sm:$0xf]  ;;  %s7886_s14 = sshll.u32 %s7960_s25, 4  ;;  %s7887_s14 = int_to_ptr.vmem [resolvable:$false] %s7886_s14 }
 0x86b   : > { %s7888_s15 = scalar_lea.vmem %s7887_s14, 32 }
 0x86d   : > { %4435 = vrot.lane.b32.xlu1 %v4412_v60, %s10492_s3  ;;  %v2425_v60 = vld [vmem:[#allocation6 + $0x134] sm:$0xff] }
 0x86e   : > { %4437 = vrot.lane.b32.xlu0 %v4411_v33, %s10492_s3 }
 0x871   : > { %5641 = vrot.lane.b32.xlu1 %v5634_v62, %s10490_s20  ;;  %v4797_v62 = vrot.slane %v9877_v45, 4 }
 0x872   : > { %5643 = vrot.lane.b32.xlu0 %v5633_v31, %s10490_s20  ;;  %v2426_v31 = vld [vmem:[#allocation6 + $0x13c] sm:$0xff] }
 0x875   : > { %1928 = vrot.lane.b32.xlu1 %v1443_v18, %s10484_s1  ;;  %v7839_v18 = vld [vmem:[%s10417_s9 + $0xdc] ss:$36 sps:$4 sm:$0xff]  }
 0x876   : > { %1930 = vrot.lane.b32.xlu0 %v1444_v40, %s10484_s1  ;;  %v4668_v40 = vrot.slane %v9877_v45, 3  ;;  %6678 = vmatprep.subr.bf16.mxu1 %v7839_v18  ;;  %v6348_v45 = vrot.slane %v6339_v14, 6  ;;  %v5819_v18 = vrot.slane %v9995_v29, 4 }
 0x877   : > { %6679 = vmatpush1.bf16.msra.mxu1 %v7837_v0 }
 0x878   : > { %v4669_v33 = vsel %vm4646_vm9, %v4666_v24, %v4668_v40  ;;  %v4671_v42 = vsel %vm4646_vm9, %v4668_v40, %v4670_v38  ;;  %6723 = vmatprep.subr.bf16.mxu1 %v7842_v21  ;;  %v2428_v24 = vld [vmem:[#allocation6 + $0x14c] sm:$0xff] }
 0x879   : > { %1932 = vrot.lane.b32.xlu1 %v1771_v53, %s10484_s1  ;;  %v4799_v53 = vrot.slane %v9951_v13, 4 }
 0x87a   : > { %1934 = vrot.lane.b32.xlu0 %v1772_v37, %s10484_s1  ;;  %v4798_v37 = vsel %vm725_vm0, %v9290_v25, %v4797_v62  ;;  %v5761_v25 = vld [vmem:[#allocation8 + $0x80] sm:$0xf] }
 0x87b   : > { %v4800_v12 = vsel %vm725_vm0, %v4797_v62, %v4799_v53  ;;  %v4927_v58 = vsel %vm725_vm0, %v4924_v11, %v4799_v53  ;;  %v6318_v11 = vld [vmem:[#allocation9 + $0x10] sm:$0xe0] }
 0x87d   : > { %1936 = vrot.lane.b32.xlu1 %v1773_v27, %s10484_s1  ;;  %s10495_s1 = smov 32   ;;  %v6256_v27 = vld [vmem:[#allocation14] sm:$0xff] }
 0x87e   : > { %4562 = vrot.lane.b32.xlu0 %v4539_v19, %s10488_s0 }
 0x881   : > { %4564 = vrot.lane.b32.xlu1 %v4541_v5, %s10488_s0  ;;  %v6349_v5 = vsel %vm5170_vm13, %v6346_v16, %v6348_v45  ;;  %v2755_v16 = vld [vmem:[#allocation6 + $0x154] sm:$0xff] }
 0x882   : > { %4566 = vrot.lane.b32.xlu0 %v4540_v48, %s10488_s0 }
 0x885   : > { %5694 = vrot.lane.b32.xlu1 %v9652_v49, %s10495_s1  ;;  %v7833_v49 = vld [vmem:[%s10417_s9 + $0xec] ss:$36 sps:$4 sm:$0xff]  }
 0x886   : > { %5696 = vrot.lane.b32.xlu0 %v5687_v51, %s10495_s1  ;;  %6780 = vmatprep.subr.bf16.mxu0 %v7833_v49 }
 0x887   : > { %6781 = vmatpush1.bf16.msra.mxu0 %v7831_v26 }
 0x888   : > { %7696 = vmatprep.subr.bf16.mxu0 %v9975_v35 }
 0x889   : > { %6310 = vrot.lane.b32.xlu1 %v6307_v63, %s10490_s20  ;;  %v2757_v63 = vld [vmem:[#allocation6 + $0x164] sm:$0xf] }
 0x88a   : > { %2256 = vrot.lane.b32.xlu0 %v2097_v47, %s10492_s3  ;;  %v4928_v47 = vrot.slane %v9985_v43, 4 }
 0x88c   : > { %v4929_v0 = vsel %vm725_vm0, %v4799_v53, %v4928_v47 }
 0x88d   : > { %2258 = vrot.lane.b32.xlu1 %v2098_v59, %s10492_s3 }
 0x88e   : > { %2260 = vrot.lane.b32.xlu0 %v2099_v52, %s10492_s3 }
 0x891   : > { %2262 = vrot.lane.b32.xlu1 %v2100_v50, %s10492_s3 }
 0x892   : > { %2264 = vrot.lane.b32.xlu0 %v2101_v46, %s10492_s3 }
 0x895   : > { %4692 = vrot.lane.b32.xlu1 %v4669_v33, %s10490_s20  ;;  %v1156_v33 = vld [vmem:[#allocation11 + $0x130] sm:$0xff] }
 0x896   : > { %4694 = vrot.lane.b32.xlu0 %v4671_v42, %s10490_s20 }
 0x899   : > { %4696 = vrot.lane.b32.xlu1 %v4670_v38, %s10490_s20  ;;  %v1155_v38 = vld [vmem:[#allocation11 + $0x128] sm:$0xff] }
 0x89a   : > { %2584 = vrot.lane.b32.xlu0 %v2425_v60, %s10485_s27 }
 0x89d   : > { %2586 = vrot.lane.b32.xlu1 %v2426_v31, %s10485_s27  ;;  %v5820_v31 = vsel %vm725_vm0, %v5817_v30, %v5819_v18  ;;  %v3082_v30 = vld [vmem:[#allocation6 + $0x14d] sm:$0xff] }
 0x89e   : > { %2588 = vrot.lane.b32.xlu0 %v2427_v9, %s10485_s27 }
 0x8a1   : > { %2590 = vrot.lane.b32.xlu1 %v2428_v24, %s10485_s27 }
 0x8a2   : > { %2592 = vrot.lane.b32.xlu0 %v2429_v15, %s10485_s27  ;;  %v6326_v15 = vrot.slane %v6318_v11, 5  ;;  %v5851_v11 = vld [vmem:[#allocation8 + $0x98] sm:$0x1]  ;;  %s7528_s27 = sshll.u32 %s10498_s26, 4 }
 0x8a5   : > { %4821 = vrot.lane.b32.xlu1 %v4798_v37, %s10493_s29 }
 0x8a6   : > { %4823 = vrot.lane.b32.xlu0 %v4800_v12, %s10493_s29  ;;  %v1158_v12 = vld [vmem:[#allocation11 + $0x140] sm:$0xf] }
 0x8a8   : > { %v6267_v48 = vpop.permute.xlu0 %6266 }
 0x8a9   : > { %v6272_v19 = vadd.f32 %v6267_v48, %v6256_v27  ;;  %4825 = vrot.lane.b32.xlu1 %v4799_v53, %s10493_s29  ;;  %v6309_v26 = vpop.permute.xlu1 %6308  ;;  %v6327_v53 = vrot.slane %v9805_v1, 5  ;;  %v3081_v27 = vld [vmem:[#allocation6 + $0x145] sm:$0xff] }
 0x8aa   : > { %5778 = vrot.lane.b32.xlu0 %v9642_v23, %s10492_s3 }
 0x8ab   : > { %6274 = vst.msk [vmem:[#allocation14] sm:$0xff] %vm6231_vm15, %v6272_v19  ;;  %v6328_v45 = vsel %vm5036_vm10, %v6326_v15, %v6327_v53 }
 0x8ad   : > { %5780 = vrot.lane.b32.xlu1 %v5761_v25, %s10492_s3  ;;  %v3083_v25 = vld [vmem:[#allocation6 + $0x155] sm:$0xff] }
 0x8ae   : > { %6352 = vrot.lane.b32.xlu0 %v6349_v5, %s10490_s20 }
 0x8b1   : > { %2912 = vrot.lane.b32.xlu1 %v2427_v9, %s10488_s0 }
 0x8b2   : > { %v6279_v22 = vld [vmem:[#allocation14] sm:$0xff]  ;;  %2914 = vrot.lane.b32.xlu0 %v2428_v24, %s10488_s0 }
 0x8b3   : > { %v6291_v51 = vadd.f32 %v6286_v17, %v6279_v22  ;;  %v1157_v24 = vld [vmem:[#allocation11 + $0x138] sm:$0xff] }
 0x8b4   : > { %v4241_v17 = vld [vmem:[#allocation12 + $0x50] sm:$0xff] }
 0x8b5   : > { %6293 = vst.msk [vmem:[#allocation14] sm:$0xff] %vm6231_vm15, %v6291_v51  ;;  %2916 = vrot.lane.b32.xlu1 %v2755_v16, %s10488_s0 }
 0x8b6   : > { %2918 = vrot.lane.b32.xlu0 %v2756_v39, %s10488_s0 }
 0x8b8   : > { %v9988_v49 = vpop.permute.xlu0 %6350 }
 0x8b9   : > { %2920 = vrot.lane.b32.xlu1 %v2757_v63, %s10488_s0  ;;  %v5058_v63 = vrot.slane %v9951_v13, 5  ;;  %s10496_s0 = smov 16  }
 0x8ba   : > { %4950 = vrot.lane.b32.xlu0 %v4927_v58, %s10495_s1  ;;  %v4242_v58 = vld [vmem:[#allocation12 + $0x58] sm:$0xff] }
 0x8bb   : > { %v9998_v59 = vpop.permute.xlu1 %6381  ;;  %v5059_v13 = vsel %vm5036_vm10, %v5056_v41, %v5058_v63  ;;  %v5870_v41 = vrot.slane %v9995_v29, 5 }
 0x8bc   : > { %v6298_v52 = vld [vmem:[#allocation14] sm:$0xff]  ;;  %v1273_v46 = vpop.permute.xlu0 %1272 }
 0x8bd   : > { %v6314_v50 = vadd.f32 %v6309_v26, %v6298_v52  ;;  %v1359_v40 = vadd.f32 %v1273_v46, %v1154_v7  ;;  %4952 = vrot.lane.b32.xlu1 %v4929_v0, %s10495_s1  ;;  %v3085_v26 = vld [vmem:[#allocation6 + $0x165] sm:$0xf]  ;;  %v4243_v7 = vld [vmem:[#allocation12 + $0x60] sm:$0xf] }
 0x8be   : > { %4954 = vrot.lane.b32.xlu0 %v4928_v47, %s10495_s1  ;;  %v5008_v47 = vld [vmem:[#allocation7 + $0xf0] sm:$0x1] }
 0x8bf   : > { %6316 = vst.msk [vmem:[#allocation14] sm:$0xff] %vm6231_vm15, %v6314_v50  ;;  %v1275_v21 = vpop.permute.xlu1 %1274 }
 0x8c0   : > { %1400 = vst.msk [vmem:[#allocation11 + $0x120] sm:$0xff] %vm655_vm2, %v1359_v40  ;;  %v1277_v42 = vpop.permute.xlu0 %1276  ;;  %v1360_v60 = vadd.f32 %v1275_v21, %v1155_v38  ;;  %v5062_v40 = vrot.slane %v5008_v47, 5  ;;  %v5570_v38 = vld [vmem:[#allocation13 + $0x18] sm:$0xff] }
 0x8c1   : > { %v1361_v9 = vadd.f32 %v1277_v42, %v1156_v33  ;;  %5827 = vrot.lane.b32.xlu1 %v5820_v31, %s10490_s20  ;;  %v5571_v42 = vld [vmem:[#allocation13 + $0x20] sm:$0xf] }
 0x8c2   : > { %5829 = vrot.lane.b32.xlu0 %v5819_v18, %s10490_s20  ;;  %1401 = vst.msk [vmem:[#allocation11 + $0x128] sm:$0xff] %vm655_vm2, %v1360_v60  ;;  %v5060_v18 = vrot.slane %v9985_v43, 5 }
 0x8c3   : > { %1402 = vst.msk [vmem:[#allocation11 + $0x130] sm:$0xff] %vm655_vm2, %v1361_v9  ;;  %v1279_v62 = vpop.permute.xlu1 %1278 }
 0x8c4   : > { %v1281_v37 = vpop.permute.xlu0 %1280  ;;  %v1362_v14 = vadd.f32 %v1279_v62, %v1157_v24  ;;  %v5061_v32 = vsel %vm5036_vm10, %v5058_v63, %v5060_v18  ;;  %v5063_v15 = vsel %vm5036_vm10, %v5060_v18, %v5062_v40  ;;  %v5872_v24 = vrot.slane %v5851_v11, 5  ;;  %v6370_v62 = vld [vmem:[#allocation9 + $0x90] sm:$0x1]  ;;  %v3411_v63 = vld [vmem:[#allocation6 + $0x156] sm:$0xff] }
 0x8c5   : > { %v1363_v48 = vadd.f32 %v1281_v37, %v1158_v12  ;;  %3240 = vrot.lane.b32.xlu1 %v3081_v27, %s10486_s2  ;;  %v6257_v37 = vld [vmem:[#allocation14 + $0x8] sm:$0xff]  ;;  %v5871_v27 = vsel %vm5036_vm10, %v5868_v8, %v5870_v41 }
 0x8c6   : > { %v6321_v19 = vld [vmem:[#allocation14] sm:$0xff]  ;;  %3242 = vrot.lane.b32.xlu0 %v3082_v30, %s10486_s2  ;;  %1403 = vst.msk [vmem:[#allocation11 + $0x138] sm:$0xff] %vm655_vm2, %v1362_v14 }
 0x8c7   : > { %v1482_v6 = vld [vmem:[#allocation11 + $0x120] sm:$0xff]  ;;  %v6333_v5 = vadd.f32 %v6328_v45, %v6321_v19  ;;  %1404 = vst.msk [vmem:[#allocation11 + $0x140] sm:$0xf] %vm1075_vm4, %v1363_v48  ;;  %v1601_v22 = vpop.permute.xlu1 %1600  ;;  %v6379_v48 = vrot.slane %v6370_v62, 1  ;;  %v5873_v19 = vsel %vm5036_vm10, %v5870_v41, %v5872_v24 }
 0x8c8   : > { %v4304_v16 = vpop.permute.xlu0 %4303  ;;  %v1687_v51 = vadd.f32 %v1601_v22, %v1482_v6  ;;  %v6278_v45 = vld [vmem:[#allocation9 + $0x58] sm:$0x3] }
 0x8c9   : > { %6335 = vst.msk [vmem:[#allocation14] sm:$0xff] %vm6231_vm15, %v6333_v5  ;;  %v4332_v39 = vadd.f32 %v4304_v16, %v4241_v17  ;;  %3244 = vrot.lane.b32.xlu1 %v3083_v25, %s10486_s2  ;;  %v1483_v29 = vld [vmem:[#allocation11 + $0x128] sm:$0xff]  ;;  %v6380_v8 = vsel %vm4257_vm7, %v6377_v4, %v6379_v48  ;;  %v3409_v17 = vld [vmem:[#allocation6 + $0x146] sm:$0xff]  ;;  %v6287_v16 = vrot.slane %v6278_v45, 2 }
 0x8ca   : > { %3246 = vrot.lane.b32.xlu0 %v3084_v20, %s10486_s2  ;;  %1728 = vst.msk [vmem:[#allocation11 + $0x120] sm:$0xff] %vm655_vm2, %v1687_v51  ;;  %v1484_v6 = vld [vmem:[#allocation11 + $0x130] sm:$0xff] }
 0x8cb   : > { %4345 = vst.msk [vmem:[#allocation12 + $0x50] sm:$0xff] %vm4158_vm6, %v4332_v39  ;;  %v4306_v52 = vpop.permute.xlu1 %4305 }
 0x8cc   : > { %v4308_v46 = vpop.permute.xlu0 %4307  ;;  %v4333_v0 = vadd.f32 %v4306_v52, %v4242_v58  ;;  %v3410_v52 = vld [vmem:[#allocation6 + $0x14e] sm:$0xff] }
 0x8cd   : > { %v4334_v50 = vadd.f32 %v4308_v46, %v4243_v7  ;;  %3248 = vrot.lane.b32.xlu1 %v3085_v26, %s10486_s2  ;;  %v1485_v20 = vld [vmem:[#allocation11 + $0x138] sm:$0xff] }
 0x8ce   : > { %5084 = vrot.lane.b32.xlu0 %v5059_v13, %s10496_s0  ;;  %4346 = vst.msk [vmem:[#allocation12 + $0x58] sm:$0xff] %vm4158_vm6, %v4333_v0  ;;  %v1486_v47 = vld [vmem:[#allocation11 + $0x140] sm:$0xf]  ;;  %v6288_v0 = vsel %vm4387_vm8, %v6285_v36, %v6287_v16 }
 0x8cf   : > { %4347 = vst.msk [vmem:[#allocation12 + $0x60] sm:$0xf] %vm4216_vm11, %v4334_v50  ;;  %v5593_v21 = vpop.permute.xlu1 %5592  ;;  %v3413_v50 = vld [vmem:[#allocation6 + $0x166] sm:$0xf] }
 0x8d0   : > { %v6340_v33 = vld [vmem:[#allocation14] sm:$0xff]  ;;  %v5595_v43 = vpop.permute.xlu0 %5594  ;;  %v5604_v60 = vadd.f32 %v5593_v21, %v5570_v38 }
 0x8d1   : > { %v6356_v31 = vadd.f32 %v9988_v49, %v6340_v33  ;;  %v5605_v9 = vadd.f32 %v5595_v43, %v5571_v42  ;;  %5086 = vrot.lane.b32.xlu1 %v5061_v32, %s10496_s0  ;;  %v1810_v24 = vld [vmem:[#allocation11 + $0x120] sm:$0xff] }
 0x8d2   : > { %5088 = vrot.lane.b32.xlu0 %v5063_v15, %s10496_s0  ;;  %5609 = vst.msk [vmem:[#allocation13 + $0x18] sm:$0xff] %vm5530_vm14, %v5604_v60  ;;  %v4371_v34 = vld [vmem:[#allocation12 + $0x50] sm:$0xff]  ;;  %v6391_v15 = vld [vmem:[#allocation9 + $0x48] sm:$0xfc] }
 0x8d3   : > { %6358 = vst.msk [vmem:[#allocation14] sm:$0xff] %vm6231_vm15, %v6356_v31  ;;  %v6269_v12 = vpop.permute.xlu1 %6268 }
 0x8d4   : > { %5610 = vst.msk [vmem:[#allocation13 + $0x20] sm:$0xf] %vm5560_vm12, %v5605_v9  ;;  %v1603_v14 = vpop.permute.xlu0 %1602  ;;  %v6273_v49 = vadd.f32 %v6269_v12, %v6257_v37  ;;  %v10076_v9 = vld [vmem:[#allocation9 + $0x70] sm:$0xff] }
 0x8d5   : > { %v1688_v30 = vadd.f32 %v1603_v14, %v1483_v29  ;;  %5880 = vrot.lane.b32.xlu1 %v5871_v27, %s10495_s1  ;;  %v4372_v13 = vld [vmem:[#allocation12 + $0x58] sm:$0xff]  ;;  %v6399_v27 = vrot.slane %v6391_v15, 2 }
 0x8d6   : > { %5882 = vrot.lane.b32.xlu0 %v5873_v19, %s10495_s1  ;;  %6275 = vst.msk [vmem:[#allocation14 + $0x8] sm:$0xff] %vm6231_vm15, %v6273_v49  ;;  %v4373_v11 = vld [vmem:[#allocation12 + $0x60] sm:$0xf]  ;;  %v6400_v49 = vrot.slane %v10076_v9, 2  ;;  %s7325_s1 = sshll.u32 %s10340_s23, 4  ;;  %s7326_s1 = int_to_ptr.vmem [resolvable:$true] %s7325_s1 }
 0x8d7   : > { %1729 = vst.msk [vmem:[#allocation11 + $0x128] sm:$0xff] %vm655_vm2, %v1688_v30  ;;  %v1605_v25 = vpop.permute.xlu1 %1604  ;;  %s7882_s5 = scalar_lea.vmem %s7326_s1, 16  ;;  %p7889_p0 = scmp.lt.s32.totalorder %s7326_s1, %s7887_s14 }
 0x8d8   : > { %v1607_v5 = vpop.permute.xlu0 %1606  ;;  %v1689_v23 = vadd.f32 %v1605_v25, %v1484_v6  ;;  %p7883_p11 = scmp.ne.s32.totalorder %s7326_s1, %s7882_s5  ;;  %p7890_p1 = scmp.lt.s32.totalorder %s7888_s15, %s7882_s5 }
 0x8d9   : > { %v1690_v22 = vadd.f32 %v1607_v5, %v1485_v20  ;;  %6383 = vrot.lane.b32.xlu1 %v6380_v8, %s10490_s20  ;;  %v5619_v57 = vld [vmem:[#allocation13 + $0x18] sm:$0xff]  ;;  %v6401_v5 = vsel %vm4387_vm8, %v6399_v27, %v6400_v49 }
 0x8da   : > { %v6362_v51 = vld [vmem:[#allocation14] sm:$0xff]  ;;  %3568 = vrot.lane.b32.xlu0 %v3409_v17, %s10490_s20  ;;  %1730 = vst.msk [vmem:[#allocation11 + $0x130] sm:$0xff] %vm655_vm2, %v1689_v23  ;;  %p7884_p12 = pnand %p7883_p11, %p8097_p5  ;;  %p7891_p2 = por %p7890_p1, %p7889_p0 }
 0x8db   : > { %v6364_v39 = vadd.f32 %v6362_v51, %v9807_v28  ;;  %1731 = vst.msk [vmem:[#allocation11 + $0x138] sm:$0xff] %vm655_vm2, %v1690_v22  ;;  %v1609_v26 = vpop.permute.xlu1 %1608  ;;  %v3412_v28 = vld [vmem:[#allocation6 + $0x15e] sm:$0xff] }
 0x8dc   : > { %v4434_v58 = vpop.permute.xlu0 %4433  ;;  %v1691_v4 = vadd.f32 %v1609_v26, %v1486_v47  ;;  %v5620_v43 = vld [vmem:[#allocation13 + $0x20] sm:$0xf]  ;;  %p7885_p13 = pneg %p7884_p12 }
 0x8dd   : > { %6366 = vst.msk [vmem:[#allocation14] sm:$0xff] %vm6231_vm15, %v6364_v39  ;;  %v4462_v7 = vadd.f32 %v4434_v58, %v4371_v34  ;;  %3570 = vrot.lane.b32.xlu1 %v3410_v52, %s10490_s20  ;;  %v6280_v46 = vld [vmem:[#allocation14 + $0x8] sm:$0xff] }
 0x8de   : > { %3572 = vrot.lane.b32.xlu0 %v3411_v63, %s10490_s20  ;;  %1732 = vst.msk [vmem:[#allocation11 + $0x140] sm:$0xf] %vm1075_vm4, %v1691_v4  ;;  %v6292_v18 = vadd.f32 %v6288_v0, %v6280_v46  ;;  %v1811_v37 = vld [vmem:[#allocation11 + $0x128] sm:$0xff]  ;;  %v10093_v4 = vld [vmem:[%s10416_s8] ss:$0 sm:$0xff]  ;;  %p7892_p3 = pnand %p7891_p2, %p7885_p13 }
 0x8df   : > { %4475 = vst.msk [vmem:[#allocation12 + $0x50] sm:$0xff] %vm4158_vm6, %v4462_v7  ;;  %v4436_v40 = vpop.permute.xlu1 %4435 }
 0x8e0   : > { %v4438_v38 = vpop.permute.xlu0 %4437  ;;  %v4463_v21 = vadd.f32 %v4436_v40, %v4372_v13  ;;  %6294 = vst.msk [vmem:[#allocation14 + $0x8] sm:$0xff] %vm6231_vm15, %v6292_v18  ;;  %v5717_v40 = vld [vmem:[#allocation8 + $0x68] sm:$0xff] }
 0x8e1   : > { %v4464_v33 = vadd.f32 %v4438_v38, %v4373_v11  ;;  %3574 = vrot.lane.b32.xlu1 %v3412_v28, %s10490_s20 }
 0x8e2   : > { %3576 = vrot.lane.b32.xlu0 %v3413_v50, %s10490_s20  ;;  %4476 = vst.msk [vmem:[#allocation12 + $0x58] sm:$0xff] %vm4158_vm6, %v4463_v21  ;;  %v1813_v30 = vld [vmem:[#allocation11 + $0x138] sm:$0xff]  ;;  %s10501_s20 = sld [smem:[#allocation37_spill]] }
 0x8e3   : > { %4477 = vst.msk [vmem:[#allocation12 + $0x60] sm:$0xf] %vm4216_vm11, %v4464_v33  ;;  %v5642_v36 = vpop.permute.xlu1 %5641  ;;  %v5718_v33 = vld [vmem:[#allocation8 + $0x80] sm:$0x7] }
 0x8e4   : > { %v6371_v42 = vld [vmem:[#allocation14] sm:$0xff]  ;;  %v5644_v60 = vpop.permute.xlu0 %5643  ;;  %v5653_v32 = vadd.f32 %v5642_v36, %v5619_v57 }
 0x8e5   : > { %v6387_v41 = vadd.f32 %v9998_v59, %v6371_v42  ;;  %v5654_v31 = vadd.f32 %v5644_v60, %v5620_v43  ;;  %v1812_v59 = vld [vmem:[#allocation11 + $0x130] sm:$0xff]  ;;  %v1814_v23 = vld [vmem:[#allocation11 + $0x140] sm:$0xf]  ;;  %v5738_v60 = vrot.slane %v5717_v40, 7 }
 0x8e6   : > { %5658 = vst.msk [vmem:[#allocation13 + $0x18] sm:$0xff] %vm5530_vm14, %v5653_v32  ;;  %v4501_v22 = vld [vmem:[#allocation12 + $0x50] sm:$0xff]  ;;  %v5740_v32 = vrot.slane %v5718_v33, 7 }
 0x8e7   : > { %6389 = vst.msk [vmem:[#allocation14] sm:$0xff] %vm6231_vm15, %v6387_v41  ;;  %v1929_v62 = vpop.permute.xlu1 %1928  ;;  %v6299_v38 = vld [vmem:[#allocation14 + $0x8] sm:$0xff]  ;;  %v6320_v41 = vld [vmem:[#allocation9 + $0x60] sm:$0x1f] }
 0x8e8   : > { %5659 = vst.msk [vmem:[#allocation13 + $0x20] sm:$0xf] %vm5560_vm12, %v5654_v31  ;;  %v1931_v12 = vpop.permute.xlu0 %1930  ;;  %v2015_v29 = vadd.f32 %v1929_v62, %v1810_v24  ;;  %v6329_v27 = vrot.slane %v6320_v41, 5  ;;  %s10365_s3 = scalar_lea.hbm %s10501_s20, %s7528_s27 }
 0x8e9   : > { %v2016_v14 = vadd.f32 %v1931_v12, %v1811_v37  ;;  %v4502_v39 = vld [vmem:[#allocation12 + $0x58] sm:$0xff] }
 0x8ea   : > { %2056 = vst.msk [vmem:[#allocation11 + $0x120] sm:$0xff] %vm655_vm2, %v2015_v29  ;;  %v4503_v26 = vld [vmem:[#allocation12 + $0x60] sm:$0xf] }
 0x8eb   : > { %2057 = vst.msk [vmem:[#allocation11 + $0x128] sm:$0xff] %vm655_vm2, %v2016_v14  ;;  %v1933_v48 = vpop.permute.xlu1 %1932  ;;  %v5739_v14 = vsel %vm5730_vm5, %v5736_v54, %v5738_v60 }
 0x8ec   : > { %v1935_v19 = vpop.permute.xlu0 %1934  ;;  %v2017_v45 = vadd.f32 %v1933_v48, %v1812_v59  ;;  %v5741_v48 = vsel %vm5730_vm5, %v5738_v60, %v5740_v32  ;;  %v7845_v60 = vld [vmem:[%s10417_s9 + $0x54] ss:$36 sps:$4 sm:$0xff]  }
 0x8ed   : > { %v2018_v6 = vadd.f32 %v1935_v19, %v1813_v30  ;;  %v5669_v52 = vld [vmem:[#allocation13 + $0x18] sm:$0xff] }
 0x8ee   : > { %v6394_v25 = vld [vmem:[#allocation14] sm:$0xff]  ;;  %2058 = vst.msk [vmem:[#allocation11 + $0x130] sm:$0xff] %vm655_vm2, %v2017_v45 }
 0x8ef   : > { %v6406_v20 = vadd.f32 %v6401_v5, %v6394_v25  ;;  %2059 = vst.msk [vmem:[#allocation11 + $0x138] sm:$0xff] %vm655_vm2, %v2018_v6  ;;  %v1937_v8 = vpop.permute.xlu1 %1936  ;;  %v5670_v0 = vld [vmem:[#allocation13 + $0x20] sm:$0xf] }
 0x8f0   : > { %v4563_v17 = vpop.permute.xlu0 %4562  ;;  %v2019_v16 = vadd.f32 %v1937_v8, %v1814_v23 }
 0x8f1   : > { %6408 = vst.msk [vmem:[#allocation14] sm:$0xff] %vm6231_vm15, %v6406_v20  ;;  %v4591_v51 = vadd.f32 %v4563_v17, %v4501_v22  ;;  %v2138_v57 = vld [vmem:[#allocation11 + $0x120] sm:$0xff] }
 0x8f2   : > { %2060 = vst.msk [vmem:[#allocation11 + $0x140] sm:$0xf] %vm1075_vm4, %v2019_v16  ;;  %v2139_v31 = vld [vmem:[#allocation11 + $0x128] sm:$0xff] }
 0x8f3   : > { %4604 = vst.msk [vmem:[#allocation12 + $0x50] sm:$0xff] %vm4158_vm6, %v4591_v51  ;;  %v4565_v63 = vpop.permute.xlu1 %4564  ;;  %v6330_v51 = vsel %vm5036_vm10, %v6327_v53, %v6329_v27 }
 0x8f4   : > { %v4567_v47 = vpop.permute.xlu0 %4566  ;;  %v4592_v34 = vadd.f32 %v4565_v63, %v4502_v39 }
 0x8f5   : > { %v4593_v58 = vadd.f32 %v4567_v47, %v4503_v26  ;;  %v2140_v24 = vld [vmem:[#allocation11 + $0x130] sm:$0xff] }
 0x8f6   : > { %4605 = vst.msk [vmem:[#allocation12 + $0x58] sm:$0xff] %vm4158_vm6, %v4592_v34  ;;  %v2141_v6 = vld [vmem:[#allocation11 + $0x138] sm:$0xff] }
 0x8f7   : > { %4606 = vst.msk [vmem:[#allocation12 + $0x60] sm:$0xf] %vm4216_vm11, %v4593_v58  ;;  %v5695_v7 = vpop.permute.xlu1 %5694 }
 0x8f8   : > { %v6410_v46 = vld [vmem:[#allocation14] sm:$0xff]  ;;  %v5697_v28 = vpop.permute.xlu0 %5696  ;;  %v5706_v18 = vadd.f32 %v5695_v7, %v5669_v52 }
 0x8f9   : > { %v6419_v50 = vadd.f32 %v10093_v4, %v6410_v46  ;;  %v5707_v13 = vadd.f32 %v5697_v28, %v5670_v0  ;;  %v2142_v19 = vld [vmem:[#allocation11 + $0x140] sm:$0xf] }
 0x8fa   : > { %5711 = vst.msk [vmem:[#allocation13 + $0x18] sm:$0xff] %vm5530_vm14, %v5706_v18  ;;  %v4630_v47 = vld [vmem:[#allocation12 + $0x50] sm:$0xff] }
 0x8fb   : > { %v6421_v11 = vmax.f32 %v6419_v50, 0.0  ;;  %5712 = vst.msk [vmem:[#allocation13 + $0x20] sm:$0xf] %vm5560_vm12, %v5707_v13  ;;  %v6311_v21 = vpop.permute.xlu1 %6310  ;;  %v6438_v13 = vld [vmem:[#allocation5 + $0x8] sm:$0xff] }
 0x8fc   : > { %v2257_v36 = vpop.permute.xlu0 %2256  ;;  %v6315_v42 = vadd.f32 %v6311_v21, %v6299_v38 }
 0x8fd   : > { %6423 = vst.msk [vmem:[#allocation14] sm:$0xff] %vm6231_vm15, %v6421_v11  ;;  %v2343_v43 = vadd.f32 %v2257_v36, %v2138_v57  ;;  %v4631_v34 = vld [vmem:[#allocation12 + $0x58] sm:$0xff]  ;;  %v7840_v36 = vld [vmem:[%s10417_s9 + $0x8] ss:$36 sps:$4 sm:$0xff]  }
 0x8fe   : > { %6317 = vst.msk [vmem:[#allocation14 + $0x8] sm:$0xff] %vm6231_vm15, %v6315_v42  ;;  %v4632_v53 = vld [vmem:[#allocation12 + $0x60] sm:$0xf] }
 0x8ff   : > { %2384 = vst.msk [vmem:[#allocation11 + $0x120] sm:$0xff] %vm655_vm2, %v2343_v43  ;;  %v2259_v15 = vpop.permute.xlu1 %2258 }
 0x900   : > { %v2261_v62 = vpop.permute.xlu0 %2260  ;;  %v2344_v37 = vadd.f32 %v2259_v15, %v2139_v31 }
 0x901   : > { %v2345_v12 = vadd.f32 %v2261_v62, %v2140_v24  ;;  %v5722_v29 = vld [vmem:[#allocation13 + $0x18] sm:$0xff] }
 0x902   : > { %2385 = vst.msk [vmem:[#allocation11 + $0x128] sm:$0xff] %vm655_vm2, %v2344_v37  ;;  %v5723_v59 = vld [vmem:[#allocation13 + $0x20] sm:$0xf]  ;;  %v5750_v30 = vadd.f32 %v5739_v14, %v5722_v29  ;;  %v7865_v62 = vld [vmem:[%s10417_s9 + $0x68] ss:$36 sps:$4 sm:$0xff]  }
 0x903   : > { %2386 = vst.msk [vmem:[#allocation11 + $0x130] sm:$0xff] %vm655_vm2, %v2345_v12  ;;  %v2263_v45 = vpop.permute.xlu1 %2262  ;;  %v5751_v25 = vadd.f32 %v5741_v48, %v5723_v59  ;;  %v7843_v12 = vld [vmem:[%s10417_s9 + $0x50] ss:$36 sps:$4 sm:$0xff]   ;;  %v6439_v29 = vld [vmem:[#allocation5 + $0x10] sm:$0x1] }
 0x904   : > { %v2265_v5 = vpop.permute.xlu0 %2264  ;;  %v2346_v20 = vadd.f32 %v2263_v45, %v2141_v6  ;;  %v6429_v23 = vld [vmem:[#allocation14] sm:$0x1]  ;;  %v6430_v8 = vld [vmem:[#allocation14 + $0x1] sm:$0x1]  ;;  %v6432_v61 = vld [vmem:[#allocation14 + $0x4] sm:$0x1] }
 0x905   : > { %5755 = vst.msk [vmem:[#allocation13 + $0x18] sm:$0xff] %vm5530_vm14, %v5750_v30  ;;  %v2347_v54 = vadd.f32 %v2265_v5, %v2142_v19  ;;  %v6431_v22 = vmax.f32 %v6429_v23, %v6430_v8  ;;  %v6433_v17 = vld [vmem:[#allocation14 + $0x5] sm:$0x1]  ;;  %v6322_v16 = vld [vmem:[#allocation14 + $0x8] sm:$0xff]  ;;  %v10150_v19 = vpack.c.bf16 %v6439_v29, %v6439_v29  ;;  %v7866_v23 = vld [vmem:[%s10417_s9 + $0xb0] ss:$36 sps:$4 sm:$0xff]  }
 0x906   : > { %5756 = vst.msk [vmem:[#allocation13 + $0x20] sm:$0xf] %vm5560_vm12, %v5751_v25  ;;  %v6434_v39 = vmax.f32 %v6432_v61, %v6433_v17  ;;  %v6334_v63 = vadd.f32 %v6330_v51, %v6322_v16  ;;  %v2466_v0 = vld [vmem:[#allocation11 + $0x120] sm:$0xff]  ;;  %v7846_v25 = vld [vmem:[%s10417_s9 + $0x98] ss:$36 sps:$4 sm:$0xff]  }
 0x907   : > { %2387 = vst.msk [vmem:[#allocation11 + $0x138] sm:$0xff] %vm655_vm2, %v2346_v20  ;;  %v4693_v26 = vpop.permute.xlu1 %4692  ;;  %v7848_v14 = vld [vmem:[%s10417_s9 + $0x9c] ss:$36 sps:$4 sm:$0xff]   ;;  %v7851_v5 = vld [vmem:[%s10417_s9 + $0xe4] ss:$36 sps:$4 sm:$0xff]  }
 0x908   : > { %2388 = vst.msk [vmem:[#allocation11 + $0x140] sm:$0xf] %vm1075_vm4, %v2347_v54  ;;  %v4695_v58 = vpop.permute.xlu0 %4694  ;;  %v4721_v52 = vadd.f32 %v4693_v26, %v4630_v47  ;;  %v6435_v7 = vmax.f32 %v6431_v22, %v6434_v39  ;;  %v7849_v17 = vld [vmem:[%s10417_s9 + $0xe0] ss:$36 sps:$4 sm:$0xff]   ;;  %v7867_v16 = vld [vmem:[%s10417_s9 + $0xf8] ss:$36 sps:$4 sm:$0xff]  }
 0x909   : > { %6336 = vst.msk [vmem:[#allocation14 + $0x8] sm:$0xff] %vm6231_vm15, %v6334_v63  ;;  %v4722_v46 = vadd.f32 %v4695_v58, %v4631_v34  ;;  %v2467_v40 = vld [vmem:[#allocation11 + $0x128] sm:$0xff]  ;;  %v7854_v51 = vld [vmem:[%s10417_s9 + $0x1c] ss:$36 sps:$4 sm:$0xff]   ;;  %v7861_v29 = vld [vmem:[%s10417_s9 + $0xf0] ss:$36 sps:$4 sm:$0xff]  }
 0x90a   : > { %4734 = vst.msk [vmem:[#allocation12 + $0x50] sm:$0xff] %vm4158_vm6, %v4721_v52  ;;  %v2468_v38 = vld [vmem:[#allocation11 + $0x130] sm:$0xff]  ;;  %v7852_v52 = vld [vmem:[%s10417_s9 + $0x18] ss:$36 sps:$4 sm:$0xff]  }
 0x90b   : > { %6436 = vst.msk [vmem:[#allocation5 + $0x4] sm:$0x1] %vm6427_vm3, %v6435_v7  ;;  %v4697_v1 = vpop.permute.xlu1 %4696  ;;  %v7857_v7 = vld [vmem:[%s10417_s9 + $0x64] ss:$36 sps:$4 sm:$0xff]  }
 0x90c   : > { %4735 = vst.msk [vmem:[#allocation12 + $0x58] sm:$0xff] %vm4158_vm6, %v4722_v46  ;;  %v2585_v28 = vpop.permute.xlu0 %2584  ;;  %v4723_v18 = vadd.f32 %v4697_v1, %v4632_v53  ;;  %v5765_v8 = vld [vmem:[#allocation13 + $0x18] sm:$0xff] }
 0x90d   : > { %v2671_v50 = vadd.f32 %v2585_v28, %v2466_v0  ;;  %v5766_v63 = vld [vmem:[#allocation13 + $0x20] sm:$0xf] }
 0x90e   : > { %4736 = vst.msk [vmem:[#allocation12 + $0x60] sm:$0xf] %vm4216_vm11, %v4723_v18  ;;  %v2469_v41 = vld [vmem:[#allocation11 + $0x138] sm:$0xff] }
 0x90f   : > { %2712 = vst.msk [vmem:[#allocation11 + $0x120] sm:$0xff] %vm655_vm2, %v2671_v50  ;;  %v2587_v11 = vpop.permute.xlu1 %2586  ;;  %v2470_v31 = vld [vmem:[#allocation11 + $0x140] sm:$0xf] }
 0x910   : > { %v2589_v21 = vpop.permute.xlu0 %2588  ;;  %v2672_v33 = vadd.f32 %v2587_v11, %v2467_v40  ;;  %v6341_v26 = vld [vmem:[#allocation14 + $0x8] sm:$0xff] }
 0x911   : > { %v2673_v57 = vadd.f32 %v2589_v21, %v2468_v38  ;;  %v4760_v59 = vld [vmem:[#allocation12 + $0x50] sm:$0xff]  ;;  %v7855_v50 = vld [vmem:[%s10417_s9 + $0x60] ss:$36 sps:$4 sm:$0xff]  }
 0x912   : > { %v6437_v42 = vld [vmem:[#allocation5] sm:$0xff]  ;;  %2713 = vst.msk [vmem:[#allocation11 + $0x128] sm:$0xff] %vm655_vm2, %v2672_v33 }
 0x913   : > { %v10125_v43 = vpack.c.bf16 %v6438_v13, %v6437_v42  ;;  %2714 = vst.msk [vmem:[#allocation11 + $0x130] sm:$0xff] %vm655_vm2, %v2673_v57  ;;  %v2591_v32 = vpop.permute.xlu1 %2590  ;;  %v4761_v48 = vld [vmem:[#allocation12 + $0x58] sm:$0xff]  ;;  %v7860_v13 = vld [vmem:[%s10417_s9 + $0xac] ss:$36 sps:$4 sm:$0xff]   ;;  %v7863_v42 = vld [vmem:[%s10417_s9 + $0xf4] ss:$36 sps:$4 sm:$0xff]  }
 0x914   : > { %v2593_v15 = vpop.permute.xlu0 %2592  ;;  %v2674_v24 = vadd.f32 %v2591_v32, %v2469_v41 }
 0x915   : > { %7505 = vmatmul.mubr.msk.bf16.vlgmr.msra.gmra.mrb[76].mxu1 %vm6231_vm15, %v10125_v43  ;;  %7509 = vmatmul.mubr.msk.bf16.vlgmr.msra.gmra.mrb[92].mxu0 %vm6231_vm15, %v10125_v43  ;;  %v2675_v37 = vadd.f32 %v2593_v15, %v2470_v31  ;;  %v4762_v20 = vld [vmem:[#allocation12 + $0x60] sm:$0xf] }
 0x916   : > { %6724 = vmatpush1.bf16.msra.mxu1 %v7840_v36  ;;  %6714 = vmatprep.mubr.bf16.mxu1 %v7956_v55  ;;  %2715 = vst.msk [vmem:[#allocation11 + $0x138] sm:$0xff] %vm655_vm2, %v2674_v24  ;;  %v2794_v1 = vld [vmem:[#allocation11 + $0x120] sm:$0xff]  ;;  %v7858_v36 = vld [vmem:[%s10417_s9 + $0xa8] ss:$36 sps:$4 sm:$0xff]  }
 0x917   : > { %6725 = vmatprep.subr.bf16.mxu1 %v7845_v60  ;;  %6816 = vmatprep.mubr.bf16.mxu0 %v7956_v55  ;;  %2716 = vst.msk [vmem:[#allocation11 + $0x140] sm:$0xf] %vm1075_vm4, %v2675_v37  ;;  %v4822_v27 = vpop.permute.xlu1 %4821  ;;  %v6361_v60 = vld [vmem:[#allocation9 + $0x68] sm:$0xff] }
 0x918   : > { %7697 = vmatpush3.bf16.msra.mxu0 %v9975_v35  ;;  %v4824_v30 = vpop.permute.xlu0 %4823  ;;  %v4850_v45 = vadd.f32 %v4822_v27, %v4760_v59 }
 0x919   : > { %7698 = vmatprep.subr.bf16.mxu0 %v7865_v62  ;;  %v4851_v6 = vadd.f32 %v4824_v30, %v4761_v48  ;;  %v2795_v53 = vld [vmem:[#allocation11 + $0x128] sm:$0xff] }
 0x91a   : > { %6726 = vmatpush1.bf16.msra.mxu1 %v7843_v12  ;;  %4863 = vst.msk [vmem:[#allocation12 + $0x50] sm:$0xff] %vm4158_vm6, %v4850_v45  ;;  %v2796_v40 = vld [vmem:[#allocation11 + $0x130] sm:$0xff] }
 0x91b   : > { %6727 = vmatprep.subr.bf16.mxu1 %v7848_v14  ;;  %4864 = vst.msk [vmem:[#allocation12 + $0x58] sm:$0xff] %vm4158_vm6, %v4851_v6  ;;  %v4826_v35 = vpop.permute.xlu1 %4825 }
 0x91c   : > { %7699 = vmatpush3.bf16.msra.mxu0 %v7865_v62  ;;  %v5779_v61 = vpop.permute.xlu0 %5778  ;;  %v4852_v54 = vadd.f32 %v4826_v35, %v4762_v20 }
 0x91d   : > { %7506 = vmatmul.mubr.msk.bf16.gmra.mrb[80].mxu1 %vm6231_vm15, %v10150_v19  ;;  %7510 = vmatmul.mubr.msk.bf16.gmra.mrb[96].mxu0 %vm6231_vm15, %v10150_v19  ;;  %v5790_v22 = vadd.f32 %v5779_v61, %v5765_v8  ;;  %v2797_v38 = vld [vmem:[#allocation11 + $0x138] sm:$0xff] }
 0x91e   : > { %6728 = vmatpush1.bf16.msra.mxu1 %v7846_v25  ;;  %7704 = vmatprep.mubr.msk.bf16.mxu0 %vm6231_vm15, %v10125_v43  ;;  %4865 = vst.msk [vmem:[#allocation12 + $0x60] sm:$0xf] %vm4216_vm11, %v4852_v54  ;;  %v2798_v41 = vld [vmem:[#allocation11 + $0x140] sm:$0xf] }
 0x91f   : > { %6729 = vmatprep.subr.bf16.mxu1 %v7851_v5  ;;  %6755 = vmatprep.mubr.bf16.mxu1 %v7956_v55  ;;  %5795 = vst.msk [vmem:[#allocation13 + $0x18] sm:$0xff] %vm5530_vm14, %v5790_v22  ;;  %v5781_v39 = vpop.permute.xlu1 %5780 }
 0x920   : > { %7700 = vmatprep.subr.bf16.mxu0 %v7866_v23  ;;  %v6353_v47 = vpop.permute.xlu0 %6352  ;;  %v5791_v34 = vadd.f32 %v5781_v39, %v5766_v63 }
 0x921   : > { %7701 = vmatpush3.bf16.msra.mxu0 %v7866_v23  ;;  %v6357_v58 = vadd.f32 %v6353_v47, %v6341_v26  ;;  %v4889_v24 = vld [vmem:[#allocation12 + $0x50] sm:$0xff] }
 0x922   : > { %6730 = vmatpush1.bf16.msra.mxu1 %v7849_v17  ;;  %7702 = vmatprep.subr.bf16.mxu0 %v7867_v16  ;;  %5796 = vst.msk [vmem:[#allocation13 + $0x20] sm:$0xf] %vm5560_vm12, %v5791_v34  ;;  %v4890_v14 = vld [vmem:[#allocation12 + $0x58] sm:$0xff] }
 0x923   : > { %6825 = vmatprep.subr.bf16.mxu1 %v7854_v51  ;;  %6359 = vst.msk [vmem:[#allocation14 + $0x8] sm:$0xff] %vm6231_vm15, %v6357_v58  ;;  %v2913_v46 = vpop.permute.xlu1 %2912 }
 0x924   : > { %v2915_v0 = vpop.permute.xlu0 %2914  ;;  %v2999_v28 = vadd.f32 %v2913_v46, %v2794_v1  ;;  %v5140_v1 = vld [vmem:[#allocation7 + $0xd8] sm:$0xff] }
 0x925   : > { %7507 = vmatmul.mubr.msk.bf16.vlgmr.msra.gmra.mrb[84].mxu1 %vm6231_vm15, %v10125_v43  ;;  %7703 = vmatpush3.bf16.msra.mxu0 %v7867_v16  ;;  %v3000_v18 = vadd.f32 %v2915_v0, %v2795_v53  ;;  %v4891_v59 = vld [vmem:[#allocation12 + $0x60] sm:$0xf] }
 0x926   : > { %6826 = vmatpush1.bf16.msra.mxu1 %v7852_v52  ;;  %6765 = vmatprep.mubr.bf16.mxu1 %v7956_v55  ;;  %3040 = vst.msk [vmem:[#allocation11 + $0x120] sm:$0xff] %vm655_vm2, %v2999_v28  ;;  %v5805_v6 = vld [vmem:[#allocation13 + $0x18] sm:$0xff] }
 0x927   : > { %6827 = vmatprep.subr.bf16.mxu1 %v7857_v7  ;;  %7728 = vmatprep.subr.bf16.mxu0 %v7946_v2  ;;  %3041 = vst.msk [vmem:[#allocation11 + $0x128] sm:$0xff] %vm655_vm2, %v3000_v18  ;;  %v2917_v11 = vpop.permute.xlu1 %2916 }
 0x928   : > { %7705 = vmatmul.mubr.msk.bf16.vlgmr.msra.gmra.mrb[100].mxu0 %vm6231_vm15, %v10150_v19  ;;  %v2919_v21 = vpop.permute.xlu0 %2918  ;;  %v3001_v33 = vadd.f32 %v2917_v11, %v2796_v40  ;;  %v5141_v40 = vld [vmem:[#allocation7 + $0xe8] sm:$0xff]  ;;  %v5142_v11 = vld [vmem:[#allocation7 + $0xf8] sm:$0x3] }
 0x929   : > { %7732 = vmatprep.mubr.msk.bf16.mxu0 %vm7947_vm1, %v7946_v2  ;;  %v3002_v57 = vadd.f32 %v2919_v21, %v2797_v38  ;;  %v5806_v5 = vld [vmem:[#allocation13 + $0x20] sm:$0xf] }
 0x92a   : > { %6828 = vmatpush1.bf16.msra.mxu1 %v7855_v50  ;;  %3042 = vst.msk [vmem:[#allocation11 + $0x130] sm:$0xff] %vm655_vm2, %v3001_v33  ;;  %v6363_v32 = vld [vmem:[#allocation14 + $0x8] sm:$0xff] }
 0x92b   : > { %6829 = vmatprep.subr.bf16.mxu1 %v7860_v13  ;;  %3043 = vst.msk [vmem:[#allocation11 + $0x138] sm:$0xff] %vm655_vm2, %v3002_v57  ;;  %v2921_v31 = vpop.permute.xlu1 %2920  ;;  %v6365_v15 = vadd.f32 %v6363_v32, %v6361_v60  ;;  %v5192_v13 = vrot.slane %v5140_v1, 6 }
 0x92c   : > { %v4951_v62 = vpop.permute.xlu0 %4950  ;;  %v3003_v37 = vadd.f32 %v2921_v31, %v2798_v41  ;;  %v5196_v31 = vrot.slane %v5142_v11, 6 }
 0x92d   : > { %7508 = vmatmul.mubr.msk.bf16.gmra.mrb[88].mxu1 %vm6231_vm15, %v10150_v19  ;;  %v4979_v12 = vadd.f32 %v4951_v62, %v4889_v24  ;;  %6367 = vst.msk [vmem:[#allocation14 + $0x8] sm:$0xff] %vm6231_vm15, %v6365_v15  ;;  %v3122_v8 = vld [vmem:[#allocation11 + $0x120] sm:$0xff]  ;;  %v5193_v32 = vsel %vm5170_vm13, %v5190_v10, %v5192_v13  ;;  %v5903_v15 = vld [vmem:[#allocation8 + $0x88] sm:$0xff] }
 0x92e   : > { %6830 = vmatpush1.bf16.msra.mxu1 %v7858_v36  ;;  %6857 = vmatprep.mubr.bf16.mxu1 %v7956_v55  ;;  %3044 = vst.msk [vmem:[#allocation11 + $0x140] sm:$0xf] %vm1075_vm4, %v3003_v37  ;;  %v3123_v54 = vld [vmem:[#allocation11 + $0x128] sm:$0xff]  ;;  %v5904_v62 = vld [vmem:[#allocation8 + $0xa0] sm:$0x3]  ;;  %v5923_v10 = vrot.slane %v5903_v15, 6 }
 0x92f   : > { %6831 = vmatprep.subr.bf16.mxu1 %v7863_v42  ;;  %4992 = vst.msk [vmem:[#allocation12 + $0x50] sm:$0xff] %vm4158_vm6, %v4979_v12  ;;  %v4953_v27 = vpop.permute.xlu1 %4952  ;;  %v5194_v42 = vrot.slane %v5141_v40, 6 }
 0x930   : > { %v4955_v48 = vpop.permute.xlu0 %4954  ;;  %v4980_v30 = vadd.f32 %v4953_v27, %v4890_v14 }
 0x931   : > { %v4981_v45 = vadd.f32 %v4955_v48, %v4891_v59  ;;  %v5195_v44 = vsel %vm5170_vm13, %v5192_v13, %v5194_v42 }
 0x932   : > { %6832 = vmatpush1.bf16.msra.mxu1 %v7861_v29  ;;  %4993 = vst.msk [vmem:[#allocation12 + $0x58] sm:$0xff] %vm4158_vm6, %v4980_v30  ;;  %v3125_v39 = vld [vmem:[#allocation11 + $0x138] sm:$0xff] }
 0x933   : > { %7708 = vmatprep.subr.bf16.mxu1 %v7946_v2  ;;  %4994 = vst.msk [vmem:[#allocation12 + $0x60] sm:$0xf] %vm4216_vm11, %v4981_v45  ;;  %v5828_v25 = vpop.permute.xlu1 %5827  ;;  %v5197_v45 = vsel %vm5170_vm13, %v5194_v42, %v5196_v31 }
 0x934   : > { %v5830_v35 = vpop.permute.xlu0 %5829  ;;  %v5839_v20 = vadd.f32 %v5828_v25, %v5805_v6  ;;  %v6372_v37 = vld [vmem:[#allocation14 + $0x8] sm:$0xff]  ;;  %v5925_v25 = vrot.slane %v5904_v62, 6 }
 0x935   : > { %7511 = vmatmul.mubr.msk.bf16.vlgmr.msra.gmra.mrb[92].mxu1 %vm6231_vm15, %v10125_v43  ;;  %v5840_v23 = vadd.f32 %v5830_v35, %v5806_v5  ;;  %v3124_v43 = vld [vmem:[#allocation11 + $0x130] sm:$0xff]  ;;  %v3126_v47 = vld [vmem:[#allocation11 + $0x140] sm:$0xf] }
 0x936   : > { %6867 = vmatprep.mubr.bf16.mxu1 %v7956_v55  ;;  %5844 = vst.msk [vmem:[#allocation13 + $0x18] sm:$0xff] %vm5530_vm14, %v5839_v20  ;;  %v5019_v58 = vld [vmem:[#allocation12 + $0x50] sm:$0xff]  ;;  %v6393_v5 = vld [vmem:[#allocation9 + $0x98] sm:$0x3] }
 0x937   : > { %5845 = vst.msk [vmem:[#allocation13 + $0x20] sm:$0xf] %vm5560_vm12, %v5840_v23  ;;  %v3241_v61 = vpop.permute.xlu1 %3240 }
 0x938   : > { %v3243_v22 = vpop.permute.xlu0 %3242  ;;  %v3327_v17 = vadd.f32 %v3241_v61, %v3122_v8 }
 0x939   : > { %v3328_v16 = vadd.f32 %v3243_v22, %v3123_v54  ;;  %v5924_v22 = vsel %vm5170_vm13, %v5921_v56, %v5923_v10 }
 0x93a   : > { %3368 = vst.msk [vmem:[#allocation11 + $0x120] sm:$0xff] %vm655_vm2, %v3327_v17  ;;  %v5021_v0 = vld [vmem:[#allocation12 + $0x60] sm:$0xf] }
 0x93b   : > { %3369 = vst.msk [vmem:[#allocation11 + $0x128] sm:$0xff] %vm655_vm2, %v3328_v16  ;;  %v3245_v51 = vpop.permute.xlu1 %3244  ;;  %v6402_v16 = vrot.slane %v6393_v5, 2  ;;  %v7871_v5 = vld [vmem:[%s10419_s11 + $0x18] sm:$0xff]  }
 0x93c   : > { %v3247_v63 = vpop.permute.xlu0 %3246  ;;  %v3329_v26 = vadd.f32 %v3245_v51, %v3124_v43 }
 0x93d   : > { %7512 = vmatmul.mubr.msk.bf16.gmra.mrb[96].mxu1 %vm6231_vm15, %v10150_v19  ;;  %v3330_v55 = vadd.f32 %v3247_v63, %v3125_v39  ;;  %v5020_v19 = vld [vmem:[#allocation12 + $0x58] sm:$0xff]  ;;  %v5855_v38 = vld [vmem:[#allocation13 + $0x18] sm:$0xff]  ;;  %v5926_v39 = vsel %vm5170_vm13, %v5923_v10, %v5925_v25  ;;  %v7870_v25 = vld [vmem:[%s10419_s11 + $0x10] sm:$0xff]  }
 0x93e   : > { %7724 = vmatprep.mubr.msk.bf16.mxu1 %vm7947_vm1, %v7946_v2  ;;  %3370 = vst.msk [vmem:[#allocation11 + $0x130] sm:$0xff] %vm655_vm2, %v3329_v26  ;;  %v5856_v33 = vld [vmem:[#allocation13 + $0x20] sm:$0xf] }
 0x93f   : > { %3371 = vst.msk [vmem:[#allocation11 + $0x138] sm:$0xff] %vm655_vm2, %v3330_v55  ;;  %v3249_v34 = vpop.permute.xlu1 %3248 }
 0x940   : > { %v5085_v52 = vpop.permute.xlu0 %5084  ;;  %v3331_v7 = vadd.f32 %v3249_v34, %v3126_v47 }
 0x941   : > { %v5113_v46 = vadd.f32 %v5085_v52, %v5019_v58  ;;  %v3450_v29 = vld [vmem:[#allocation11 + $0x120] sm:$0xff] }
 0x942   : > { %3372 = vst.msk [vmem:[#allocation11 + $0x140] sm:$0xf] %vm1075_vm4, %v3331_v7  ;;  %v3451_v20 = vld [vmem:[#allocation11 + $0x128] sm:$0xff]  ;;  %v7879_v52 = vld [vmem:[%s10412_s4] ss:$0 sm:$0xff] }
 0x943   : > { %5126 = vst.msk [vmem:[#allocation12 + $0x50] sm:$0xff] %vm4158_vm6, %v5113_v46  ;;  %v5087_v53 = vpop.permute.xlu1 %5086  ;;  %v6403_v46 = vsel %vm4387_vm8, %v6400_v49, %v6402_v16 }
 0x944   : > { %v5089_v28 = vpop.permute.xlu0 %5088  ;;  %v5114_v18 = vadd.f32 %v5087_v53, %v5020_v19 }
 0x945   : > { %v5115_v50 = vadd.f32 %v5089_v28, %v5021_v0  ;;  %v3452_v8 = vld [vmem:[#allocation11 + $0x130] sm:$0xff] }
 0x946   : > { %5127 = vst.msk [vmem:[#allocation12 + $0x58] sm:$0xff] %vm4158_vm6, %v5114_v18  ;;  %v3453_v55 = vld [vmem:[#allocation11 + $0x138] sm:$0xff] }
 0x947   : > { %5128 = vst.msk [vmem:[#allocation12 + $0x60] sm:$0xf] %vm4216_vm11, %v5115_v50  ;;  %v5881_v21 = vpop.permute.xlu1 %5880  ;;  %v7880_v50 = vld [vmem:[%s10491_s24] ss:$0 sm:$0xff] }
 0x948   : > { %v5883_v57 = vpop.permute.xlu0 %5882  ;;  %v5892_v36 = vadd.f32 %v5881_v21, %v5855_v38 }
 0x949   : > { %v5893_v60 = vadd.f32 %v5883_v57, %v5856_v33  ;;  %v3454_v58 = vld [vmem:[#allocation11 + $0x140] sm:$0xf] }
 0x94a   : > { %v5153_v41 = vld [vmem:[#allocation12 + $0x50] sm:$0xff]  ;;  %5897 = vst.msk [vmem:[#allocation13 + $0x18] sm:$0xff] %vm5530_vm14, %v5892_v36 }
 0x94b   : > { %v5221_v24 = vadd.f32 %v5193_v32, %v5153_v41  ;;  %5898 = vst.msk [vmem:[#allocation13 + $0x20] sm:$0xf] %vm5560_vm12, %v5893_v60  ;;  %v6384_v12 = vpop.permute.xlu1 %6383  ;;  %v7881_v41 = vld [vmem:[%s10414_s6] ss:$0 sm:$0xff] }
 0x94c   : > { %v3569_v14 = vpop.permute.xlu0 %3568  ;;  %v6388_v27 = vadd.f32 %v6384_v12, %v6372_v37 }
 0x94d   : > { %5234 = vst.msk [vmem:[#allocation12 + $0x50] sm:$0xff] %vm4158_vm6, %v5221_v24  ;;  %v5154_v59 = vld [vmem:[#allocation12 + $0x58] sm:$0xff]  ;;  %v3655_v48 = vadd.f32 %v3569_v14, %v3450_v29 }
 0x94e   : > { %v5155_v30 = vld [vmem:[#allocation12 + $0x60] sm:$0xf]  ;;  %v5222_v6 = vadd.f32 %v5195_v44, %v5154_v59  ;;  %6390 = vst.msk [vmem:[#allocation14 + $0x8] sm:$0xff] %vm6231_vm15, %v6388_v27 }
 0x94f   : > { %v5223_v35 = vadd.f32 %v5197_v45, %v5155_v30  ;;  %3696 = vst.msk [vmem:[#allocation11 + $0x120] sm:$0xff] %vm655_vm2, %v3655_v48  ;;  %v3571_v23 = vpop.permute.xlu1 %3570 }
 0x950   : > { %5235 = vst.msk [vmem:[#allocation12 + $0x58] sm:$0xff] %vm4158_vm6, %v5222_v6  ;;  %v3573_v61 = vpop.permute.xlu0 %3572  ;;  %v3656_v54 = vadd.f32 %v3571_v23, %v3451_v20  ;;  %v7868_v6 = vld [vmem:[%s10419_s11] sm:$0xff]   ;;  %v7873_v20 = vld [vmem:[%s10419_s11 + $0x28] sm:$0xff]   ;;  %v7874_v23 = vld [vmem:[%s10419_s11 + $0x30] sm:$0xff]  }
 0x951   : > { %5236 = vst.msk [vmem:[#allocation12 + $0x60] sm:$0xf] %vm4216_vm11, %v5223_v35  ;;  %v5908_v17 = vld [vmem:[#allocation13 + $0x18] sm:$0xff]  ;;  %v3657_v43 = vadd.f32 %v3573_v61, %v3452_v8  ;;  %7709 = vmatpush3.bf16.msra.mxu1 %v7868_v6  ;;  %v7872_v35 = vld [vmem:[%s10419_s11 + $0x20] sm:$0xff]   ;;  %v7875_v8 = vld [vmem:[%s10419_s11 + $0x38] sm:$0xff]  }
 0x952   : > { %v5909_v51 = vld [vmem:[#allocation13 + $0x20] sm:$0xf]  ;;  %v5935_v63 = vadd.f32 %v5924_v22, %v5908_v17  ;;  %3697 = vst.msk [vmem:[#allocation11 + $0x128] sm:$0xff] %vm655_vm2, %v3656_v54  ;;  %7710 = vmatprep.subr.bf16.mxu1 %v7946_v2  ;;  %v7876_v61 = vld [vmem:[%s10421_s13] sm:$0xff]  }
 0x953   : > { %v5936_v26 = vadd.f32 %v5926_v39, %v5909_v51  ;;  %3698 = vst.msk [vmem:[#allocation11 + $0x130] sm:$0xff] %vm655_vm2, %v3657_v43  ;;  %v3575_v47 = vpop.permute.xlu1 %3574  ;;  %7729 = vmatpush3.bf16.msra.mxu0 %v7876_v61 }
 0x954   : > { %v5247_v34 = vld [vmem:[#allocation12 + $0x50] sm:$0xff]  ;;  %5940 = vst.msk [vmem:[#allocation13 + $0x18] sm:$0xff] %vm5530_vm14, %v5935_v63  ;;  %v3577_v3 = vpop.permute.xlu0 %3576  ;;  %v3658_v56 = vadd.f32 %v3575_v47, %v3453_v55  ;;  %7730 = vmatprep.subr.bf16.mxu0 %v7946_v2 }
 0x955   : > { %v5267_v7 = vadd.f32 %v7879_v52, %v5247_v34  ;;  %5941 = vst.msk [vmem:[#allocation13 + $0x20] sm:$0xf] %vm5560_vm12, %v5936_v26  ;;  %v6395_v1 = vld [vmem:[#allocation14 + $0x8] sm:$0xff]  ;;  %v3659_v19 = vadd.f32 %v3577_v3, %v3454_v58 }
 0x956   : > { %v3737_v53 = vld [vmem:[#allocation11 + $0x120] sm:$0xff]  ;;  %v6407_v0 = vadd.f32 %v6403_v46, %v6395_v1  ;;  %3699 = vst.msk [vmem:[#allocation11 + $0x138] sm:$0xff] %vm655_vm2, %v3658_v56 }
 0x957   : > { %v5280_v28 = vmax.f32 %v5267_v7, 0.0  ;;  %v5248_v18 = vld [vmem:[#allocation12 + $0x58] sm:$0xff]  ;;  %v3785_v13 = vadd.f32 %v7880_v50, %v3737_v53  ;;  %3700 = vst.msk [vmem:[#allocation11 + $0x140] sm:$0xf] %vm1075_vm4, %v3659_v19 }
 0x958   : > { %v5249_v40 = vld [vmem:[#allocation12 + $0x60] sm:$0xf]  ;;  %v5268_v11 = vadd.f32 %v7879_v52, %v5248_v18  ;;  %6409 = vst.msk [vmem:[#allocation14 + $0x8] sm:$0xff] %vm6231_vm15, %v6407_v0 }
 0x959   : > { %5293 = vst.msk [vmem:[#allocation12 + $0x50] sm:$0xff] %vm4158_vm6, %v5280_v28  ;;  %v5269_v9 = vadd.f32 %v7879_v52, %v5249_v40  ;;  %v3826_v49 = vmax.f32 %v3785_v13, 0.0  ;;  %v3738_v38 = vld [vmem:[#allocation11 + $0x128] sm:$0xff] }
 0x95a   : > { %v5281_v21 = vmax.f32 %v5268_v11, 0.0  ;;  %v3739_v33 = vld [vmem:[#allocation11 + $0x130] sm:$0xff]  ;;  %v3786_v57 = vadd.f32 %v7880_v50, %v3738_v38 }
 0x95b   : > { %v5282_v36 = vmax.f32 %v5269_v9, 0.0  ;;  %v5945_v42 = vld [vmem:[#allocation13 + $0x18] sm:$0xff]  ;;  %3867 = vst.msk [vmem:[#allocation11 + $0x120] sm:$0xff] %vm655_vm2, %v3826_v49  ;;  %v3787_v60 = vadd.f32 %v7880_v50, %v3739_v33 }
 0x95c   : > { %5294 = vst.msk [vmem:[#allocation12 + $0x58] sm:$0xff] %vm4158_vm6, %v5281_v21  ;;  %v5946_v32 = vld [vmem:[#allocation13 + $0x20] sm:$0xf]  ;;  %v5957_v31 = vadd.f32 %v7881_v41, %v5945_v42  ;;  %v3827_v15 = vmax.f32 %v3786_v57, 0.0 }
 0x95d   : > { %5295 = vst.msk [vmem:[#allocation12 + $0x60] sm:$0xf] %vm4216_vm11, %v5282_v36  ;;  %v5958_v24 = vadd.f32 %v7881_v41, %v5946_v32  ;;  %v3828_v62 = vmax.f32 %v3787_v60, 0.0  ;;  %v3740_v37 = vld [vmem:[#allocation11 + $0x138] sm:$0xff] }
 0x95e   : > { %v5962_v12 = vmax.f32 %v5957_v31, 0.0  ;;  %3868 = vst.msk [vmem:[#allocation11 + $0x128] sm:$0xff] %vm655_vm2, %v3827_v15  ;;  %v3741_v29 = vld [vmem:[#allocation11 + $0x140] sm:$0xf]  ;;  %v3788_v14 = vadd.f32 %v7880_v50, %v3740_v37 }
 0x95f   : > { %v5963_v27 = vmax.f32 %v5958_v24, 0.0  ;;  %v6411_v44 = vld [vmem:[#allocation14 + $0x8] sm:$0xff]  ;;  %3869 = vst.msk [vmem:[#allocation11 + $0x130] sm:$0xff] %vm655_vm2, %v3828_v62  ;;  %v3789_v59 = vadd.f32 %v7880_v50, %v3741_v29 }
 0x960   : > { %5967 = vst.msk [vmem:[#allocation13 + $0x18] sm:$0xff] %vm5530_vm14, %v5962_v12  ;;  %v6420_v10 = vadd.f32 %v10093_v4, %v6411_v44  ;;  %v3829_v48 = vmax.f32 %v3788_v14, 0.0  ;;  %v7869_v4 = vld [vmem:[%s10419_s11 + $0x8] sm:$0xff]  }
 0x961   : > { %5968 = vst.msk [vmem:[#allocation13 + $0x20] sm:$0xf] %vm5560_vm12, %v5963_v27  ;;  %v3830_v30 = vmax.f32 %v3789_v59, 0.0  ;;  %7711 = vmatpush3.bf16.msra.mxu1 %v7869_v4 }
 0x962   : > { %v6422_v45 = vmax.f32 %v6420_v10, 0.0  ;;  %3870 = vst.msk [vmem:[#allocation11 + $0x138] sm:$0xff] %vm655_vm2, %v3829_v48  ;;  %7712 = vmatprep.subr.bf16.mxu1 %v7946_v2 }
 0x963   : > { %3871 = vst.msk [vmem:[#allocation11 + $0x140] sm:$0xf] %vm1075_vm4, %v3830_v30 }
 0x964   : > { %6424 = vst.msk [vmem:[#allocation14 + $0x8] sm:$0xff] %vm6231_vm15, %v6422_v45 }
 0x965   : > { %7713 = vmatpush3.bf16.msra.mxu1 %v7870_v25 }
 0x966   : > { %7714 = vmatprep.subr.bf16.mxu1 %v7946_v2 }
 0x969   : > { %7715 = vmatpush3.bf16.msra.mxu1 %v7871_v5 }
 0x96a   : > { %7716 = vmatprep.subr.bf16.mxu1 %v7946_v2 }
 0x96d   : > { %7717 = vmatpush3.bf16.msra.mxu1 %v7872_v35 }
 0x96e   : > { %7718 = vmatprep.subr.bf16.mxu1 %v7946_v2 }
 0x971   : > { %7719 = vmatpush3.bf16.msra.mxu1 %v7873_v20 }
 0x972   : > { %7720 = vmatprep.subr.bf16.mxu1 %v7946_v2 }
 0x975   : > { %7721 = vmatpush3.bf16.msra.mxu1 %v7874_v23 }
 0x976   : > { %7722 = vmatprep.subr.bf16.mxu1 %v7946_v2 }
 0x979   : > { %7723 = vmatpush3.bf16.msra.mxu1 %v7875_v8 }
 0x9e8   : > { %v6706_v54 = vpop.f32.mrb[76].mxu1  ;;  %v6808_v22 = vpop.f32.mrb[92].mxu0 }
 0x9e9   : > { %6928 = vst [vmem:[#allocation10 + $0x20] sm:$0xff] %v6808_v22  ;;  %v6708_v17 = vpop.f32.mrb[77].mxu1  ;;  %v6810_v16 = vpop.f32.mrb[93].mxu0 }
 0x9ea   : > { %6925 = vst [vmem:[#allocation10 + $0x8] sm:$0xff] %v6708_v17  ;;  %6929 = vst [vmem:[#allocation10 + $0x28] sm:$0xff] %v6810_v16  ;;  %v6710_v43 = vpop.f32.mrb[78].mxu1  ;;  %v6812_v51 = vpop.f32.mrb[94].mxu0 }
 0x9eb   : > { %6933 = vst [vmem:[#allocation10 + $0x48] sm:$0xff] %v6710_v43  ;;  %6937 = vst [vmem:[#allocation10 + $0x68] sm:$0xff] %v6812_v51  ;;  %v6712_v39 = vpop.f32.mrb[79].mxu1  ;;  %v6814_v63 = vpop.f32.mrb[95].mxu0 }
 0x9ec   : > { %6934 = vst [vmem:[#allocation10 + $0x50] sm:$0xff] %v6712_v39  ;;  %6938 = vst [vmem:[#allocation10 + $0x70] sm:$0xff] %v6814_v63 }
 0x9f0   : > { %v6716_v26 = vpop.f32.mrb[80].mxu1  ;;  %v6818_v55 = vpop.f32.mrb[96].mxu0  ;;  %v7000_v45 = vld [vmem:[#allocation10 + $0x20] sm:$0xf0] }
 0x9f1   : > { %v6718_v47 = vpop.f32.mrb[81].mxu1  ;;  %v6820_v56 = vpop.f32.mrb[97].mxu0  ;;  %v6955_v9 = vld [vmem:[#allocation10 + $0x8] sm:$0xfe]  ;;  %v7006_v20 = vrot.slane %v7000_v45, 4 }
 0x9f2   : > { %v6952_v34 = vld [vmem:[#allocation10 + $0x48] sm:$0x1]  ;;  %v6720_v3 = vpop.f32.mrb[82].mxu1  ;;  %v6822_v52 = vpop.f32.mrb[98].mxu0  ;;  %v6961_v33 = vrot.slane %v6955_v9, 1 }
 0x9f3   : > { %6954 = vst [vmem:[#allocation15 + $0x8] sm:$0x1] %v6952_v34  ;;  %v6721_v58 = vpop.f32.mrb[83].mxu1  ;;  %v6956_v7 = vld [vmem:[#allocation10 + $0x50] sm:$0x3]  ;;  %v6823_v46 = vpop.f32.mrb[99].mxu0 }
 0x9f4   : > { %v6962_v19 = vrot.slane %v6956_v7, 1  ;;  %v7001_v44 = vld [vmem:[#allocation10 + $0x68] sm:$0x1f]  ;;  %v7016_v5 = vld [vmem:[#allocation10 + $0x70] sm:$0x3f] }
 0x9f5   : > { %v7007_v4 = vrot.slane %v7001_v44, 4  ;;  %v7015_v23 = vld [vmem:[#allocation10 + $0x28] sm:$0xe0] }
 0x9f6   : > { %v6963_v60 = vsel %vm4257_vm7, %v6961_v33, %v6962_v19  ;;  %v7021_v51 = vrot.slane %v7015_v23, 5 }
 0x9f7   : > { %v6966_v14 = vadd.f32 %v6963_v60, %v6706_v54  ;;  %v7008_v61 = vsel %vm725_vm0, %v7006_v20, %v7007_v4  ;;  %v7022_v54 = vrot.slane %v7016_v5, 5 }
 0x9f8   : > { %v6757_v1 = vpop.f32.mrb[84].mxu1 }
 0x9f9   : > { %6926 = vst [vmem:[#allocation10 + $0x10] sm:$0xff] %v6757_v1  ;;  %v6759_v53 = vpop.f32.mrb[85].mxu1  ;;  %v7023_v47 = vsel %vm5036_vm10, %v7021_v51, %v7022_v54 }
 0x9fa   : > { %v6958_v0 = vld [vmem:[#allocation15 + $0x8] sm:$0x1]  ;;  %6927 = vst [vmem:[#allocation10 + $0x18] sm:$0xff] %v6759_v53  ;;  %v6761_v28 = vpop.f32.mrb[86].mxu1 }
 0x9fb   : > { %v6967_v18 = vadd.f32 %v6962_v19, %v6958_v0  ;;  %6935 = vst [vmem:[#allocation10 + $0x58] sm:$0xff] %v6761_v28  ;;  %v6763_v50 = vpop.f32.mrb[87].mxu1  ;;  %v7706_v13 = vpop.f32.mrb[100].mxu0 }
 0x9fc   : > { %6936 = vst [vmem:[#allocation10 + $0x60] sm:$0xff] %v6763_v50  ;;  %6950 = vst [vmem:[#allocation10 + $0xd0] sm:$0x1] %v7706_v13  ;;  %v6910_v40 = vpop.f32.mrb[101].mxu0 }
 0x9fd   : > { %6969 = vst [vmem:[#allocation15 + $0x8] sm:$0x1] %v6967_v18  ;;  %v7707_v11 = vpop.f32.mrb[102].mxu0  ;;  %v7515_v18 = vld [vmem:[%s10418_s10] ss:$0 sm:$0xff] }
 0x9fe   : > { %v10324_v49 = vpop.f32.mrb[103].mxu0 }
 0xa00   : > { %v6970_v38 = vld [vmem:[#allocation10 + $0x10] sm:$0xfc]  ;;  %v6767_v21 = vpop.f32.mrb[88].mxu1 }
 0xa01   : > { %v6769_v57 = vpop.f32.mrb[89].mxu1  ;;  %v6976_v32 = vrot.slane %v6970_v38, 2  ;;  %v6985_v24 = vld [vmem:[#allocation10 + $0x18] sm:$0xf8] }
 0xa02   : > { %v6971_v36 = vld [vmem:[#allocation10 + $0x58] sm:$0x7]  ;;  %v6771_v42 = vpop.f32.mrb[90].mxu1  ;;  %v6991_v27 = vrot.slane %v6985_v24, 3  ;;  %v7877_v24 = vld [vmem:[%s10421_s13 + $0x8] sm:$0xff]  }
 0xa03   : > { %v6977_v41 = vrot.slane %v6971_v36, 2  ;;  %v6986_v31 = vld [vmem:[#allocation10 + $0x60] sm:$0xf]  ;;  %v6772_v15 = vpop.f32.mrb[91].mxu1  ;;  %v7061_v42 = vld [vmem:[#allocation10 + $0xd0] sm:$0x1]  ;;  %7731 = vmatpush3.bf16.msra.mxu0 %v7877_v24 }
 0xa04   : > { %v6973_v62 = vld [vmem:[#allocation15 + $0x8] sm:$0x1]  ;;  %v6992_v29 = vrot.slane %v6986_v31, 3  ;;  %7736 = vmatprep.subr.bf16.mxu0 %v7946_v2 }
 0xa05   : > { %v6978_v37 = vsel %vm4387_vm8, %v6976_v32, %v6977_v41  ;;  %v6982_v12 = vadd.f32 %v6977_v41, %v6973_v62  ;;  %v7103_v62 = vld [vmem:[%s10420_s12] sm:$0x1] }
 0xa06   : > { %v6981_v59 = vadd.f32 %v6978_v37, %v6966_v14  ;;  %v6993_v48 = vsel %vm4646_vm9, %v6991_v27, %v6992_v29  ;;  %v7256_v27 = vld [vmem:[%s10497_s16] sm:$0xf] }
 0xa07   : > { %6984 = vst [vmem:[#allocation15 + $0x8] sm:$0x1] %v6982_v12 }
 0xa08   : > { %v6859_v10 = vpop.f32.mrb[92].mxu1  ;;  %v6996_v35 = vadd.f32 %v6993_v48, %v6981_v59  ;;  %v7262_v48 = vsel %vm725_vm0, %v7256_v27, 0 }
 0xa09   : > { %6930 = vst [vmem:[#allocation10 + $0x30] sm:$0xff] %v6859_v10  ;;  %v6861_v30 = vpop.f32.mrb[93].mxu1 }
 0xa0a   : > { %6931 = vst [vmem:[#allocation10 + $0x38] sm:$0xff] %v6861_v30  ;;  %v6863_v6 = vpop.f32.mrb[94].mxu1  ;;  %v7011_v17 = vadd.f32 %v7008_v61, %v6996_v35  ;;  %v7198_v30 = vld [vmem:[%s10499_s18] sm:$0x1] }
 0xa0b   : > { %6939 = vst [vmem:[#allocation10 + $0x78] sm:$0xff] %v6863_v6  ;;  %v6865_v25 = vpop.f32.mrb[95].mxu1 }
 0xa0c   : > { %v7026_v52 = vadd.f32 %v7023_v47, %v7011_v17  ;;  %v7052_v46 = vrot.slane %v6865_v25, 7 }
 0xa0e   : > { %v6988_v8 = vld [vmem:[#allocation15 + $0x8] sm:$0x1] }
 0xa0f   : > { %v6997_v22 = vadd.f32 %v6992_v29, %v6988_v8 }
 0xa10   : > { %v7030_v16 = vld [vmem:[#allocation10 + $0x30] sm:$0xc0]  ;;  %v6869_v43 = vpop.f32.mrb[96].mxu1 }
 0xa11   : > { %6999 = vst [vmem:[#allocation15 + $0x8] sm:$0x1] %v6997_v22  ;;  %v7045_v39 = vld [vmem:[#allocation10 + $0x38] sm:$0x80]  ;;  %v6871_v63 = vpop.f32.mrb[97].mxu1  ;;  %v7036_v34 = vrot.slane %v7030_v16, 6 }
 0xa12   : > { %v7031_v26 = vld [vmem:[#allocation10 + $0x78] sm:$0x7f]  ;;  %v6873_v55 = vpop.f32.mrb[98].mxu1  ;;  %v7051_v3 = vrot.slane %v7045_v39, 7 }
 0xa13   : > { %v7037_v58 = vrot.slane %v7031_v26, 6  ;;  %v6874_v56 = vpop.f32.mrb[99].mxu1 }
 0xa14   : > { %v7053_v19 = vsel %vm5730_vm5, %v7051_v3, %v7052_v46 }
 0xa15   : > { %v7038_v7 = vsel %vm5170_vm13, %v7036_v34, %v7037_v58 }
 0xa16   : > { %v7041_v1 = vadd.f32 %v7038_v7, %v7026_v52 }
 0xa18   : > { %v7003_v53 = vld [vmem:[#allocation15 + $0x8] sm:$0x1]  ;;  %v7056_v0 = vadd.f32 %v7053_v19, %v7041_v1 }
 0xa19   : > { %v7012_v28 = vadd.f32 %v7007_v4, %v7003_v53 }
 0xa1a   : > { %v7064_v50 = vadd.f32 %v7056_v0, %v10324_v49 }
 0xa1b   : > { %7014 = vst [vmem:[#allocation15 + $0x8] sm:$0x1] %v7012_v28 }
 0xa1c   : > { %v7077_v13 = vadd.f32 %v7515_v18, %v7064_v50 }
 0xa1e   : > { %v7079_v40 = vmax.f32 %v7077_v13, 0.0 }
 0xa20   : > { %7081 = vst [vmem:[#allocation15] sm:$0xff] %v7079_v40 }
 0xa22   : > { %v7018_v11 = vld [vmem:[#allocation15 + $0x8] sm:$0x1] }
 0xa23   : > { %v7027_v9 = vadd.f32 %v7022_v54, %v7018_v11 }
 0xa25   : > { %7029 = vst [vmem:[#allocation15 + $0x8] sm:$0x1] %v7027_v9 }
 0xa27   : > { %v7083_v38 = vld [vmem:[#allocation15] sm:$0x1] }
 0xa28   : > { %v7086_v21 = vpack.c.bf16 %v7083_v38, %v7083_v38  ;;  %7085 = vst [vmem:[%s10340_s23] sm:$0x1] %v7083_v38 }
 0xa2a   : > { %7725 = vmatmul.mubr.bf16.vlgmr.msra.gmra.mrb[100].mxu1 %v7086_v21 }
 0xa2c   : > { %v7033_v33 = vld [vmem:[#allocation15 + $0x8] sm:$0x1] }
 0xa2d   : > { %v7042_v57 = vadd.f32 %v7037_v58, %v7033_v33 }
 0xa2f   : > { %7044 = vst [vmem:[#allocation15 + $0x8] sm:$0x1] %v7042_v57 }
 0xa36   : > { %v7048_v49 = vld [vmem:[#allocation15 + $0x8] sm:$0x1] }
 0xa37   : > { %v7057_v36 = vadd.f32 %v7052_v46, %v7048_v49 }
 0xa39   : > { %7059 = vst [vmem:[#allocation15 + $0x8] sm:$0x1] %v7057_v36 }
 0xa40   : > { %v7063_v60 = vld [vmem:[#allocation15 + $0x8] sm:$0x1] }
 0xa41   : > { %v7065_v32 = vadd.f32 %v7063_v60, %v7061_v42 }
 0xa43   : > { %7067 = vst [vmem:[#allocation15 + $0x8] sm:$0x1] %v7065_v32 }
 0xa4a   : > { %v7069_v41 = vld [vmem:[#allocation15 + $0x8] sm:$0x1] }
 0xa4b   : > { %v7078_v31 = vadd.f32 %v7515_v18, %v7069_v41 }
 0xa4d   : > { %v7080_v15 = vmax.f32 %v7078_v31, 0.0 }
 0xa4f   : > { %7082 = vst [vmem:[#allocation15 + $0x8] sm:$0x1] %v7080_v15 }
 0xafd   : > { %v7186_v37 = vpop.f32.mrb[100].mxu1 }
 0xafe   : > { %v7187_v12 = vadd.f32 %v7186_v37, %v7103_v62  ;;  %v7726_v29 = vpop.f32.mrb[101].mxu1 }
 0xaff   : > { %v7189_v14 = vpop.f32.mrb[102].mxu1 }
 0xb00   : > { %v7192_v44 = vmax.f32 %v7187_v12, 0.0  ;;  %v7727_v59 = vpop.f32.mrb[103].mxu1 }
 0xb02   : > { %v7193_v10 = vpack.c.bf16 %v7192_v44, %v7192_v44 }
 0xb04   : > { %7733 = vmatmul.mubr.msk.bf16.vlgmr.msra.gmra.mrb[104].mxu0 %vm5530_vm14, %v7193_v10 }
 0xb05   : > { %7737 = vmatpush3.bf16.msra.mxu0 %v7262_v48  ;;  %7738 = vmatprep.mubr.msk.bf16.mxu0 %vm7947_vm1, %v7946_v2 }
 0xbd7   : > { %v7248_v45 = vpop.f32.mrb[104].mxu0 }
 0xbd8   : > { %v7249_v6 = vadd.f32 %v7248_v45, %v7198_v30  ;;  %v7734_v4 = vpop.f32.mrb[105].mxu0 }
 0xbd9   : > { %v7251_v25 = vpop.f32.mrb[106].mxu0 }
 0xbda   : > { %v7254_v5 = vmax.f32 %v7249_v6, 0.0  ;;  %v7735_v35 = vpop.f32.mrb[107].mxu0 }
 0xbdc   : > { %v7255_v20 = vpack.c.bf16 %v7254_v5, %v7254_v5 }
 0xbde   : > { %7739 = vmatmul.mubr.msk.bf16.vlgmr.msra.gmra.mrb[108].mxu0 %vm655_vm2, %v7255_v20 }
 0xbdf   : > { %7895 = shalt.err (!%p7892_p3)
}
 0xbe0   : > { %s7896_s22 = scalar_lea.hbm %s10365_s3, 16  ;;  %s7900_s16 = scalar_lea.hbm %s10501_s20, 32 }
 0xbe1   : > { %p7897_p4 = scmp.ne.s32.totalorder %s10365_s3, %s7896_s22  ;;  %p7901_p9 = scmp.lt.u32.totalorder %s10365_s3, %s10501_s20 }
 0xbe2   : > { %p7902_p10 = scmp.lt.u32.totalorder %s7900_s16, %s7896_s22  ;;  %p7904_p12 = scmp.lt.u32.totalorder %s7896_s22, %s10365_s3 }
 0xbe3   : > { %p7898_p7 = pnand %p7897_p4, %p8097_p5 }
 0xbe4   : > { %p7903_p11 = por %p7902_p10, %p7901_p9 }
 0xbe5   : > { %p7899_p8 = pneg %p7898_p7 }
 0xbe6   : > { %p7905_p13 = por %p7904_p12, %p7903_p11 }
 0xbe8   : > { %p7906_p0 = pnand %p7905_p13, %p7899_p8 }
 0xbea   : > { %7909 = shalt.err (!%p7906_p0)
}
 0xbeb   : > { %s10502_s17 = sld [smem:[#allocation28_spill]]  ;;  %v7257_v2 = vld [vmem:[#allocation16] sm:$0x1]  ;;  %s10503_s0 = sld [smem:[#allocation36_spill]]  ;;  %vm7304_vm0 = vcmask 0  }
 0xbec   : > { %7743 = dma.vmem_to_hbm [thread:$0]  (%p8097_p5), %s7326_s1, 16, %s10365_s3, %s7310_s28  }
 0xbf1   : > { %s583_s2 = scalar_lea.vmem %s10503_s0, %s10502_s17 }
 0xcb1   : > { %v7298_v23 = vpop.f32.mrb[108].mxu0 }
 0xcb2   : > { %v7299_v8 = vadd.f32 %v7298_v23, %v7257_v2  ;;  %v7740_v61 = vpop.f32.mrb[109].mxu0 }
 0xcb3   : > { %v7301_v54 = vpop.f32.mrb[110].mxu0 }
 0xcb4   : > { %7305 = vst.msk [vmem:[%s583_s2] sm:$0x1] %vm7304_vm0, %v7299_v8  ;;  %v7741_v22 = vpop.f32.mrb[111].mxu0 }
 0xcb5 PF: > { %s10504_s5 = sld [smem:[#allocation22_spill]]  ;;  %s10505_s25 = sld [smem:[#allocation20_spill]] }
 0xcbb   : > { %p7749_p1 = scmp.ge.s32.totalorder %s10504_s5, 2  ;;  %s7343_s29 = sand.u32 1, %s10505_s25  }
 0xcbc   : > { %s7344_s3 = scalar_lea.sflag [#allocation18], %s7343_s29 }
 0xcbd   : > { %p7746_p5 = pnand %p7749_p1, %p8101_p6 }
 0xcbf   : > { %7927 = dma.done.wait (!%p7746_p5), %s7344_s3, 16  }
 0xcc0   : > { %7929 = vsyncadd (!%p7746_p5), %s7344_s3, 4294967280  ;;  %s10507_s19 = sld [smem:[#allocation24_spill]]  ;;  %s10508_s1 = sld [smem:[#allocation21_spill]] }
 0xcc1   : > { %s10509_s0 = sld [smem:[#allocation25_spill]]  ;;  %s10510_s29 = smov %s7936_s30 }
 0xcc6   : > { %p31_p2 = scmp.ge.s32.totalorder %s10507_s19, 4   ;;  %s10511_s30 = smov %s10508_s1 }
 0xcc8   :  { %33 = sbr.rel (!%p31_p2) target bundleno = 13 (0xd), region = 188 }
 0xccf   :  { %7348 = vsyncpa [#allocation18], 1 }
 0xcd0   :  { %7350 = vsyncpa [#allocation18 + $0x1], 1 }

</bundles_post_ra>
